<compile_context>
chip_gen: v7x
topology: tpu7x:2x2x1
jax: 0.10.0
libtpu: 0.0.40
codegen_flags: <defaults>
</compile_context>

<pallas_src>
import math
from functools import partial

import jax
import jax.numpy as jnp
from jax.experimental import pallas as pl
from jax.experimental.pallas import tpu as pltpu


def _encoder_kernel(x_ref, adj_bias_ref, pool_ref,
                    w0_ref, wrest_ref, b_ref, bn_scale_ref, bn_shift_ref,
                    pooled_ref, *, num_layers, num_heads, head_dim, selected):
    H, d = num_heads, head_dim
    HD = H * d
    N = x_ref.shape[0]
    mxu_dtype = w0_ref.dtype             # bf16 weights => bf16 MXU operands

    adj_bias = adj_bias_ref[...]         # [N, N] bf16: 0 where edge j->i, -1e30 elsewhere
    pool = pool_ref[...]                 # [G, N] mean-pool matrix (f32)
    h = x_ref[...]                       # node features stay resident across all layers

    slot = 0
    for layer in range(num_layers):      # static unroll over layers
        w_all = w0_ref[...] if layer == 0 else wrest_ref[layer - 1]     # [C_in, 4HD] bf16
        # Fused Q|K|V|skip projection (1/sqrt(d) folded into Q host-side),
        # bf16 operands, f32 accumulation.
        proj = jnp.dot(h.astype(mxu_dtype), w_all,
                       preferred_element_type=jnp.float32) + b_ref[layer]  # [N, 4HD] f32

        # Single reshape + major-dim transpose to batched-head layout [4H, N, d];
        # q/k/v/skip are cheap leading-dim slices (no 8-lane extracts, no concat).
        ph = jnp.transpose(proj.reshape(N, 4 * H, d), (1, 0, 2))
        qh = ph[0 * H:1 * H].astype(mxu_dtype)        # [H, N, d]
        kh = ph[1 * H:2 * H].astype(mxu_dtype)
        vh = ph[2 * H:3 * H].astype(mxu_dtype)
        skip = ph[3 * H:4 * H]                        # [H, N, d] f32 (residual kept f32)

        # Batched-head attention scores + additive edge mask.
        s = jnp.einsum('hqd,hkd->hqk', qh, kh,
                       preferred_element_type=jnp.float32)               # [H, N, N]
        s = s + adj_bias
        # Clamped row max: masked entries underflow exp to exactly 0, and a
        # fully-masked (isolated) row gives denom == 0 -> pure skip path.
        m = jnp.maximum(jnp.max(s, axis=-1, keepdims=True), 0.0)
        p = jnp.exp(s - m)                                               # f32
        denom = jnp.sum(p, axis=-1, keepdims=True)                       # [H, N, 1]
        # Deferred normalization: unnormalized P.V, then one reciprocal per row.
        out = jnp.einsum('hqk,hkd->hqd', p.astype(mxu_dtype), vh,
                         preferred_element_type=jnp.float32)             # [H, N, d]
        inv = pl.reciprocal(jnp.where(denom > 0.0, denom, 1.0), approx=True)
        y3 = out * inv + skip                                            # [H, N, d]

        # Back to [N, HD]; folded eval BatchNorm + ReLU (Dropout = identity).
        y = jnp.transpose(y3, (1, 0, 2)).reshape(N, HD)
        y = y * bn_scale_ref[layer] + bn_shift_ref[layer]
        h = jnp.maximum(y, 0.0)

        if layer in selected:
            # Incremental pooled accumulation straight into the VMEM-resident
            # output slab; final HBM store is one lane-dense [G, n_sel*HD] DMA.
            pooled_ref[:, slot * HD:(slot + 1) * HD] = jnp.dot(
                pool, h, preferred_element_type=jnp.float32)
            slot += 1


@partial(jax.jit, static_argnames=("num_heads", "head_dim", "selected",
                                   "num_graphs", "num_layers"))
def graph_transformer_encoder(x, edge_index, batch,
                              w0, wrest, b_all, bn_scale, bn_shift,
                              *, num_heads, head_dim, selected,
                              num_graphs, num_layers):
    N, C0 = x.shape
    HD = num_heads * head_dim
    n_sel = sum(1 for i in range(num_layers) if i in selected)

    # Additive edge mask adj_bias[dst, src] = 0 if edge src->dst else -1e30,
    # stored in bf16 (halves the O(N^2) VMEM footprint).
    # Note: duplicate edges collapse to a single 0 entry (PyG's scatter-softmax
    # would weight a multi-edge twice); only matters for multigraphs.
    src, dst = edge_index[0], edge_index[1]
    adj_bias = (jnp.full((N, N), -1e30, jnp.float32)
                .at[dst, src].set(0.0).astype(jnp.bfloat16))

    # Mean-pool matrix [G, N]: row g = 1/|graph g| on its nodes.
    onehot = (batch[None, :] == jnp.arange(num_graphs)[:, None]).astype(jnp.float32)
    counts = jnp.maximum(onehot.sum(axis=1, keepdims=True), 1.0)
    pool_mat = onehot / counts

    # Advisory cost estimate (static Python ints).
    proj_flops = 2 * N * C0 * 4 * HD + (num_layers - 1) * 2 * N * HD * 4 * HD
    attn_flops = num_layers * 2 * (2 * num_heads * N * N * head_dim)
    pool_flops = n_sel * 2 * num_graphs * N * HD
    transcendentals = num_layers * num_heads * (N * N + N)
    bytes_accessed = (N * C0 * 4 + N * N * 2 + num_graphs * N * 4
                      + C0 * 4 * HD * 2 + max(num_layers - 1, 1) * HD * 4 * HD * 2
                      + num_layers * 4 * HD * 4 + 2 * num_layers * HD * 4
                      + num_graphs * n_sel * HD * 4)

    kernel = partial(_encoder_kernel, num_layers=num_layers,
                     num_heads=num_heads, head_dim=head_dim,
                     selected=tuple(selected))
    vm = pl.BlockSpec(memory_space=pltpu.MemorySpace.VMEM)
    return pl.pallas_call(
        kernel,
        out_shape=jax.ShapeDtypeStruct((num_graphs, n_sel * HD), jnp.float32),
        in_specs=[vm] * 8,
        out_specs=vm,
        compiler_params=pltpu.CompilerParams(vmem_limit_bytes=32 * 1024 * 1024),
        cost_estimate=pl.CostEstimate(flops=int(proj_flops + attn_flops + pool_flops),
                                      transcendentals=int(transcendentals),
                                      bytes_accessed=int(bytes_accessed)),
    )(x, adj_bias, pool_mat, w0, wrest, b_all, bn_scale, bn_shift)


def select_layer_indices(num_layers, num_selected):
    if num_layers >= 10:
        return [0, 1, 2, 3, 4, 5, 7, 9]
    step = max(1, num_layers // num_selected)
    idx = list(range(0, min(num_layers, num_selected * step), step))
    while len(idx) < num_selected:
        idx.append(num_layers - 1)
    return idx[:num_selected]


def init_layer_params(key, c_in, hd):
    """Raw (PyTorch-style) parameters for one layer."""
    ks = jax.random.split(key, 12)
    def w(k, cin):
        return jax.random.normal(k, (cin, hd), jnp.float32) / jnp.sqrt(float(cin))
    def b(k):
        return jax.random.normal(k, (1, hd), jnp.float32) * 0.01
    wq, bq = w(ks[0], c_in), b(ks[1])
    wk, bk = w(ks[2], c_in), b(ks[3])
    wv, bv = w(ks[4], c_in), b(ks[5])
    ws, bs = w(ks[6], c_in), b(ks[7])
    gamma = 1.0 + 0.1 * jax.random.normal(ks[8], (1, hd), jnp.float32)
    beta = 0.1 * jax.random.normal(ks[9], (1, hd), jnp.float32)
    running_mean = jnp.zeros((1, hd), jnp.float32)
    running_var = jnp.ones((1, hd), jnp.float32)
    return (wq, bq, wk, bk, wv, bv, ws, bs, gamma, beta, running_mean, running_var)


def prepare_layer_params(layer_params, head_dim, mxu_dtype=jnp.bfloat16):
    """Host-side fusion/folding of raw params into kernel-friendly arrays."""
    scale = 1.0 / math.sqrt(head_dim)
    w0 = None
    wrest, b_list, sc_list, sh_list = [], [], [], []
    for i, (wq, bq, wk, bk, wv, bv, ws, bs,
            gamma, beta, mean, var) in enumerate(layer_params):
        # fold 1/sqrt(d) into Q; fuse Q|K|V|skip along lanes; bf16 for the MXU
        w_all = jnp.concatenate([wq * scale, wk, wv, ws], axis=1).astype(mxu_dtype)
        b_all = jnp.concatenate([bq * scale, bk, bv, bs], axis=1)      # [1, 4*HD] f32
        bn_sc = gamma * jax.lax.rsqrt(var + 1e-5)                      # [1, HD]
        bn_sh = beta - mean * bn_sc
        if i == 0:
            w0 = w_all
        else:
            wrest.append(w_all)
        b_list.append(b_all)
        sc_list.append(bn_sc)
        sh_list.append(bn_sh)
    if wrest:
        wrest = jnp.stack(wrest, axis=0)                  # [L-1, HD, 4*HD]
    else:
        wrest = jnp.zeros((1,) + w0.shape, w0.dtype)      # placeholder (L == 1)
    return (w0, wrest, jnp.stack(b_list, 0),              # [L, 1, 4*HD]
            jnp.stack(sc_list, 0), jnp.stack(sh_list, 0))  # [L, 1, HD]


if __name__ == "__main__":
    # small config: num_node_features=16, hidden_dim=8, heads=4, layers=8, selected=8
    num_node_features = 16
    hidden_dim = 8
    num_heads = 4
    num_layers = 8
    num_selected_layers = 8
    HD = hidden_dim * num_heads

    selected = tuple(select_layer_indices(num_layers, num_selected_layers))

    key = jax.random.PRNGKey(0)
    k_x, k_p = jax.random.split(key)

    # two graphs of 8 nodes each; bidirectional ring edges within each graph
    N = 16
    num_graphs = 2
    batch = jnp.array([0] * 8 + [1] * 8, dtype=jnp.int32)
    src_list, dst_list = [], []
    for g in range(num_graphs):
        base = 8 * g
        for n in range(8):
            a, b = base + n, base + (n + 1) % 8
            src_list += [a, b]
            dst_list += [b, a]
    edge_index = jnp.array([src_list, dst_list], dtype=jnp.int32)   # [2, 32]

    x = jax.random.normal(k_x, (N, num_node_features), jnp.float32)

    layer_params = []
    pkeys = jax.random.split(k_p, num_layers)
    for i in range(num_layers):
        c_in = num_node_features if i == 0 else HD
        layer_params.append(init_layer_params(pkeys[i], c_in, HD))

    w0, wrest, b_all, bn_scale, bn_shift = prepare_layer_params(
        layer_params, head_dim=hidden_dim)

    out = graph_transformer_encoder(
        x, edge_index, batch, w0, wrest, b_all, bn_scale, bn_shift,
        num_heads=num_heads, head_dim=hidden_dim, selected=selected,
        num_graphs=num_graphs, num_layers=num_layers)
    out = jax.block_until_ready(out)
    assert out.shape == (num_graphs, num_selected_layers * HD), out.shape
    assert bool(jnp.all(jnp.isfinite(out)))
    print("KERNEL_OK")
</pallas_src>

<mosaic_0001>
module attributes {stable_mosaic.version = 11 : i64} {
  func.func @_encoder_kernel(%arg0: memref<16x16xf32, #tpu.memory_space<vmem>>, %arg1: memref<16x16xbf16, #tpu.memory_space<vmem>>, %arg2: memref<2x16xf32, #tpu.memory_space<vmem>>, %arg3: memref<16x128xbf16, #tpu.memory_space<vmem>>, %arg4: memref<7x32x128xbf16, #tpu.memory_space<vmem>>, %arg5: memref<8x1x128xf32, #tpu.memory_space<vmem>>, %arg6: memref<8x1x32xf32, #tpu.memory_space<vmem>>, %arg7: memref<8x1x32xf32, #tpu.memory_space<vmem>>, %arg8: memref<2x256xf32, #tpu.memory_space<vmem>>) attributes {dimension_semantics = [], scalar_prefetch = 0 : i64, scratch_operands = 0 : i64, tpu.core_type = #tpu.core_type<tc>} {
    %c0 = arith.constant 0 : index
    %c0_0 = arith.constant 0 : index
    %0 = vector.load %arg1[%c0, %c0_0] : memref<16x16xbf16, #tpu.memory_space<vmem>>, vector<16x16xbf16>
    %c0_1 = arith.constant 0 : index
    %c0_2 = arith.constant 0 : index
    %1 = vector.load %arg2[%c0_1, %c0_2] : memref<2x16xf32, #tpu.memory_space<vmem>>, vector<2x16xf32>
    %c0_3 = arith.constant 0 : index
    %c0_4 = arith.constant 0 : index
    %2 = vector.load %arg0[%c0_3, %c0_4] : memref<16x16xf32, #tpu.memory_space<vmem>>, vector<16x16xf32>
    %c0_5 = arith.constant 0 : index
    %c0_6 = arith.constant 0 : index
    %3 = vector.load %arg3[%c0_5, %c0_6] : memref<16x128xbf16, #tpu.memory_space<vmem>>, vector<16x128xbf16>
    %4 = arith.truncf %2 : vector<16x16xf32> to vector<16x16xbf16>
    %cst = arith.constant dense<0.000000e+00> : vector<16x128xf32>
    %5 = tpu.matmul %4, %3, %cst {dimension_numbers = #tpu.dot_dimension_numbers<[1], [0], [0], [1], [0, 0, 1, 1], [], []>} : vector<16x16xbf16>, vector<16x128xbf16>, vector<16x128xf32> -> vector<16x128xf32>
    %c0_7 = arith.constant 0 : index
    %c0_8 = arith.constant 0 : index
    %c0_9 = arith.constant 0 : index
    %6 = vector.load %arg5[%c0_7, %c0_8, %c0_9] : memref<8x1x128xf32, #tpu.memory_space<vmem>>, vector<1x1x128xf32>
    %7 = vector.shape_cast %6 : vector<1x1x128xf32> to vector<1x128xf32>
    %8 = vector.broadcast %7 : vector<1x128xf32> to vector<16x128xf32>
    %9 = arith.addf %5, %8 : vector<16x128xf32>
    %10 = vector.shape_cast %9 : vector<16x128xf32> to vector<16x16x8xf32>
    %11 = tpu.transpose %10, [1, 0, 2] : vector<16x16x8xf32> -> vector<16x16x8xf32>
    %12 = vector.extract_strided_slice %11 {offsets = [0, 0, 0], sizes = [4, 16, 8], strides = [1, 1, 1]} : vector<16x16x8xf32> to vector<4x16x8xf32>
    %13 = arith.truncf %12 : vector<4x16x8xf32> to vector<4x16x8xbf16>
    %14 = vector.extract_strided_slice %11 {offsets = [4, 0, 0], sizes = [4, 16, 8], strides = [1, 1, 1]} : vector<16x16x8xf32> to vector<4x16x8xf32>
    %15 = arith.truncf %14 : vector<4x16x8xf32> to vector<4x16x8xbf16>
    %16 = vector.extract_strided_slice %11 {offsets = [8, 0, 0], sizes = [4, 16, 8], strides = [1, 1, 1]} : vector<16x16x8xf32> to vector<4x16x8xf32>
    %17 = arith.truncf %16 : vector<4x16x8xf32> to vector<4x16x8xbf16>
    %18 = vector.extract_strided_slice %11 {offsets = [12, 0, 0], sizes = [4, 16, 8], strides = [1, 1, 1]} : vector<16x16x8xf32> to vector<4x16x8xf32>
    "tpu.trace_start"() <{level = 10 : i32, message = "hqd,hkd->hqk"}> : () -> ()
    %cst_10 = arith.constant dense<0.000000e+00> : vector<4x16x16xf32>
    %19 = tpu.matmul %13, %15, %cst_10 {dimension_numbers = #tpu.dot_dimension_numbers<[2], [2], [1], [1], [0, 0, 0, 1, 1, 1], [0], [0]>} : vector<4x16x8xbf16>, vector<4x16x8xbf16>, vector<4x16x16xf32> -> vector<4x16x16xf32>
    "tpu.trace_stop"() : () -> ()
    %20 = arith.extf %0 : vector<16x16xbf16> to vector<16x16xf32>
    %21 = vector.shape_cast %20 : vector<16x16xf32> to vector<1x16x16xf32>
    %22 = vector.broadcast %21 : vector<1x16x16xf32> to vector<4x16x16xf32>
    %23 = arith.addf %19, %22 : vector<4x16x16xf32>
    %cst_11 = arith.constant dense<0xFF800000> : vector<4x16xf32>
    %24 = vector.multi_reduction <maximumf>, %23, %cst_11 [2] : vector<4x16x16xf32> to vector<4x16xf32>
    %25 = vector.shape_cast %24 : vector<4x16xf32> to vector<4x16x1xf32>
    %cst_12 = arith.constant 0.000000e+00 : f32
    %26 = vector.broadcast %cst_12 : f32 to vector<4x16x1xf32>
    %27 = arith.maximumf %25, %26 : vector<4x16x1xf32>
    %28 = vector.broadcast %27 : vector<4x16x1xf32> to vector<4x16x16xf32>
    %29 = arith.subf %23, %28 : vector<4x16x16xf32>
    %30 = math.exp %29 : vector<4x16x16xf32>
    %cst_13 = arith.constant dense<0.000000e+00> : vector<4x16xf32>
    %31 = vector.multi_reduction <add>, %30, %cst_13 [2] : vector<4x16x16xf32> to vector<4x16xf32>
    %32 = vector.shape_cast %31 : vector<4x16xf32> to vector<4x16x1xf32>
    %33 = arith.truncf %30 : vector<4x16x16xf32> to vector<4x16x16xbf16>
    "tpu.trace_start"() <{level = 10 : i32, message = "hqk,hkd->hqd"}> : () -> ()
    %cst_14 = arith.constant dense<0.000000e+00> : vector<4x16x8xf32>
    %34 = tpu.matmul %33, %17, %cst_14 {dimension_numbers = #tpu.dot_dimension_numbers<[2], [1], [1], [2], [0, 0, 0, 1, 1, 2], [0], [0]>} : vector<4x16x16xbf16>, vector<4x16x8xbf16>, vector<4x16x8xf32> -> vector<4x16x8xf32>
    %cst_15 = arith.constant 0.000000e+00 : f32
    "tpu.trace_stop"() : () -> ()
    %35 = vector.broadcast %cst_15 : f32 to vector<4x16x1xf32>
    %36 = arith.cmpf ogt, %32, %35 : vector<4x16x1xf32>
    %cst_16 = arith.constant 1.000000e+00 : f32
    %37 = vector.broadcast %cst_16 : f32 to vector<4x16x1xf32>
    %38 = arith.select %36, %32, %37 : vector<4x16x1xi1>, vector<4x16x1xf32>
    %39 = tpu.reciprocal %38 {approx = true} : vector<4x16x1xf32> -> vector<4x16x1xf32>
    %40 = vector.broadcast %39 : vector<4x16x1xf32> to vector<4x16x8xf32>
    %41 = arith.mulf %34, %40 : vector<4x16x8xf32>
    %42 = arith.addf %41, %18 : vector<4x16x8xf32>
    %43 = tpu.transpose %42, [1, 0, 2] : vector<4x16x8xf32> -> vector<16x4x8xf32>
    %44 = vector.shape_cast %43 : vector<16x4x8xf32> to vector<16x32xf32>
    %c0_17 = arith.constant 0 : index
    %c0_18 = arith.constant 0 : index
    %c0_19 = arith.constant 0 : index
    %45 = vector.load %arg6[%c0_17, %c0_18, %c0_19] : memref<8x1x32xf32, #tpu.memory_space<vmem>>, vector<1x1x32xf32>
    %46 = vector.shape_cast %45 : vector<1x1x32xf32> to vector<1x32xf32>
    %47 = vector.broadcast %46 : vector<1x32xf32> to vector<16x32xf32>
    %48 = arith.mulf %44, %47 : vector<16x32xf32>
    %c0_20 = arith.constant 0 : index
    %c0_21 = arith.constant 0 : index
    %c0_22 = arith.constant 0 : index
    %49 = vector.load %arg7[%c0_20, %c0_21, %c0_22] : memref<8x1x32xf32, #tpu.memory_space<vmem>>, vector<1x1x32xf32>
    %50 = vector.shape_cast %49 : vector<1x1x32xf32> to vector<1x32xf32>
    %51 = vector.broadcast %50 : vector<1x32xf32> to vector<16x32xf32>
    %52 = arith.addf %48, %51 : vector<16x32xf32>
    %cst_23 = arith.constant 0.000000e+00 : f32
    %53 = vector.broadcast %cst_23 : f32 to vector<16x32xf32>
    %54 = arith.maximumf %52, %53 : vector<16x32xf32>
    %cst_24 = arith.constant dense<0.000000e+00> : vector<2x32xf32>
    %55 = tpu.matmul %1, %54, %cst_24 {dimension_numbers = #tpu.dot_dimension_numbers<[1], [0], [0], [1], [0, 0, 1, 1], [], []>} : vector<2x16xf32>, vector<16x32xf32>, vector<2x32xf32> -> vector<2x32xf32>
    %c0_25 = arith.constant 0 : index
    %c0_26 = arith.constant 0 : index
    %56 = vector.load %arg8[%c0_25, %c0_26] : memref<2x256xf32, #tpu.memory_space<vmem>>, vector<2x32xf32>
    tpu.vector_store %arg8[%c0_25, %c0_26], %55 {strides = array<i32>} : memref<2x256xf32, #tpu.memory_space<vmem>>, vector<2x32xf32>,
    %c0_27 = arith.constant 0 : index
    %c0_28 = arith.constant 0 : index
    %c0_29 = arith.constant 0 : index
    %57 = vector.load %arg4[%c0_27, %c0_28, %c0_29] : memref<7x32x128xbf16, #tpu.memory_space<vmem>>, vector<1x32x128xbf16>
    %58 = vector.shape_cast %57 : vector<1x32x128xbf16> to vector<32x128xbf16>
    %59 = arith.truncf %54 : vector<16x32xf32> to vector<16x32xbf16>
    %cst_30 = arith.constant dense<0.000000e+00> : vector<16x128xf32>
    %60 = tpu.matmul %59, %58, %cst_30 {dimension_numbers = #tpu.dot_dimension_numbers<[1], [0], [0], [1], [0, 0, 1, 1], [], []>} : vector<16x32xbf16>, vector<32x128xbf16>, vector<16x128xf32> -> vector<16x128xf32>
    %c1 = arith.constant 1 : index
    %c0_31 = arith.constant 0 : index
    %c0_32 = arith.constant 0 : index
    %61 = vector.load %arg5[%c1, %c0_31, %c0_32] : memref<8x1x128xf32, #tpu.memory_space<vmem>>, vector<1x1x128xf32>
    %62 = vector.shape_cast %61 : vector<1x1x128xf32> to vector<1x128xf32>
    %63 = vector.broadcast %62 : vector<1x128xf32> to vector<16x128xf32>
    %64 = arith.addf %60, %63 : vector<16x128xf32>
    %65 = vector.shape_cast %64 : vector<16x128xf32> to vector<16x16x8xf32>
    %66 = tpu.transpose %65, [1, 0, 2] : vector<16x16x8xf32> -> vector<16x16x8xf32>
    %67 = vector.extract_strided_slice %66 {offsets = [0, 0, 0], sizes = [4, 16, 8], strides = [1, 1, 1]} : vector<16x16x8xf32> to vector<4x16x8xf32>
    %68 = arith.truncf %67 : vector<4x16x8xf32> to vector<4x16x8xbf16>
    %69 = vector.extract_strided_slice %66 {offsets = [4, 0, 0], sizes = [4, 16, 8], strides = [1, 1, 1]} : vector<16x16x8xf32> to vector<4x16x8xf32>
    %70 = arith.truncf %69 : vector<4x16x8xf32> to vector<4x16x8xbf16>
    %71 = vector.extract_strided_slice %66 {offsets = [8, 0, 0], sizes = [4, 16, 8], strides = [1, 1, 1]} : vector<16x16x8xf32> to vector<4x16x8xf32>
    %72 = arith.truncf %71 : vector<4x16x8xf32> to vector<4x16x8xbf16>
    %73 = vector.extract_strided_slice %66 {offsets = [12, 0, 0], sizes = [4, 16, 8], strides = [1, 1, 1]} : vector<16x16x8xf32> to vector<4x16x8xf32>
    "tpu.trace_start"() <{level = 10 : i32, message = "hqd,hkd->hqk"}> : () -> ()
    %cst_33 = arith.constant dense<0.000000e+00> : vector<4x16x16xf32>
    %74 = tpu.matmul %68, %70, %cst_33 {dimension_numbers = #tpu.dot_dimension_numbers<[2], [2], [1], [1], [0, 0, 0, 1, 1, 1], [0], [0]>} : vector<4x16x8xbf16>, vector<4x16x8xbf16>, vector<4x16x16xf32> -> vector<4x16x16xf32>
    "tpu.trace_stop"() : () -> ()
    %75 = arith.extf %0 : vector<16x16xbf16> to vector<16x16xf32>
    %76 = vector.shape_cast %75 : vector<16x16xf32> to vector<1x16x16xf32>
    %77 = vector.broadcast %76 : vector<1x16x16xf32> to vector<4x16x16xf32>
    %78 = arith.addf %74, %77 : vector<4x16x16xf32>
    %cst_34 = arith.constant dense<0xFF800000> : vector<4x16xf32>
    %79 = vector.multi_reduction <maximumf>, %78, %cst_34 [2] : vector<4x16x16xf32> to vector<4x16xf32>
    %80 = vector.shape_cast %79 : vector<4x16xf32> to vector<4x16x1xf32>
    %cst_35 = arith.constant 0.000000e+00 : f32
    %81 = vector.broadcast %cst_35 : f32 to vector<4x16x1xf32>
    %82 = arith.maximumf %80, %81 : vector<4x16x1xf32>
    %83 = vector.broadcast %82 : vector<4x16x1xf32> to vector<4x16x16xf32>
    %84 = arith.subf %78, %83 : vector<4x16x16xf32>
    %85 = math.exp %84 : vector<4x16x16xf32>
    %cst_36 = arith.constant dense<0.000000e+00> : vector<4x16xf32>
    %86 = vector.multi_reduction <add>, %85, %cst_36 [2] : vector<4x16x16xf32> to vector<4x16xf32>
    %87 = vector.shape_cast %86 : vector<4x16xf32> to vector<4x16x1xf32>
    %88 = arith.truncf %85 : vector<4x16x16xf32> to vector<4x16x16xbf16>
    "tpu.trace_start"() <{level = 10 : i32, message = "hqk,hkd->hqd"}> : () -> ()
    %cst_37 = arith.constant dense<0.000000e+00> : vector<4x16x8xf32>
    %89 = tpu.matmul %88, %72, %cst_37 {dimension_numbers = #tpu.dot_dimension_numbers<[2], [1], [1], [2], [0, 0, 0, 1, 1, 2], [0], [0]>} : vector<4x16x16xbf16>, vector<4x16x8xbf16>, vector<4x16x8xf32> -> vector<4x16x8xf32>
    %cst_38 = arith.constant 0.000000e+00 : f32
    "tpu.trace_stop"() : () -> ()
    %90 = vector.broadcast %cst_38 : f32 to vector<4x16x1xf32>
    %91 = arith.cmpf ogt, %87, %90 : vector<4x16x1xf32>
    %cst_39 = arith.constant 1.000000e+00 : f32
    %92 = vector.broadcast %cst_39 : f32 to vector<4x16x1xf32>
    %93 = arith.select %91, %87, %92 : vector<4x16x1xi1>, vector<4x16x1xf32>
    %94 = tpu.reciprocal %93 {approx = true} : vector<4x16x1xf32> -> vector<4x16x1xf32>
    %95 = vector.broadcast %94 : vector<4x16x1xf32> to vector<4x16x8xf32>
    %96 = arith.mulf %89, %95 : vector<4x16x8xf32>
    %97 = arith.addf %96, %73 : vector<4x16x8xf32>
    %98 = tpu.transpose %97, [1, 0, 2] : vector<4x16x8xf32> -> vector<16x4x8xf32>
    %99 = vector.shape_cast %98 : vector<16x4x8xf32> to vector<16x32xf32>
    %c1_40 = arith.constant 1 : index
    %c0_41 = arith.constant 0 : index
    %c0_42 = arith.constant 0 : index
    %100 = vector.load %arg6[%c1_40, %c0_41, %c0_42] : memref<8x1x32xf32, #tpu.memory_space<vmem>>, vector<1x1x32xf32>
    %101 = vector.shape_cast %100 : vector<1x1x32xf32> to vector<1x32xf32>
    %102 = vector.broadcast %101 : vector<1x32xf32> to vector<16x32xf32>
    %103 = arith.mulf %99, %102 : vector<16x32xf32>
    %c1_43 = arith.constant 1 : index
    %c0_44 = arith.constant 0 : index
    %c0_45 = arith.constant 0 : index
    %104 = vector.load %arg7[%c1_43, %c0_44, %c0_45] : memref<8x1x32xf32, #tpu.memory_space<vmem>>, vector<1x1x32xf32>
    %105 = vector.shape_cast %104 : vector<1x1x32xf32> to vector<1x32xf32>
    %106 = vector.broadcast %105 : vector<1x32xf32> to vector<16x32xf32>
    %107 = arith.addf %103, %106 : vector<16x32xf32>
    %cst_46 = arith.constant 0.000000e+00 : f32
    %108 = vector.broadcast %cst_46 : f32 to vector<16x32xf32>
    %109 = arith.maximumf %107, %108 : vector<16x32xf32>
    %cst_47 = arith.constant dense<0.000000e+00> : vector<2x32xf32>
    %110 = tpu.matmul %1, %109, %cst_47 {dimension_numbers = #tpu.dot_dimension_numbers<[1], [0], [0], [1], [0, 0, 1, 1], [], []>} : vector<2x16xf32>, vector<16x32xf32>, vector<2x32xf32> -> vector<2x32xf32>
    %c0_48 = arith.constant 0 : index
    %c32 = arith.constant 32 : index
    %111 = vector.load %arg8[%c0_48, %c32] : memref<2x256xf32, #tpu.memory_space<vmem>>, vector<2x32xf32>
    tpu.vector_store %arg8[%c0_48, %c32], %110 {strides = array<i32>} : memref<2x256xf32, #tpu.memory_space<vmem>>, vector<2x32xf32>,
    %c1_49 = arith.constant 1 : index
    %c0_50 = arith.constant 0 : index
    %c0_51 = arith.constant 0 : index
    %112 = vector.load %arg4[%c1_49, %c0_50, %c0_51] : memref<7x32x128xbf16, #tpu.memory_space<vmem>>, vector<1x32x128xbf16>
    %113 = vector.shape_cast %112 : vector<1x32x128xbf16> to vector<32x128xbf16>
    %114 = arith.truncf %109 : vector<16x32xf32> to vector<16x32xbf16>
    %cst_52 = arith.constant dense<0.000000e+00> : vector<16x128xf32>
    %115 = tpu.matmul %114, %113, %cst_52 {dimension_numbers = #tpu.dot_dimension_numbers<[1], [0], [0], [1], [0, 0, 1, 1], [], []>} : vector<16x32xbf16>, vector<32x128xbf16>, vector<16x128xf32> -> vector<16x128xf32>
    %c2 = arith.constant 2 : index
    %c0_53 = arith.constant 0 : index
    %c0_54 = arith.constant 0 : index
    %116 = vector.load %arg5[%c2, %c0_53, %c0_54] : memref<8x1x128xf32, #tpu.memory_space<vmem>>, vector<1x1x128xf32>
    %117 = vector.shape_cast %116 : vector<1x1x128xf32> to vector<1x128xf32>
    %118 = vector.broadcast %117 : vector<1x128xf32> to vector<16x128xf32>
    %119 = arith.addf %115, %118 : vector<16x128xf32>
    %120 = vector.shape_cast %119 : vector<16x128xf32> to vector<16x16x8xf32>
    %121 = tpu.transpose %120, [1, 0, 2] : vector<16x16x8xf32> -> vector<16x16x8xf32>
    %122 = vector.extract_strided_slice %121 {offsets = [0, 0, 0], sizes = [4, 16, 8], strides = [1, 1, 1]} : vector<16x16x8xf32> to vector<4x16x8xf32>
    %123 = arith.truncf %122 : vector<4x16x8xf32> to vector<4x16x8xbf16>
    %124 = vector.extract_strided_slice %121 {offsets = [4, 0, 0], sizes = [4, 16, 8], strides = [1, 1, 1]} : vector<16x16x8xf32> to vector<4x16x8xf32>
    %125 = arith.truncf %124 : vector<4x16x8xf32> to vector<4x16x8xbf16>
    %126 = vector.extract_strided_slice %121 {offsets = [8, 0, 0], sizes = [4, 16, 8], strides = [1, 1, 1]} : vector<16x16x8xf32> to vector<4x16x8xf32>
    %127 = arith.truncf %126 : vector<4x16x8xf32> to vector<4x16x8xbf16>
    %128 = vector.extract_strided_slice %121 {offsets = [12, 0, 0], sizes = [4, 16, 8], strides = [1, 1, 1]} : vector<16x16x8xf32> to vector<4x16x8xf32>
    "tpu.trace_start"() <{level = 10 : i32, message = "hqd,hkd->hqk"}> : () -> ()
    %cst_55 = arith.constant dense<0.000000e+00> : vector<4x16x16xf32>
    %129 = tpu.matmul %123, %125, %cst_55 {dimension_numbers = #tpu.dot_dimension_numbers<[2], [2], [1], [1], [0, 0, 0, 1, 1, 1], [0], [0]>} : vector<4x16x8xbf16>, vector<4x16x8xbf16>, vector<4x16x16xf32> -> vector<4x16x16xf32>
    "tpu.trace_stop"() : () -> ()
    %130 = arith.extf %0 : vector<16x16xbf16> to vector<16x16xf32>
    %131 = vector.shape_cast %130 : vector<16x16xf32> to vector<1x16x16xf32>
    %132 = vector.broadcast %131 : vector<1x16x16xf32> to vector<4x16x16xf32>
    %133 = arith.addf %129, %132 : vector<4x16x16xf32>
    %cst_56 = arith.constant dense<0xFF800000> : vector<4x16xf32>
    %134 = vector.multi_reduction <maximumf>, %133, %cst_56 [2] : vector<4x16x16xf32> to vector<4x16xf32>
    %135 = vector.shape_cast %134 : vector<4x16xf32> to vector<4x16x1xf32>
    %cst_57 = arith.constant 0.000000e+00 : f32
    %136 = vector.broadcast %cst_57 : f32 to vector<4x16x1xf32>
    %137 = arith.maximumf %135, %136 : vector<4x16x1xf32>
    %138 = vector.broadcast %137 : vector<4x16x1xf32> to vector<4x16x16xf32>
    %139 = arith.subf %133, %138 : vector<4x16x16xf32>
    %140 = math.exp %139 : vector<4x16x16xf32>
    %cst_58 = arith.constant dense<0.000000e+00> : vector<4x16xf32>
    %141 = vector.multi_reduction <add>, %140, %cst_58 [2] : vector<4x16x16xf32> to vector<4x16xf32>
    %142 = vector.shape_cast %141 : vector<4x16xf32> to vector<4x16x1xf32>
    %143 = arith.truncf %140 : vector<4x16x16xf32> to vector<4x16x16xbf16>
    "tpu.trace_start"() <{level = 10 : i32, message = "hqk,hkd->hqd"}> : () -> ()
    %cst_59 = arith.constant dense<0.000000e+00> : vector<4x16x8xf32>
    %144 = tpu.matmul %143, %127, %cst_59 {dimension_numbers = #tpu.dot_dimension_numbers<[2], [1], [1], [2], [0, 0, 0, 1, 1, 2], [0], [0]>} : vector<4x16x16xbf16>, vector<4x16x8xbf16>, vector<4x16x8xf32> -> vector<4x16x8xf32>
    %cst_60 = arith.constant 0.000000e+00 : f32
    "tpu.trace_stop"() : () -> ()
    %145 = vector.broadcast %cst_60 : f32 to vector<4x16x1xf32>
    %146 = arith.cmpf ogt, %142, %145 : vector<4x16x1xf32>
    %cst_61 = arith.constant 1.000000e+00 : f32
    %147 = vector.broadcast %cst_61 : f32 to vector<4x16x1xf32>
    %148 = arith.select %146, %142, %147 : vector<4x16x1xi1>, vector<4x16x1xf32>
    %149 = tpu.reciprocal %148 {approx = true} : vector<4x16x1xf32> -> vector<4x16x1xf32>
    %150 = vector.broadcast %149 : vector<4x16x1xf32> to vector<4x16x8xf32>
    %151 = arith.mulf %144, %150 : vector<4x16x8xf32>
    %152 = arith.addf %151, %128 : vector<4x16x8xf32>
    %153 = tpu.transpose %152, [1, 0, 2] : vector<4x16x8xf32> -> vector<16x4x8xf32>
    %154 = vector.shape_cast %153 : vector<16x4x8xf32> to vector<16x32xf32>
    %c2_62 = arith.constant 2 : index
    %c0_63 = arith.constant 0 : index
    %c0_64 = arith.constant 0 : index
    %155 = vector.load %arg6[%c2_62, %c0_63, %c0_64] : memref<8x1x32xf32, #tpu.memory_space<vmem>>, vector<1x1x32xf32>
    %156 = vector.shape_cast %155 : vector<1x1x32xf32> to vector<1x32xf32>
    %157 = vector.broadcast %156 : vector<1x32xf32> to vector<16x32xf32>
    %158 = arith.mulf %154, %157 : vector<16x32xf32>
    %c2_65 = arith.constant 2 : index
    %c0_66 = arith.constant 0 : index
    %c0_67 = arith.constant 0 : index
    %159 = vector.load %arg7[%c2_65, %c0_66, %c0_67] : memref<8x1x32xf32, #tpu.memory_space<vmem>>, vector<1x1x32xf32>
    %160 = vector.shape_cast %159 : vector<1x1x32xf32> to vector<1x32xf32>
    %161 = vector.broadcast %160 : vector<1x32xf32> to vector<16x32xf32>
    %162 = arith.addf %158, %161 : vector<16x32xf32>
    %cst_68 = arith.constant 0.000000e+00 : f32
    %163 = vector.broadcast %cst_68 : f32 to vector<16x32xf32>
    %164 = arith.maximumf %162, %163 : vector<16x32xf32>
    %cst_69 = arith.constant dense<0.000000e+00> : vector<2x32xf32>
    %165 = tpu.matmul %1, %164, %cst_69 {dimension_numbers = #tpu.dot_dimension_numbers<[1], [0], [0], [1], [0, 0, 1, 1], [], []>} : vector<2x16xf32>, vector<16x32xf32>, vector<2x32xf32> -> vector<2x32xf32>
    %c0_70 = arith.constant 0 : index
    %c64 = arith.constant 64 : index
    %166 = vector.load %arg8[%c0_70, %c64] : memref<2x256xf32, #tpu.memory_space<vmem>>, vector<2x32xf32>
    tpu.vector_store %arg8[%c0_70, %c64], %165 {strides = array<i32>} : memref<2x256xf32, #tpu.memory_space<vmem>>, vector<2x32xf32>,
    %c2_71 = arith.constant 2 : index
    %c0_72 = arith.constant 0 : index
    %c0_73 = arith.constant 0 : index
    %167 = vector.load %arg4[%c2_71, %c0_72, %c0_73] : memref<7x32x128xbf16, #tpu.memory_space<vmem>>, vector<1x32x128xbf16>
    %168 = vector.shape_cast %167 : vector<1x32x128xbf16> to vector<32x128xbf16>
    %169 = arith.truncf %164 : vector<16x32xf32> to vector<16x32xbf16>
    %cst_74 = arith.constant dense<0.000000e+00> : vector<16x128xf32>
    %170 = tpu.matmul %169, %168, %cst_74 {dimension_numbers = #tpu.dot_dimension_numbers<[1], [0], [0], [1], [0, 0, 1, 1], [], []>} : vector<16x32xbf16>, vector<32x128xbf16>, vector<16x128xf32> -> vector<16x128xf32>
    %c3 = arith.constant 3 : index
    %c0_75 = arith.constant 0 : index
    %c0_76 = arith.constant 0 : index
    %171 = vector.load %arg5[%c3, %c0_75, %c0_76] : memref<8x1x128xf32, #tpu.memory_space<vmem>>, vector<1x1x128xf32>
    %172 = vector.shape_cast %171 : vector<1x1x128xf32> to vector<1x128xf32>
    %173 = vector.broadcast %172 : vector<1x128xf32> to vector<16x128xf32>
    %174 = arith.addf %170, %173 : vector<16x128xf32>
    %175 = vector.shape_cast %174 : vector<16x128xf32> to vector<16x16x8xf32>
    %176 = tpu.transpose %175, [1, 0, 2] : vector<16x16x8xf32> -> vector<16x16x8xf32>
    %177 = vector.extract_strided_slice %176 {offsets = [0, 0, 0], sizes = [4, 16, 8], strides = [1, 1, 1]} : vector<16x16x8xf32> to vector<4x16x8xf32>
    %178 = arith.truncf %177 : vector<4x16x8xf32> to vector<4x16x8xbf16>
    %179 = vector.extract_strided_slice %176 {offsets = [4, 0, 0], sizes = [4, 16, 8], strides = [1, 1, 1]} : vector<16x16x8xf32> to vector<4x16x8xf32>
    %180 = arith.truncf %179 : vector<4x16x8xf32> to vector<4x16x8xbf16>
    %181 = vector.extract_strided_slice %176 {offsets = [8, 0, 0], sizes = [4, 16, 8], strides = [1, 1, 1]} : vector<16x16x8xf32> to vector<4x16x8xf32>
    %182 = arith.truncf %181 : vector<4x16x8xf32> to vector<4x16x8xbf16>
    %183 = vector.extract_strided_slice %176 {offsets = [12, 0, 0], sizes = [4, 16, 8], strides = [1, 1, 1]} : vector<16x16x8xf32> to vector<4x16x8xf32>
    "tpu.trace_start"() <{level = 10 : i32, message = "hqd,hkd->hqk"}> : () -> ()
    %cst_77 = arith.constant dense<0.000000e+00> : vector<4x16x16xf32>
    %184 = tpu.matmul %178, %180, %cst_77 {dimension_numbers = #tpu.dot_dimension_numbers<[2], [2], [1], [1], [0, 0, 0, 1, 1, 1], [0], [0]>} : vector<4x16x8xbf16>, vector<4x16x8xbf16>, vector<4x16x16xf32> -> vector<4x16x16xf32>
    "tpu.trace_stop"() : () -> ()
    %185 = arith.extf %0 : vector<16x16xbf16> to vector<16x16xf32>
    %186 = vector.shape_cast %185 : vector<16x16xf32> to vector<1x16x16xf32>
    %187 = vector.broadcast %186 : vector<1x16x16xf32> to vector<4x16x16xf32>
    %188 = arith.addf %184, %187 : vector<4x16x16xf32>
    %cst_78 = arith.constant dense<0xFF800000> : vector<4x16xf32>
    %189 = vector.multi_reduction <maximumf>, %188, %cst_78 [2] : vector<4x16x16xf32> to vector<4x16xf32>
    %190 = vector.shape_cast %189 : vector<4x16xf32> to vector<4x16x1xf32>
    %cst_79 = arith.constant 0.000000e+00 : f32
    %191 = vector.broadcast %cst_79 : f32 to vector<4x16x1xf32>
    %192 = arith.maximumf %190, %191 : vector<4x16x1xf32>
    %193 = vector.broadcast %192 : vector<4x16x1xf32> to vector<4x16x16xf32>
    %194 = arith.subf %188, %193 : vector<4x16x16xf32>
    %195 = math.exp %194 : vector<4x16x16xf32>
    %cst_80 = arith.constant dense<0.000000e+00> : vector<4x16xf32>
    %196 = vector.multi_reduction <add>, %195, %cst_80 [2] : vector<4x16x16xf32> to vector<4x16xf32>
    %197 = vector.shape_cast %196 : vector<4x16xf32> to vector<4x16x1xf32>
    %198 = arith.truncf %195 : vector<4x16x16xf32> to vector<4x16x16xbf16>
    "tpu.trace_start"() <{level = 10 : i32, message = "hqk,hkd->hqd"}> : () -> ()
    %cst_81 = arith.constant dense<0.000000e+00> : vector<4x16x8xf32>
    %199 = tpu.matmul %198, %182, %cst_81 {dimension_numbers = #tpu.dot_dimension_numbers<[2], [1], [1], [2], [0, 0, 0, 1, 1, 2], [0], [0]>} : vector<4x16x16xbf16>, vector<4x16x8xbf16>, vector<4x16x8xf32> -> vector<4x16x8xf32>
    %cst_82 = arith.constant 0.000000e+00 : f32
    "tpu.trace_stop"() : () -> ()
    %200 = vector.broadcast %cst_82 : f32 to vector<4x16x1xf32>
    %201 = arith.cmpf ogt, %197, %200 : vector<4x16x1xf32>
    %cst_83 = arith.constant 1.000000e+00 : f32
    %202 = vector.broadcast %cst_83 : f32 to vector<4x16x1xf32>
    %203 = arith.select %201, %197, %202 : vector<4x16x1xi1>, vector<4x16x1xf32>
    %204 = tpu.reciprocal %203 {approx = true} : vector<4x16x1xf32> -> vector<4x16x1xf32>
    %205 = vector.broadcast %204 : vector<4x16x1xf32> to vector<4x16x8xf32>
    %206 = arith.mulf %199, %205 : vector<4x16x8xf32>
    %207 = arith.addf %206, %183 : vector<4x16x8xf32>
    %208 = tpu.transpose %207, [1, 0, 2] : vector<4x16x8xf32> -> vector<16x4x8xf32>
    %209 = vector.shape_cast %208 : vector<16x4x8xf32> to vector<16x32xf32>
    %c3_84 = arith.constant 3 : index
    %c0_85 = arith.constant 0 : index
    %c0_86 = arith.constant 0 : index
    %210 = vector.load %arg6[%c3_84, %c0_85, %c0_86] : memref<8x1x32xf32, #tpu.memory_space<vmem>>, vector<1x1x32xf32>
    %211 = vector.shape_cast %210 : vector<1x1x32xf32> to vector<1x32xf32>
    %212 = vector.broadcast %211 : vector<1x32xf32> to vector<16x32xf32>
    %213 = arith.mulf %209, %212 : vector<16x32xf32>
    %c3_87 = arith.constant 3 : index
    %c0_88 = arith.constant 0 : index
    %c0_89 = arith.constant 0 : index
    %214 = vector.load %arg7[%c3_87, %c0_88, %c0_89] : memref<8x1x32xf32, #tpu.memory_space<vmem>>, vector<1x1x32xf32>
    %215 = vector.shape_cast %214 : vector<1x1x32xf32> to vector<1x32xf32>
    %216 = vector.broadcast %215 : vector<1x32xf32> to vector<16x32xf32>
    %217 = arith.addf %213, %216 : vector<16x32xf32>
    %cst_90 = arith.constant 0.000000e+00 : f32
    %218 = vector.broadcast %cst_90 : f32 to vector<16x32xf32>
    %219 = arith.maximumf %217, %218 : vector<16x32xf32>
    %cst_91 = arith.constant dense<0.000000e+00> : vector<2x32xf32>
    %220 = tpu.matmul %1, %219, %cst_91 {dimension_numbers = #tpu.dot_dimension_numbers<[1], [0], [0], [1], [0, 0, 1, 1], [], []>} : vector<2x16xf32>, vector<16x32xf32>, vector<2x32xf32> -> vector<2x32xf32>
    %c0_92 = arith.constant 0 : index
    %c96 = arith.constant 96 : index
    %221 = vector.load %arg8[%c0_92, %c96] : memref<2x256xf32, #tpu.memory_space<vmem>>, vector<2x32xf32>
    tpu.vector_store %arg8[%c0_92, %c96], %220 {strides = array<i32>} : memref<2x256xf32, #tpu.memory_space<vmem>>, vector<2x32xf32>,
    %c3_93 = arith.constant 3 : index
    %c0_94 = arith.constant 0 : index
    %c0_95 = arith.constant 0 : index
    %222 = vector.load %arg4[%c3_93, %c0_94, %c0_95] : memref<7x32x128xbf16, #tpu.memory_space<vmem>>, vector<1x32x128xbf16>
    %223 = vector.shape_cast %222 : vector<1x32x128xbf16> to vector<32x128xbf16>
    %224 = arith.truncf %219 : vector<16x32xf32> to vector<16x32xbf16>
    %cst_96 = arith.constant dense<0.000000e+00> : vector<16x128xf32>
    %225 = tpu.matmul %224, %223, %cst_96 {dimension_numbers = #tpu.dot_dimension_numbers<[1], [0], [0], [1], [0, 0, 1, 1], [], []>} : vector<16x32xbf16>, vector<32x128xbf16>, vector<16x128xf32> -> vector<16x128xf32>
    %c4 = arith.constant 4 : index
    %c0_97 = arith.constant 0 : index
    %c0_98 = arith.constant 0 : index
    %226 = vector.load %arg5[%c4, %c0_97, %c0_98] : memref<8x1x128xf32, #tpu.memory_space<vmem>>, vector<1x1x128xf32>
    %227 = vector.shape_cast %226 : vector<1x1x128xf32> to vector<1x128xf32>
    %228 = vector.broadcast %227 : vector<1x128xf32> to vector<16x128xf32>
    %229 = arith.addf %225, %228 : vector<16x128xf32>
    %230 = vector.shape_cast %229 : vector<16x128xf32> to vector<16x16x8xf32>
    %231 = tpu.transpose %230, [1, 0, 2] : vector<16x16x8xf32> -> vector<16x16x8xf32>
    %232 = vector.extract_strided_slice %231 {offsets = [0, 0, 0], sizes = [4, 16, 8], strides = [1, 1, 1]} : vector<16x16x8xf32> to vector<4x16x8xf32>
    %233 = arith.truncf %232 : vector<4x16x8xf32> to vector<4x16x8xbf16>
    %234 = vector.extract_strided_slice %231 {offsets = [4, 0, 0], sizes = [4, 16, 8], strides = [1, 1, 1]} : vector<16x16x8xf32> to vector<4x16x8xf32>
    %235 = arith.truncf %234 : vector<4x16x8xf32> to vector<4x16x8xbf16>
    %236 = vector.extract_strided_slice %231 {offsets = [8, 0, 0], sizes = [4, 16, 8], strides = [1, 1, 1]} : vector<16x16x8xf32> to vector<4x16x8xf32>
    %237 = arith.truncf %236 : vector<4x16x8xf32> to vector<4x16x8xbf16>
    %238 = vector.extract_strided_slice %231 {offsets = [12, 0, 0], sizes = [4, 16, 8], strides = [1, 1, 1]} : vector<16x16x8xf32> to vector<4x16x8xf32>
    "tpu.trace_start"() <{level = 10 : i32, message = "hqd,hkd->hqk"}> : () -> ()
    %cst_99 = arith.constant dense<0.000000e+00> : vector<4x16x16xf32>
    %239 = tpu.matmul %233, %235, %cst_99 {dimension_numbers = #tpu.dot_dimension_numbers<[2], [2], [1], [1], [0, 0, 0, 1, 1, 1], [0], [0]>} : vector<4x16x8xbf16>, vector<4x16x8xbf16>, vector<4x16x16xf32> -> vector<4x16x16xf32>
    "tpu.trace_stop"() : () -> ()
    %240 = arith.extf %0 : vector<16x16xbf16> to vector<16x16xf32>
    %241 = vector.shape_cast %240 : vector<16x16xf32> to vector<1x16x16xf32>
    %242 = vector.broadcast %241 : vector<1x16x16xf32> to vector<4x16x16xf32>
    %243 = arith.addf %239, %242 : vector<4x16x16xf32>
    %cst_100 = arith.constant dense<0xFF800000> : vector<4x16xf32>
    %244 = vector.multi_reduction <maximumf>, %243, %cst_100 [2] : vector<4x16x16xf32> to vector<4x16xf32>
    %245 = vector.shape_cast %244 : vector<4x16xf32> to vector<4x16x1xf32>
    %cst_101 = arith.constant 0.000000e+00 : f32
    %246 = vector.broadcast %cst_101 : f32 to vector<4x16x1xf32>
    %247 = arith.maximumf %245, %246 : vector<4x16x1xf32>
    %248 = vector.broadcast %247 : vector<4x16x1xf32> to vector<4x16x16xf32>
    %249 = arith.subf %243, %248 : vector<4x16x16xf32>
    %250 = math.exp %249 : vector<4x16x16xf32>
    %cst_102 = arith.constant dense<0.000000e+00> : vector<4x16xf32>
    %251 = vector.multi_reduction <add>, %250, %cst_102 [2] : vector<4x16x16xf32> to vector<4x16xf32>
    %252 = vector.shape_cast %251 : vector<4x16xf32> to vector<4x16x1xf32>
    %253 = arith.truncf %250 : vector<4x16x16xf32> to vector<4x16x16xbf16>
    "tpu.trace_start"() <{level = 10 : i32, message = "hqk,hkd->hqd"}> : () -> ()
    %cst_103 = arith.constant dense<0.000000e+00> : vector<4x16x8xf32>
    %254 = tpu.matmul %253, %237, %cst_103 {dimension_numbers = #tpu.dot_dimension_numbers<[2], [1], [1], [2], [0, 0, 0, 1, 1, 2], [0], [0]>} : vector<4x16x16xbf16>, vector<4x16x8xbf16>, vector<4x16x8xf32> -> vector<4x16x8xf32>
    %cst_104 = arith.constant 0.000000e+00 : f32
    "tpu.trace_stop"() : () -> ()
    %255 = vector.broadcast %cst_104 : f32 to vector<4x16x1xf32>
    %256 = arith.cmpf ogt, %252, %255 : vector<4x16x1xf32>
    %cst_105 = arith.constant 1.000000e+00 : f32
    %257 = vector.broadcast %cst_105 : f32 to vector<4x16x1xf32>
    %258 = arith.select %256, %252, %257 : vector<4x16x1xi1>, vector<4x16x1xf32>
    %259 = tpu.reciprocal %258 {approx = true} : vector<4x16x1xf32> -> vector<4x16x1xf32>
    %260 = vector.broadcast %259 : vector<4x16x1xf32> to vector<4x16x8xf32>
    %261 = arith.mulf %254, %260 : vector<4x16x8xf32>
    %262 = arith.addf %261, %238 : vector<4x16x8xf32>
    %263 = tpu.transpose %262, [1, 0, 2] : vector<4x16x8xf32> -> vector<16x4x8xf32>
    %264 = vector.shape_cast %263 : vector<16x4x8xf32> to vector<16x32xf32>
    %c4_106 = arith.constant 4 : index
    %c0_107 = arith.constant 0 : index
    %c0_108 = arith.constant 0 : index
    %265 = vector.load %arg6[%c4_106, %c0_107, %c0_108] : memref<8x1x32xf32, #tpu.memory_space<vmem>>, vector<1x1x32xf32>
    %266 = vector.shape_cast %265 : vector<1x1x32xf32> to vector<1x32xf32>
    %267 = vector.broadcast %266 : vector<1x32xf32> to vector<16x32xf32>
    %268 = arith.mulf %264, %267 : vector<16x32xf32>
    %c4_109 = arith.constant 4 : index
    %c0_110 = arith.constant 0 : index
    %c0_111 = arith.constant 0 : index
    %269 = vector.load %arg7[%c4_109, %c0_110, %c0_111] : memref<8x1x32xf32, #tpu.memory_space<vmem>>, vector<1x1x32xf32>
    %270 = vector.shape_cast %269 : vector<1x1x32xf32> to vector<1x32xf32>
    %271 = vector.broadcast %270 : vector<1x32xf32> to vector<16x32xf32>
    %272 = arith.addf %268, %271 : vector<16x32xf32>
    %cst_112 = arith.constant 0.000000e+00 : f32
    %273 = vector.broadcast %cst_112 : f32 to vector<16x32xf32>
    %274 = arith.maximumf %272, %273 : vector<16x32xf32>
    %cst_113 = arith.constant dense<0.000000e+00> : vector<2x32xf32>
    %275 = tpu.matmul %1, %274, %cst_113 {dimension_numbers = #tpu.dot_dimension_numbers<[1], [0], [0], [1], [0, 0, 1, 1], [], []>} : vector<2x16xf32>, vector<16x32xf32>, vector<2x32xf32> -> vector<2x32xf32>
    %c0_114 = arith.constant 0 : index
    %c128 = arith.constant 128 : index
    %276 = vector.load %arg8[%c0_114, %c128] : memref<2x256xf32, #tpu.memory_space<vmem>>, vector<2x32xf32>
    tpu.vector_store %arg8[%c0_114, %c128], %275 {strides = array<i32>} : memref<2x256xf32, #tpu.memory_space<vmem>>, vector<2x32xf32>,
    %c4_115 = arith.constant 4 : index
    %c0_116 = arith.constant 0 : index
    %c0_117 = arith.constant 0 : index
    %277 = vector.load %arg4[%c4_115, %c0_116, %c0_117] : memref<7x32x128xbf16, #tpu.memory_space<vmem>>, vector<1x32x128xbf16>
    %278 = vector.shape_cast %277 : vector<1x32x128xbf16> to vector<32x128xbf16>
    %279 = arith.truncf %274 : vector<16x32xf32> to vector<16x32xbf16>
    %cst_118 = arith.constant dense<0.000000e+00> : vector<16x128xf32>
    %280 = tpu.matmul %279, %278, %cst_118 {dimension_numbers = #tpu.dot_dimension_numbers<[1], [0], [0], [1], [0, 0, 1, 1], [], []>} : vector<16x32xbf16>, vector<32x128xbf16>, vector<16x128xf32> -> vector<16x128xf32>
    %c5 = arith.constant 5 : index
    %c0_119 = arith.constant 0 : index
    %c0_120 = arith.constant 0 : index
    %281 = vector.load %arg5[%c5, %c0_119, %c0_120] : memref<8x1x128xf32, #tpu.memory_space<vmem>>, vector<1x1x128xf32>
    %282 = vector.shape_cast %281 : vector<1x1x128xf32> to vector<1x128xf32>
    %283 = vector.broadcast %282 : vector<1x128xf32> to vector<16x128xf32>
    %284 = arith.addf %280, %283 : vector<16x128xf32>
    %285 = vector.shape_cast %284 : vector<16x128xf32> to vector<16x16x8xf32>
    %286 = tpu.transpose %285, [1, 0, 2] : vector<16x16x8xf32> -> vector<16x16x8xf32>
    %287 = vector.extract_strided_slice %286 {offsets = [0, 0, 0], sizes = [4, 16, 8], strides = [1, 1, 1]} : vector<16x16x8xf32> to vector<4x16x8xf32>
    %288 = arith.truncf %287 : vector<4x16x8xf32> to vector<4x16x8xbf16>
    %289 = vector.extract_strided_slice %286 {offsets = [4, 0, 0], sizes = [4, 16, 8], strides = [1, 1, 1]} : vector<16x16x8xf32> to vector<4x16x8xf32>
    %290 = arith.truncf %289 : vector<4x16x8xf32> to vector<4x16x8xbf16>
    %291 = vector.extract_strided_slice %286 {offsets = [8, 0, 0], sizes = [4, 16, 8], strides = [1, 1, 1]} : vector<16x16x8xf32> to vector<4x16x8xf32>
    %292 = arith.truncf %291 : vector<4x16x8xf32> to vector<4x16x8xbf16>
    %293 = vector.extract_strided_slice %286 {offsets = [12, 0, 0], sizes = [4, 16, 8], strides = [1, 1, 1]} : vector<16x16x8xf32> to vector<4x16x8xf32>
    "tpu.trace_start"() <{level = 10 : i32, message = "hqd,hkd->hqk"}> : () -> ()
    %cst_121 = arith.constant dense<0.000000e+00> : vector<4x16x16xf32>
    %294 = tpu.matmul %288, %290, %cst_121 {dimension_numbers = #tpu.dot_dimension_numbers<[2], [2], [1], [1], [0, 0, 0, 1, 1, 1], [0], [0]>} : vector<4x16x8xbf16>, vector<4x16x8xbf16>, vector<4x16x16xf32> -> vector<4x16x16xf32>
    "tpu.trace_stop"() : () -> ()
    %295 = arith.extf %0 : vector<16x16xbf16> to vector<16x16xf32>
    %296 = vector.shape_cast %295 : vector<16x16xf32> to vector<1x16x16xf32>
    %297 = vector.broadcast %296 : vector<1x16x16xf32> to vector<4x16x16xf32>
    %298 = arith.addf %294, %297 : vector<4x16x16xf32>
    %cst_122 = arith.constant dense<0xFF800000> : vector<4x16xf32>
    %299 = vector.multi_reduction <maximumf>, %298, %cst_122 [2] : vector<4x16x16xf32> to vector<4x16xf32>
    %300 = vector.shape_cast %299 : vector<4x16xf32> to vector<4x16x1xf32>
    %cst_123 = arith.constant 0.000000e+00 : f32
    %301 = vector.broadcast %cst_123 : f32 to vector<4x16x1xf32>
    %302 = arith.maximumf %300, %301 : vector<4x16x1xf32>
    %303 = vector.broadcast %302 : vector<4x16x1xf32> to vector<4x16x16xf32>
    %304 = arith.subf %298, %303 : vector<4x16x16xf32>
    %305 = math.exp %304 : vector<4x16x16xf32>
    %cst_124 = arith.constant dense<0.000000e+00> : vector<4x16xf32>
    %306 = vector.multi_reduction <add>, %305, %cst_124 [2] : vector<4x16x16xf32> to vector<4x16xf32>
    %307 = vector.shape_cast %306 : vector<4x16xf32> to vector<4x16x1xf32>
    %308 = arith.truncf %305 : vector<4x16x16xf32> to vector<4x16x16xbf16>
    "tpu.trace_start"() <{level = 10 : i32, message = "hqk,hkd->hqd"}> : () -> ()
    %cst_125 = arith.constant dense<0.000000e+00> : vector<4x16x8xf32>
    %309 = tpu.matmul %308, %292, %cst_125 {dimension_numbers = #tpu.dot_dimension_numbers<[2], [1], [1], [2], [0, 0, 0, 1, 1, 2], [0], [0]>} : vector<4x16x16xbf16>, vector<4x16x8xbf16>, vector<4x16x8xf32> -> vector<4x16x8xf32>
    %cst_126 = arith.constant 0.000000e+00 : f32
    "tpu.trace_stop"() : () -> ()
    %310 = vector.broadcast %cst_126 : f32 to vector<4x16x1xf32>
    %311 = arith.cmpf ogt, %307, %310 : vector<4x16x1xf32>
    %cst_127 = arith.constant 1.000000e+00 : f32
    %312 = vector.broadcast %cst_127 : f32 to vector<4x16x1xf32>
    %313 = arith.select %311, %307, %312 : vector<4x16x1xi1>, vector<4x16x1xf32>
    %314 = tpu.reciprocal %313 {approx = true} : vector<4x16x1xf32> -> vector<4x16x1xf32>
    %315 = vector.broadcast %314 : vector<4x16x1xf32> to vector<4x16x8xf32>
    %316 = arith.mulf %309, %315 : vector<4x16x8xf32>
    %317 = arith.addf %316, %293 : vector<4x16x8xf32>
    %318 = tpu.transpose %317, [1, 0, 2] : vector<4x16x8xf32> -> vector<16x4x8xf32>
    %319 = vector.shape_cast %318 : vector<16x4x8xf32> to vector<16x32xf32>
    %c5_128 = arith.constant 5 : index
    %c0_129 = arith.constant 0 : index
    %c0_130 = arith.constant 0 : index
    %320 = vector.load %arg6[%c5_128, %c0_129, %c0_130] : memref<8x1x32xf32, #tpu.memory_space<vmem>>, vector<1x1x32xf32>
    %321 = vector.shape_cast %320 : vector<1x1x32xf32> to vector<1x32xf32>
    %322 = vector.broadcast %321 : vector<1x32xf32> to vector<16x32xf32>
    %323 = arith.mulf %319, %322 : vector<16x32xf32>
    %c5_131 = arith.constant 5 : index
    %c0_132 = arith.constant 0 : index
    %c0_133 = arith.constant 0 : index
    %324 = vector.load %arg7[%c5_131, %c0_132, %c0_133] : memref<8x1x32xf32, #tpu.memory_space<vmem>>, vector<1x1x32xf32>
    %325 = vector.shape_cast %324 : vector<1x1x32xf32> to vector<1x32xf32>
    %326 = vector.broadcast %325 : vector<1x32xf32> to vector<16x32xf32>
    %327 = arith.addf %323, %326 : vector<16x32xf32>
    %cst_134 = arith.constant 0.000000e+00 : f32
    %328 = vector.broadcast %cst_134 : f32 to vector<16x32xf32>
    %329 = arith.maximumf %327, %328 : vector<16x32xf32>
    %cst_135 = arith.constant dense<0.000000e+00> : vector<2x32xf32>
    %330 = tpu.matmul %1, %329, %cst_135 {dimension_numbers = #tpu.dot_dimension_numbers<[1], [0], [0], [1], [0, 0, 1, 1], [], []>} : vector<2x16xf32>, vector<16x32xf32>, vector<2x32xf32> -> vector<2x32xf32>
    %c0_136 = arith.constant 0 : index
    %c160 = arith.constant 160 : index
    %331 = vector.load %arg8[%c0_136, %c160] : memref<2x256xf32, #tpu.memory_space<vmem>>, vector<2x32xf32>
    tpu.vector_store %arg8[%c0_136, %c160], %330 {strides = array<i32>} : memref<2x256xf32, #tpu.memory_space<vmem>>, vector<2x32xf32>,
    %c5_137 = arith.constant 5 : index
    %c0_138 = arith.constant 0 : index
    %c0_139 = arith.constant 0 : index
    %332 = vector.load %arg4[%c5_137, %c0_138, %c0_139] : memref<7x32x128xbf16, #tpu.memory_space<vmem>>, vector<1x32x128xbf16>
    %333 = vector.shape_cast %332 : vector<1x32x128xbf16> to vector<32x128xbf16>
    %334 = arith.truncf %329 : vector<16x32xf32> to vector<16x32xbf16>
    %cst_140 = arith.constant dense<0.000000e+00> : vector<16x128xf32>
    %335 = tpu.matmul %334, %333, %cst_140 {dimension_numbers = #tpu.dot_dimension_numbers<[1], [0], [0], [1], [0, 0, 1, 1], [], []>} : vector<16x32xbf16>, vector<32x128xbf16>, vector<16x128xf32> -> vector<16x128xf32>
    %c6 = arith.constant 6 : index
    %c0_141 = arith.constant 0 : index
    %c0_142 = arith.constant 0 : index
    %336 = vector.load %arg5[%c6, %c0_141, %c0_142] : memref<8x1x128xf32, #tpu.memory_space<vmem>>, vector<1x1x128xf32>
    %337 = vector.shape_cast %336 : vector<1x1x128xf32> to vector<1x128xf32>
    %338 = vector.broadcast %337 : vector<1x128xf32> to vector<16x128xf32>
    %339 = arith.addf %335, %338 : vector<16x128xf32>
    %340 = vector.shape_cast %339 : vector<16x128xf32> to vector<16x16x8xf32>
    %341 = tpu.transpose %340, [1, 0, 2] : vector<16x16x8xf32> -> vector<16x16x8xf32>
    %342 = vector.extract_strided_slice %341 {offsets = [0, 0, 0], sizes = [4, 16, 8], strides = [1, 1, 1]} : vector<16x16x8xf32> to vector<4x16x8xf32>
    %343 = arith.truncf %342 : vector<4x16x8xf32> to vector<4x16x8xbf16>
    %344 = vector.extract_strided_slice %341 {offsets = [4, 0, 0], sizes = [4, 16, 8], strides = [1, 1, 1]} : vector<16x16x8xf32> to vector<4x16x8xf32>
    %345 = arith.truncf %344 : vector<4x16x8xf32> to vector<4x16x8xbf16>
    %346 = vector.extract_strided_slice %341 {offsets = [8, 0, 0], sizes = [4, 16, 8], strides = [1, 1, 1]} : vector<16x16x8xf32> to vector<4x16x8xf32>
    %347 = arith.truncf %346 : vector<4x16x8xf32> to vector<4x16x8xbf16>
    %348 = vector.extract_strided_slice %341 {offsets = [12, 0, 0], sizes = [4, 16, 8], strides = [1, 1, 1]} : vector<16x16x8xf32> to vector<4x16x8xf32>
    "tpu.trace_start"() <{level = 10 : i32, message = "hqd,hkd->hqk"}> : () -> ()
    %cst_143 = arith.constant dense<0.000000e+00> : vector<4x16x16xf32>
    %349 = tpu.matmul %343, %345, %cst_143 {dimension_numbers = #tpu.dot_dimension_numbers<[2], [2], [1], [1], [0, 0, 0, 1, 1, 1], [0], [0]>} : vector<4x16x8xbf16>, vector<4x16x8xbf16>, vector<4x16x16xf32> -> vector<4x16x16xf32>
    "tpu.trace_stop"() : () -> ()
    %350 = arith.extf %0 : vector<16x16xbf16> to vector<16x16xf32>
    %351 = vector.shape_cast %350 : vector<16x16xf32> to vector<1x16x16xf32>
    %352 = vector.broadcast %351 : vector<1x16x16xf32> to vector<4x16x16xf32>
    %353 = arith.addf %349, %352 : vector<4x16x16xf32>
    %cst_144 = arith.constant dense<0xFF800000> : vector<4x16xf32>
    %354 = vector.multi_reduction <maximumf>, %353, %cst_144 [2] : vector<4x16x16xf32> to vector<4x16xf32>
    %355 = vector.shape_cast %354 : vector<4x16xf32> to vector<4x16x1xf32>
    %cst_145 = arith.constant 0.000000e+00 : f32
    %356 = vector.broadcast %cst_145 : f32 to vector<4x16x1xf32>
    %357 = arith.maximumf %355, %356 : vector<4x16x1xf32>
    %358 = vector.broadcast %357 : vector<4x16x1xf32> to vector<4x16x16xf32>
    %359 = arith.subf %353, %358 : vector<4x16x16xf32>
    %360 = math.exp %359 : vector<4x16x16xf32>
    %cst_146 = arith.constant dense<0.000000e+00> : vector<4x16xf32>
    %361 = vector.multi_reduction <add>, %360, %cst_146 [2] : vector<4x16x16xf32> to vector<4x16xf32>
    %362 = vector.shape_cast %361 : vector<4x16xf32> to vector<4x16x1xf32>
    %363 = arith.truncf %360 : vector<4x16x16xf32> to vector<4x16x16xbf16>
    "tpu.trace_start"() <{level = 10 : i32, message = "hqk,hkd->hqd"}> : () -> ()
    %cst_147 = arith.constant dense<0.000000e+00> : vector<4x16x8xf32>
    %364 = tpu.matmul %363, %347, %cst_147 {dimension_numbers = #tpu.dot_dimension_numbers<[2], [1], [1], [2], [0, 0, 0, 1, 1, 2], [0], [0]>} : vector<4x16x16xbf16>, vector<4x16x8xbf16>, vector<4x16x8xf32> -> vector<4x16x8xf32>
    %cst_148 = arith.constant 0.000000e+00 : f32
    "tpu.trace_stop"() : () -> ()
    %365 = vector.broadcast %cst_148 : f32 to vector<4x16x1xf32>
    %366 = arith.cmpf ogt, %362, %365 : vector<4x16x1xf32>
    %cst_149 = arith.constant 1.000000e+00 : f32
    %367 = vector.broadcast %cst_149 : f32 to vector<4x16x1xf32>
    %368 = arith.select %366, %362, %367 : vector<4x16x1xi1>, vector<4x16x1xf32>
    %369 = tpu.reciprocal %368 {approx = true} : vector<4x16x1xf32> -> vector<4x16x1xf32>
    %370 = vector.broadcast %369 : vector<4x16x1xf32> to vector<4x16x8xf32>
    %371 = arith.mulf %364, %370 : vector<4x16x8xf32>
    %372 = arith.addf %371, %348 : vector<4x16x8xf32>
    %373 = tpu.transpose %372, [1, 0, 2] : vector<4x16x8xf32> -> vector<16x4x8xf32>
    %374 = vector.shape_cast %373 : vector<16x4x8xf32> to vector<16x32xf32>
    %c6_150 = arith.constant 6 : index
    %c0_151 = arith.constant 0 : index
    %c0_152 = arith.constant 0 : index
    %375 = vector.load %arg6[%c6_150, %c0_151, %c0_152] : memref<8x1x32xf32, #tpu.memory_space<vmem>>, vector<1x1x32xf32>
    %376 = vector.shape_cast %375 : vector<1x1x32xf32> to vector<1x32xf32>
    %377 = vector.broadcast %376 : vector<1x32xf32> to vector<16x32xf32>
    %378 = arith.mulf %374, %377 : vector<16x32xf32>
    %c6_153 = arith.constant 6 : index
    %c0_154 = arith.constant 0 : index
    %c0_155 = arith.constant 0 : index
    %379 = vector.load %arg7[%c6_153, %c0_154, %c0_155] : memref<8x1x32xf32, #tpu.memory_space<vmem>>, vector<1x1x32xf32>
    %380 = vector.shape_cast %379 : vector<1x1x32xf32> to vector<1x32xf32>
    %381 = vector.broadcast %380 : vector<1x32xf32> to vector<16x32xf32>
    %382 = arith.addf %378, %381 : vector<16x32xf32>
    %cst_156 = arith.constant 0.000000e+00 : f32
    %383 = vector.broadcast %cst_156 : f32 to vector<16x32xf32>
    %384 = arith.maximumf %382, %383 : vector<16x32xf32>
    %cst_157 = arith.constant dense<0.000000e+00> : vector<2x32xf32>
    %385 = tpu.matmul %1, %384, %cst_157 {dimension_numbers = #tpu.dot_dimension_numbers<[1], [0], [0], [1], [0, 0, 1, 1], [], []>} : vector<2x16xf32>, vector<16x32xf32>, vector<2x32xf32> -> vector<2x32xf32>
    %c0_158 = arith.constant 0 : index
    %c192 = arith.constant 192 : index
    %386 = vector.load %arg8[%c0_158, %c192] : memref<2x256xf32, #tpu.memory_space<vmem>>, vector<2x32xf32>
    tpu.vector_store %arg8[%c0_158, %c192], %385 {strides = array<i32>} : memref<2x256xf32, #tpu.memory_space<vmem>>, vector<2x32xf32>,
    %c6_159 = arith.constant 6 : index
    %c0_160 = arith.constant 0 : index
    %c0_161 = arith.constant 0 : index
    %387 = vector.load %arg4[%c6_159, %c0_160, %c0_161] : memref<7x32x128xbf16, #tpu.memory_space<vmem>>, vector<1x32x128xbf16>
    %388 = vector.shape_cast %387 : vector<1x32x128xbf16> to vector<32x128xbf16>
    %389 = arith.truncf %384 : vector<16x32xf32> to vector<16x32xbf16>
    %cst_162 = arith.constant dense<0.000000e+00> : vector<16x128xf32>
    %390 = tpu.matmul %389, %388, %cst_162 {dimension_numbers = #tpu.dot_dimension_numbers<[1], [0], [0], [1], [0, 0, 1, 1], [], []>} : vector<16x32xbf16>, vector<32x128xbf16>, vector<16x128xf32> -> vector<16x128xf32>
    %c7 = arith.constant 7 : index
    %c0_163 = arith.constant 0 : index
    %c0_164 = arith.constant 0 : index
    %391 = vector.load %arg5[%c7, %c0_163, %c0_164] : memref<8x1x128xf32, #tpu.memory_space<vmem>>, vector<1x1x128xf32>
    %392 = vector.shape_cast %391 : vector<1x1x128xf32> to vector<1x128xf32>
    %393 = vector.broadcast %392 : vector<1x128xf32> to vector<16x128xf32>
    %394 = arith.addf %390, %393 : vector<16x128xf32>
    %395 = vector.shape_cast %394 : vector<16x128xf32> to vector<16x16x8xf32>
    %396 = tpu.transpose %395, [1, 0, 2] : vector<16x16x8xf32> -> vector<16x16x8xf32>
    %397 = vector.extract_strided_slice %396 {offsets = [0, 0, 0], sizes = [4, 16, 8], strides = [1, 1, 1]} : vector<16x16x8xf32> to vector<4x16x8xf32>
    %398 = arith.truncf %397 : vector<4x16x8xf32> to vector<4x16x8xbf16>
    %399 = vector.extract_strided_slice %396 {offsets = [4, 0, 0], sizes = [4, 16, 8], strides = [1, 1, 1]} : vector<16x16x8xf32> to vector<4x16x8xf32>
    %400 = arith.truncf %399 : vector<4x16x8xf32> to vector<4x16x8xbf16>
    %401 = vector.extract_strided_slice %396 {offsets = [8, 0, 0], sizes = [4, 16, 8], strides = [1, 1, 1]} : vector<16x16x8xf32> to vector<4x16x8xf32>
    %402 = arith.truncf %401 : vector<4x16x8xf32> to vector<4x16x8xbf16>
    %403 = vector.extract_strided_slice %396 {offsets = [12, 0, 0], sizes = [4, 16, 8], strides = [1, 1, 1]} : vector<16x16x8xf32> to vector<4x16x8xf32>
    "tpu.trace_start"() <{level = 10 : i32, message = "hqd,hkd->hqk"}> : () -> ()
    %cst_165 = arith.constant dense<0.000000e+00> : vector<4x16x16xf32>
    %404 = tpu.matmul %398, %400, %cst_165 {dimension_numbers = #tpu.dot_dimension_numbers<[2], [2], [1], [1], [0, 0, 0, 1, 1, 1], [0], [0]>} : vector<4x16x8xbf16>, vector<4x16x8xbf16>, vector<4x16x16xf32> -> vector<4x16x16xf32>
    "tpu.trace_stop"() : () -> ()
    %405 = arith.extf %0 : vector<16x16xbf16> to vector<16x16xf32>
    %406 = vector.shape_cast %405 : vector<16x16xf32> to vector<1x16x16xf32>
    %407 = vector.broadcast %406 : vector<1x16x16xf32> to vector<4x16x16xf32>
    %408 = arith.addf %404, %407 : vector<4x16x16xf32>
    %cst_166 = arith.constant dense<0xFF800000> : vector<4x16xf32>
    %409 = vector.multi_reduction <maximumf>, %408, %cst_166 [2] : vector<4x16x16xf32> to vector<4x16xf32>
    %410 = vector.shape_cast %409 : vector<4x16xf32> to vector<4x16x1xf32>
    %cst_167 = arith.constant 0.000000e+00 : f32
    %411 = vector.broadcast %cst_167 : f32 to vector<4x16x1xf32>
    %412 = arith.maximumf %410, %411 : vector<4x16x1xf32>
    %413 = vector.broadcast %412 : vector<4x16x1xf32> to vector<4x16x16xf32>
    %414 = arith.subf %408, %413 : vector<4x16x16xf32>
    %415 = math.exp %414 : vector<4x16x16xf32>
    %cst_168 = arith.constant dense<0.000000e+00> : vector<4x16xf32>
    %416 = vector.multi_reduction <add>, %415, %cst_168 [2] : vector<4x16x16xf32> to vector<4x16xf32>
    %417 = vector.shape_cast %416 : vector<4x16xf32> to vector<4x16x1xf32>
    %418 = arith.truncf %415 : vector<4x16x16xf32> to vector<4x16x16xbf16>
    "tpu.trace_start"() <{level = 10 : i32, message = "hqk,hkd->hqd"}> : () -> ()
    %cst_169 = arith.constant dense<0.000000e+00> : vector<4x16x8xf32>
    %419 = tpu.matmul %418, %402, %cst_169 {dimension_numbers = #tpu.dot_dimension_numbers<[2], [1], [1], [2], [0, 0, 0, 1, 1, 2], [0], [0]>} : vector<4x16x16xbf16>, vector<4x16x8xbf16>, vector<4x16x8xf32> -> vector<4x16x8xf32>
    %cst_170 = arith.constant 0.000000e+00 : f32
    "tpu.trace_stop"() : () -> ()
    %420 = vector.broadcast %cst_170 : f32 to vector<4x16x1xf32>
    %421 = arith.cmpf ogt, %417, %420 : vector<4x16x1xf32>
    %cst_171 = arith.constant 1.000000e+00 : f32
    %422 = vector.broadcast %cst_171 : f32 to vector<4x16x1xf32>
    %423 = arith.select %421, %417, %422 : vector<4x16x1xi1>, vector<4x16x1xf32>
    %424 = tpu.reciprocal %423 {approx = true} : vector<4x16x1xf32> -> vector<4x16x1xf32>
    %425 = vector.broadcast %424 : vector<4x16x1xf32> to vector<4x16x8xf32>
    %426 = arith.mulf %419, %425 : vector<4x16x8xf32>
    %427 = arith.addf %426, %403 : vector<4x16x8xf32>
    %428 = tpu.transpose %427, [1, 0, 2] : vector<4x16x8xf32> -> vector<16x4x8xf32>
    %429 = vector.shape_cast %428 : vector<16x4x8xf32> to vector<16x32xf32>
    %c7_172 = arith.constant 7 : index
    %c0_173 = arith.constant 0 : index
    %c0_174 = arith.constant 0 : index
    %430 = vector.load %arg6[%c7_172, %c0_173, %c0_174] : memref<8x1x32xf32, #tpu.memory_space<vmem>>, vector<1x1x32xf32>
    %431 = vector.shape_cast %430 : vector<1x1x32xf32> to vector<1x32xf32>
    %432 = vector.broadcast %431 : vector<1x32xf32> to vector<16x32xf32>
    %433 = arith.mulf %429, %432 : vector<16x32xf32>
    %c7_175 = arith.constant 7 : index
    %c0_176 = arith.constant 0 : index
    %c0_177 = arith.constant 0 : index
    %434 = vector.load %arg7[%c7_175, %c0_176, %c0_177] : memref<8x1x32xf32, #tpu.memory_space<vmem>>, vector<1x1x32xf32>
    %435 = vector.shape_cast %434 : vector<1x1x32xf32> to vector<1x32xf32>
    %436 = vector.broadcast %435 : vector<1x32xf32> to vector<16x32xf32>
    %437 = arith.addf %433, %436 : vector<16x32xf32>
    %cst_178 = arith.constant 0.000000e+00 : f32
    %438 = vector.broadcast %cst_178 : f32 to vector<16x32xf32>
    %439 = arith.maximumf %437, %438 : vector<16x32xf32>
    %cst_179 = arith.constant dense<0.000000e+00> : vector<2x32xf32>
    %440 = tpu.matmul %1, %439, %cst_179 {dimension_numbers = #tpu.dot_dimension_numbers<[1], [0], [0], [1], [0, 0, 1, 1], [], []>} : vector<2x16xf32>, vector<16x32xf32>, vector<2x32xf32> -> vector<2x32xf32>
    %c0_180 = arith.constant 0 : index
    %c224 = arith.constant 224 : index
    %441 = vector.load %arg8[%c0_180, %c224] : memref<2x256xf32, #tpu.memory_space<vmem>>, vector<2x32xf32>
    tpu.vector_store %arg8[%c0_180, %c224], %440 {strides = array<i32>} : memref<2x256xf32, #tpu.memory_space<vmem>>, vector<2x32xf32>,
    return
  }
}

</mosaic_0001>

<bundles_post_ra>
// kernel: graph_transformer_encoder.1
= control target key start
LH: loop header
LB: loop body
LE: loop exit
PB: predicated region body
PF: predicated region fallthrough
CT: control target
= control target key end

     0   :  { %v18756_v1 = vmov 0.0   ;;  %vm52_vm0 = vcmask 130048   ;;  %vm18757_vm1 = vmmov 0   ;;  %s21974_s0 = inlined_call_operand.vmem [shape: f32[16,16], index: 0, kind: input, shape index: {}]   ;;  %s21975_s1 = inlined_call_operand.vmem [shape: bf16[16,16], index: 1, kind: input, shape index: {}]   ;;  %s21976_s2 = inlined_call_operand.vmem [shape: f32[2,16], index: 2, kind: input, shape index: {}]   ;;  %s21977_s3 = inlined_call_operand.vmem [shape: bf16[16,128], index: 3, kind: input, shape index: {}]   ;;  %s21978_s4 = inlined_call_operand.vmem [shape: bf16[7,32,128], index: 4, kind: input, shape index: {}]   ;;  %s21979_s5 = inlined_call_operand.vmem [shape: f32[8,1,128], index: 5, kind: input, shape index: {}]   ;;  %s21980_s6 = inlined_call_operand.vmem [shape: f32[8,1,32], index: 6, kind: input, shape index: {}]   ;;  %s21981_s7 = inlined_call_operand.vmem [shape: f32[8,1,32], index: 7, kind: input, shape index: {}]   ;;  %s21982_s8 = inlined_call_operand.hbm [shape: f32[2,256], index: 8, kind: output, shape index: {}]  }
   0x1   :  { %v18454_v0 = vld [vmem:[%s21977_s3] sm:$0xff]   ;;  %17907 = vmatprep.subr.bf16.mxu0 %v18756_v1  ;;  %v35_v3 = vld [vmem:[%s21974_s0 + $0x8] sm:$0xff]  ;;  %17913 = vmatprep.subr.bf16.mxu1 %v18756_v1 }
   0x2   :  { %v34_v2 = vld [vmem:[%s21974_s0] sm:$0xff]  ;;  %17908 = vmatpush3.bf16.msra.mxu0 %v18454_v0  ;;  %17909 = vmatprep.mubr.msk.bf16.mxu0 %vm18757_vm1, %v18756_v1 }
   0x3   :  { %v38_v4 = vpack.c.bf16 %v35_v3, %v34_v2  ;;  %17919 = vmatprep.subr.bf16.mxu0 %v18756_v1  ;;  %17915 = vmatprep.mubr.msk.bf16.mxu1 %vm18757_vm1, %v18756_v1 }
   0x5   :  { %17910 = vmatmul.mubr.msk.bf16.vlgmr.msra.gmra.mrb[0].mxu0 %vm52_vm0, %v38_v4 }
   0x6   :  { %17921 = vmatprep.mubr.msk.bf16.mxu0 %vm18757_vm1, %v18756_v1 }
   0x7   :  { %13 = vsyncpa [#allocation3], 0  ;;  %v17276_v5 = vld [vmem:[%s21979_s5] ss:$0 sm:$0xff]  ;;  %s18758_s11 = smov 88   ;;  %s18759_s12 = smov 96   ;;  %v194_v14 = vlaneseq }
   0x8   :  { %s18760_s13 = smov 80   ;;  %s18761_s14 = smov 72   ;;  %v18768_v12 = vmov 1983009808   ;;  %v18769_v17 = vmov 1934713408  }
   0x9   :  { %s18762_s15 = smov 120   ;;  %s18763_s16 = smov 112   ;;  %v192_v13 = vunpack.c.l.s4 %v18768_v12  ;;  %v256_v18 = vunpack.c.l.s4 %v18769_v17  ;;  %v195_v20 = vshrl.u32 %v194_v14, 7  ;;  %vm1291_vm2 = vcmask 64512  }
   0xa   :  { %s18764_s17 = smov 104   ;;  %s18765_s18 = smov 64   ;;  %vm2080_vm11 = vcmask 195584   ;;  %vm2203_vm12 = vcmask 261120   ;;  %vm2176_vm13 = vcmask 254976  }
   0xb   :  { %s18766_s19 = smov 48   ;;  %s18767_s20 = smov 56   ;;  %v193_v19 = vunpack.c.0.s8 %v192_v13  ;;  %v257_v23 = vunpack.c.0.s8 %v256_v18 }
   0xc   :  { %s18771_s23 = smov 32   ;;  %s18772_s24 = smov 24  }
   0xd   :  { %v18888_v24 = vsub.s32 %v193_v19, %v195_v20  ;;  %v18890_v31 = vsub.s32 %v257_v23, %v195_v20  ;;  %s18773_s25 = smov 16   ;;  %s18774_s26 = smov 8  }
  0xd8   :  { %v90_v6 = vpop.f32.mrb[0].mxu0 }
  0xd9   :  { %v18844_v7 = vadd.f32 %v17276_v5, %v90_v6  ;;  %v17911_v8 = vpop.f32.mrb[1].mxu0 }
  0xda   :  { %v93_v9 = vpop.f32.mrb[2].mxu0 }
  0xdb   :  { %123 = vrot.lane.b32.xlu1 %v18844_v7, %s18758_s11  ;;  %117 = vrot.lane.b32.xlu0 %v18844_v7, %s18759_s12  ;;  %v17912_v10 = vpop.f32.mrb[3].mxu0  ;;  %v18850_v11 = vadd.f32 %v17276_v5, %v93_v9 }
  0xdf   :  { %129 = vrot.lane.b32.xlu0 %v18844_v7, %s18760_s13  ;;  %125 = vrot.lane.b32.xlu1 %v18850_v11, %s18758_s11 }
  0xe3   :  { %135 = vrot.lane.b32.xlu0 %v18844_v7, %s18761_s14  ;;  %131 = vrot.lane.b32.xlu1 %v18850_v11, %s18760_s13 }
  0xe7   :  { %99 = vrot.lane.b32.xlu0 %v18844_v7, %s18762_s15  ;;  %137 = vrot.lane.b32.xlu1 %v18850_v11, %s18761_s14 }
  0xeb   :  { %101 = vrot.lane.b32.xlu1 %v18850_v11, %s18762_s15  ;;  %119 = vrot.lane.b32.xlu0 %v18850_v11, %s18759_s12 }
  0xef   :  { %107 = vrot.lane.b32.xlu1 %v18850_v11, %s18763_s16  ;;  %105 = vrot.lane.b32.xlu0 %v18844_v7, %s18763_s16 }
  0xf3   :  { %113 = vrot.lane.b32.xlu1 %v18850_v11, %s18764_s17  ;;  %111 = vrot.lane.b32.xlu0 %v18844_v7, %s18764_s17 }
  0xf7   :  { %141 = vrot.lane.b32.xlu1 %v18844_v7, %s18765_s18  ;;  %153 = vrot.lane.b32.xlu0 %v18844_v7, %s18766_s19 }
  0xfb   :  { %147 = vrot.lane.b32.xlu1 %v18844_v7, %s18767_s20  ;;  %143 = vrot.lane.b32.xlu0 %v18850_v11, %s18765_s18 }
  0xff   :  { %149 = vrot.lane.b32.xlu1 %v18850_v11, %s18767_s20 }
 0x103   :  { %155 = vrot.lane.b32.xlu1 %v18850_v11, %s18766_s19 }
 0x14d   :  { %v124_v15 = vpop.permute.xlu1 %123  ;;  %v118_v16 = vpop.permute.xlu0 %117 }
 0x151   :  { %v130_v21 = vpop.permute.xlu0 %129  ;;  %v126_v22 = vpop.permute.xlu1 %125 }
 0x152   :  { %v221_v25 = vcombine.low %v118_v16, %v130_v21  ;;  %v222_v26 = vcombine.high %v118_v16, %v130_v21 }
 0x154   :  { %v229_v32 = vrot.slane %v221_v25, %v18888_v24  ;;  %v236_v33 = vrot.slane %v222_v26, %v18888_v24 }
 0x155   :  { %v136_v27 = vpop.permute.xlu0 %135  ;;  %v132_v28 = vpop.permute.xlu1 %131 }
 0x156   :  { %v237_v29 = vcombine.low %v124_v15, %v136_v27  ;;  %v238_v30 = vcombine.high %v124_v15, %v136_v27 }
 0x158   :  { %v245_v34 = vrot.slane %v237_v29, %v18888_v24  ;;  %v252_v35 = vrot.slane %v238_v30, %v18888_v24 }
 0x159   :  { %v100_v36 = vpop.permute.xlu0 %99  ;;  %v138_v37 = vpop.permute.xlu1 %137 }
 0x15a   :  { %v285_v38 = vcombine.low %v229_v32, %v245_v34  ;;  %v286_v39 = vcombine.high %v229_v32, %v245_v34  ;;  %v301_v40 = vcombine.low %v236_v33, %v252_v35  ;;  %v302_v41 = vcombine.high %v236_v33, %v252_v35 }
 0x15b   :  { %v509_v46 = vcombine.low %v126_v22, %v138_v37  ;;  %v510_v49 = vcombine.high %v126_v22, %v138_v37 }
 0x15c   :  { %v293_v42 = vrot.slane %v285_v38, %v18890_v31  ;;  %v300_v43 = vrot.slane %v286_v39, %v18890_v31  ;;  %v309_v44 = vrot.slane %v301_v40, %v18890_v31  ;;  %v316_v45 = vrot.slane %v302_v41, %v18890_v31 }
 0x15d   :  { %v102_v47 = vpop.permute.xlu1 %101  ;;  %v120_v48 = vpop.permute.xlu0 %119  ;;  %v517_v56 = vrot.slane %v509_v46, %v18888_v24  ;;  %v524_v61 = vrot.slane %v510_v49, %v18888_v24 }
 0x15e   :  { %v493_v50 = vcombine.low %v120_v48, %v132_v28  ;;  %v494_v51 = vcombine.high %v120_v48, %v132_v28  ;;  %v17280_v52 = vcombine.low %v293_v42, %v300_v43  ;;  %v17282_v53 = vcombine.high %v293_v42, %v300_v43 }
 0x15f   :  { %v17284_v54 = vcombine.low %v309_v44, %v316_v45  ;;  %v17286_v55 = vcombine.high %v309_v44, %v316_v45 }
 0x160   :  { %v501_v57 = vrot.slane %v493_v50, %v18888_v24  ;;  %v508_v58 = vrot.slane %v494_v51, %v18888_v24  ;;  %v18909_v5 = vrot.slane %v17280_v52, %v18888_v24  ;;  %v18912_v6 = vrot.slane %v17282_v53, %v18888_v24 }
 0x161   :  { %v108_v59 = vpop.permute.xlu1 %107  ;;  %v106_v60 = vpop.permute.xlu0 %105  ;;  %v18915_v8 = vrot.slane %v17284_v54, %v18888_v24  ;;  %v18918_v9 = vrot.slane %v17286_v55, %v18888_v24 }
 0x162   :  { %v461_v62 = vcombine.low %v18850_v11, %v108_v59  ;;  %v462_v63 = vcombine.high %v18850_v11, %v108_v59  ;;  %v557_v0 = vcombine.low %v501_v57, %v517_v56  ;;  %v558_v2 = vcombine.high %v501_v57, %v517_v56 }
 0x163   :  { %v189_v3 = vcombine.low %v18844_v7, %v106_v60  ;;  %v190_v4 = vcombine.high %v18844_v7, %v106_v60  ;;  %v573_v13 = vcombine.low %v508_v58, %v524_v61  ;;  %v574_v14 = vcombine.high %v508_v58, %v524_v61 }
 0x164   :  { %v565_v10 = vrot.slane %v557_v0, %v18890_v31  ;;  %v572_v12 = vrot.slane %v558_v2, %v18890_v31  ;;  %v469_v21 = vrot.slane %v461_v62, %v18888_v24  ;;  %v476_v22 = vrot.slane %v462_v63, %v18888_v24 }
 0x165   :  { %v114_v15 = vpop.permute.xlu1 %113  ;;  %v112_v16 = vpop.permute.xlu0 %111  ;;  %v197_v23 = vrot.slane %v189_v3, %v18888_v24  ;;  %v204_v25 = vrot.slane %v190_v4, %v18888_v24  ;;  %v581_v30 = vrot.slane %v573_v13, %v18890_v31  ;;  %v588_v32 = vrot.slane %v574_v14, %v18890_v31 }
 0x166   :  { %v477_v17 = vcombine.low %v102_v47, %v114_v15  ;;  %v478_v18 = vcombine.high %v102_v47, %v114_v15  ;;  %v205_v19 = vcombine.low %v100_v36, %v112_v16  ;;  %v206_v20 = vcombine.high %v100_v36, %v112_v16 }
 0x167   :  { %v17288_v33 = vcombine.low %v565_v10, %v572_v12  ;;  %v17290_v34 = vcombine.high %v565_v10, %v572_v12  ;;  %v17292_v59 = vcombine.low %v581_v30, %v588_v32  ;;  %v17294_v60 = vcombine.high %v581_v30, %v588_v32 }
 0x168   :  { %v485_v26 = vrot.slane %v477_v17, %v18888_v24  ;;  %v492_v27 = vrot.slane %v478_v18, %v18888_v24  ;;  %v213_v28 = vrot.slane %v205_v19, %v18888_v24  ;;  %v220_v29 = vrot.slane %v206_v20, %v18888_v24 }
 0x169   :  { %v884_v63 = vrot.slane %v17288_v33, %v18888_v24  ;;  %v900_v0 = vrot.slane %v17290_v34, %v18888_v24  ;;  %v813_v4 = vcombine.low %v18909_v5, %v18912_v6  ;;  %v845_v10 = vcombine.low %v18915_v8, %v18918_v9 }
 0x16a   :  { %v525_v35 = vcombine.low %v469_v21, %v485_v26  ;;  %v526_v36 = vcombine.high %v469_v21, %v485_v26  ;;  %v541_v37 = vcombine.low %v476_v22, %v492_v27  ;;  %v542_v38 = vcombine.high %v476_v22, %v492_v27 }
 0x16b   :  { %v253_v39 = vcombine.low %v197_v23, %v213_v28  ;;  %v254_v40 = vcombine.high %v197_v23, %v213_v28  ;;  %v269_v41 = vcombine.low %v204_v25, %v220_v29  ;;  %v270_v42 = vcombine.high %v204_v25, %v220_v29 }
 0x16c   :  { %v533_v43 = vrot.slane %v525_v35, %v18890_v31  ;;  %v540_v44 = vrot.slane %v526_v36, %v18890_v31  ;;  %v549_v45 = vrot.slane %v541_v37, %v18890_v31  ;;  %v556_v46 = vrot.slane %v542_v38, %v18890_v31 }
 0x16d   :  { %v261_v47 = vrot.slane %v253_v39, %v18890_v31  ;;  %v268_v48 = vrot.slane %v254_v40, %v18890_v31  ;;  %v277_v49 = vrot.slane %v269_v41, %v18890_v31  ;;  %v284_v50 = vrot.slane %v270_v42, %v18890_v31 }
 0x16e   :  { %v17287_v51 = vcombine.low %v533_v43, %v540_v44  ;;  %v17289_v52 = vcombine.high %v533_v43, %v540_v44  ;;  %v17291_v53 = vcombine.low %v549_v45, %v556_v46  ;;  %v17293_v54 = vcombine.high %v549_v45, %v556_v46 }
 0x16f   :  { %v17279_v55 = vcombine.low %v261_v47, %v268_v48  ;;  %v17281_v56 = vcombine.high %v261_v47, %v268_v48  ;;  %v17283_v57 = vcombine.low %v277_v49, %v284_v50  ;;  %v17285_v58 = vcombine.high %v277_v49, %v284_v50 }
 0x170   :  { %v877_v12 = vrot.slane %v17287_v51, %v18888_v24  ;;  %v893_v13 = vrot.slane %v17289_v52, %v18888_v24  ;;  %v909_v14 = vrot.slane %v17291_v53, %v18888_v24  ;;  %v925_v15 = vrot.slane %v17293_v54, %v18888_v24 }
 0x171   :  { %v18941_v61 = vrot.slane %v17279_v55, %v18888_v24  ;;  %v18944_v62 = vrot.slane %v17281_v56, %v18888_v24  ;;  %v18949_v2 = vrot.slane %v17283_v57, %v18888_v24  ;;  %v789_v3 = vrot.slane %v17285_v58, %v18888_v24 }
 0x172   :  { %v916_v16 = vrot.slane %v17292_v59, %v18888_v24  ;;  %v932_v17 = vrot.slane %v17294_v60, %v18888_v24  ;;  %v949_v18 = vcombine.low %v884_v63, %v900_v0  ;;  %v821_v20 = vrot.slane %v813_v4, %v18890_v31 }
 0x173   :  { %v797_v19 = vcombine.low %v18941_v61, %v18944_v62  ;;  %v853_v21 = vrot.slane %v845_v10, %v18890_v31  ;;  %v829_v23 = vcombine.low %v18949_v2, %v789_v3  ;;  %v933_v26 = vcombine.low %v877_v12, %v893_v13 }
 0x174   :  { %v981_v22 = vcombine.low %v916_v16, %v932_v17  ;;  %v957_v25 = vrot.slane %v949_v18, %v18890_v31  ;;  %v965_v27 = vcombine.low %v909_v14, %v925_v15  ;;  %v814_v34 = vcombine.high %v18909_v5, %v18912_v6 }
 0x175   :  { %v805_v29 = vrot.slane %v797_v19, %v18890_v31  ;;  %v837_v30 = vrot.slane %v829_v23, %v18890_v31  ;;  %v941_v32 = vrot.slane %v933_v26, %v18890_v31  ;;  %v846_v35 = vcombine.high %v18915_v8, %v18918_v9 }
 0x176   :  { %v989_v28 = vrot.slane %v981_v22, %v18890_v31  ;;  %v973_v33 = vrot.slane %v965_v27, %v18890_v31  ;;  %v865_v36 = vcombine.low %v821_v20, %v853_v21  ;;  %v866_v38 = vcombine.high %v821_v20, %v853_v21 }
 0x177   :  { %v934_v40 = vcombine.high %v877_v12, %v893_v13  ;;  %v966_v41 = vcombine.high %v909_v14, %v925_v15  ;;  %v828_v42 = vrot.slane %v814_v34, %v18890_v31  ;;  %v860_v43 = vrot.slane %v846_v35, %v18890_v31 }
 0x178   :  { %v1001_v37 = vcombine.low %v957_v25, %v989_v28  ;;  %v1002_v39 = vcombine.high %v957_v25, %v989_v28  ;;  %v950_v46 = vcombine.high %v884_v63, %v900_v0  ;;  %v982_v47 = vcombine.high %v916_v16, %v932_v17  ;;  %v17729_v17 = vld [vmem:[%s21975_s1] sm:$0xff]   ;;  %s18770_s1 = smov 40  }
 0x179   :  { %v861_v48 = vcombine.low %v805_v29, %v837_v30  ;;  %v862_v49 = vcombine.high %v805_v29, %v837_v30  ;;  %v997_v5 = vcombine.low %v941_v32, %v973_v33  ;;  %v998_v6 = vcombine.high %v941_v32, %v973_v33 }
 0x17a   :  { %v1281_v44 = vpack.c.bf16 %v1001_v37, %v865_v36  ;;  %v1282_v45 = vpack.c.bf16 %v1002_v39, %v866_v38  ;;  %v964_v50 = vrot.slane %v950_v46, %v18890_v31  ;;  %v996_v51 = vrot.slane %v982_v47, %v18890_v31 }
 0x17b   :  { %v798_v52 = vcombine.high %v18941_v61, %v18944_v62  ;;  %v830_v53 = vcombine.high %v18949_v2, %v789_v3  ;;  %v867_v54 = vcombine.low %v828_v42, %v860_v43  ;;  %v868_v56 = vcombine.high %v828_v42, %v860_v43 }
 0x17c   :  { %v1296_v8 = vsel %vm1291_vm2, %v1281_v44, 0  ;;  %v1343_v9 = vsel %vm1291_vm2, %v1282_v45, 0  ;;  %v1003_v55 = vcombine.low %v964_v50, %v996_v51  ;;  %v1004_v57 = vcombine.high %v964_v50, %v996_v51  ;;  %v19059_v50 = vpop.permute.xlu1 %141 }
 0x17d   :  { %17914 = vmatpush3.bf16.xpose.msra.mxu1 %v1296_v8  ;;  %17920 = vmatpush3.bf16.xpose.msra.mxu0 %v1343_v9  ;;  %v1277_v58 = vpack.c.bf16 %v997_v5, %v861_v48  ;;  %v1278_v59 = vpack.c.bf16 %v998_v6, %v862_v49  ;;  %v812_v0 = vrot.slane %v798_v52, %v18890_v31  ;;  %v19011_v18 = vunpack.c.l.bf16 %v17729_v17  ;;  %v19063_v52 = vpop.permute.xlu0 %153 }
 0x17e   :  { %17925 = vmatprep.subr.bf16.mxu1 %v18756_v1  ;;  %17931 = vmatprep.subr.bf16.mxu0 %v18756_v1  ;;  %v1283_v60 = vpack.c.bf16 %v1003_v55, %v867_v54  ;;  %v1284_v63 = vpack.c.bf16 %v1004_v57, %v868_v56  ;;  %v844_v61 = vrot.slane %v830_v53, %v18890_v31  ;;  %v19013_v19 = vunpack.c.h.bf16 %v17729_v17 }
 0x17f   :  { %v948_v62 = vrot.slane %v934_v40, %v18890_v31  ;;  %v980_v2 = vrot.slane %v966_v41, %v18890_v31 }
 0x180   :  { %v1390_v3 = vsel %vm1291_vm2, %v1283_v60, 0  ;;  %v1437_v4 = vsel %vm1291_vm2, %v1284_v63, 0  ;;  %v863_v10 = vcombine.low %v812_v0, %v844_v61  ;;  %v864_v13 = vcombine.high %v812_v0, %v844_v61  ;;  %v19061_v51 = vpop.permute.xlu1 %147 }
 0x181   :  { %v999_v12 = vcombine.low %v948_v62, %v980_v2  ;;  %v1000_v14 = vcombine.high %v948_v62, %v980_v2  ;;  %v144_v54 = vpop.permute.xlu0 %143 }
 0x183   :  { %v1279_v15 = vpack.c.bf16 %v999_v12, %v863_v10  ;;  %v1280_v16 = vpack.c.bf16 %v1000_v14, %v864_v13 }
 0x184   :  { %17916 = vmatmul.mubr.msk.bf16.vlgmr.msra.gmra.mrb[0].mxu1 %vm1291_vm2, %v1277_v58  ;;  %17922 = vmatmul.mubr.msk.bf16.vlgmr.msra.gmra.mrb[4].mxu0 %vm1291_vm2, %v1278_v59  ;;  %v150_v53 = vpop.permute.xlu1 %149 }
 0x185   :  { %17926 = vmatpush3.bf16.xpose.msra.mxu1 %v1390_v3  ;;  %17932 = vmatpush3.bf16.xpose.msra.mxu0 %v1437_v4 }
 0x186   :  { %17927 = vmatprep.mubr.msk.bf16.mxu1 %vm18757_vm1, %v18756_v1  ;;  %17933 = vmatprep.mubr.msk.bf16.mxu0 %vm18757_vm1, %v18756_v1 }
 0x187   :  { %17937 = vmatprep.subr.bf16.mxu1 %v18756_v1  ;;  %17943 = vmatprep.subr.bf16.mxu0 %v18756_v1 }
 0x188   :  { %v156_v55 = vpop.permute.xlu1 %155 }
 0x18c   :  { %17928 = vmatmul.mubr.msk.bf16.vlgmr.msra.gmra.mrb[4].mxu1 %vm1291_vm2, %v1279_v15  ;;  %17934 = vmatmul.mubr.msk.bf16.vlgmr.msra.gmra.mrb[8].mxu0 %vm1291_vm2, %v1280_v16 }
 0x18d   :  { %17939 = vmatprep.mubr.msk.bf16.mxu1 %vm18757_vm1, %v18756_v1  ;;  %17945 = vmatprep.mubr.msk.bf16.mxu0 %vm18757_vm1, %v18756_v1 }
 0x257   :  { %v1332_v20 = vpop.f32.mrb[0].mxu1  ;;  %v1379_v21 = vpop.f32.mrb[4].mxu0 }
 0x258   :  { %v1333_v22 = vadd.f32 %v19011_v18, %v1332_v20  ;;  %v17917_v23 = vpop.f32.mrb[1].mxu1  ;;  %v17923_v25 = vpop.f32.mrb[5].mxu0  ;;  %v1380_v28 = vadd.f32 %v19011_v18, %v1379_v21 }
 0x259   :  { %v1335_v26 = vpop.f32.mrb[2].mxu1  ;;  %v1382_v27 = vpop.f32.mrb[6].mxu0 }
 0x25a   :  { %v1336_v29 = vadd.f32 %v19013_v19, %v1335_v26  ;;  %v17918_v30 = vpop.f32.mrb[3].mxu1  ;;  %v17924_v32 = vpop.f32.mrb[7].mxu0  ;;  %v1480_v33 = vsel %vm52_vm0, %v1333_v22, -inf  ;;  %v19021_v35 = vadd.f32 %v19013_v19, %v1382_v27  ;;  %v1486_v36 = vsel %vm52_vm0, %v1380_v28, -inf }
 0x25b   :  { %1481 = vmax.xlane.f32.xlu0 %v1480_v33  ;;  %v597_v26 = vcombine.low %v144_v54, %v156_v55  ;;  %v598_v27 = vcombine.high %v144_v54, %v156_v55  ;;  %v325_v30 = vcombine.low %v19059_v50, %v19063_v52 }
 0x25c   :  { %v1483_v34 = vsel %vm52_vm0, %v1336_v29, -inf  ;;  %v1489_v49 = vsel %vm52_vm0, %v19021_v35, -inf }
 0x25d   :  { %1484 = vmax.xlane.f32.xlu1 %v1483_v34 }
 0x25f   :  { %v1426_v37 = vpop.f32.mrb[4].mxu1  ;;  %v1473_v38 = vpop.f32.mrb[8].mxu0  ;;  %1487 = vmax.xlane.f32.xlu0 %v1486_v36 }
 0x260   :  { %v1427_v39 = vadd.f32 %v19011_v18, %v1426_v37  ;;  %v17929_v40 = vpop.f32.mrb[5].mxu1  ;;  %v17935_v41 = vpop.f32.mrb[9].mxu0  ;;  %v19026_v44 = vadd.f32 %v19011_v18, %v1473_v38 }
 0x261   :  { %v1429_v42 = vpop.f32.mrb[6].mxu1  ;;  %v1476_v43 = vpop.f32.mrb[10].mxu0  ;;  %v605_v40 = vrot.slane %v597_v26, %v18888_v24 }
 0x262   :  { %v19029_v45 = vadd.f32 %v19013_v19, %v1429_v42  ;;  %v17930_v46 = vpop.f32.mrb[7].mxu1  ;;  %v17936_v47 = vpop.f32.mrb[11].mxu0  ;;  %v1492_v48 = vsel %vm52_vm0, %v1427_v39, -inf  ;;  %v19035_v5 = vadd.f32 %v19013_v19, %v1476_v43  ;;  %v1498_v6 = vsel %vm52_vm0, %v19026_v44, -inf }
 0x263   :  { %1493 = vmax.xlane.f32.xlu1 %v1492_v48  ;;  %1490 = vmax.xlane.f32.xlu0 %v1489_v49  ;;  %v333_v47 = vrot.slane %v325_v30, %v18888_v24 }
 0x264   :  { %v1495_v8 = vsel %vm52_vm0, %v19029_v45, -inf  ;;  %v1501_v9 = vsel %vm52_vm0, %v19035_v5, -inf }
 0x267   :  { %1499 = vmax.xlane.f32.xlu1 %v1498_v6  ;;  %1496 = vmax.xlane.f32.xlu0 %v1495_v8 }
 0x26b   :  { %1502 = vmax.xlane.f32.xlu0 %v1501_v9 }
 0x278   :  { %161 = vrot.lane.b32.xlu1 %v18850_v11, %s18770_s1 }
 0x27c   :  { %165 = vrot.lane.b32.xlu1 %v18844_v7, %s18771_s23 }
 0x280   :  { %171 = vrot.lane.b32.xlu1 %v18844_v7, %s18772_s24 }
 0x281   :  { %159 = vrot.lane.b32.xlu0 %v18844_v7, %s18770_s1 }
 0x284   :  { %173 = vrot.lane.b32.xlu1 %v18850_v11, %s18772_s24 }
 0x285   :  { %167 = vrot.lane.b32.xlu0 %v18850_v11, %s18771_s23 }
 0x288   :  { %179 = vrot.lane.b32.xlu1 %v18850_v11, %s18773_s25 }
 0x289   :  { %177 = vrot.lane.b32.xlu0 %v18844_v7, %s18773_s25 }
 0x2e8   :  { %v1482_v56 = vpop.xlane.xlu0 %1481 }
 0x2e9   :  { %v1504_v57 = vmax.f32 %v1482_v56, 0.0 }
 0x2ea   :  { %v1485_v58 = vpop.xlane.xlu1 %1484 }
 0x2eb   :  { %v1512_v59 = vsub.f32 %v1333_v22, %v1504_v57  ;;  %v1505_v60 = vmax.f32 %v1485_v58, 0.0 }
 0x2ec   :  { %v1488_v63 = vpop.xlane.xlu0 %1487 }
 0x2ed   :  { %v1520_v0 = vmul.f32 1.442695, %v1512_v59  ;;  %v1513_v61 = vsub.f32 %v1336_v29, %v1505_v60  ;;  %v1506_v62 = vmax.f32 %v1488_v63, 0.0 }
 0x2ef   :  { %18469 = vpow2.f32 %v1520_v0  ;;  %v1522_v2 = vmul.f32 1.442695, %v1513_v61  ;;  %v1514_v3 = vsub.f32 %v1380_v28, %v1506_v62 }
 0x2f0   :  { %v1494_v4 = vpop.xlane.xlu1 %1493  ;;  %v1491_v10 = vpop.xlane.xlu0 %1490 }
 0x2f1   :  { %18471 = vpow2.f32 %v1522_v2  ;;  %v1524_v12 = vmul.f32 1.442695, %v1514_v3  ;;  %v1508_v13 = vmax.f32 %v1494_v4, 0.0  ;;  %v1507_v14 = vmax.f32 %v1491_v10, 0.0 }
 0x2f3   :  { %18473 = vpow2.f32 %v1524_v12  ;;  %v1516_v15 = vsub.f32 %v1427_v39, %v1508_v13  ;;  %v1515_v16 = vsub.f32 %v19021_v35, %v1507_v14  ;;  %v326_v39 = vcombine.high %v19059_v50, %v19063_v52 }
 0x2f4   :  { %v1500_v17 = vpop.xlane.xlu1 %1499  ;;  %v1497_v20 = vpop.xlane.xlu0 %1496 }
 0x2f5   :  { %v1528_v21 = vmul.f32 1.442695, %v1516_v15  ;;  %v1526_v22 = vmul.f32 1.442695, %v1515_v16  ;;  %v1510_v23 = vmax.f32 %v1500_v17, 0.0  ;;  %v1509_v25 = vmax.f32 %v1497_v20, 0.0 }
 0x2f6   :  { %v340_v63 = vrot.slane %v326_v39, %v18888_v24 }
 0x2f7   :  { %18475 = vpow2.f32 %v1528_v21  ;;  %v1518_v28 = vsub.f32 %v19026_v44, %v1510_v23  ;;  %v1517_v29 = vsub.f32 %v19029_v45, %v1509_v25  ;;  %v612_v44 = vrot.slane %v598_v27, %v18888_v24 }
 0x2f8   :  { %18477 = vpow2.f32 %v1526_v22  ;;  %v162_v32 = vpop.permute.xlu1 %161  ;;  %v1503_v33 = vpop.xlane.xlu0 %1502 }
 0x2f9   :  { %v19070_v34 = vpop.eup %18469  ;;  %v1532_v35 = vmul.f32 1.442695, %v1518_v28  ;;  %v1530_v36 = vmul.f32 1.442695, %v1517_v29  ;;  %v613_v37 = vcombine.low %v150_v53, %v162_v32  ;;  %v614_v38 = vcombine.high %v150_v53, %v162_v32 }
 0x2fa   :  { %v1511_v41 = vmax.f32 %v1503_v33, 0.0  ;;  %v1536_v42 = vsel %vm52_vm0, %v19070_v34, 0.0 }
 0x2fb   :  { %v19077_v43 = vpop.eup %18471  ;;  %18479 = vpow2.f32 %v1532_v35  ;;  %v621_v45 = vrot.slane %v613_v37, %v18888_v24  ;;  %v628_v46 = vrot.slane %v614_v38, %v18888_v24  ;;  %1537 = vadd.xlane.f32.xlu0 %v1536_v42 }
 0x2fc   :  { %18481 = vpow2.f32 %v1530_v36  ;;  %v1519_v48 = vsub.f32 %v19035_v5, %v1511_v41  ;;  %v160_v49 = vpop.permute.xlu0 %159  ;;  %v1539_v6 = vsel %vm52_vm0, %v19077_v43, 0.0 }
 0x2fd   :  { %v19086_v8 = vpop.eup %18473  ;;  %v661_v9 = vcombine.low %v605_v40, %v621_v45  ;;  %v662_v50 = vcombine.high %v605_v40, %v621_v45  ;;  %v677_v52 = vcombine.low %v612_v44, %v628_v46  ;;  %v678_v53 = vcombine.high %v612_v44, %v628_v46  ;;  %1540 = vadd.xlane.f32.xlu1 %v1539_v6 }
 0x2fe   :  { %v1534_v54 = vmul.f32 1.442695, %v1519_v48  ;;  %v341_v55 = vcombine.low %v19061_v51, %v160_v49  ;;  %v342_v56 = vcombine.high %v19061_v51, %v160_v49  ;;  %v1542_v57 = vsel %vm52_vm0, %v19086_v8, 0.0 }
 0x2ff   :  { %v669_v5 = vrot.slane %v661_v9, %v18890_v31  ;;  %v676_v58 = vrot.slane %v662_v50, %v18890_v31  ;;  %v685_v59 = vrot.slane %v677_v52, %v18890_v31  ;;  %v692_v60 = vrot.slane %v678_v53, %v18890_v31  ;;  %1543 = vadd.xlane.f32.xlu0 %v1542_v57 }
 0x300   :  { %18483 = vpow2.f32 %v1534_v54  ;;  %v349_v0 = vrot.slane %v341_v55, %v18888_v24  ;;  %v356_v61 = vrot.slane %v342_v56, %v18888_v24 }
 0x301   :  { %v19099_v51 = vpop.eup %18475  ;;  %v17303_v62 = vcombine.low %v669_v5, %v676_v58  ;;  %v17305_v2 = vcombine.high %v669_v5, %v676_v58  ;;  %v17307_v3 = vcombine.low %v685_v59, %v692_v60  ;;  %v17309_v4 = vcombine.high %v685_v59, %v692_v60 }
 0x302   :  { %v19101_v10 = vpop.eup %18477  ;;  %v389_v12 = vcombine.low %v333_v47, %v349_v0  ;;  %v390_v13 = vcombine.high %v333_v47, %v349_v0  ;;  %v405_v14 = vcombine.low %v340_v63, %v356_v61  ;;  %v406_v15 = vcombine.high %v340_v63, %v356_v61 }
 0x303   :  { %v1149_v16 = vrot.slane %v17303_v62, %v18888_v24  ;;  %v1165_v17 = vrot.slane %v17305_v2, %v18888_v24  ;;  %v1181_v26 = vrot.slane %v17307_v3, %v18888_v24  ;;  %v1197_v27 = vrot.slane %v17309_v4, %v18888_v24 }
 0x304   :  { %v397_v20 = vrot.slane %v389_v12, %v18890_v31  ;;  %v404_v21 = vrot.slane %v390_v13, %v18890_v31  ;;  %v413_v22 = vrot.slane %v405_v14, %v18890_v31  ;;  %v420_v23 = vrot.slane %v406_v15, %v18890_v31 }
 0x305   :  { %v19109_v25 = vpop.eup %18479  ;;  %v1548_v28 = vsel %vm52_vm0, %v19099_v51, 0.0  ;;  %v1545_v29 = vsel %vm52_vm0, %v19101_v10, 0.0  ;;  %v1205_v44 = vcombine.low %v1149_v16, %v1165_v17  ;;  %v1237_v45 = vcombine.low %v1181_v26, %v1197_v27 }
 0x306   :  { %v19117_v30 = vpop.eup %18481  ;;  %v17295_v32 = vcombine.low %v397_v20, %v404_v21  ;;  %v17297_v33 = vcombine.high %v397_v20, %v404_v21  ;;  %v17299_v35 = vcombine.low %v413_v22, %v420_v23  ;;  %v17301_v36 = vcombine.high %v413_v22, %v420_v23  ;;  %1549 = vadd.xlane.f32.xlu1 %v1548_v28 }
 0x307   :  { %1546 = vadd.xlane.f32.xlu0 %v1545_v29  ;;  %v1554_v37 = vsel %vm52_vm0, %v19109_v25, 0.0  ;;  %v1551_v38 = vsel %vm52_vm0, %v19117_v30, 0.0  ;;  %v1213_v6 = vrot.slane %v1205_v44, %v18890_v31  ;;  %v1245_v53 = vrot.slane %v1237_v45, %v18890_v31 }
 0x308   :  { %v1013_v39 = vrot.slane %v17295_v32, %v18888_v24  ;;  %v1029_v40 = vrot.slane %v17297_v33, %v18888_v24  ;;  %v1045_v41 = vrot.slane %v17299_v35, %v18888_v24  ;;  %v1061_v42 = vrot.slane %v17301_v36, %v18888_v24 }
 0x309   :  { %v1206_v56 = vcombine.high %v1149_v16, %v1165_v17  ;;  %v1238_v57 = vcombine.high %v1181_v26, %v1197_v27  ;;  %v1269_v58 = vcombine.low %v1213_v6, %v1245_v53  ;;  %v1270_v60 = vcombine.high %v1213_v6, %v1245_v53 }
 0x30a   :  { %v18484_v46 = vpop.eup %18483  ;;  %1555 = vadd.xlane.f32.xlu1 %v1554_v37  ;;  %v1069_v47 = vcombine.low %v1013_v39, %v1029_v40  ;;  %v1101_v48 = vcombine.low %v1045_v41, %v1061_v42  ;;  %v1070_v49 = vcombine.high %v1013_v39, %v1029_v40  ;;  %v1102_v55 = vcombine.high %v1045_v41, %v1061_v42 }
 0x30b   :  { %1552 = vadd.xlane.f32.xlu0 %v1551_v38  ;;  %v1557_v9 = vsel %vm52_vm0, %v18484_v46, 0.0  ;;  %v1220_v0 = vrot.slane %v1206_v56, %v18890_v31  ;;  %v1252_v61 = vrot.slane %v1238_v57, %v18890_v31  ;;  %v1560_v14 = vpack.c.bf16 %v19077_v43, %v19070_v34 }
 0x30c   :  { %v1077_v50 = vrot.slane %v1069_v47, %v18890_v31  ;;  %v1109_v52 = vrot.slane %v1101_v48, %v18890_v31  ;;  %v1084_v54 = vrot.slane %v1070_v49, %v18890_v31  ;;  %v1116_v63 = vrot.slane %v1102_v55, %v18890_v31 }
 0x30d   :  { %v1271_v12 = vcombine.low %v1220_v0, %v1252_v61  ;;  %v1272_v13 = vcombine.high %v1220_v0, %v1252_v61  ;;  %v1561_v15 = vpack.c.bf16 %v19101_v10, %v19086_v8  ;;  %v1562_v34 = vpack.c.bf16 %v19117_v30, %v19099_v51  ;;  %v168_v8 = vpop.permute.xlu0 %167 }
 0x30e   :  { %v1133_v5 = vcombine.low %v1077_v50, %v1109_v52  ;;  %v1134_v59 = vcombine.high %v1077_v50, %v1109_v52  ;;  %v1135_v3 = vcombine.low %v1084_v54, %v1116_v63  ;;  %v1136_v4 = vcombine.high %v1084_v54, %v1116_v63 }
 0x30f   :  { %1558 = vadd.xlane.f32.xlu0 %v1557_v9  ;;  %v1563_v43 = vpack.c.bf16 %v18484_v46, %v19109_v25 }
 0x310   :  { %v1285_v62 = vpack.c.bf16 %v1269_v58, %v1133_v5  ;;  %v1286_v2 = vpack.c.bf16 %v1270_v60, %v1134_v59  ;;  %v1287_v16 = vpack.c.bf16 %v1271_v12, %v1135_v3  ;;  %v1288_v17 = vpack.c.bf16 %v1272_v13, %v1136_v4 }
 0x311   :  { %v178_v10 = vpop.permute.xlu0 %177 }
 0x312   :  { %17938 = vmatpush3.bf16.msra.mxu1 %v1285_v62  ;;  %17944 = vmatpush3.bf16.msra.mxu0 %v1286_v2 }
 0x313   :  { %17949 = vmatprep.subr.bf16.mxu1 %v18756_v1  ;;  %17955 = vmatprep.subr.bf16.mxu0 %v18756_v1 }
 0x315   :  { %17940 = vmatmul.mubr.msk.bf16.vlgmr.msra.gmra.mrb[8].mxu1 %vm52_vm0, %v1560_v14  ;;  %17946 = vmatmul.mubr.msk.bf16.vlgmr.msra.gmra.mrb[12].mxu0 %vm52_vm0, %v1561_v15 }
 0x316   :  { %17950 = vmatpush3.bf16.msra.mxu1 %v1287_v16  ;;  %17956 = vmatpush3.bf16.msra.mxu0 %v1288_v17 }
 0x317   :  { %17951 = vmatprep.mubr.msk.bf16.mxu1 %vm18757_vm1, %v18756_v1  ;;  %17957 = vmatprep.mubr.msk.bf16.mxu0 %vm18757_vm1, %v18756_v1 }
 0x318   :  { %17968 = vmatprep.subr.bf16.mxu0 %v18756_v1 }
 0x31b   :  { %185 = vrot.lane.b32.xlu1 %v18850_v11, %s18774_s26  ;;  %v166_v11 = vpop.permute.xlu1 %165 }
 0x31c   :  { %v358_v37 = vcombine.high %v166_v11, %v178_v10 }
 0x31d   :  { %17952 = vmatmul.mubr.msk.bf16.vlgmr.msra.gmra.mrb[12].mxu1 %vm52_vm0, %v1562_v34  ;;  %17958 = vmatmul.mubr.msk.bf16.vlgmr.msra.gmra.mrb[16].mxu0 %vm52_vm0, %v1563_v43 }
 0x31e   :  { %17972 = vmatprep.mubr.msk.bf16.mxu0 %vm18757_vm1, %v18756_v1  ;;  %17965 = vmatprep.mubr.msk.f32.mxu1 %vm18757_vm1, %v18756_v1  ;;  %v372_v46 = vrot.slane %v358_v37, %v18888_v24 }
 0x31f   :  { %v172_v51 = vpop.permute.xlu1 %171 }
 0x323   :  { %v174_v22 = vpop.permute.xlu1 %173 }
 0x325   :  { %183 = vrot.lane.b32.xlu0 %v18844_v7, %s18774_s26  ;;  %v357_v7 = vcombine.low %v166_v11, %v178_v10 }
 0x327   :  { %v180_v25 = vpop.permute.xlu1 %179  ;;  %v365_v45 = vrot.slane %v357_v7, %v18888_v24 }
 0x328   :  { %v629_v42 = vcombine.low %v168_v8, %v180_v25  ;;  %v630_v44 = vcombine.high %v168_v8, %v180_v25 }
 0x32a   :  { %v637_v54 = vrot.slane %v629_v42, %v18888_v24  ;;  %v644_v55 = vrot.slane %v630_v44, %v18888_v24 }
 0x388   :  { %v1538_v20 = vpop.xlane.xlu0 %1537 }
 0x389   :  { %vm1740_vm3 = vcmp.gt.f32.partialorder %v1538_v20, 0.0 }
 0x38a   :  { %v1541_v26 = vpop.xlane.xlu1 %1540  ;;  %v1748_v47 = vsel %vm1740_vm3, %v1538_v20, 1.0 }
 0x38b   :  { %vm1741_vm4 = vcmp.gt.f32.partialorder %v1541_v26, 0.0  ;;  %18485 = vrcp.f32 %v1748_v47 }
 0x38c   :  { %v1544_v21 = vpop.xlane.xlu0 %1543  ;;  %v1749_v48 = vsel %vm1741_vm4, %v1541_v26, 1.0 }
 0x38d   :  { %vm1742_vm5 = vcmp.gt.f32.partialorder %v1544_v21, 0.0  ;;  %18487 = vrcp.f32 %v1749_v48 }
 0x38e   :  { %v1750_v56 = vsel %vm1742_vm5, %v1544_v21, 1.0 }
 0x38f   :  { %18489 = vrcp.f32 %v1750_v56 }
 0x393   :  { %v1550_v28 = vpop.xlane.xlu1 %1549 }
 0x394   :  { %v1547_v23 = vpop.xlane.xlu0 %1546  ;;  %vm1744_vm6 = vcmp.gt.f32.partialorder %v1550_v28, 0.0 }
 0x395   :  { %vm1743_vm7 = vcmp.gt.f32.partialorder %v1547_v23, 0.0  ;;  %v1752_v62 = vsel %vm1744_vm6, %v1550_v28, 1.0  ;;  %v18486_v8 = vpop.eup %18485 }
 0x396   :  { %v1751_v2 = vsel %vm1743_vm7, %v1547_v23, 1.0  ;;  %18491 = vrcp.f32 %v1752_v62 }
 0x397   :  { %v1556_v30 = vpop.xlane.xlu1 %1555  ;;  %18493 = vrcp.f32 %v1751_v2  ;;  %v18488_v21 = vpop.eup %18487 }
 0x398   :  { %v1553_v27 = vpop.xlane.xlu0 %1552  ;;  %vm1746_vm8 = vcmp.gt.f32.partialorder %v1556_v30, 0.0 }
 0x399   :  { %vm1745_vm9 = vcmp.gt.f32.partialorder %v1553_v27, 0.0  ;;  %v1754_v34 = vsel %vm1746_vm8, %v1556_v30, 1.0 }
 0x39a   :  { %v1753_v43 = vsel %vm1745_vm9, %v1553_v27, 1.0  ;;  %18495 = vrcp.f32 %v1754_v34  ;;  %v18490_v27 = vpop.eup %18489 }
 0x39b   :  { %v186_v33 = vpop.permute.xlu1 %185  ;;  %18497 = vrcp.f32 %v1753_v43 }
 0x39c   :  { %v19162_v29 = vpop.xlane.xlu0 %1558  ;;  %v645_v38 = vcombine.low %v174_v22, %v186_v33  ;;  %v646_v39 = vcombine.high %v174_v22, %v186_v33 }
 0x39d   :  { %vm1747_vm10 = vcmp.gt.f32.partialorder %v19162_v29, 0.0 }
 0x39e   :  { %v653_v49 = vrot.slane %v645_v38, %v18888_v24  ;;  %v660_v6 = vrot.slane %v646_v39, %v18888_v24  ;;  %v1755_v28 = vsel %vm1747_vm10, %v19162_v29, 1.0 }
 0x39f   :  { %18499 = vrcp.f32 %v1755_v28 }
 0x3a0   :  { %v184_v32 = vpop.permute.xlu0 %183  ;;  %v693_v57 = vcombine.low %v637_v54, %v653_v49  ;;  %v694_v5 = vcombine.high %v637_v54, %v653_v49  ;;  %v709_v58 = vcombine.low %v644_v55, %v660_v6  ;;  %v710_v59 = vcombine.high %v644_v55, %v660_v6 }
 0x3a1   :  { %v373_v35 = vcombine.low %v172_v51, %v184_v32  ;;  %v374_v36 = vcombine.high %v172_v51, %v184_v32 }
 0x3a2   :  { %v701_v3 = vrot.slane %v693_v57, %v18890_v31  ;;  %v708_v4 = vrot.slane %v694_v5, %v18890_v31  ;;  %v717_v12 = vrot.slane %v709_v58, %v18890_v31  ;;  %v724_v13 = vrot.slane %v710_v59, %v18890_v31 }
 0x3a3   :  { %v381_v40 = vrot.slane %v373_v35, %v18888_v24  ;;  %v388_v41 = vrot.slane %v374_v36, %v18888_v24 }
 0x3a4   :  { %v17304_v11 = vcombine.low %v701_v3, %v708_v4  ;;  %v17306_v10 = vcombine.high %v701_v3, %v708_v4  ;;  %v17308_v20 = vcombine.low %v717_v12, %v724_v13  ;;  %v17310_v51 = vcombine.high %v717_v12, %v724_v13 }
 0x3a5   :  { %v421_v9 = vcombine.low %v365_v45, %v381_v40  ;;  %v422_v50 = vcombine.high %v365_v45, %v381_v40  ;;  %v437_v52 = vcombine.low %v372_v46, %v388_v41  ;;  %v438_v53 = vcombine.high %v372_v46, %v388_v41  ;;  %v18492_v45 = vpop.eup %18491 }
 0x3a6   :  { %v1156_v30 = vrot.slane %v17304_v11, %v18888_v24  ;;  %v1172_v32 = vrot.slane %v17306_v10, %v18888_v24  ;;  %v1188_v33 = vrot.slane %v17308_v20, %v18888_v24  ;;  %v1204_v35 = vrot.slane %v17310_v51, %v18888_v24  ;;  %v18494_v6 = vpop.eup %18493 }
 0x3a7   :  { %v429_v60 = vrot.slane %v421_v9, %v18890_v31  ;;  %v436_v63 = vrot.slane %v422_v50, %v18890_v31  ;;  %v445_v0 = vrot.slane %v437_v52, %v18890_v31  ;;  %v452_v61 = vrot.slane %v438_v53, %v18890_v31  ;;  %v18496_v5 = vpop.eup %18495 }
 0x3a8   :  { %v1221_v46 = vcombine.low %v1156_v30, %v1172_v32  ;;  %v1253_v47 = vcombine.low %v1188_v33, %v1204_v35  ;;  %v1222_v52 = vcombine.high %v1156_v30, %v1172_v32  ;;  %v1254_v53 = vcombine.high %v1188_v33, %v1204_v35 }
 0x3a9   :  { %v17296_v14 = vcombine.low %v429_v60, %v436_v63  ;;  %v17298_v15 = vcombine.high %v429_v60, %v436_v63  ;;  %v17300_v16 = vcombine.low %v445_v0, %v452_v61  ;;  %v17302_v17 = vcombine.high %v445_v0, %v452_v61  ;;  %v18498_v60 = vpop.eup %18497 }
 0x3aa   :  { %v1229_v58 = vrot.slane %v1221_v46, %v18890_v31  ;;  %v1261_v59 = vrot.slane %v1253_v47, %v18890_v31  ;;  %v1236_v2 = vrot.slane %v1222_v52, %v18890_v31  ;;  %v1268_v3 = vrot.slane %v1254_v53, %v18890_v31 }
 0x3ab   :  { %v1020_v22 = vrot.slane %v17296_v14, %v18888_v24  ;;  %v1036_v23 = vrot.slane %v17298_v15, %v18888_v24  ;;  %v1052_v25 = vrot.slane %v17300_v16, %v18888_v24  ;;  %v1068_v26 = vrot.slane %v17302_v17, %v18888_v24  ;;  %v18500_v17 = vpop.eup %18499 }
 0x3ac   :  { %v1274_v30 = vcombine.high %v1229_v58, %v1261_v59  ;;  %v1275_v32 = vcombine.low %v1236_v2, %v1268_v3  ;;  %v1276_v33 = vcombine.high %v1236_v2, %v1268_v3 }
 0x3ad   :  { %v1085_v36 = vcombine.low %v1020_v22, %v1036_v23  ;;  %v1117_v7 = vcombine.low %v1052_v25, %v1068_v26  ;;  %v1086_v41 = vcombine.high %v1020_v22, %v1036_v23  ;;  %v1118_v42 = vcombine.high %v1052_v25, %v1068_v26 }
 0x3af   :  { %v1093_v9 = vrot.slane %v1085_v36, %v18890_v31  ;;  %v1125_v50 = vrot.slane %v1117_v7, %v18890_v31  ;;  %v1100_v54 = vrot.slane %v1086_v41, %v18890_v31  ;;  %v1132_v55 = vrot.slane %v1118_v42, %v18890_v31 }
 0x3b1   :  { %v1137_v63 = vcombine.low %v1093_v9, %v1125_v50  ;;  %v1138_v0 = vcombine.high %v1093_v9, %v1125_v50  ;;  %v1139_v4 = vcombine.low %v1100_v54, %v1132_v55  ;;  %v1140_v13 = vcombine.high %v1100_v54, %v1132_v55 }
 0x3e8   :  { %v1601_v37 = vpop.f32.mrb[8].mxu1  ;;  %v1645_v38 = vpop.f32.mrb[12].mxu0 }
 0x3e9   :  { %v17941_v39 = vpop.f32.mrb[9].mxu1  ;;  %v17947_v40 = vpop.f32.mrb[13].mxu0  ;;  %v1764_v56 = vmul.f32 %v18486_v8, %v1601_v37  ;;  %v1766_v57 = vmul.f32 %v18490_v27, %v1645_v38  ;;  %v1273_v27 = vcombine.low %v1229_v58, %v1261_v59 }
 0x3ea   :  { %v1604_v29 = vpop.f32.mrb[10].mxu1  ;;  %v1648_v44 = vpop.f32.mrb[14].mxu0 }
 0x3eb   :  { %v17942_v48 = vpop.f32.mrb[11].mxu1  ;;  %v17948_v49 = vpop.f32.mrb[15].mxu0  ;;  %v1772_v34 = vadd.f32 %v1764_v56, %v1137_v63  ;;  %v1774_v43 = vadd.f32 %v1766_v57, %v1138_v0  ;;  %v1765_v8 = vmul.f32 %v18488_v21, %v1604_v29  ;;  %v1767_v11 = vmul.f32 %v18494_v6, %v1648_v44 }
 0x3ed   :  { %v1773_v38 = vadd.f32 %v1765_v8, %v1273_v27  ;;  %v1775_v39 = vadd.f32 %v1767_v11, %v1274_v30 }
 0x3f0   :  { %v1689_v61 = vpop.f32.mrb[12].mxu1  ;;  %v1733_v62 = vpop.f32.mrb[16].mxu0 }
 0x3f1   :  { %v1768_v12 = vmul.f32 %v18492_v45, %v1689_v61  ;;  %v1770_v14 = vmul.f32 %v18496_v5, %v1733_v62  ;;  %v17953_v15 = vpop.f32.mrb[13].mxu1  ;;  %v17959_v16 = vpop.f32.mrb[17].mxu0 }
 0x3f2   :  { %v1692_v10 = vpop.f32.mrb[14].mxu1  ;;  %v1736_v20 = vpop.f32.mrb[18].mxu0 }
 0x3f3   :  { %v1776_v51 = vadd.f32 %v1768_v12, %v1139_v4  ;;  %v1778_v22 = vadd.f32 %v1770_v14, %v1140_v13  ;;  %v1769_v23 = vmul.f32 %v18498_v60, %v1692_v10  ;;  %v1771_v25 = vmul.f32 %v18500_v17, %v1736_v20  ;;  %v17954_v26 = vpop.f32.mrb[15].mxu1  ;;  %v17960_v28 = vpop.f32.mrb[19].mxu0 }
 0x3f5   :  { %v1780_v35 = vcombine.low %v1772_v34, %v1776_v51  ;;  %v1781_v36 = vcombine.high %v1772_v34, %v1776_v51  ;;  %v1796_v7 = vcombine.low %v1774_v43, %v1778_v22  ;;  %v1797_v37 = vcombine.high %v1774_v43, %v1778_v22 }
 0x3f6   :  { %v1777_v21 = vadd.f32 %v1769_v23, %v1275_v32  ;;  %v1779_v40 = vadd.f32 %v1771_v25, %v1276_v33 }
 0x3f7   :  { %v1788_v41 = vrot.slane %v1780_v35, %v18888_v24  ;;  %v1795_v42 = vrot.slane %v1781_v36, %v18888_v24  ;;  %v1804_v29 = vrot.slane %v1796_v7, %v18888_v24  ;;  %v1811_v44 = vrot.slane %v1797_v37, %v18888_v24 }
 0x3f8   :  { %v1848_v45 = vcombine.low %v1773_v38, %v1777_v21  ;;  %v1849_v46 = vcombine.high %v1773_v38, %v1777_v21  ;;  %v1864_v47 = vcombine.low %v1775_v39, %v1779_v40  ;;  %v1865_v48 = vcombine.high %v1775_v39, %v1779_v40 }
 0x3f9   :  { %v1812_v49 = vcombine.low %v1788_v41, %v1804_v29  ;;  %v1813_v6 = vcombine.high %v1788_v41, %v1804_v29  ;;  %v1828_v9 = vcombine.low %v1795_v42, %v1811_v44  ;;  %v1829_v50 = vcombine.high %v1795_v42, %v1811_v44 }
 0x3fa   :  { %v1856_v52 = vrot.slane %v1848_v45, %v18888_v24  ;;  %v1863_v53 = vrot.slane %v1849_v46, %v18888_v24  ;;  %v1872_v54 = vrot.slane %v1864_v47, %v18888_v24  ;;  %v1879_v55 = vrot.slane %v1865_v48, %v18888_v24 }
 0x3fb   :  { %v1820_v56 = vrot.slane %v1812_v49, %v18890_v31  ;;  %v1827_v57 = vrot.slane %v1813_v6, %v18890_v31  ;;  %v1836_v5 = vrot.slane %v1828_v9, %v18890_v31  ;;  %v1843_v58 = vrot.slane %v1829_v50, %v18890_v31  ;;  %v18455_v6 = vld [vmem:[%s21978_s4] sm:$0xff]   ;;  %v18456_v50 = vld [vmem:[%s21978_s4 + $0x8] sm:$0xff]  }
 0x3fc   :  { %v1880_v59 = vcombine.low %v1856_v52, %v1872_v54  ;;  %v1881_v60 = vcombine.high %v1856_v52, %v1872_v54  ;;  %v1896_v63 = vcombine.low %v1863_v53, %v1879_v55  ;;  %v1897_v0 = vcombine.high %v1863_v53, %v1879_v55  ;;  %17969 = vmatpush3.bf16.msra.mxu0 %v18455_v6 }
 0x3fd   :  { %v1916_v61 = vcombine.low %v1820_v56, %v1827_v57  ;;  %v17319_v62 = vcombine.high %v1820_v56, %v1827_v57  ;;  %v1932_v2 = vcombine.low %v1836_v5, %v1843_v58  ;;  %v17320_v3 = vcombine.high %v1836_v5, %v1843_v58  ;;  %17970 = vmatprep.subr.bf16.mxu0 %v18756_v1  ;;  %v17323_v57 = vld [vmem:[%s21980_s6] ss:$0 sm:$0xff] }
 0x3fe   :  { %v1888_v4 = vrot.slane %v1880_v59, %v18890_v31  ;;  %v1895_v12 = vrot.slane %v1881_v60, %v18890_v31  ;;  %v1904_v13 = vrot.slane %v1896_v63, %v18890_v31  ;;  %v1911_v14 = vrot.slane %v1897_v0, %v18890_v31  ;;  %v17324_v63 = vld [vmem:[%s21981_s7] ss:$0 sm:$0xff] }
 0x3ff   :  { %v1923_v15 = vrot.slane %v1916_v61, %v18888_v24  ;;  %v1931_v16 = vrot.slane %v17319_v62, %v18888_v24  ;;  %v1939_v17 = vrot.slane %v1932_v2, %v18888_v24  ;;  %v1947_v34 = vrot.slane %v17320_v3, %v18888_v24 }
 0x400   :  { %v1984_v43 = vcombine.low %v1888_v4, %v1895_v12  ;;  %v17321_v8 = vcombine.high %v1888_v4, %v1895_v12  ;;  %v2000_v11 = vcombine.low %v1904_v13, %v1911_v14  ;;  %v17322_v10 = vcombine.high %v1904_v13, %v1911_v14  ;;  %17971 = vmatpush3.bf16.msra.mxu0 %v18456_v50 }
 0x401   :  { %v1948_v20 = vcombine.low %v1923_v15, %v1931_v16  ;;  %v1964_v51 = vcombine.low %v1939_v17, %v1947_v34  ;;  %v1949_v22 = vcombine.high %v1923_v15, %v1931_v16  ;;  %v1965_v23 = vcombine.high %v1939_v17, %v1947_v34  ;;  %17982 = vmatprep.subr.bf16.mxu0 %v18756_v1  ;;  %v17327_v16 = vld [vmem:[%s21979_s5 + $0x1] ss:$0 sm:$0xff] }
 0x402   :  { %v1991_v25 = vrot.slane %v1984_v43, %v18888_v24  ;;  %v1999_v26 = vrot.slane %v17321_v8, %v18888_v24  ;;  %v2007_v28 = vrot.slane %v2000_v11, %v18888_v24  ;;  %v2015_v27 = vrot.slane %v17322_v10, %v18888_v24 }
 0x403   :  { %v1956_v30 = vrot.slane %v1948_v20, %v18890_v31  ;;  %v1972_v32 = vrot.slane %v1964_v51, %v18890_v31  ;;  %v1963_v33 = vrot.slane %v1949_v22, %v18890_v31  ;;  %v1979_v35 = vrot.slane %v1965_v23, %v18890_v31  ;;  %v33_v20 = vld [vmem:[%s21976_s2] sm:$0x3] }
 0x404   :  { %v2016_v36 = vcombine.low %v1991_v25, %v1999_v26  ;;  %v2032_v7 = vcombine.low %v2007_v28, %v2015_v27  ;;  %v2017_v37 = vcombine.high %v1991_v25, %v1999_v26  ;;  %v2033_v38 = vcombine.high %v2007_v28, %v2015_v27 }
 0x405   :  { %v1981_v39 = vcombine.high %v1956_v30, %v1972_v32  ;;  %v1982_v21 = vcombine.low %v1963_v33, %v1979_v35  ;;  %v1983_v40 = vcombine.high %v1963_v33, %v1979_v35  ;;  %v1980_v41 = vcombine.low %v1956_v30, %v1972_v32 }
 0x406   :  { %v2024_v42 = vrot.slane %v2016_v36, %v18890_v31  ;;  %v2040_v29 = vrot.slane %v2032_v7, %v18890_v31  ;;  %v2031_v44 = vrot.slane %v2017_v37, %v18890_v31  ;;  %v2047_v45 = vrot.slane %v2033_v38, %v18890_v31 }
 0x407   :  { %2054 = vrot.lane.b32.xlu0 %v1981_v39, %s18774_s26  ;;  %v18775_v9 = vmov 0.0|0.0  }
 0x408   :  { %v2049_v46 = vcombine.high %v2024_v42, %v2040_v29  ;;  %v2050_v47 = vcombine.low %v2031_v44, %v2047_v45  ;;  %v2051_v48 = vcombine.high %v2031_v44, %v2047_v45  ;;  %v2048_v49 = vcombine.low %v2024_v42, %v2040_v29  ;;  %18409 = vmatprep.subr.bf16.mxu1 %v18775_v9 }
 0x40a   :  { %2056 = vrot.lane.b32.xlu1 %v2049_v46, %s18774_s26 }
 0x40b   :  { %2062 = vrot.lane.b32.xlu0 %v1982_v21, %s18773_s25 }
 0x40e   :  { %2064 = vrot.lane.b32.xlu1 %v2050_v47, %s18773_s25 }
 0x40f   :  { %2070 = vrot.lane.b32.xlu0 %v1983_v40, %s18772_s24 }
 0x412   :  { %2072 = vrot.lane.b32.xlu1 %v2051_v48, %s18772_s24 }
 0x479   :  { %v2055_v52 = vpop.permute.xlu0 %2054 }
 0x47a   :  { %v2076_v55 = vsel %vm1291_vm2, %v1980_v41, %v2055_v52 }
 0x47c   :  { %v2057_v53 = vpop.permute.xlu1 %2056 }
 0x47d   :  { %v2063_v54 = vpop.permute.xlu0 %2062  ;;  %v2077_v60 = vsel %vm1291_vm2, %v2048_v49, %v2057_v53 }
 0x47e   :  { %v2078_v5 = vsel %vm52_vm0, %v2076_v55, %v2063_v54 }
 0x480   :  { %v2065_v56 = vpop.permute.xlu1 %2064 }
 0x481   :  { %v2071_v58 = vpop.permute.xlu0 %2070  ;;  %v2079_v61 = vsel %vm52_vm0, %v2077_v60, %v2065_v56 }
 0x482   :  { %v2081_v59 = vsel %vm2080_vm11, %v2078_v5, %v2071_v58 }
 0x483   :  { %v2090_v0 = vmul.f32 %v17323_v57, %v2081_v59 }
 0x484   :  { %v2073_v62 = vpop.permute.xlu1 %2072 }
 0x485   :  { %v2082_v2 = vsel %vm2080_vm11, %v2079_v61, %v2073_v62  ;;  %v2099_v3 = vadd.f32 %v17324_v63, %v2090_v0 }
 0x486   :  { %v2091_v4 = vmul.f32 %v17323_v57, %v2082_v2 }
 0x487   :  { %v2101_v13 = vmax.f32 %v2099_v3, 0.0 }
 0x488   :  { %v2100_v12 = vadd.f32 %v17324_v63, %v2091_v4 }
 0x48a   :  { %v2102_v14 = vmax.f32 %v2100_v12, 0.0 }
 0x48c   :  { %v18410_v15 = vpack.c.bf16 %v2102_v14, %v2101_v13 }
 0x48e   :  { %18411 = vmatpush3.bf16.msra.mxu1 %v18410_v15  ;;  %17973 = vmatmul.mubr.msk.bf16.vlgmr.msra.gmra.mrb[20].mxu0 %vm2203_vm12, %v18410_v15 }
 0x48f   :  { %17976 = vmatprep.subr.bf16.mxu1 %v18756_v1  ;;  %17984 = vmatprep.mubr.msk.bf16.mxu0 %vm18757_vm1, %v18756_v1 }
 0x491   :  { %17966 = vmatmul.mubr.msk.f32.vlgmr.msra.gmra.mrb[16].mxu1 %vm52_vm0, %v33_v20 }
 0x492   :  { %17978 = vmatprep.mubr.msk.bf16.mxu1 %vm18757_vm1, %v18756_v1 }
 0x561   :  { %v2241_v17 = vpop.f32.mrb[20].mxu0 }
 0x562   :  { %v19264_v34 = vadd.f32 %v17327_v16, %v2241_v17  ;;  %v17974_v43 = vpop.f32.mrb[21].mxu0 }
 0x563   :  { %v2244_v8 = vpop.f32.mrb[22].mxu0 }
 0x564   :  { %v19266_v11 = vadd.f32 %v17327_v16, %v2244_v8  ;;  %2268 = vrot.lane.b32.xlu0 %v19264_v34, %s18759_s12  ;;  %v17975_v10 = vpop.f32.mrb[23].mxu0 }
 0x566   :  { %2270 = vrot.lane.b32.xlu1 %v19266_v11, %s18759_s12 }
 0x568   :  { %2274 = vrot.lane.b32.xlu0 %v19264_v34, %s18758_s11 }
 0x56a   :  { %2276 = vrot.lane.b32.xlu1 %v19266_v11, %s18758_s11 }
 0x56c   :  { %2280 = vrot.lane.b32.xlu0 %v19264_v34, %s18760_s13 }
 0x56e   :  { %2282 = vrot.lane.b32.xlu1 %v19266_v11, %s18760_s13 }
 0x570   :  { %2286 = vrot.lane.b32.xlu0 %v19264_v34, %s18761_s14 }
 0x572   :  { %2288 = vrot.lane.b32.xlu1 %v19266_v11, %s18761_s14 }
 0x574   :  { %2250 = vrot.lane.b32.xlu0 %v19264_v34, %s18762_s15 }
 0x576   :  { %2252 = vrot.lane.b32.xlu1 %v19266_v11, %s18762_s15 }
 0x578   :  { %2256 = vrot.lane.b32.xlu0 %v19264_v34, %s18763_s16 }
 0x57a   :  { %2258 = vrot.lane.b32.xlu1 %v19266_v11, %s18763_s16 }
 0x57c   :  { %2262 = vrot.lane.b32.xlu0 %v19264_v34, %s18764_s17 }
 0x57e   :  { %2264 = vrot.lane.b32.xlu1 %v19266_v11, %s18764_s17 }
 0x580   :  { %2304 = vrot.lane.b32.xlu0 %v19264_v34, %s18766_s19 }
 0x582   :  { %2292 = vrot.lane.b32.xlu1 %v19264_v34, %s18765_s18 }
 0x584   :  { %2294 = vrot.lane.b32.xlu0 %v19266_v11, %s18765_s18 }
 0x586   :  { %2298 = vrot.lane.b32.xlu1 %v19264_v34, %s18767_s20 }
 0x58a   :  { %2300 = vrot.lane.b32.xlu1 %v19266_v11, %s18767_s20 }
 0x58e   :  { %2306 = vrot.lane.b32.xlu1 %v19266_v11, %s18766_s19 }
 0x5d6   :  { %v2269_v51 = vpop.permute.xlu0 %2268 }
 0x5d8   :  { %v2271_v22 = vpop.permute.xlu1 %2270 }
 0x5da   :  { %v2275_v23 = vpop.permute.xlu0 %2274 }
 0x5dc   :  { %v2277_v25 = vpop.permute.xlu1 %2276 }
 0x5de   :  { %v2281_v26 = vpop.permute.xlu0 %2280 }
 0x5df   :  { %v2372_v28 = vcombine.low %v2269_v51, %v2281_v26  ;;  %v2373_v27 = vcombine.high %v2269_v51, %v2281_v26 }
 0x5e0   :  { %v2283_v30 = vpop.permute.xlu1 %2282 }
 0x5e1   :  { %v2380_v36 = vrot.slane %v2372_v28, %v18888_v24  ;;  %v2387_v7 = vrot.slane %v2373_v27, %v18888_v24  ;;  %v2644_v37 = vcombine.low %v2271_v22, %v2283_v30  ;;  %v2645_v38 = vcombine.high %v2271_v22, %v2283_v30 }
 0x5e2   :  { %v2287_v32 = vpop.permute.xlu0 %2286 }
 0x5e3   :  { %v2388_v33 = vcombine.low %v2275_v23, %v2287_v32  ;;  %v2389_v35 = vcombine.high %v2275_v23, %v2287_v32  ;;  %v2652_v48 = vrot.slane %v2644_v37, %v18888_v24  ;;  %v2659_v52 = vrot.slane %v2645_v38, %v18888_v24 }
 0x5e4   :  { %v2289_v39 = vpop.permute.xlu1 %2288 }
 0x5e5   :  { %v2396_v21 = vrot.slane %v2388_v33, %v18888_v24  ;;  %v2403_v40 = vrot.slane %v2389_v35, %v18888_v24  ;;  %v2660_v41 = vcombine.low %v2277_v25, %v2289_v39  ;;  %v2661_v42 = vcombine.high %v2277_v25, %v2289_v39 }
 0x5e6   :  { %v2251_v29 = vpop.permute.xlu0 %2250 }
 0x5e7   :  { %v2436_v44 = vcombine.low %v2380_v36, %v2396_v21  ;;  %v2437_v45 = vcombine.high %v2380_v36, %v2396_v21  ;;  %v2452_v46 = vcombine.low %v2387_v7, %v2403_v40  ;;  %v2453_v47 = vcombine.high %v2387_v7, %v2403_v40 }
 0x5e8   :  { %v2668_v49 = vrot.slane %v2660_v41, %v18888_v24  ;;  %v2675_v6 = vrot.slane %v2661_v42, %v18888_v24  ;;  %v2253_v50 = vpop.permute.xlu1 %2252 }
 0x5e9   :  { %v2444_v53 = vrot.slane %v2436_v44, %v18890_v31  ;;  %v2451_v54 = vrot.slane %v2437_v45, %v18890_v31  ;;  %v2460_v5 = vrot.slane %v2452_v46, %v18890_v31  ;;  %v2467_v58 = vrot.slane %v2453_v47, %v18890_v31 }
 0x5ea   :  { %v2708_v55 = vcombine.low %v2652_v48, %v2668_v49  ;;  %v2709_v56 = vcombine.high %v2652_v48, %v2668_v49  ;;  %v2257_v57 = vpop.permute.xlu0 %2256  ;;  %v2724_v59 = vcombine.low %v2659_v52, %v2675_v6  ;;  %v2725_v60 = vcombine.high %v2659_v52, %v2675_v6 }
 0x5eb   :  { %v17332_v62 = vcombine.low %v2444_v53, %v2451_v54  ;;  %v17334_v2 = vcombine.high %v2444_v53, %v2451_v54  ;;  %v2340_v3 = vcombine.low %v19264_v34, %v2257_v57  ;;  %v2341_v4 = vcombine.high %v19264_v34, %v2257_v57 }
 0x5ec   :  { %v2259_v63 = vpop.permute.xlu1 %2258  ;;  %v2716_v0 = vrot.slane %v2708_v55, %v18890_v31  ;;  %v2723_v61 = vrot.slane %v2709_v56, %v18890_v31  ;;  %v17336_v13 = vcombine.low %v2460_v5, %v2467_v58  ;;  %v17338_v14 = vcombine.high %v2460_v5, %v2467_v58 }
 0x5ed   :  { %v2612_v15 = vcombine.low %v19266_v11, %v2259_v63  ;;  %v2613_v16 = vcombine.high %v19266_v11, %v2259_v63  ;;  %v2732_v17 = vrot.slane %v2724_v59, %v18890_v31  ;;  %v2739_v43 = vrot.slane %v2725_v60, %v18890_v31 }
 0x5ee   :  { %v2263_v12 = vpop.permute.xlu0 %2262  ;;  %v17340_v51 = vcombine.low %v2716_v0, %v2723_v61  ;;  %v17342_v22 = vcombine.high %v2716_v0, %v2723_v61  ;;  %v2348_v26 = vrot.slane %v2340_v3, %v18888_v24  ;;  %v2355_v28 = vrot.slane %v2341_v4, %v18888_v24 }
 0x5ef   :  { %v2356_v8 = vcombine.low %v2251_v29, %v2263_v12  ;;  %v2357_v10 = vcombine.high %v2251_v29, %v2263_v12  ;;  %v2620_v32 = vrot.slane %v2612_v15, %v18888_v24  ;;  %v2627_v33 = vrot.slane %v2613_v16, %v18888_v24 }
 0x5f0   :  { %v2265_v20 = vpop.permute.xlu1 %2264  ;;  %v2915_v52 = vrot.slane %v17334_v2, %v18888_v24  ;;  %v2931_v53 = vrot.slane %v17336_v13, %v18888_v24  ;;  %v2947_v54 = vrot.slane %v17338_v14, %v18888_v24  ;;  %v17344_v0 = vcombine.low %v2732_v17, %v2739_v43 }
 0x5f1   :  { %v2628_v23 = vcombine.low %v2253_v50, %v2265_v20  ;;  %v2629_v25 = vcombine.high %v2253_v50, %v2265_v20  ;;  %v2364_v27 = vrot.slane %v2356_v8, %v18888_v24  ;;  %v2371_v30 = vrot.slane %v2357_v10, %v18888_v24 }
 0x5f2   :  { %v2899_v50 = vrot.slane %v17332_v62, %v18888_v24  ;;  %v17346_v61 = vcombine.high %v2732_v17, %v2739_v43  ;;  %v3035_v3 = vrot.slane %v17340_v51, %v18888_v24  ;;  %v3051_v62 = vrot.slane %v17342_v22, %v18888_v24 }
 0x5f3   :  { %v2636_v35 = vrot.slane %v2628_v23, %v18888_v24  ;;  %v2643_v36 = vrot.slane %v2629_v25, %v18888_v24  ;;  %v2404_v7 = vcombine.low %v2348_v26, %v2364_v27  ;;  %v2405_v37 = vcombine.high %v2348_v26, %v2364_v27 }
 0x5f4   :  { %v2420_v38 = vcombine.low %v2355_v28, %v2371_v30  ;;  %v2421_v39 = vcombine.high %v2355_v28, %v2371_v30  ;;  %v2964_v4 = vcombine.low %v2899_v50, %v2915_v52  ;;  %v2996_v2 = vcombine.low %v2931_v53, %v2947_v54 }
 0x5f5   :  { %v2676_v21 = vcombine.low %v2620_v32, %v2636_v35  ;;  %v2677_v40 = vcombine.high %v2620_v32, %v2636_v35  ;;  %v2692_v41 = vcombine.low %v2627_v33, %v2643_v36  ;;  %v2693_v42 = vcombine.high %v2627_v33, %v2643_v36 }
 0x5f6   :  { %v2412_v29 = vrot.slane %v2404_v7, %v18890_v31  ;;  %v2419_v44 = vrot.slane %v2405_v37, %v18890_v31  ;;  %v2428_v45 = vrot.slane %v2420_v38, %v18890_v31  ;;  %v2435_v46 = vrot.slane %v2421_v39, %v18890_v31 }
 0x5f7   :  { %v2684_v47 = vrot.slane %v2676_v21, %v18890_v31  ;;  %v2691_v48 = vrot.slane %v2677_v40, %v18890_v31  ;;  %v2700_v49 = vrot.slane %v2692_v41, %v18890_v31  ;;  %v2707_v6 = vrot.slane %v2693_v42, %v18890_v31 }
 0x5f8   :  { %v17331_v58 = vcombine.low %v2412_v29, %v2419_v44  ;;  %v17333_v59 = vcombine.high %v2412_v29, %v2419_v44  ;;  %v17335_v60 = vcombine.low %v2428_v45, %v2435_v46  ;;  %v17337_v63 = vcombine.high %v2428_v45, %v2435_v46 }
 0x5f9   :  { %v17339_v55 = vcombine.low %v2684_v47, %v2691_v48  ;;  %v17341_v56 = vcombine.high %v2684_v47, %v2691_v48  ;;  %v17343_v57 = vcombine.low %v2700_v49, %v2707_v6  ;;  %v17345_v5 = vcombine.high %v2700_v49, %v2707_v6 }
 0x5fa   :  { %v19361_v16 = vrot.slane %v17331_v58, %v18888_v24  ;;  %v2908_v8 = vrot.slane %v17333_v59, %v18888_v24  ;;  %v2924_v17 = vrot.slane %v17335_v60, %v18888_v24  ;;  %v2940_v43 = vrot.slane %v17337_v63, %v18888_v24 }
 0x5fb   :  { %v3028_v12 = vrot.slane %v17339_v55, %v18888_v24  ;;  %v3044_v13 = vrot.slane %v17341_v56, %v18888_v24  ;;  %v3060_v14 = vrot.slane %v17343_v57, %v18888_v24  ;;  %v3076_v15 = vrot.slane %v17345_v5, %v18888_v24 }
 0x5fc   :  { %v3067_v10 = vrot.slane %v17344_v0, %v18888_v24  ;;  %v3083_v20 = vrot.slane %v17346_v61, %v18888_v24  ;;  %v3100_v51 = vcombine.low %v3035_v3, %v3051_v62  ;;  %v2972_v22 = vrot.slane %v2964_v4, %v18890_v31 }
 0x5fd   :  { %v3004_v23 = vrot.slane %v2996_v2, %v18890_v31  ;;  %v3084_v25 = vcombine.low %v3028_v12, %v3044_v13  ;;  %v3116_v26 = vcombine.low %v3060_v14, %v3076_v15  ;;  %v2948_v30 = vcombine.low %v19361_v16, %v2908_v8 }
 0x5fe   :  { %v3108_v28 = vrot.slane %v3100_v51, %v18890_v31  ;;  %v3132_v27 = vcombine.low %v3067_v10, %v3083_v20  ;;  %v2980_v32 = vcombine.low %v2924_v17, %v2940_v43  ;;  %v2965_v35 = vcombine.high %v2899_v50, %v2915_v52 }
 0x5ff   :  { %v2997_v36 = vcombine.high %v2931_v53, %v2947_v54  ;;  %v3016_v7 = vcombine.low %v2972_v22, %v3004_v23  ;;  %v3017_v37 = vcombine.high %v2972_v22, %v3004_v23  ;;  %v3092_v21 = vrot.slane %v3084_v25, %v18890_v31  ;;  %v2172_v23 = vpop.f32.mrb[16].mxu1 }
 0x600   :  { %v3140_v33 = vrot.slane %v3132_v27, %v18890_v31  ;;  %v3124_v40 = vrot.slane %v3116_v26, %v18890_v31  ;;  %v2956_v41 = vrot.slane %v2948_v30, %v18890_v31  ;;  %v2988_v42 = vrot.slane %v2980_v32, %v18890_v31  ;;  %2177 = vst.msk [vmem:[#allocation2] sm:$0x3] %vm2176_vm13, %v2172_v23  ;;  %v17967_v25 = vpop.f32.mrb[17].mxu1 }
 0x601   :  { %v3101_v29 = vcombine.high %v3035_v3, %v3051_v62  ;;  %v3133_v44 = vcombine.high %v3067_v10, %v3083_v20  ;;  %v2979_v47 = vrot.slane %v2965_v35, %v18890_v31  ;;  %v3011_v48 = vrot.slane %v2997_v36, %v18890_v31 }
 0x602   :  { %v3152_v38 = vcombine.low %v3108_v28, %v3140_v33  ;;  %v3153_v39 = vcombine.high %v3108_v28, %v3140_v33  ;;  %v3085_v49 = vcombine.high %v3028_v12, %v3044_v13  ;;  %v3117_v6 = vcombine.high %v3060_v14, %v3076_v15 }
 0x603   :  { %v3115_v50 = vrot.slane %v3101_v29, %v18890_v31  ;;  %v3147_v52 = vrot.slane %v3133_v44, %v18890_v31  ;;  %v3148_v55 = vcombine.low %v3092_v21, %v3124_v40  ;;  %v3149_v56 = vcombine.high %v3092_v21, %v3124_v40 }
 0x604   :  { %v3432_v45 = vpack.c.bf16 %v3152_v38, %v3016_v7  ;;  %v3433_v46 = vpack.c.bf16 %v3153_v39, %v3017_v37  ;;  %v3012_v57 = vcombine.low %v2956_v41, %v2988_v42  ;;  %v3013_v59 = vcombine.high %v2956_v41, %v2988_v42 }
 0x605   :  { %v3154_v5 = vcombine.low %v3115_v50, %v3147_v52  ;;  %v3155_v58 = vcombine.high %v3115_v50, %v3147_v52  ;;  %v3018_v60 = vcombine.low %v2979_v47, %v3011_v48  ;;  %v3019_v63 = vcombine.high %v2979_v47, %v3011_v48 }
 0x606   :  { %v3444_v53 = vsel %vm1291_vm2, %v3432_v45, 0  ;;  %v3491_v54 = vsel %vm1291_vm2, %v3433_v46, 0  ;;  %v2949_v0 = vcombine.high %v19361_v16, %v2908_v8  ;;  %v2981_v61 = vcombine.high %v2924_v17, %v2940_v43 }
 0x607   :  { %17977 = vmatpush3.bf16.xpose.msra.mxu1 %v3444_v53  ;;  %17983 = vmatpush3.bf16.xpose.msra.mxu0 %v3491_v54  ;;  %v3428_v3 = vpack.c.bf16 %v3148_v55, %v3012_v57  ;;  %v3429_v62 = vpack.c.bf16 %v3149_v56, %v3013_v59  ;;  %v3434_v4 = vpack.c.bf16 %v3154_v5, %v3018_v60  ;;  %v19446_v60 = vpop.permute.xlu0 %2304 }
 0x608   :  { %17988 = vmatprep.subr.bf16.mxu1 %v18756_v1  ;;  %17994 = vmatprep.subr.bf16.mxu0 %v18756_v1  ;;  %v3435_v2 = vpack.c.bf16 %v3155_v58, %v3019_v63  ;;  %v3099_v12 = vrot.slane %v3085_v49, %v18890_v31  ;;  %v3131_v13 = vrot.slane %v3117_v6, %v18890_v31  ;;  %v19442_v58 = vpop.permute.xlu1 %2292 }
 0x609   :  { %v3538_v14 = vsel %vm1291_vm2, %v3434_v4, 0  ;;  %v2963_v10 = vrot.slane %v2949_v0, %v18890_v31  ;;  %v2995_v16 = vrot.slane %v2981_v61, %v18890_v31 }
 0x60a   :  { %v3585_v15 = vsel %vm1291_vm2, %v3435_v2, 0  ;;  %v3150_v8 = vcombine.low %v3099_v12, %v3131_v13  ;;  %v3151_v17 = vcombine.high %v3099_v12, %v3131_v13 }
 0x60b   :  { %v3014_v43 = vcombine.low %v2963_v10, %v2995_v16  ;;  %v3015_v20 = vcombine.high %v2963_v10, %v2995_v16  ;;  %v2295_v0 = vpop.permute.xlu0 %2294 }
 0x60c   :  { %v19444_v59 = vpop.permute.xlu1 %2298 }
 0x60d   :  { %v3430_v51 = vpack.c.bf16 %v3150_v8, %v3014_v43  ;;  %v3431_v22 = vpack.c.bf16 %v3151_v17, %v3015_v20 }
 0x60e   :  { %17979 = vmatmul.mubr.msk.bf16.vlgmr.msra.gmra.mrb[20].mxu1 %vm1291_vm2, %v3428_v3  ;;  %17985 = vmatmul.mubr.msk.bf16.vlgmr.msra.gmra.mrb[24].mxu0 %vm1291_vm2, %v3429_v62 }
 0x60f   :  { %17989 = vmatpush3.bf16.xpose.msra.mxu1 %v3538_v14  ;;  %17995 = vmatpush3.bf16.xpose.msra.mxu0 %v3585_v15 }
 0x610   :  { %17990 = vmatprep.mubr.msk.bf16.mxu1 %vm18757_vm1, %v18756_v1  ;;  %17996 = vmatprep.mubr.msk.bf16.mxu0 %vm18757_vm1, %v18756_v1  ;;  %v2301_v63 = vpop.permute.xlu1 %2300 }
 0x611   :  { %18000 = vmatprep.subr.bf16.mxu1 %v18756_v1  ;;  %18006 = vmatprep.subr.bf16.mxu0 %v18756_v1 }
 0x614   :  { %v2307_v61 = vpop.permute.xlu1 %2306 }
 0x616   :  { %17991 = vmatmul.mubr.msk.bf16.vlgmr.msra.gmra.mrb[24].mxu1 %vm1291_vm2, %v3430_v51  ;;  %17997 = vmatmul.mubr.msk.bf16.vlgmr.msra.gmra.mrb[28].mxu0 %vm1291_vm2, %v3431_v22 }
 0x617   :  { %18002 = vmatprep.mubr.msk.bf16.mxu1 %vm18757_vm1, %v18756_v1  ;;  %18008 = vmatprep.mubr.msk.bf16.mxu0 %vm18757_vm1, %v18756_v1 }
 0x6e1   :  { %v3480_v26 = vpop.f32.mrb[20].mxu1  ;;  %v3527_v28 = vpop.f32.mrb[24].mxu0 }
 0x6e2   :  { %v3481_v27 = vadd.f32 %v19011_v18, %v3480_v26  ;;  %v17980_v30 = vpop.f32.mrb[21].mxu1  ;;  %v17986_v32 = vpop.f32.mrb[25].mxu0  ;;  %v3528_v36 = vadd.f32 %v19011_v18, %v3527_v28 }
 0x6e3   :  { %v3483_v33 = vpop.f32.mrb[22].mxu1  ;;  %v3530_v35 = vpop.f32.mrb[26].mxu0 }
 0x6e4   :  { %v3484_v7 = vadd.f32 %v19013_v19, %v3483_v33  ;;  %v17981_v37 = vpop.f32.mrb[23].mxu1  ;;  %v17987_v38 = vpop.f32.mrb[27].mxu0  ;;  %v3628_v39 = vsel %vm52_vm0, %v3481_v27, -inf  ;;  %v3531_v40 = vadd.f32 %v19013_v19, %v3530_v35  ;;  %v3634_v41 = vsel %vm52_vm0, %v3528_v36, -inf }
 0x6e5   :  { %3629 = vmax.xlane.f32.xlu0 %v3628_v39  ;;  %v2748_v35 = vcombine.low %v2295_v0, %v2307_v61  ;;  %v2476_v38 = vcombine.low %v19442_v58, %v19446_v60 }
 0x6e6   :  { %v3631_v21 = vsel %vm52_vm0, %v3484_v7, -inf  ;;  %v3637_v53 = vsel %vm52_vm0, %v3531_v40, -inf }
 0x6e7   :  { %3632 = vmax.xlane.f32.xlu1 %v3631_v21 }
 0x6e9   :  { %v3621_v42 = vpop.f32.mrb[28].mxu0  ;;  %3635 = vmax.xlane.f32.xlu0 %v3634_v41  ;;  %v3574_v29 = vpop.f32.mrb[24].mxu1 }
 0x6ea   :  { %v3575_v44 = vadd.f32 %v19011_v18, %v3574_v29  ;;  %v17992_v45 = vpop.f32.mrb[25].mxu1  ;;  %v17998_v46 = vpop.f32.mrb[29].mxu0  ;;  %v3622_v49 = vadd.f32 %v19011_v18, %v3621_v42 }
 0x6eb   :  { %v3577_v47 = vpop.f32.mrb[26].mxu1  ;;  %v3624_v48 = vpop.f32.mrb[30].mxu0  ;;  %v2477_v45 = vcombine.high %v19442_v58, %v19446_v60  ;;  %v2756_v46 = vrot.slane %v2748_v35, %v18888_v24 }
 0x6ec   :  { %v3578_v6 = vadd.f32 %v19013_v19, %v3577_v47  ;;  %v17993_v50 = vpop.f32.mrb[27].mxu1  ;;  %v17999_v52 = vpop.f32.mrb[31].mxu0  ;;  %v3640_v54 = vsel %vm52_vm0, %v3575_v44, -inf  ;;  %v19420_v55 = vadd.f32 %v19013_v19, %v3624_v48  ;;  %v3646_v56 = vsel %vm52_vm0, %v3622_v49, -inf }
 0x6ed   :  { %3638 = vmax.xlane.f32.xlu0 %v3637_v53  ;;  %3641 = vmax.xlane.f32.xlu1 %v3640_v54  ;;  %v2484_v53 = vrot.slane %v2476_v38, %v18888_v24 }
 0x6ee   :  { %v3643_v57 = vsel %vm52_vm0, %v3578_v6, -inf  ;;  %v3649_v5 = vsel %vm52_vm0, %v19420_v55, -inf }
 0x6f1   :  { %3647 = vmax.xlane.f32.xlu1 %v3646_v56  ;;  %3644 = vmax.xlane.f32.xlu0 %v3643_v57 }
 0x6f5   :  { %3650 = vmax.xlane.f32.xlu0 %v3649_v5 }
 0x702   :  { %2312 = vrot.lane.b32.xlu1 %v19266_v11, %s18770_s1 }
 0x706   :  { %2316 = vrot.lane.b32.xlu1 %v19264_v34, %s18771_s23 }
 0x70a   :  { %2322 = vrot.lane.b32.xlu1 %v19264_v34, %s18772_s24 }
 0x70b   :  { %2310 = vrot.lane.b32.xlu0 %v19264_v34, %s18770_s1 }
 0x70e   :  { %2324 = vrot.lane.b32.xlu1 %v19266_v11, %s18772_s24 }
 0x70f   :  { %2318 = vrot.lane.b32.xlu0 %v19266_v11, %s18771_s23 }
 0x712   :  { %2330 = vrot.lane.b32.xlu1 %v19266_v11, %s18773_s25 }
 0x713   :  { %2328 = vrot.lane.b32.xlu0 %v19264_v34, %s18773_s25 }
 0x772   :  { %v3630_v3 = vpop.xlane.xlu0 %3629 }
 0x773   :  { %v3652_v62 = vmax.f32 %v3630_v3, 0.0 }
 0x774   :  { %v3633_v4 = vpop.xlane.xlu1 %3632 }
 0x775   :  { %v3660_v2 = vsub.f32 %v3481_v27, %v3652_v62  ;;  %v3653_v12 = vmax.f32 %v3633_v4, 0.0 }
 0x776   :  { %v3636_v13 = vpop.xlane.xlu0 %3635 }
 0x777   :  { %v3668_v14 = vmul.f32 1.442695, %v3660_v2  ;;  %v3661_v15 = vsub.f32 %v3484_v7, %v3653_v12  ;;  %v3654_v10 = vmax.f32 %v3636_v13, 0.0  ;;  %v2749_v7 = vcombine.high %v2295_v0, %v2307_v61 }
 0x779   :  { %18501 = vpow2.f32 %v3668_v14  ;;  %v3670_v16 = vmul.f32 1.442695, %v3661_v15  ;;  %v3662_v8 = vsub.f32 %v3528_v36, %v3654_v10  ;;  %v2491_v14 = vrot.slane %v2477_v45, %v18888_v24 }
 0x77a   :  { %v3639_v17 = vpop.xlane.xlu0 %3638  ;;  %v3642_v43 = vpop.xlane.xlu1 %3641 }
 0x77b   :  { %18503 = vpow2.f32 %v3670_v16  ;;  %v3672_v20 = vmul.f32 1.442695, %v3662_v8  ;;  %v3655_v51 = vmax.f32 %v3639_v17, 0.0  ;;  %v3656_v22 = vmax.f32 %v3642_v43, 0.0 }
 0x77d   :  { %18505 = vpow2.f32 %v3672_v20  ;;  %v3663_v23 = vsub.f32 %v3531_v40, %v3655_v51  ;;  %v3664_v25 = vsub.f32 %v3575_v44, %v3656_v22 }
 0x77e   :  { %v3648_v26 = vpop.xlane.xlu1 %3647  ;;  %v3645_v28 = vpop.xlane.xlu0 %3644 }
 0x77f   :  { %v3674_v27 = vmul.f32 1.442695, %v3663_v23  ;;  %v3676_v30 = vmul.f32 1.442695, %v3664_v25  ;;  %v3658_v32 = vmax.f32 %v3648_v26, 0.0  ;;  %v3657_v33 = vmax.f32 %v3645_v28, 0.0 }
 0x781   :  { %18507 = vpow2.f32 %v3674_v27  ;;  %v3666_v37 = vsub.f32 %v3622_v49, %v3658_v32  ;;  %v3665_v36 = vsub.f32 %v3578_v6, %v3657_v33  ;;  %v2763_v6 = vrot.slane %v2749_v7, %v18888_v24 }
 0x782   :  { %18509 = vpow2.f32 %v3676_v30  ;;  %v2313_v39 = vpop.permute.xlu1 %2312  ;;  %v3651_v21 = vpop.xlane.xlu0 %3650 }
 0x783   :  { %v19450_v41 = vpop.eup %18501  ;;  %v3680_v40 = vmul.f32 1.442695, %v3666_v37  ;;  %v3678_v42 = vmul.f32 1.442695, %v3665_v36  ;;  %v2764_v29 = vcombine.low %v2301_v63, %v2313_v39  ;;  %v2765_v44 = vcombine.high %v2301_v63, %v2313_v39 }
 0x784   :  { %v3659_v47 = vmax.f32 %v3651_v21, 0.0  ;;  %v3684_v48 = vsel %vm52_vm0, %v19450_v41, 0.0 }
 0x785   :  { %v19457_v49 = vpop.eup %18503  ;;  %18511 = vpow2.f32 %v3680_v40  ;;  %v2772_v50 = vrot.slane %v2764_v29, %v18888_v24  ;;  %v2779_v52 = vrot.slane %v2765_v44, %v18888_v24  ;;  %3685 = vadd.xlane.f32.xlu0 %v3684_v48 }
 0x786   :  { %18513 = vpow2.f32 %v3678_v42  ;;  %v3667_v54 = vsub.f32 %v19420_v55, %v3659_v47  ;;  %v2311_v56 = vpop.permute.xlu0 %2310  ;;  %v3687_v57 = vsel %vm52_vm0, %v19457_v49, 0.0 }
 0x787   :  { %v19466_v5 = vpop.eup %18505  ;;  %v2812_v58 = vcombine.low %v2756_v46, %v2772_v50  ;;  %v2813_v60 = vcombine.high %v2756_v46, %v2772_v50  ;;  %v2828_v63 = vcombine.low %v2763_v6, %v2779_v52  ;;  %v2829_v0 = vcombine.high %v2763_v6, %v2779_v52  ;;  %3688 = vadd.xlane.f32.xlu1 %v3687_v57 }
 0x788   :  { %v3682_v61 = vmul.f32 1.442695, %v3667_v54  ;;  %v2492_v3 = vcombine.low %v19444_v59, %v2311_v56  ;;  %v2493_v62 = vcombine.high %v19444_v59, %v2311_v56  ;;  %v3690_v4 = vsel %vm52_vm0, %v19466_v5, 0.0 }
 0x789   :  { %v2820_v55 = vrot.slane %v2812_v58, %v18890_v31  ;;  %v2827_v2 = vrot.slane %v2813_v60, %v18890_v31  ;;  %v2836_v12 = vrot.slane %v2828_v63, %v18890_v31  ;;  %v2843_v13 = vrot.slane %v2829_v0, %v18890_v31  ;;  %3691 = vadd.xlane.f32.xlu0 %v3690_v4 }
 0x78a   :  { %18515 = vpow2.f32 %v3682_v61  ;;  %v2500_v15 = vrot.slane %v2492_v3, %v18888_v24  ;;  %v2507_v10 = vrot.slane %v2493_v62, %v18888_v24 }
 0x78b   :  { %v19479_v59 = vpop.eup %18507  ;;  %v17355_v16 = vcombine.low %v2820_v55, %v2827_v2  ;;  %v17357_v8 = vcombine.high %v2820_v55, %v2827_v2  ;;  %v17359_v17 = vcombine.low %v2836_v12, %v2843_v13  ;;  %v17361_v43 = vcombine.high %v2836_v12, %v2843_v13 }
 0x78c   :  { %v19481_v20 = vpop.eup %18509  ;;  %v2540_v51 = vcombine.low %v2484_v53, %v2500_v15  ;;  %v2541_v22 = vcombine.high %v2484_v53, %v2500_v15  ;;  %v2556_v23 = vcombine.low %v2491_v14, %v2507_v10  ;;  %v2557_v25 = vcombine.high %v2491_v14, %v2507_v10 }
 0x78d   :  { %v3300_v26 = vrot.slane %v17355_v16, %v18888_v24  ;;  %v3316_v28 = vrot.slane %v17357_v8, %v18888_v24  ;;  %v3332_v7 = vrot.slane %v17359_v17, %v18888_v24  ;;  %v3348_v37 = vrot.slane %v17361_v43, %v18888_v24 }
 0x78e   :  { %v2548_v27 = vrot.slane %v2540_v51, %v18890_v31  ;;  %v2555_v30 = vrot.slane %v2541_v22, %v18890_v31  ;;  %v2564_v32 = vrot.slane %v2556_v23, %v18890_v31  ;;  %v2571_v33 = vrot.slane %v2557_v25, %v18890_v31 }
 0x78f   :  { %v19489_v35 = vpop.eup %18511  ;;  %v3696_v36 = vsel %vm52_vm0, %v19481_v20, 0.0  ;;  %v3693_v38 = vsel %vm52_vm0, %v19479_v59, 0.0  ;;  %v3356_v50 = vcombine.low %v3300_v26, %v3316_v28  ;;  %v3388_v52 = vcombine.low %v3332_v7, %v3348_v37 }
 0x790   :  { %v19497_v39 = vpop.eup %18513  ;;  %v17347_v21 = vcombine.low %v2548_v27, %v2555_v30  ;;  %v17349_v40 = vcombine.high %v2548_v27, %v2555_v30  ;;  %v17351_v42 = vcombine.low %v2564_v32, %v2571_v33  ;;  %v17353_v29 = vcombine.high %v2564_v32, %v2571_v33  ;;  %3697 = vadd.xlane.f32.xlu1 %v3696_v36 }
 0x791   :  { %3694 = vadd.xlane.f32.xlu0 %v3693_v38  ;;  %v3702_v44 = vsel %vm52_vm0, %v19489_v35, 0.0  ;;  %v3699_v45 = vsel %vm52_vm0, %v19497_v39, 0.0  ;;  %v3364_v58 = vrot.slane %v3356_v50, %v18890_v31  ;;  %v3396_v61 = vrot.slane %v3388_v52, %v18890_v31 }
 0x792   :  { %v3164_v46 = vrot.slane %v17347_v21, %v18888_v24  ;;  %v3180_v47 = vrot.slane %v17349_v40, %v18888_v24  ;;  %v3196_v48 = vrot.slane %v17351_v42, %v18888_v24  ;;  %v3212_v6 = vrot.slane %v17353_v29, %v18888_v24 }
 0x793   :  { %v3357_v4 = vcombine.high %v3300_v26, %v3316_v28  ;;  %v3389_v55 = vcombine.high %v3332_v7, %v3348_v37  ;;  %v3420_v12 = vcombine.low %v3364_v58, %v3396_v61  ;;  %v3421_v14 = vcombine.high %v3364_v58, %v3396_v61 }
 0x794   :  { %v18516_v53 = vpop.eup %18515  ;;  %3703 = vadd.xlane.f32.xlu1 %v3702_v44  ;;  %v3220_v54 = vcombine.low %v3164_v46, %v3180_v47  ;;  %v3252_v56 = vcombine.low %v3196_v48, %v3212_v6  ;;  %v3221_v57 = vcombine.high %v3164_v46, %v3180_v47  ;;  %v3253_v62 = vcombine.high %v3196_v48, %v3212_v6 }
 0x795   :  { %3700 = vadd.xlane.f32.xlu0 %v3699_v45  ;;  %v3705_v60 = vsel %vm52_vm0, %v18516_v53, 0.0  ;;  %v3371_v10 = vrot.slane %v3357_v4, %v18890_v31  ;;  %v3403_v16 = vrot.slane %v3389_v55, %v18890_v31  ;;  %v3708_v25 = vpack.c.bf16 %v19457_v49, %v19450_v41 }
 0x796   :  { %v3228_v63 = vrot.slane %v3220_v54, %v18890_v31  ;;  %v3260_v0 = vrot.slane %v3252_v56, %v18890_v31  ;;  %v3235_v3 = vrot.slane %v3221_v57, %v18890_v31  ;;  %v3267_v15 = vrot.slane %v3253_v62, %v18890_v31 }
 0x797   :  { %v3422_v22 = vcombine.low %v3371_v10, %v3403_v16  ;;  %v3423_v23 = vcombine.high %v3371_v10, %v3403_v16  ;;  %v3709_v26 = vpack.c.bf16 %v19479_v59, %v19466_v5  ;;  %v3710_v41 = vpack.c.bf16 %v19497_v39, %v19481_v20  ;;  %v2319_v5 = vpop.permute.xlu0 %2318 }
 0x798   :  { %v3284_v2 = vcombine.low %v3228_v63, %v3260_v0  ;;  %v3285_v13 = vcombine.high %v3228_v63, %v3260_v0  ;;  %v3286_v43 = vcombine.low %v3235_v3, %v3267_v15  ;;  %v3287_v51 = vcombine.high %v3235_v3, %v3267_v15 }
 0x799   :  { %3706 = vadd.xlane.f32.xlu0 %v3705_v60  ;;  %v3711_v49 = vpack.c.bf16 %v18516_v53, %v19489_v35 }
 0x79a   :  { %v3436_v8 = vpack.c.bf16 %v3420_v12, %v3284_v2  ;;  %v3437_v17 = vpack.c.bf16 %v3421_v14, %v3285_v13  ;;  %v3438_v28 = vpack.c.bf16 %v3422_v22, %v3286_v43  ;;  %v3439_v27 = vpack.c.bf16 %v3423_v23, %v3287_v51 }
 0x79b   :  { %v2329_v59 = vpop.permute.xlu0 %2328 }
 0x79c   :  { %18001 = vmatpush3.bf16.msra.mxu1 %v3436_v8  ;;  %18007 = vmatpush3.bf16.msra.mxu0 %v3437_v17 }
 0x79d   :  { %18012 = vmatprep.subr.bf16.mxu1 %v18756_v1  ;;  %18018 = vmatprep.subr.bf16.mxu0 %v18756_v1 }
 0x79f   :  { %18003 = vmatmul.mubr.msk.bf16.vlgmr.msra.gmra.mrb[28].mxu1 %vm52_vm0, %v3708_v25  ;;  %18009 = vmatmul.mubr.msk.bf16.vlgmr.msra.gmra.mrb[32].mxu0 %vm52_vm0, %v3709_v26 }
 0x7a0   :  { %18013 = vmatpush3.bf16.msra.mxu1 %v3438_v28  ;;  %18019 = vmatpush3.bf16.msra.mxu0 %v3439_v27 }
 0x7a1   :  { %18014 = vmatprep.mubr.msk.bf16.mxu1 %vm18757_vm1, %v18756_v1  ;;  %18020 = vmatprep.mubr.msk.bf16.mxu0 %vm18757_vm1, %v18756_v1 }
 0x7a2   :  { %18031 = vmatprep.subr.bf16.mxu0 %v18756_v1  ;;  %18412 = vmatprep.subr.bf16.mxu1 %v18775_v9 }
 0x7a5   :  { %2336 = vrot.lane.b32.xlu1 %v19266_v11, %s18774_s26  ;;  %v2317_v11 = vpop.permute.xlu1 %2316 }
 0x7a6   :  { %v2509_v45 = vcombine.high %v2317_v11, %v2329_v59 }
 0x7a7   :  { %18015 = vmatmul.mubr.msk.bf16.vlgmr.msra.gmra.mrb[32].mxu1 %vm52_vm0, %v3710_v41  ;;  %18021 = vmatmul.mubr.msk.bf16.vlgmr.msra.gmra.mrb[36].mxu0 %vm52_vm0, %v3711_v49 }
 0x7a8   :  { %18035 = vmatprep.mubr.msk.bf16.mxu0 %vm18757_vm1, %v18756_v1  ;;  %18028 = vmatprep.mubr.msk.f32.mxu1 %vm18757_vm1, %v18756_v1  ;;  %v2523_v54 = vrot.slane %v2509_v45, %v18888_v24 }
 0x7a9   :  { %v2323_v20 = vpop.permute.xlu1 %2322 }
 0x7ad   :  { %v2325_v33 = vpop.permute.xlu1 %2324 }
 0x7af   :  { %2334 = vrot.lane.b32.xlu0 %v19264_v34, %s18774_s26  ;;  %v2508_v34 = vcombine.low %v2317_v11, %v2329_v59 }
 0x7b1   :  { %v2331_v7 = vpop.permute.xlu1 %2330  ;;  %v2516_v53 = vrot.slane %v2508_v34, %v18888_v24 }
 0x7b2   :  { %v2780_v50 = vcombine.low %v2319_v5, %v2331_v7  ;;  %v2781_v52 = vcombine.high %v2319_v5, %v2331_v7 }
 0x7b4   :  { %v2788_v62 = vrot.slane %v2780_v50, %v18888_v24  ;;  %v2795_v4 = vrot.slane %v2781_v52, %v18888_v24 }
 0x812   :  { %v3686_v30 = vpop.xlane.xlu0 %3685 }
 0x813   :  { %vm3888_vm14 = vcmp.gt.f32.partialorder %v3686_v30, 0.0 }
 0x814   :  { %v3689_v37 = vpop.xlane.xlu1 %3688  ;;  %v3896_v56 = vsel %vm3888_vm14, %v3686_v30, 1.0 }
 0x815   :  { %vm3889_vm15 = vcmp.gt.f32.partialorder %v3689_v37, 0.0  ;;  %18517 = vrcp.f32 %v3896_v56 }
 0x816   :  { %v3692_v32 = vpop.xlane.xlu0 %3691  ;;  %v3897_v57 = vsel %vm3889_vm15, %v3689_v37, 1.0 }
 0x817   :  { %vm3890_vm3 = vcmp.gt.f32.partialorder %v3692_v32, 0.0  ;;  %18519 = vrcp.f32 %v3897_v57 }
 0x818   :  { %v3898_v55 = vsel %vm3890_vm3, %v3692_v32, 1.0 }
 0x819   :  { %18521 = vrcp.f32 %v3898_v55 }
 0x81d   :  { %v3698_v38 = vpop.xlane.xlu1 %3697 }
 0x81e   :  { %v3695_v35 = vpop.xlane.xlu0 %3694  ;;  %vm3892_vm4 = vcmp.gt.f32.partialorder %v3698_v38, 0.0 }
 0x81f   :  { %vm3891_vm5 = vcmp.gt.f32.partialorder %v3695_v35, 0.0  ;;  %v3900_v17 = vsel %vm3892_vm4, %v3698_v38, 1.0  ;;  %v18518_v11 = vpop.eup %18517 }
 0x820   :  { %v3899_v43 = vsel %vm3891_vm5, %v3695_v35, 1.0  ;;  %18523 = vrcp.f32 %v3900_v17 }
 0x821   :  { %v3704_v21 = vpop.xlane.xlu1 %3703  ;;  %18525 = vrcp.f32 %v3899_v43 }
 0x822   :  { %v3701_v36 = vpop.xlane.xlu0 %3700  ;;  %vm3894_vm6 = vcmp.gt.f32.partialorder %v3704_v21, 0.0 }
 0x823   :  { %vm3893_vm7 = vcmp.gt.f32.partialorder %v3701_v36, 0.0  ;;  %v3902_v49 = vsel %vm3894_vm6, %v3704_v21, 1.0 }
 0x824   :  { %v3901_v5 = vsel %vm3893_vm7, %v3701_v36, 1.0  ;;  %18527 = vrcp.f32 %v3902_v49 }
 0x825   :  { %v2337_v42 = vpop.permute.xlu1 %2336  ;;  %18529 = vrcp.f32 %v3901_v5 }
 0x826   :  { %v19543_v39 = vpop.xlane.xlu0 %3706  ;;  %v2796_v46 = vcombine.low %v2325_v33, %v2337_v42  ;;  %v2797_v47 = vcombine.high %v2325_v33, %v2337_v42  ;;  %v18520_v33 = vpop.eup %18519 }
 0x827   :  { %vm3895_vm8 = vcmp.gt.f32.partialorder %v19543_v39, 0.0  ;;  %v18522_v36 = vpop.eup %18521 }
 0x828   :  { %v2804_v58 = vrot.slane %v2796_v46, %v18888_v24  ;;  %v2811_v60 = vrot.slane %v2797_v47, %v18888_v24  ;;  %v3903_v21 = vsel %vm3895_vm8, %v19543_v39, 1.0 }
 0x829   :  { %18531 = vrcp.f32 %v3903_v21 }
 0x82a   :  { %v2335_v40 = vpop.permute.xlu0 %2334  ;;  %v2844_v2 = vcombine.low %v2788_v62, %v2804_v58  ;;  %v2845_v12 = vcombine.high %v2788_v62, %v2804_v58  ;;  %v2860_v13 = vcombine.low %v2795_v4, %v2811_v60  ;;  %v2861_v14 = vcombine.high %v2795_v4, %v2811_v60 }
 0x82b   :  { %v2524_v29 = vcombine.low %v2323_v20, %v2335_v40  ;;  %v2525_v44 = vcombine.high %v2323_v20, %v2335_v40 }
 0x82c   :  { %v2852_v51 = vrot.slane %v2844_v2, %v18890_v31  ;;  %v2859_v22 = vrot.slane %v2845_v12, %v18890_v31  ;;  %v2868_v23 = vrot.slane %v2860_v13, %v18890_v31  ;;  %v2875_v25 = vrot.slane %v2861_v14, %v18890_v31 }
 0x82d   :  { %v2532_v48 = vrot.slane %v2524_v29, %v18888_v24  ;;  %v2539_v6 = vrot.slane %v2525_v44, %v18888_v24 }
 0x82e   :  { %v17356_v59 = vcombine.low %v2852_v51, %v2859_v22  ;;  %v17358_v30 = vcombine.high %v2852_v51, %v2859_v22  ;;  %v17360_v20 = vcombine.low %v2868_v23, %v2875_v25  ;;  %v17362_v32 = vcombine.high %v2868_v23, %v2875_v25 }
 0x82f   :  { %v2572_v63 = vcombine.low %v2516_v53, %v2532_v48  ;;  %v2573_v0 = vcombine.high %v2516_v53, %v2532_v48  ;;  %v2588_v61 = vcombine.low %v2523_v54, %v2539_v6  ;;  %v2589_v3 = vcombine.high %v2523_v54, %v2539_v6  ;;  %v18524_v54 = vpop.eup %18523 }
 0x830   :  { %v3307_v40 = vrot.slane %v17356_v59, %v18888_v24  ;;  %v3323_v42 = vrot.slane %v17358_v30, %v18888_v24  ;;  %v3339_v29 = vrot.slane %v17360_v20, %v18888_v24  ;;  %v3355_v44 = vrot.slane %v17362_v32, %v18888_v24 }
 0x831   :  { %v2580_v15 = vrot.slane %v2572_v63, %v18890_v31  ;;  %v2587_v10 = vrot.slane %v2573_v0, %v18890_v31  ;;  %v2596_v16 = vrot.slane %v2588_v61, %v18890_v31  ;;  %v2603_v8 = vrot.slane %v2589_v3, %v18890_v31  ;;  %v18526_v63 = vpop.eup %18525 }
 0x832   :  { %v3372_v56 = vcombine.low %v3307_v40, %v3323_v42  ;;  %v3404_v57 = vcombine.low %v3339_v29, %v3355_v44  ;;  %v3373_v3 = vcombine.high %v3307_v40, %v3323_v42  ;;  %v3405_v62 = vcombine.high %v3339_v29, %v3355_v44  ;;  %v18528_v13 = vpop.eup %18527 }
 0x833   :  { %v17348_v26 = vcombine.low %v2580_v15, %v2587_v10  ;;  %v17350_v28 = vcombine.high %v2580_v15, %v2587_v10  ;;  %v17352_v27 = vcombine.low %v2596_v16, %v2603_v8  ;;  %v17354_v41 = vcombine.high %v2596_v16, %v2603_v8  ;;  %v18530_v10 = vpop.eup %18529 }
 0x834   :  { %v3380_v14 = vrot.slane %v3372_v56, %v18890_v31  ;;  %v3412_v15 = vrot.slane %v3404_v57, %v18890_v31  ;;  %v3387_v51 = vrot.slane %v3373_v3, %v18890_v31  ;;  %v3419_v22 = vrot.slane %v3405_v62, %v18890_v31  ;;  %v18532_v49 = vpop.eup %18531 }
 0x835   :  { %v3171_v35 = vrot.slane %v17348_v26, %v18888_v24  ;;  %v3187_v7 = vrot.slane %v17350_v28, %v18888_v24  ;;  %v3203_v37 = vrot.slane %v17352_v27, %v18888_v24  ;;  %v3219_v38 = vrot.slane %v17354_v41, %v18888_v24 }
 0x836   :  { %v3424_v40 = vcombine.low %v3380_v14, %v3412_v15  ;;  %v3425_v42 = vcombine.high %v3380_v14, %v3412_v15  ;;  %v3426_v29 = vcombine.low %v3387_v51, %v3419_v22  ;;  %v3427_v44 = vcombine.high %v3387_v51, %v3419_v22 }
 0x837   :  { %v3236_v34 = vcombine.low %v3171_v35, %v3187_v7  ;;  %v3268_v45 = vcombine.low %v3203_v37, %v3219_v38  ;;  %v3237_v50 = vcombine.high %v3171_v35, %v3187_v7  ;;  %v3269_v52 = vcombine.high %v3203_v37, %v3219_v38 }
 0x839   :  { %v3244_v0 = vrot.slane %v3236_v34, %v18890_v31  ;;  %v3276_v61 = vrot.slane %v3268_v45, %v18890_v31  ;;  %v3251_v4 = vrot.slane %v3237_v50, %v18890_v31  ;;  %v3283_v55 = vrot.slane %v3269_v52, %v18890_v31 }
 0x83b   :  { %v3288_v16 = vcombine.low %v3244_v0, %v3276_v61  ;;  %v3289_v8 = vcombine.high %v3244_v0, %v3276_v61  ;;  %v3290_v23 = vcombine.low %v3251_v4, %v3283_v55  ;;  %v3291_v26 = vcombine.high %v3251_v4, %v3283_v55 }
 0x872   :  { %v3749_v46 = vpop.f32.mrb[28].mxu1  ;;  %v3793_v47 = vpop.f32.mrb[32].mxu0 }
 0x873   :  { %v18004_v48 = vpop.f32.mrb[29].mxu1  ;;  %v18010_v6 = vpop.f32.mrb[33].mxu0  ;;  %v3912_v2 = vmul.f32 %v18518_v11, %v3749_v46  ;;  %v3914_v12 = vmul.f32 %v18522_v36, %v3793_v47 }
 0x874   :  { %v3752_v39 = vpop.f32.mrb[30].mxu1  ;;  %v3796_v53 = vpop.f32.mrb[34].mxu0 }
 0x875   :  { %v18005_v58 = vpop.f32.mrb[31].mxu1  ;;  %v18011_v60 = vpop.f32.mrb[35].mxu0  ;;  %v3920_v5 = vadd.f32 %v3912_v2, %v3288_v16  ;;  %v3922_v11 = vadd.f32 %v3914_v12, %v3289_v8  ;;  %v3913_v59 = vmul.f32 %v18520_v33, %v3752_v39  ;;  %v3915_v30 = vmul.f32 %v18526_v63, %v3796_v53 }
 0x877   :  { %v3921_v48 = vadd.f32 %v3913_v59, %v3424_v40  ;;  %v3923_v6 = vadd.f32 %v3915_v30, %v3425_v42 }
 0x87a   :  { %v3837_v17 = vpop.f32.mrb[32].mxu1  ;;  %v3881_v43 = vpop.f32.mrb[36].mxu0 }
 0x87b   :  { %v3916_v25 = vmul.f32 %v18524_v54, %v3837_v17  ;;  %v3918_v28 = vmul.f32 %v18528_v13, %v3881_v43  ;;  %v18016_v27 = vpop.f32.mrb[33].mxu1  ;;  %v18022_v41 = vpop.f32.mrb[37].mxu0 }
 0x87c   :  { %v3840_v20 = vpop.f32.mrb[34].mxu1  ;;  %v3884_v32 = vpop.f32.mrb[38].mxu0 }
 0x87d   :  { %v3924_v35 = vadd.f32 %v3916_v25, %v3290_v23  ;;  %v3926_v7 = vadd.f32 %v3918_v28, %v3291_v26  ;;  %v3917_v37 = vmul.f32 %v18530_v10, %v3840_v20  ;;  %v3919_v38 = vmul.f32 %v18532_v49, %v3884_v32  ;;  %v18017_v21 = vpop.f32.mrb[35].mxu1  ;;  %v18023_v36 = vpop.f32.mrb[39].mxu0 }
 0x87f   :  { %v3928_v34 = vcombine.low %v3920_v5, %v3924_v35  ;;  %v3929_v45 = vcombine.high %v3920_v5, %v3924_v35  ;;  %v3944_v46 = vcombine.low %v3922_v11, %v3926_v7  ;;  %v3945_v47 = vcombine.high %v3922_v11, %v3926_v7 }
 0x880   :  { %v3925_v33 = vadd.f32 %v3917_v37, %v3426_v29  ;;  %v3927_v50 = vadd.f32 %v3919_v38, %v3427_v44 }
 0x881   :  { %v3936_v52 = vrot.slane %v3928_v34, %v18888_v24  ;;  %v3943_v39 = vrot.slane %v3929_v45, %v18888_v24  ;;  %v3952_v53 = vrot.slane %v3944_v46, %v18888_v24  ;;  %v3959_v54 = vrot.slane %v3945_v47, %v18888_v24 }
 0x882   :  { %v3996_v56 = vcombine.low %v3921_v48, %v3925_v33  ;;  %v3997_v57 = vcombine.high %v3921_v48, %v3925_v33  ;;  %v4012_v58 = vcombine.low %v3923_v6, %v3927_v50  ;;  %v4013_v60 = vcombine.high %v3923_v6, %v3927_v50 }
 0x883   :  { %v3960_v63 = vcombine.low %v3936_v52, %v3952_v53  ;;  %v3961_v0 = vcombine.high %v3936_v52, %v3952_v53  ;;  %v3976_v61 = vcombine.low %v3943_v39, %v3959_v54  ;;  %v3977_v3 = vcombine.high %v3943_v39, %v3959_v54 }
 0x884   :  { %v4004_v62 = vrot.slane %v3996_v56, %v18888_v24  ;;  %v4011_v4 = vrot.slane %v3997_v57, %v18888_v24  ;;  %v4020_v55 = vrot.slane %v4012_v58, %v18888_v24  ;;  %v4027_v2 = vrot.slane %v4013_v60, %v18888_v24 }
 0x885   :  { %v3968_v12 = vrot.slane %v3960_v63, %v18890_v31  ;;  %v3975_v13 = vrot.slane %v3961_v0, %v18890_v31  ;;  %v3984_v14 = vrot.slane %v3976_v61, %v18890_v31  ;;  %v3991_v15 = vrot.slane %v3977_v3, %v18890_v31  ;;  %v18457_v61 = vld [vmem:[%s21978_s4 + $0x10] sm:$0xff]   ;;  %v18458_v3 = vld [vmem:[%s21978_s4 + $0x18] sm:$0xff]  }
 0x886   :  { %v4028_v10 = vcombine.low %v4004_v62, %v4020_v55  ;;  %v4029_v16 = vcombine.high %v4004_v62, %v4020_v55  ;;  %v4044_v8 = vcombine.low %v4011_v4, %v4027_v2  ;;  %v4045_v17 = vcombine.high %v4011_v4, %v4027_v2  ;;  %18032 = vmatpush3.bf16.msra.mxu0 %v18457_v61 }
 0x887   :  { %v4064_v43 = vcombine.low %v3968_v12, %v3975_v13  ;;  %v17371_v51 = vcombine.high %v3968_v12, %v3975_v13  ;;  %v4080_v22 = vcombine.low %v3984_v14, %v3991_v15  ;;  %v17372_v23 = vcombine.high %v3984_v14, %v3991_v15  ;;  %18033 = vmatprep.subr.bf16.mxu0 %v18756_v1  ;;  %v17376_v13 = vld [vmem:[%s21980_s6 + $0x1] ss:$0 sm:$0xff] }
 0x888   :  { %v4036_v25 = vrot.slane %v4028_v10, %v18890_v31  ;;  %v4043_v26 = vrot.slane %v4029_v16, %v18890_v31  ;;  %v4052_v28 = vrot.slane %v4044_v8, %v18890_v31  ;;  %v4059_v27 = vrot.slane %v4045_v17, %v18890_v31  ;;  %v17378_v8 = vld [vmem:[%s21981_s7 + $0x1] ss:$0 sm:$0xff] }
 0x889   :  { %v4071_v41 = vrot.slane %v4064_v43, %v18888_v24  ;;  %v4079_v49 = vrot.slane %v17371_v51, %v18888_v24  ;;  %v4087_v5 = vrot.slane %v4080_v22, %v18888_v24  ;;  %v4095_v11 = vrot.slane %v17372_v23, %v18888_v24 }
 0x88a   :  { %v4132_v59 = vcombine.low %v4036_v25, %v4043_v26  ;;  %v17373_v30 = vcombine.high %v4036_v25, %v4043_v26  ;;  %v4148_v20 = vcombine.low %v4052_v28, %v4059_v27  ;;  %v17374_v32 = vcombine.high %v4052_v28, %v4059_v27  ;;  %18034 = vmatpush3.bf16.msra.mxu0 %v18458_v3 }
 0x88b   :  { %v4096_v35 = vcombine.low %v4071_v41, %v4079_v49  ;;  %v4112_v7 = vcombine.low %v4087_v5, %v4095_v11  ;;  %v4097_v37 = vcombine.high %v4071_v41, %v4079_v49  ;;  %v4113_v38 = vcombine.high %v4087_v5, %v4095_v11  ;;  %18045 = vmatprep.subr.bf16.mxu0 %v18756_v1  ;;  %v18725_v49 = vld [vmem:[%s21976_s2] sm:$0x3]  ;;  %v17385_v5 = vld [vmem:[%s21979_s5 + $0x2] ss:$0 sm:$0xff] }
 0x88c   :  { %v4139_v21 = vrot.slane %v4132_v59, %v18888_v24  ;;  %v4147_v36 = vrot.slane %v17373_v30, %v18888_v24  ;;  %v4155_v40 = vrot.slane %v4148_v20, %v18888_v24  ;;  %v4163_v42 = vrot.slane %v17374_v32, %v18888_v24 }
 0x88d   :  { %v4104_v29 = vrot.slane %v4096_v35, %v18890_v31  ;;  %v4120_v44 = vrot.slane %v4112_v7, %v18890_v31  ;;  %v4111_v34 = vrot.slane %v4097_v37, %v18890_v31  ;;  %v4127_v45 = vrot.slane %v4113_v38, %v18890_v31 }
 0x88e   :  { %v4164_v46 = vcombine.low %v4139_v21, %v4147_v36  ;;  %v4180_v47 = vcombine.low %v4155_v40, %v4163_v42  ;;  %v4165_v48 = vcombine.high %v4139_v21, %v4147_v36  ;;  %v4181_v6 = vcombine.high %v4155_v40, %v4163_v42 }
 0x88f   :  { %v4129_v33 = vcombine.high %v4104_v29, %v4120_v44  ;;  %v4130_v50 = vcombine.low %v4111_v34, %v4127_v45  ;;  %v4131_v52 = vcombine.high %v4111_v34, %v4127_v45  ;;  %v4128_v39 = vcombine.low %v4104_v29, %v4120_v44 }
 0x890   :  { %v4172_v53 = vrot.slane %v4164_v46, %v18890_v31  ;;  %v4188_v54 = vrot.slane %v4180_v47, %v18890_v31  ;;  %v4179_v56 = vrot.slane %v4165_v48, %v18890_v31  ;;  %v4195_v57 = vrot.slane %v4181_v6, %v18890_v31 }
 0x891   :  { %4202 = vrot.lane.b32.xlu0 %v4129_v33, %s18774_s26 }
 0x892   :  { %v4197_v58 = vcombine.high %v4172_v53, %v4188_v54  ;;  %v4198_v60 = vcombine.low %v4179_v56, %v4195_v57  ;;  %v4199_v63 = vcombine.high %v4179_v56, %v4195_v57  ;;  %v4196_v0 = vcombine.low %v4172_v53, %v4188_v54 }
 0x894   :  { %4204 = vrot.lane.b32.xlu1 %v4197_v58, %s18774_s26 }
 0x895   :  { %4210 = vrot.lane.b32.xlu0 %v4130_v50, %s18773_s25 }
 0x898   :  { %4212 = vrot.lane.b32.xlu1 %v4198_v60, %s18773_s25 }
 0x899   :  { %4218 = vrot.lane.b32.xlu0 %v4131_v52, %s18772_s24 }
 0x89c   :  { %4220 = vrot.lane.b32.xlu1 %v4199_v63, %s18772_s24 }
 0x903   :  { %v4203_v62 = vpop.permute.xlu0 %4202 }
 0x904   :  { %v4224_v2 = vsel %vm1291_vm2, %v4128_v39, %v4203_v62 }
 0x906   :  { %v4205_v4 = vpop.permute.xlu1 %4204 }
 0x907   :  { %v4211_v55 = vpop.permute.xlu0 %4210  ;;  %v4225_v16 = vsel %vm1291_vm2, %v4196_v0, %v4205_v4 }
 0x908   :  { %v4226_v14 = vsel %vm52_vm0, %v4224_v2, %v4211_v55 }
 0x90a   :  { %v4213_v12 = vpop.permute.xlu1 %4212 }
 0x90b   :  { %v4219_v15 = vpop.permute.xlu0 %4218  ;;  %v4227_v43 = vsel %vm52_vm0, %v4225_v16, %v4213_v12 }
 0x90c   :  { %v4228_v10 = vsel %vm2080_vm11, %v4226_v14, %v4219_v15 }
 0x90d   :  { %v4238_v17 = vmul.f32 %v17376_v13, %v4228_v10 }
 0x90e   :  { %v4221_v51 = vpop.permute.xlu1 %4220 }
 0x90f   :  { %v4229_v22 = vsel %vm2080_vm11, %v4227_v43, %v4221_v51  ;;  %v4248_v23 = vadd.f32 %v17378_v8, %v4238_v17 }
 0x910   :  { %v4239_v25 = vmul.f32 %v17376_v13, %v4229_v22 }
 0x911   :  { %v4250_v28 = vmax.f32 %v4248_v23, 0.0 }
 0x912   :  { %v4249_v26 = vadd.f32 %v17378_v8, %v4239_v25 }
 0x914   :  { %v4251_v27 = vmax.f32 %v4249_v26, 0.0 }
 0x916   :  { %v18413_v41 = vpack.c.bf16 %v4251_v27, %v4250_v28 }
 0x918   :  { %18414 = vmatpush3.bf16.msra.mxu1 %v18413_v41  ;;  %18036 = vmatmul.mubr.msk.bf16.vlgmr.msra.gmra.mrb[40].mxu0 %vm2203_vm12, %v18413_v41 }
 0x919   :  { %18039 = vmatprep.subr.bf16.mxu1 %v18756_v1  ;;  %18047 = vmatprep.mubr.msk.bf16.mxu0 %vm18757_vm1, %v18756_v1 }
 0x91b   :  { %18029 = vmatmul.mubr.msk.f32.vlgmr.msra.gmra.mrb[18].mxu1 %vm52_vm0, %v18725_v49 }
 0x91c   :  { %18041 = vmatprep.mubr.msk.bf16.mxu1 %vm18757_vm1, %v18756_v1 }
 0x9eb   :  { %v4398_v11 = vpop.f32.mrb[40].mxu0 }
 0x9ec   :  { %v19650_v59 = vadd.f32 %v17385_v5, %v4398_v11  ;;  %v18037_v30 = vpop.f32.mrb[41].mxu0 }
 0x9ed   :  { %v4401_v20 = vpop.f32.mrb[42].mxu0 }
 0x9ee   :  { %v19652_v32 = vadd.f32 %v17385_v5, %v4401_v20  ;;  %4425 = vrot.lane.b32.xlu0 %v19650_v59, %s18759_s12  ;;  %v18038_v35 = vpop.f32.mrb[43].mxu0  ;;  %v19694_v7 = vpop.f32.mrb[18].mxu1 }
 0x9ef   :  { %v18030_v37 = vpop.f32.mrb[19].mxu1 }
 0x9f0   :  { %4427 = vrot.lane.b32.xlu1 %v19652_v32, %s18759_s12 }
 0x9f2   :  { %4431 = vrot.lane.b32.xlu0 %v19650_v59, %s18758_s11 }
 0x9f4   :  { %4433 = vrot.lane.b32.xlu1 %v19652_v32, %s18758_s11 }
 0x9f6   :  { %4437 = vrot.lane.b32.xlu0 %v19650_v59, %s18760_s13 }
 0x9f8   :  { %4439 = vrot.lane.b32.xlu1 %v19652_v32, %s18760_s13 }
 0x9fa   :  { %4443 = vrot.lane.b32.xlu0 %v19650_v59, %s18761_s14 }
 0x9fc   :  { %4445 = vrot.lane.b32.xlu1 %v19652_v32, %s18761_s14 }
 0x9fe   :  { %4407 = vrot.lane.b32.xlu0 %v19650_v59, %s18762_s15 }
 0xa00   :  { %4409 = vrot.lane.b32.xlu1 %v19652_v32, %s18762_s15 }
 0xa02   :  { %4413 = vrot.lane.b32.xlu0 %v19650_v59, %s18763_s16 }
 0xa04   :  { %4415 = vrot.lane.b32.xlu1 %v19652_v32, %s18763_s16 }
 0xa06   :  { %4419 = vrot.lane.b32.xlu0 %v19650_v59, %s18764_s17 }
 0xa08   :  { %4421 = vrot.lane.b32.xlu1 %v19652_v32, %s18764_s17 }
 0xa0a   :  { %4461 = vrot.lane.b32.xlu0 %v19650_v59, %s18766_s19 }
 0xa0c   :  { %4449 = vrot.lane.b32.xlu1 %v19650_v59, %s18765_s18 }
 0xa0e   :  { %4451 = vrot.lane.b32.xlu0 %v19652_v32, %s18765_s18 }
 0xa10   :  { %4455 = vrot.lane.b32.xlu1 %v19650_v59, %s18767_s20 }
 0xa14   :  { %4457 = vrot.lane.b32.xlu1 %v19652_v32, %s18767_s20 }
 0xa18   :  { %4463 = vrot.lane.b32.xlu1 %v19652_v32, %s18766_s19 }
 0xa60   :  { %v4426_v38 = vpop.permute.xlu0 %4425 }
 0xa62   :  { %v4428_v21 = vpop.permute.xlu1 %4427 }
 0xa64   :  { %v4432_v36 = vpop.permute.xlu0 %4431 }
 0xa66   :  { %v4434_v40 = vpop.permute.xlu1 %4433 }
 0xa68   :  { %v4438_v42 = vpop.permute.xlu0 %4437 }
 0xa69   :  { %v4529_v29 = vcombine.low %v4426_v38, %v4438_v42  ;;  %v4530_v44 = vcombine.high %v4426_v38, %v4438_v42 }
 0xa6a   :  { %v4440_v34 = vpop.permute.xlu1 %4439 }
 0xa6b   :  { %v4537_v48 = vrot.slane %v4529_v29, %v18888_v24  ;;  %v4544_v6 = vrot.slane %v4530_v44, %v18888_v24  ;;  %v4801_v33 = vcombine.low %v4428_v21, %v4440_v34  ;;  %v4802_v50 = vcombine.high %v4428_v21, %v4440_v34 }
 0xa6c   :  { %v4444_v45 = vpop.permute.xlu0 %4443 }
 0xa6d   :  { %v4545_v46 = vcombine.low %v4432_v36, %v4444_v45  ;;  %v4546_v47 = vcombine.high %v4432_v36, %v4444_v45  ;;  %v4809_v61 = vrot.slane %v4801_v33, %v18888_v24  ;;  %v4816_v55 = vrot.slane %v4802_v50, %v18888_v24 }
 0xa6e   :  { %v4446_v52 = vpop.permute.xlu1 %4445 }
 0xa6f   :  { %v4553_v39 = vrot.slane %v4545_v46, %v18888_v24  ;;  %v4560_v53 = vrot.slane %v4546_v47, %v18888_v24  ;;  %v4817_v54 = vcombine.low %v4434_v40, %v4446_v52  ;;  %v4818_v56 = vcombine.high %v4434_v40, %v4446_v52 }
 0xa70   :  { %v4408_v57 = vpop.permute.xlu0 %4407 }
 0xa71   :  { %v4593_v58 = vcombine.low %v4537_v48, %v4553_v39  ;;  %v4594_v60 = vcombine.high %v4537_v48, %v4553_v39  ;;  %v4609_v63 = vcombine.low %v4544_v6, %v4560_v53  ;;  %v4610_v0 = vcombine.high %v4544_v6, %v4560_v53 }
 0xa72   :  { %v4825_v3 = vrot.slane %v4817_v54, %v18888_v24  ;;  %v4832_v62 = vrot.slane %v4818_v56, %v18888_v24  ;;  %v4410_v4 = vpop.permute.xlu1 %4409 }
 0xa73   :  { %v4601_v2 = vrot.slane %v4593_v58, %v18890_v31  ;;  %v4608_v12 = vrot.slane %v4594_v60, %v18890_v31  ;;  %v4617_v10 = vrot.slane %v4609_v63, %v18890_v31  ;;  %v4624_v16 = vrot.slane %v4610_v0, %v18890_v31 }
 0xa74   :  { %v4865_v13 = vcombine.low %v4809_v61, %v4825_v3  ;;  %v4866_v14 = vcombine.high %v4809_v61, %v4825_v3  ;;  %v4414_v15 = vpop.permute.xlu0 %4413  ;;  %v4881_v8 = vcombine.low %v4816_v55, %v4832_v62  ;;  %v4882_v17 = vcombine.high %v4816_v55, %v4832_v62 }
 0xa75   :  { %v17390_v23 = vcombine.low %v4601_v2, %v4608_v12  ;;  %v17392_v25 = vcombine.high %v4601_v2, %v4608_v12  ;;  %v4497_v26 = vcombine.low %v19650_v59, %v4414_v15  ;;  %v4498_v28 = vcombine.high %v19650_v59, %v4414_v15 }
 0xa76   :  { %v4416_v43 = vpop.permute.xlu1 %4415  ;;  %v4873_v51 = vrot.slane %v4865_v13, %v18890_v31  ;;  %v4880_v22 = vrot.slane %v4866_v14, %v18890_v31  ;;  %v17394_v41 = vcombine.low %v4617_v10, %v4624_v16  ;;  %v17396_v49 = vcombine.high %v4617_v10, %v4624_v16 }
 0xa77   :  { %v4769_v5 = vcombine.low %v19652_v32, %v4416_v43  ;;  %v4770_v11 = vcombine.high %v19652_v32, %v4416_v43  ;;  %v4889_v30 = vrot.slane %v4881_v8, %v18890_v31  ;;  %v4896_v20 = vrot.slane %v4882_v17, %v18890_v31 }
 0xa78   :  { %v4420_v27 = vpop.permute.xlu0 %4419  ;;  %v17398_v21 = vcombine.low %v4873_v51, %v4880_v22  ;;  %v17400_v36 = vcombine.high %v4873_v51, %v4880_v22  ;;  %v4505_v29 = vrot.slane %v4497_v26, %v18888_v24  ;;  %v4512_v44 = vrot.slane %v4498_v28, %v18888_v24 }
 0xa79   :  { %v4513_v35 = vcombine.low %v4408_v57, %v4420_v27  ;;  %v4514_v37 = vcombine.high %v4408_v57, %v4420_v27  ;;  %v4777_v46 = vrot.slane %v4769_v5, %v18888_v24  ;;  %v4784_v47 = vrot.slane %v4770_v11, %v18888_v24 }
 0xa7a   :  { %v4422_v38 = vpop.permute.xlu1 %4421  ;;  %v5056_v55 = vrot.slane %v17390_v23, %v18888_v24  ;;  %v5072_v2 = vrot.slane %v17392_v25, %v18888_v24  ;;  %v5088_v12 = vrot.slane %v17394_v41, %v18888_v24  ;;  %v5104_v13 = vrot.slane %v17396_v49, %v18888_v24 }
 0xa7b   :  { %v4785_v40 = vcombine.low %v4410_v4, %v4422_v38  ;;  %v4786_v42 = vcombine.high %v4410_v4, %v4422_v38  ;;  %v4521_v34 = vrot.slane %v4513_v35, %v18888_v24  ;;  %v4528_v45 = vrot.slane %v4514_v37, %v18888_v24 }
 0xa7c   :  { %v17402_v22 = vcombine.low %v4889_v30, %v4896_v20  ;;  %v17404_v26 = vcombine.high %v4889_v30, %v4896_v20  ;;  %v5192_v28 = vrot.slane %v17398_v21, %v18888_v24  ;;  %v5208_v23 = vrot.slane %v17400_v36, %v18888_v24 }
 0xa7d   :  { %v4793_v48 = vrot.slane %v4785_v40, %v18888_v24  ;;  %v4800_v6 = vrot.slane %v4786_v42, %v18888_v24  ;;  %v4561_v33 = vcombine.low %v4505_v29, %v4521_v34  ;;  %v4562_v50 = vcombine.high %v4505_v29, %v4521_v34 }
 0xa7e   :  { %v4577_v52 = vcombine.low %v4512_v44, %v4528_v45  ;;  %v4578_v39 = vcombine.high %v4512_v44, %v4528_v45  ;;  %v5121_v27 = vcombine.low %v5056_v55, %v5072_v2  ;;  %v5153_v25 = vcombine.low %v5088_v12, %v5104_v13 }
 0xa7f   :  { %v4833_v53 = vcombine.low %v4777_v46, %v4793_v48  ;;  %v4834_v54 = vcombine.high %v4777_v46, %v4793_v48  ;;  %v4849_v56 = vcombine.low %v4784_v47, %v4800_v6  ;;  %v4850_v57 = vcombine.high %v4784_v47, %v4800_v6 }
 0xa80   :  { %v4569_v58 = vrot.slane %v4561_v33, %v18890_v31  ;;  %v4576_v60 = vrot.slane %v4562_v50, %v18890_v31  ;;  %v4585_v63 = vrot.slane %v4577_v52, %v18890_v31  ;;  %v4592_v0 = vrot.slane %v4578_v39, %v18890_v31 }
 0xa81   :  { %v4841_v61 = vrot.slane %v4833_v53, %v18890_v31  ;;  %v4848_v3 = vrot.slane %v4834_v54, %v18890_v31  ;;  %v4857_v62 = vrot.slane %v4849_v56, %v18890_v31  ;;  %v4864_v4 = vrot.slane %v4850_v57, %v18890_v31 }
 0xa82   :  { %v17389_v8 = vcombine.low %v4569_v58, %v4576_v60  ;;  %v17391_v17 = vcombine.high %v4569_v58, %v4576_v60  ;;  %v17393_v43 = vcombine.low %v4585_v63, %v4592_v0  ;;  %v17395_v51 = vcombine.high %v4585_v63, %v4592_v0 }
 0xa83   :  { %v17397_v14 = vcombine.low %v4841_v61, %v4848_v3  ;;  %v17399_v15 = vcombine.high %v4841_v61, %v4848_v3  ;;  %v17401_v10 = vcombine.low %v4857_v62, %v4864_v4  ;;  %v17403_v16 = vcombine.high %v4857_v62, %v4864_v4 }
 0xa84   :  { %v19743_v35 = vrot.slane %v17389_v8, %v18888_v24  ;;  %v5065_v37 = vrot.slane %v17391_v17, %v18888_v24  ;;  %v5081_v30 = vrot.slane %v17393_v43, %v18888_v24  ;;  %v5097_v20 = vrot.slane %v17395_v51, %v18888_v24 }
 0xa85   :  { %v5185_v41 = vrot.slane %v17397_v14, %v18888_v24  ;;  %v5201_v49 = vrot.slane %v17399_v15, %v18888_v24  ;;  %v5217_v5 = vrot.slane %v17401_v10, %v18888_v24  ;;  %v5233_v11 = vrot.slane %v17403_v16, %v18888_v24 }
 0xa86   :  { %v5224_v38 = vrot.slane %v17402_v22, %v18888_v24  ;;  %v5240_v21 = vrot.slane %v17404_v26, %v18888_v24  ;;  %v5257_v36 = vcombine.low %v5192_v28, %v5208_v23  ;;  %v5129_v40 = vrot.slane %v5121_v27, %v18890_v31 }
 0xa87   :  { %v5161_v42 = vrot.slane %v5153_v25, %v18890_v31  ;;  %v5241_v29 = vcombine.low %v5185_v41, %v5201_v49  ;;  %v5273_v44 = vcombine.low %v5217_v5, %v5233_v11  ;;  %v5105_v46 = vcombine.low %v19743_v35, %v5065_v37 }
 0xa88   :  { %v5265_v34 = vrot.slane %v5257_v36, %v18890_v31  ;;  %v5289_v45 = vcombine.low %v5224_v38, %v5240_v21  ;;  %v5137_v47 = vcombine.low %v5081_v30, %v5097_v20  ;;  %v5122_v6 = vcombine.high %v5056_v55, %v5072_v2 }
 0xa89   :  { %v5154_v33 = vcombine.high %v5088_v12, %v5104_v13  ;;  %v5173_v50 = vcombine.low %v5129_v40, %v5161_v42  ;;  %v5174_v52 = vcombine.high %v5129_v40, %v5161_v42  ;;  %v5249_v54 = vrot.slane %v5241_v29, %v18890_v31 }
 0xa8a   :  { %v5297_v48 = vrot.slane %v5289_v45, %v18890_v31  ;;  %v5281_v56 = vrot.slane %v5273_v44, %v18890_v31  ;;  %v5113_v57 = vrot.slane %v5105_v46, %v18890_v31  ;;  %v5145_v58 = vrot.slane %v5137_v47, %v18890_v31 }
 0xa8b   :  { %v5258_v60 = vcombine.high %v5192_v28, %v5208_v23  ;;  %v5290_v63 = vcombine.high %v5224_v38, %v5240_v21  ;;  %v5136_v3 = vrot.slane %v5122_v6, %v18890_v31  ;;  %v5168_v62 = vrot.slane %v5154_v33, %v18890_v31 }
 0xa8c   :  { %v5309_v39 = vcombine.low %v5265_v34, %v5297_v48  ;;  %v5310_v53 = vcombine.high %v5265_v34, %v5297_v48  ;;  %v5242_v4 = vcombine.high %v5185_v41, %v5201_v49  ;;  %v5274_v55 = vcombine.high %v5217_v5, %v5233_v11 }
 0xa8d   :  { %v5272_v2 = vrot.slane %v5258_v60, %v18890_v31  ;;  %v5304_v12 = vrot.slane %v5290_v63, %v18890_v31  ;;  %v5305_v15 = vcombine.low %v5249_v54, %v5281_v56  ;;  %v5306_v10 = vcombine.high %v5249_v54, %v5281_v56 }
 0xa8e   :  { %v5589_v0 = vpack.c.bf16 %v5309_v39, %v5173_v50  ;;  %v5590_v61 = vpack.c.bf16 %v5310_v53, %v5174_v52  ;;  %v5169_v16 = vcombine.low %v5113_v57, %v5145_v58  ;;  %v5170_v43 = vcombine.high %v5113_v57, %v5145_v58 }
 0xa8f   :  { %v5311_v8 = vcombine.low %v5272_v2, %v5304_v12  ;;  %v5312_v17 = vcombine.high %v5272_v2, %v5304_v12  ;;  %v5175_v51 = vcombine.low %v5136_v3, %v5168_v62  ;;  %v5176_v22 = vcombine.high %v5136_v3, %v5168_v62 }
 0xa90   :  { %v5601_v13 = vsel %vm1291_vm2, %v5589_v0, 0  ;;  %v5648_v14 = vsel %vm1291_vm2, %v5590_v61, 0  ;;  %v5106_v26 = vcombine.high %v19743_v35, %v5065_v37  ;;  %v5138_v28 = vcombine.high %v5081_v30, %v5097_v20 }
 0xa91   :  { %18040 = vmatpush3.bf16.xpose.msra.mxu1 %v5601_v13  ;;  %18046 = vmatpush3.bf16.xpose.msra.mxu0 %v5648_v14  ;;  %v5585_v23 = vpack.c.bf16 %v5305_v15, %v5169_v16  ;;  %v5586_v27 = vpack.c.bf16 %v5306_v10, %v5170_v43  ;;  %v5591_v25 = vpack.c.bf16 %v5311_v8, %v5175_v51  ;;  %v19823_v8 = vpop.permute.xlu1 %4449  ;;  %v19827_v43 = vpop.permute.xlu0 %4461 }
 0xa92   :  { %18051 = vmatprep.subr.bf16.mxu1 %v18756_v1  ;;  %18057 = vmatprep.subr.bf16.mxu0 %v18756_v1  ;;  %v5592_v41 = vpack.c.bf16 %v5312_v17, %v5176_v22  ;;  %v5256_v49 = vrot.slane %v5242_v4, %v18890_v31  ;;  %v5288_v5 = vrot.slane %v5274_v55, %v18890_v31 }
 0xa93   :  { %v5695_v11 = vsel %vm1291_vm2, %v5591_v25, 0  ;;  %v5120_v21 = vrot.slane %v5106_v26, %v18890_v31  ;;  %v5152_v35 = vrot.slane %v5138_v28, %v18890_v31 }
 0xa94   :  { %v5742_v38 = vsel %vm1291_vm2, %v5592_v41, 0  ;;  %v5307_v37 = vcombine.low %v5256_v49, %v5288_v5  ;;  %v5308_v30 = vcombine.high %v5256_v49, %v5288_v5 }
 0xa95   :  { %v5171_v20 = vcombine.low %v5120_v21, %v5152_v35  ;;  %v5172_v36 = vcombine.high %v5120_v21, %v5152_v35  ;;  %v19825_v17 = vpop.permute.xlu1 %4455  ;;  %v4452_v22 = vpop.permute.xlu0 %4451 }
 0xa97   :  { %v5587_v40 = vpack.c.bf16 %v5307_v37, %v5171_v20  ;;  %v5588_v42 = vpack.c.bf16 %v5308_v30, %v5172_v36 }
 0xa98   :  { %18042 = vmatmul.mubr.msk.bf16.vlgmr.msra.gmra.mrb[36].mxu1 %vm1291_vm2, %v5585_v23  ;;  %18048 = vmatmul.mubr.msk.bf16.vlgmr.msra.gmra.mrb[44].mxu0 %vm1291_vm2, %v5586_v27 }
 0xa99   :  { %18052 = vmatpush3.bf16.xpose.msra.mxu1 %v5695_v11  ;;  %18058 = vmatpush3.bf16.xpose.msra.mxu0 %v5742_v38  ;;  %v4458_v51 = vpop.permute.xlu1 %4457 }
 0xa9a   :  { %18053 = vmatprep.mubr.msk.bf16.mxu1 %vm18757_vm1, %v18756_v1  ;;  %18059 = vmatprep.mubr.msk.bf16.mxu0 %vm18757_vm1, %v18756_v1 }
 0xa9b   :  { %18063 = vmatprep.subr.bf16.mxu1 %v18756_v1  ;;  %18069 = vmatprep.subr.bf16.mxu0 %v18756_v1 }
 0xa9d   :  { %v4464_v26 = vpop.permute.xlu1 %4463 }
 0xaa0   :  { %18054 = vmatmul.mubr.msk.bf16.vlgmr.msra.gmra.mrb[40].mxu1 %vm1291_vm2, %v5587_v40  ;;  %18060 = vmatmul.mubr.msk.bf16.vlgmr.msra.gmra.mrb[48].mxu0 %vm1291_vm2, %v5588_v42 }
 0xaa1   :  { %18065 = vmatprep.mubr.msk.bf16.mxu1 %vm18757_vm1, %v18756_v1  ;;  %18071 = vmatprep.mubr.msk.bf16.mxu0 %vm18757_vm1, %v18756_v1 }
 0xb6b   :  { %v5637_v29 = vpop.f32.mrb[36].mxu1  ;;  %v5684_v44 = vpop.f32.mrb[44].mxu0 }
 0xb6c   :  { %v5638_v34 = vadd.f32 %v19011_v18, %v5637_v29  ;;  %v18043_v45 = vpop.f32.mrb[37].mxu1  ;;  %v18049_v46 = vpop.f32.mrb[45].mxu0  ;;  %v5685_v6 = vadd.f32 %v19011_v18, %v5684_v44 }
 0xb6d   :  { %v5640_v47 = vpop.f32.mrb[38].mxu1  ;;  %v5687_v48 = vpop.f32.mrb[46].mxu0 }
 0xb6e   :  { %v5641_v33 = vadd.f32 %v19013_v19, %v5640_v47  ;;  %v18044_v50 = vpop.f32.mrb[39].mxu1  ;;  %v18050_v52 = vpop.f32.mrb[47].mxu0  ;;  %v5785_v39 = vsel %vm52_vm0, %v5638_v34, -inf  ;;  %v5688_v54 = vadd.f32 %v19013_v19, %v5687_v48  ;;  %v5791_v56 = vsel %vm52_vm0, %v5685_v6, -inf }
 0xb6f   :  { %5786 = vmax.xlane.f32.xlu0 %v5785_v39  ;;  %v4906_v50 = vcombine.high %v4452_v22, %v4464_v26  ;;  %v4633_v39 = vcombine.low %v19823_v8, %v19827_v43 }
 0xb70   :  { %v5788_v53 = vsel %vm52_vm0, %v5641_v33, -inf  ;;  %v5794_v12 = vsel %vm52_vm0, %v5688_v54, -inf }
 0xb71   :  { %5789 = vmax.xlane.f32.xlu1 %v5788_v53 }
 0xb73   :  { %v5778_v57 = vpop.f32.mrb[48].mxu0  ;;  %5792 = vmax.xlane.f32.xlu0 %v5791_v56  ;;  %v5731_v58 = vpop.f32.mrb[40].mxu1 }
 0xb74   :  { %v5732_v60 = vadd.f32 %v19011_v18, %v5731_v58  ;;  %v18055_v63 = vpop.f32.mrb[41].mxu1  ;;  %v18061_v0 = vpop.f32.mrb[49].mxu0  ;;  %v5779_v62 = vadd.f32 %v19011_v18, %v5778_v57 }
 0xb75   :  { %v5734_v61 = vpop.f32.mrb[42].mxu1  ;;  %v5781_v3 = vpop.f32.mrb[50].mxu0  ;;  %v4634_v0 = vcombine.high %v19823_v8, %v19827_v43 }
 0xb76   :  { %v5735_v4 = vadd.f32 %v19013_v19, %v5734_v61  ;;  %v18056_v55 = vpop.f32.mrb[43].mxu1  ;;  %v18062_v2 = vpop.f32.mrb[51].mxu0  ;;  %v5797_v13 = vsel %vm52_vm0, %v5732_v60, -inf  ;;  %v19801_v14 = vadd.f32 %v19013_v19, %v5781_v3  ;;  %v5803_v15 = vsel %vm52_vm0, %v5779_v62, -inf }
 0xb77   :  { %5795 = vmax.xlane.f32.xlu0 %v5794_v12  ;;  %5798 = vmax.xlane.f32.xlu1 %v5797_v13  ;;  %v4920_v55 = vrot.slane %v4906_v50, %v18888_v24  ;;  %v4641_v13 = vrot.slane %v4633_v39, %v18888_v24 }
 0xb78   :  { %v5800_v10 = vsel %vm52_vm0, %v5735_v4, -inf  ;;  %v5806_v16 = vsel %vm52_vm0, %v19801_v14, -inf }
 0xb7b   :  { %5804 = vmax.xlane.f32.xlu1 %v5803_v15  ;;  %5801 = vmax.xlane.f32.xlu0 %v5800_v10 }
 0xb7f   :  { %5807 = vmax.xlane.f32.xlu0 %v5806_v16 }
 0xb8c   :  { %4469 = vrot.lane.b32.xlu1 %v19652_v32, %s18770_s1 }
 0xb90   :  { %4473 = vrot.lane.b32.xlu1 %v19650_v59, %s18771_s23 }
 0xb94   :  { %4479 = vrot.lane.b32.xlu1 %v19650_v59, %s18772_s24 }
 0xb95   :  { %4467 = vrot.lane.b32.xlu0 %v19650_v59, %s18770_s1 }
 0xb98   :  { %4481 = vrot.lane.b32.xlu1 %v19652_v32, %s18772_s24 }
 0xb99   :  { %4475 = vrot.lane.b32.xlu0 %v19652_v32, %s18771_s23 }
 0xb9c   :  { %4487 = vrot.lane.b32.xlu1 %v19652_v32, %s18773_s25 }
 0xb9d   :  { %4485 = vrot.lane.b32.xlu0 %v19650_v59, %s18773_s25 }
 0xbfc   :  { %v5787_v28 = vpop.xlane.xlu0 %5786 }
 0xbfd   :  { %v5809_v23 = vmax.f32 %v5787_v28, 0.0 }
 0xbfe   :  { %v5790_v27 = vpop.xlane.xlu1 %5789 }
 0xbff   :  { %v5817_v25 = vsub.f32 %v5638_v34, %v5809_v23  ;;  %v5810_v41 = vmax.f32 %v5790_v27, 0.0 }
 0xc00   :  { %v5793_v49 = vpop.xlane.xlu0 %5792 }
 0xc01   :  { %v5825_v5 = vmul.f32 1.442695, %v5817_v25  ;;  %v5818_v11 = vsub.f32 %v5641_v33, %v5810_v41  ;;  %v5811_v38 = vmax.f32 %v5793_v49, 0.0  ;;  %v4905_v33 = vcombine.low %v4452_v22, %v4464_v26 }
 0xc03   :  { %18533 = vpow2.f32 %v5825_v5  ;;  %v5827_v21 = vmul.f32 1.442695, %v5818_v11  ;;  %v5819_v35 = vsub.f32 %v5685_v6, %v5811_v38  ;;  %v4913_v61 = vrot.slane %v4905_v33, %v18888_v24 }
 0xc04   :  { %v5796_v37 = vpop.xlane.xlu0 %5795  ;;  %v5799_v30 = vpop.xlane.xlu1 %5798  ;;  %v4648_v11 = vrot.slane %v4634_v0, %v18888_v24 }
 0xc05   :  { %18535 = vpow2.f32 %v5827_v21  ;;  %v5829_v20 = vmul.f32 1.442695, %v5819_v35  ;;  %v5812_v36 = vmax.f32 %v5796_v37, 0.0  ;;  %v5813_v40 = vmax.f32 %v5799_v30, 0.0 }
 0xc07   :  { %18537 = vpow2.f32 %v5829_v20  ;;  %v5820_v42 = vsub.f32 %v5688_v54, %v5812_v36  ;;  %v5821_v29 = vsub.f32 %v5732_v60, %v5813_v40 }
 0xc08   :  { %v5805_v44 = vpop.xlane.xlu1 %5804  ;;  %v5802_v45 = vpop.xlane.xlu0 %5801 }
 0xc09   :  { %v5831_v34 = vmul.f32 1.442695, %v5820_v42  ;;  %v5833_v46 = vmul.f32 1.442695, %v5821_v29  ;;  %v5815_v47 = vmax.f32 %v5805_v44, 0.0  ;;  %v5814_v48 = vmax.f32 %v5802_v45, 0.0 }
 0xc0b   :  { %18539 = vpow2.f32 %v5831_v34  ;;  %v5823_v52 = vsub.f32 %v5779_v62, %v5815_v47  ;;  %v5822_v6 = vsub.f32 %v5735_v4, %v5814_v48 }
 0xc0c   :  { %18541 = vpow2.f32 %v5833_v46  ;;  %v4470_v53 = vpop.permute.xlu1 %4469  ;;  %v5808_v56 = vpop.xlane.xlu0 %5807 }
 0xc0d   :  { %v19831_v57 = vpop.eup %18533  ;;  %v5837_v54 = vmul.f32 1.442695, %v5823_v52  ;;  %v5835_v58 = vmul.f32 1.442695, %v5822_v6  ;;  %v4921_v60 = vcombine.low %v4458_v51, %v4470_v53  ;;  %v4922_v63 = vcombine.high %v4458_v51, %v4470_v53 }
 0xc0e   :  { %v5816_v3 = vmax.f32 %v5808_v56, 0.0  ;;  %v5841_v62 = vsel %vm52_vm0, %v19831_v57, 0.0 }
 0xc0f   :  { %v19838_v4 = vpop.eup %18535  ;;  %18543 = vpow2.f32 %v5837_v54  ;;  %v4929_v2 = vrot.slane %v4921_v60, %v18888_v24  ;;  %v4936_v12 = vrot.slane %v4922_v63, %v18888_v24  ;;  %5842 = vadd.xlane.f32.xlu0 %v5841_v62 }
 0xc10   :  { %18545 = vpow2.f32 %v5835_v58  ;;  %v5824_v15 = vsub.f32 %v19801_v14, %v5816_v3  ;;  %v4468_v10 = vpop.permute.xlu0 %4467  ;;  %v5844_v16 = vsel %vm52_vm0, %v19838_v4, 0.0 }
 0xc11   :  { %v19847_v8 = vpop.eup %18537  ;;  %v4969_v43 = vcombine.low %v4913_v61, %v4929_v2  ;;  %v4970_v51 = vcombine.high %v4913_v61, %v4929_v2  ;;  %v4985_v22 = vcombine.low %v4920_v55, %v4936_v12  ;;  %v4986_v26 = vcombine.high %v4920_v55, %v4936_v12  ;;  %5845 = vadd.xlane.f32.xlu1 %v5844_v16 }
 0xc12   :  { %v5839_v28 = vmul.f32 1.442695, %v5824_v15  ;;  %v4649_v23 = vcombine.low %v19825_v17, %v4468_v10  ;;  %v4650_v27 = vcombine.high %v19825_v17, %v4468_v10  ;;  %v5847_v25 = vsel %vm52_vm0, %v19847_v8, 0.0 }
 0xc13   :  { %v4977_v14 = vrot.slane %v4969_v43, %v18890_v31  ;;  %v4984_v41 = vrot.slane %v4970_v51, %v18890_v31  ;;  %v4993_v49 = vrot.slane %v4985_v22, %v18890_v31  ;;  %v5000_v5 = vrot.slane %v4986_v26, %v18890_v31  ;;  %5848 = vadd.xlane.f32.xlu0 %v5847_v25 }
 0xc14   :  { %18547 = vpow2.f32 %v5839_v28  ;;  %v4657_v38 = vrot.slane %v4649_v23, %v18888_v24  ;;  %v4664_v21 = vrot.slane %v4650_v27, %v18888_v24 }
 0xc15   :  { %v19860_v17 = vpop.eup %18539  ;;  %v17413_v35 = vcombine.low %v4977_v14, %v4984_v41  ;;  %v17415_v37 = vcombine.high %v4977_v14, %v4984_v41  ;;  %v17417_v30 = vcombine.low %v4993_v49, %v5000_v5  ;;  %v17419_v20 = vcombine.high %v4993_v49, %v5000_v5 }
 0xc16   :  { %v19862_v36 = vpop.eup %18541  ;;  %v4697_v40 = vcombine.low %v4641_v13, %v4657_v38  ;;  %v4698_v42 = vcombine.high %v4641_v13, %v4657_v38  ;;  %v4713_v29 = vcombine.low %v4648_v11, %v4664_v21  ;;  %v4714_v44 = vcombine.high %v4648_v11, %v4664_v21 }
 0xc17   :  { %v5457_v45 = vrot.slane %v17413_v35, %v18888_v24  ;;  %v5473_v34 = vrot.slane %v17415_v37, %v18888_v24  ;;  %v5489_v52 = vrot.slane %v17417_v30, %v18888_v24  ;;  %v5505_v6 = vrot.slane %v17419_v20, %v18888_v24 }
 0xc18   :  { %v4705_v46 = vrot.slane %v4697_v40, %v18890_v31  ;;  %v4712_v47 = vrot.slane %v4698_v42, %v18890_v31  ;;  %v4721_v48 = vrot.slane %v4713_v29, %v18890_v31  ;;  %v4728_v33 = vrot.slane %v4714_v44, %v18890_v31 }
 0xc19   :  { %v19870_v50 = vpop.eup %18543  ;;  %v5853_v39 = vsel %vm52_vm0, %v19862_v36, 0.0  ;;  %v5850_v53 = vsel %vm52_vm0, %v19860_v17, 0.0  ;;  %v5513_v12 = vcombine.low %v5457_v45, %v5473_v34  ;;  %v5545_v13 = vcombine.low %v5489_v52, %v5505_v6 }
 0xc1a   :  { %v19878_v56 = vpop.eup %18545  ;;  %v17405_v54 = vcombine.low %v4705_v46, %v4712_v47  ;;  %v17407_v58 = vcombine.high %v4705_v46, %v4712_v47  ;;  %v17409_v60 = vcombine.low %v4721_v48, %v4728_v33  ;;  %v17411_v63 = vcombine.high %v4721_v48, %v4728_v33  ;;  %5854 = vadd.xlane.f32.xlu1 %v5853_v39 }
 0xc1b   :  { %5851 = vadd.xlane.f32.xlu0 %v5850_v53  ;;  %v5859_v0 = vsel %vm52_vm0, %v19870_v50, 0.0  ;;  %v5856_v61 = vsel %vm52_vm0, %v19878_v56, 0.0  ;;  %v5521_v51 = vrot.slane %v5513_v12, %v18890_v31  ;;  %v5553_v23 = vrot.slane %v5545_v13, %v18890_v31 }
 0xc1c   :  { %v5321_v3 = vrot.slane %v17405_v54, %v18888_v24  ;;  %v5337_v62 = vrot.slane %v17407_v58, %v18888_v24  ;;  %v5353_v55 = vrot.slane %v17409_v60, %v18888_v24  ;;  %v5369_v2 = vrot.slane %v17411_v63, %v18888_v24 }
 0xc1d   :  { %v5514_v14 = vcombine.high %v5457_v45, %v5473_v34  ;;  %v5546_v41 = vcombine.high %v5489_v52, %v5505_v6  ;;  %v5577_v5 = vcombine.low %v5521_v51, %v5553_v23  ;;  %v5578_v38 = vcombine.high %v5521_v51, %v5553_v23 }
 0xc1e   :  { %v18548_v15 = vpop.eup %18547  ;;  %5860 = vadd.xlane.f32.xlu1 %v5859_v0  ;;  %v5377_v10 = vcombine.low %v5321_v3, %v5337_v62  ;;  %v5409_v16 = vcombine.low %v5353_v55, %v5369_v2  ;;  %v5378_v43 = vcombine.high %v5321_v3, %v5337_v62  ;;  %v5410_v25 = vcombine.high %v5353_v55, %v5369_v2 }
 0xc1f   :  { %5857 = vadd.xlane.f32.xlu0 %v5856_v61  ;;  %v5862_v22 = vsel %vm52_vm0, %v18548_v15, 0.0  ;;  %v5528_v35 = vrot.slane %v5514_v14, %v18890_v31  ;;  %v5560_v37 = vrot.slane %v5546_v41, %v18890_v31  ;;  %v5865_v45 = vpack.c.bf16 %v19838_v4, %v19831_v57 }
 0xc20   :  { %v5385_v26 = vrot.slane %v5377_v10, %v18890_v31  ;;  %v5417_v28 = vrot.slane %v5409_v16, %v18890_v31  ;;  %v5392_v27 = vrot.slane %v5378_v43, %v18890_v31  ;;  %v5424_v21 = vrot.slane %v5410_v25, %v18890_v31 }
 0xc21   :  { %v5579_v29 = vcombine.low %v5528_v35, %v5560_v37  ;;  %v5580_v44 = vcombine.high %v5528_v35, %v5560_v37  ;;  %v5866_v34 = vpack.c.bf16 %v19860_v17, %v19847_v8  ;;  %v5867_v57 = vpack.c.bf16 %v19878_v56, %v19862_v36  ;;  %v4476_v8 = vpop.permute.xlu0 %4475 }
 0xc22   :  { %v5441_v49 = vcombine.low %v5385_v26, %v5417_v28  ;;  %v5442_v11 = vcombine.high %v5385_v26, %v5417_v28  ;;  %v5443_v40 = vcombine.low %v5392_v27, %v5424_v21  ;;  %v5444_v42 = vcombine.high %v5392_v27, %v5424_v21 }
 0xc23   :  { %5863 = vadd.xlane.f32.xlu0 %v5862_v22  ;;  %v5868_v4 = vpack.c.bf16 %v18548_v15, %v19870_v50 }
 0xc24   :  { %v5593_v30 = vpack.c.bf16 %v5577_v5, %v5441_v49  ;;  %v5594_v20 = vpack.c.bf16 %v5578_v38, %v5442_v11  ;;  %v5595_v46 = vpack.c.bf16 %v5579_v29, %v5443_v40  ;;  %v5596_v47 = vpack.c.bf16 %v5580_v44, %v5444_v42 }
 0xc25   :  { %v4486_v17 = vpop.permute.xlu0 %4485 }
 0xc26   :  { %18064 = vmatpush3.bf16.msra.mxu1 %v5593_v30  ;;  %18070 = vmatpush3.bf16.msra.mxu0 %v5594_v20 }
 0xc27   :  { %18075 = vmatprep.subr.bf16.mxu1 %v18756_v1  ;;  %18081 = vmatprep.subr.bf16.mxu0 %v18756_v1 }
 0xc29   :  { %18066 = vmatmul.mubr.msk.bf16.vlgmr.msra.gmra.mrb[44].mxu1 %vm52_vm0, %v5865_v45  ;;  %18072 = vmatmul.mubr.msk.bf16.vlgmr.msra.gmra.mrb[52].mxu0 %vm52_vm0, %v5866_v34 }
 0xc2a   :  { %18076 = vmatpush3.bf16.msra.mxu1 %v5595_v46  ;;  %18082 = vmatpush3.bf16.msra.mxu0 %v5596_v47 }
 0xc2b   :  { %18077 = vmatprep.mubr.msk.bf16.mxu1 %vm18757_vm1, %v18756_v1  ;;  %18083 = vmatprep.mubr.msk.bf16.mxu0 %vm18757_vm1, %v18756_v1 }
 0xc2c   :  { %18094 = vmatprep.subr.bf16.mxu0 %v18756_v1  ;;  %18415 = vmatprep.subr.bf16.mxu1 %v18775_v9 }
 0xc2f   :  { %4493 = vrot.lane.b32.xlu1 %v19652_v32, %s18774_s26  ;;  %v4474_v32 = vpop.permute.xlu1 %4473 }
 0xc30   :  { %v4666_v3 = vcombine.high %v4474_v32, %v4486_v17 }
 0xc31   :  { %18078 = vmatmul.mubr.msk.bf16.vlgmr.msra.gmra.mrb[48].mxu1 %vm52_vm0, %v5867_v57  ;;  %18084 = vmatmul.mubr.msk.bf16.vlgmr.msra.gmra.mrb[56].mxu0 %vm52_vm0, %v5868_v4 }
 0xc32   :  { %18098 = vmatprep.mubr.msk.bf16.mxu0 %vm18757_vm1, %v18756_v1  ;;  %18091 = vmatprep.mubr.msk.f32.mxu1 %vm18757_vm1, %v18756_v1  ;;  %v4680_v16 = vrot.slane %v4666_v3, %v18888_v24 }
 0xc33   :  { %v4480_v36 = vpop.permute.xlu1 %4479 }
 0xc37   :  { %v4482_v50 = vpop.permute.xlu1 %4481 }
 0xc39   :  { %4491 = vrot.lane.b32.xlu0 %v19650_v59, %s18774_s26  ;;  %v4665_v59 = vcombine.low %v4474_v32, %v4486_v17 }
 0xc3b   :  { %v4488_v6 = vpop.permute.xlu1 %4487  ;;  %v4673_v10 = vrot.slane %v4665_v59, %v18888_v24 }
 0xc3c   :  { %v4937_v13 = vcombine.low %v4476_v8, %v4488_v6  ;;  %v4938_v15 = vcombine.high %v4476_v8, %v4488_v6 }
 0xc3e   :  { %v4945_v14 = vrot.slane %v4937_v13, %v18888_v24  ;;  %v4952_v41 = vrot.slane %v4938_v15, %v18888_v24 }
 0xc9c   :  { %v5843_v48 = vpop.xlane.xlu0 %5842 }
 0xc9d   :  { %vm6045_vm9 = vcmp.gt.f32.partialorder %v5843_v48, 0.0 }
 0xc9e   :  { %v5846_v39 = vpop.xlane.xlu1 %5845  ;;  %v6053_v43 = vsel %vm6045_vm9, %v5843_v48, 1.0 }
 0xc9f   :  { %vm6046_vm10 = vcmp.gt.f32.partialorder %v5846_v39, 0.0  ;;  %18549 = vrcp.f32 %v6053_v43 }
 0xca0   :  { %v5849_v33 = vpop.xlane.xlu0 %5848  ;;  %v6054_v51 = vsel %vm6046_vm10, %v5846_v39, 1.0 }
 0xca1   :  { %vm6047_vm14 = vcmp.gt.f32.partialorder %v5849_v33, 0.0  ;;  %18551 = vrcp.f32 %v6054_v51 }
 0xca2   :  { %v6055_v49 = vsel %vm6047_vm14, %v5849_v33, 1.0 }
 0xca3   :  { %18553 = vrcp.f32 %v6055_v49 }
 0xca7   :  { %v5855_v56 = vpop.xlane.xlu1 %5854 }
 0xca8   :  { %v5852_v52 = vpop.xlane.xlu0 %5851  ;;  %vm6049_vm15 = vcmp.gt.f32.partialorder %v5855_v56, 0.0 }
 0xca9   :  { %vm6048_vm3 = vcmp.gt.f32.partialorder %v5852_v52, 0.0  ;;  %v6057_v40 = vsel %vm6049_vm15, %v5855_v56, 1.0  ;;  %v18550_v17 = vpop.eup %18549 }
 0xcaa   :  { %v6056_v42 = vsel %vm6048_vm3, %v5852_v52, 1.0  ;;  %18555 = vrcp.f32 %v6057_v40 }
 0xcab   :  { %v5861_v58 = vpop.xlane.xlu1 %5860  ;;  %18557 = vrcp.f32 %v6056_v42  ;;  %v18552_v52 = vpop.eup %18551 }
 0xcac   :  { %v5858_v53 = vpop.xlane.xlu0 %5857  ;;  %vm6051_vm4 = vcmp.gt.f32.partialorder %v5861_v58, 0.0 }
 0xcad   :  { %vm6050_vm5 = vcmp.gt.f32.partialorder %v5858_v53, 0.0  ;;  %v6059_v8 = vsel %vm6051_vm4, %v5861_v58, 1.0 }
 0xcae   :  { %v6058_v32 = vsel %vm6050_vm5, %v5858_v53, 1.0  ;;  %18559 = vrcp.f32 %v6059_v8  ;;  %v18554_v53 = vpop.eup %18553 }
 0xcaf   :  { %v4494_v63 = vpop.permute.xlu1 %4493  ;;  %18561 = vrcp.f32 %v6058_v32 }
 0xcb0   :  { %v19924_v54 = vpop.xlane.xlu0 %5863  ;;  %v4953_v62 = vcombine.low %v4482_v50, %v4494_v63  ;;  %v4954_v55 = vcombine.high %v4482_v50, %v4494_v63 }
 0xcb1   :  { %vm6052_vm6 = vcmp.gt.f32.partialorder %v19924_v54, 0.0 }
 0xcb2   :  { %v4961_v22 = vrot.slane %v4953_v62, %v18888_v24  ;;  %v4968_v26 = vrot.slane %v4954_v55, %v18888_v24  ;;  %v6060_v58 = vsel %vm6052_vm6, %v19924_v54, 1.0 }
 0xcb3   :  { %18563 = vrcp.f32 %v6060_v58 }
 0xcb4   :  { %v4492_v60 = vpop.permute.xlu0 %4491  ;;  %v5001_v5 = vcombine.low %v4945_v14, %v4961_v22  ;;  %v5002_v11 = vcombine.high %v4945_v14, %v4961_v22  ;;  %v5017_v38 = vcombine.low %v4952_v41, %v4968_v26  ;;  %v5018_v21 = vcombine.high %v4952_v41, %v4968_v26  ;;  %v18556_v43 = vpop.eup %18555 }
 0xcb5   :  { %v4681_v0 = vcombine.low %v4480_v36, %v4492_v60  ;;  %v4682_v61 = vcombine.high %v4480_v36, %v4492_v60 }
 0xcb6   :  { %v5009_v29 = vrot.slane %v5001_v5, %v18890_v31  ;;  %v5016_v44 = vrot.slane %v5002_v11, %v18890_v31  ;;  %v5025_v45 = vrot.slane %v5017_v38, %v18890_v31  ;;  %v5032_v34 = vrot.slane %v5018_v21, %v18890_v31 }
 0xcb7   :  { %v4689_v2 = vrot.slane %v4681_v0, %v18888_v24  ;;  %v4696_v12 = vrot.slane %v4682_v61, %v18888_v24 }
 0xcb8   :  { %v17414_v48 = vcombine.low %v5009_v29, %v5016_v44  ;;  %v17416_v36 = vcombine.high %v5009_v29, %v5016_v44  ;;  %v17418_v33 = vcombine.low %v5025_v45, %v5032_v34  ;;  %v17420_v50 = vcombine.high %v5025_v45, %v5032_v34 }
 0xcb9   :  { %v4729_v28 = vcombine.low %v4673_v10, %v4689_v2  ;;  %v4730_v23 = vcombine.high %v4673_v10, %v4689_v2  ;;  %v4745_v27 = vcombine.low %v4680_v16, %v4696_v12  ;;  %v4746_v25 = vcombine.high %v4680_v16, %v4696_v12 }
 0xcba   :  { %v5464_v63 = vrot.slane %v17414_v48, %v18888_v24  ;;  %v5480_v0 = vrot.slane %v17416_v36, %v18888_v24  ;;  %v5496_v61 = vrot.slane %v17418_v33, %v18888_v24  ;;  %v5512_v59 = vrot.slane %v17420_v50, %v18888_v24 }
 0xcbb   :  { %v4737_v35 = vrot.slane %v4729_v28, %v18890_v31  ;;  %v4744_v37 = vrot.slane %v4730_v23, %v18890_v31  ;;  %v4753_v30 = vrot.slane %v4745_v27, %v18890_v31  ;;  %v4760_v20 = vrot.slane %v4746_v25, %v18890_v31  ;;  %v18558_v23 = vpop.eup %18557 }
 0xcbc   :  { %v5529_v51 = vcombine.low %v5464_v63, %v5480_v0  ;;  %v5561_v22 = vcombine.low %v5496_v61, %v5512_v59  ;;  %v5530_v14 = vcombine.high %v5464_v63, %v5480_v0  ;;  %v5562_v41 = vcombine.high %v5496_v61, %v5512_v59  ;;  %v18560_v21 = vpop.eup %18559 }
 0xcbd   :  { %v17406_v46 = vcombine.low %v4737_v35, %v4744_v37  ;;  %v17408_v47 = vcombine.high %v4737_v35, %v4744_v37  ;;  %v17410_v57 = vcombine.low %v4753_v30, %v4760_v20  ;;  %v17412_v4 = vcombine.high %v4753_v30, %v4760_v20  ;;  %v18562_v30 = vpop.eup %18561 }
 0xcbe   :  { %v5537_v35 = vrot.slane %v5529_v51, %v18890_v31  ;;  %v5569_v37 = vrot.slane %v5561_v22, %v18890_v31  ;;  %v5544_v44 = vrot.slane %v5530_v14, %v18890_v31  ;;  %v5576_v45 = vrot.slane %v5562_v41, %v18890_v31  ;;  %v18564_v32 = vpop.eup %18563 }
 0xcbf   :  { %v5328_v6 = vrot.slane %v17406_v46, %v18888_v24  ;;  %v5344_v39 = vrot.slane %v17408_v47, %v18888_v24  ;;  %v5360_v56 = vrot.slane %v17410_v57, %v18888_v24  ;;  %v5376_v60 = vrot.slane %v17412_v4, %v18888_v24 }
 0xcc0   :  { %v5581_v0 = vcombine.low %v5537_v35, %v5569_v37  ;;  %v5582_v61 = vcombine.high %v5537_v35, %v5569_v37  ;;  %v5583_v59 = vcombine.low %v5544_v44, %v5576_v45 }
 0xcc1   :  { %v5393_v3 = vcombine.low %v5328_v6, %v5344_v39  ;;  %v5425_v62 = vcombine.low %v5360_v56, %v5376_v60  ;;  %v5394_v15 = vcombine.high %v5328_v6, %v5344_v39  ;;  %v5426_v10 = vcombine.high %v5360_v56, %v5376_v60 }
 0xcc3   :  { %v5401_v27 = vrot.slane %v5393_v3, %v18890_v31  ;;  %v5433_v25 = vrot.slane %v5425_v62, %v18890_v31  ;;  %v5408_v49 = vrot.slane %v5394_v15, %v18890_v31  ;;  %v5440_v5 = vrot.slane %v5426_v10, %v18890_v31 }
 0xcc4   :  { %v5584_v3 = vcombine.high %v5544_v44, %v5576_v45 }
 0xcc5   :  { %v5445_v20 = vcombine.low %v5401_v27, %v5433_v25  ;;  %v5446_v40 = vcombine.high %v5401_v27, %v5433_v25  ;;  %v5447_v34 = vcombine.low %v5408_v49, %v5440_v5  ;;  %v5448_v47 = vcombine.high %v5408_v49, %v5440_v5 }
 0xcfc   :  { %v5906_v55 = vpop.f32.mrb[44].mxu1  ;;  %v5950_v2 = vpop.f32.mrb[52].mxu0 }
 0xcfd   :  { %v18067_v12 = vpop.f32.mrb[45].mxu1  ;;  %v18073_v13 = vpop.f32.mrb[53].mxu0  ;;  %v6069_v11 = vmul.f32 %v18550_v17, %v5906_v55  ;;  %v6071_v38 = vmul.f32 %v18554_v53, %v5950_v2 }
 0xcfe   :  { %v5909_v54 = vpop.f32.mrb[46].mxu1  ;;  %v5953_v16 = vpop.f32.mrb[54].mxu0 }
 0xcff   :  { %v18068_v26 = vpop.f32.mrb[47].mxu1  ;;  %v18074_v28 = vpop.f32.mrb[55].mxu0  ;;  %v6077_v17 = vadd.f32 %v6069_v11, %v5445_v20  ;;  %v6079_v48 = vadd.f32 %v6071_v38, %v5446_v40  ;;  %v6070_v36 = vmul.f32 %v18552_v52, %v5909_v54  ;;  %v6072_v33 = vmul.f32 %v18558_v23, %v5953_v16 }
 0xd01   :  { %v6078_v13 = vadd.f32 %v6070_v36, %v5581_v0  ;;  %v6080_v15 = vadd.f32 %v6072_v33, %v5582_v61 }
 0xd04   :  { %v5994_v42 = vpop.f32.mrb[48].mxu1  ;;  %v6038_v29 = vpop.f32.mrb[56].mxu0 }
 0xd05   :  { %v6073_v46 = vmul.f32 %v18556_v43, %v5994_v42  ;;  %v6075_v57 = vmul.f32 %v18560_v21, %v6038_v29  ;;  %v18079_v4 = vpop.f32.mrb[49].mxu1  ;;  %v18085_v8 = vpop.f32.mrb[57].mxu0 }
 0xd06   :  { %v5997_v50 = vpop.f32.mrb[50].mxu1  ;;  %v6041_v6 = vpop.f32.mrb[58].mxu0 }
 0xd07   :  { %v6081_v39 = vadd.f32 %v6073_v46, %v5447_v34  ;;  %v6083_v56 = vadd.f32 %v6075_v57, %v5448_v47  ;;  %v6074_v60 = vmul.f32 %v18562_v30, %v5997_v50  ;;  %v6076_v58 = vmul.f32 %v18564_v32, %v6041_v6  ;;  %v18080_v53 = vpop.f32.mrb[51].mxu1  ;;  %v18086_v63 = vpop.f32.mrb[59].mxu0 }
 0xd09   :  { %v6085_v62 = vcombine.low %v6077_v17, %v6081_v39  ;;  %v6086_v55 = vcombine.high %v6077_v17, %v6081_v39  ;;  %v6101_v2 = vcombine.low %v6079_v48, %v6083_v56  ;;  %v6102_v12 = vcombine.high %v6079_v48, %v6083_v56 }
 0xd0a   :  { %v6082_v52 = vadd.f32 %v6074_v60, %v5583_v59  ;;  %v6084_v10 = vadd.f32 %v6076_v58, %v5584_v3 }
 0xd0b   :  { %v6093_v54 = vrot.slane %v6085_v62, %v18888_v24  ;;  %v6100_v16 = vrot.slane %v6086_v55, %v18888_v24  ;;  %v6109_v43 = vrot.slane %v6101_v2, %v18888_v24  ;;  %v6116_v51 = vrot.slane %v6102_v12, %v18888_v24 }
 0xd0c   :  { %v6153_v22 = vcombine.low %v6078_v13, %v6082_v52  ;;  %v6154_v26 = vcombine.high %v6078_v13, %v6082_v52  ;;  %v6169_v28 = vcombine.low %v6080_v15, %v6084_v10  ;;  %v6170_v23 = vcombine.high %v6080_v15, %v6084_v10 }
 0xd0d   :  { %v6117_v27 = vcombine.low %v6093_v54, %v6109_v43  ;;  %v6118_v25 = vcombine.high %v6093_v54, %v6109_v43  ;;  %v6133_v14 = vcombine.low %v6100_v16, %v6116_v51  ;;  %v6134_v41 = vcombine.high %v6100_v16, %v6116_v51 }
 0xd0e   :  { %v6161_v49 = vrot.slane %v6153_v22, %v18888_v24  ;;  %v6168_v5 = vrot.slane %v6154_v26, %v18888_v24  ;;  %v6177_v11 = vrot.slane %v6169_v28, %v18888_v24  ;;  %v6184_v38 = vrot.slane %v6170_v23, %v18888_v24 }
 0xd0f   :  { %v6125_v21 = vrot.slane %v6117_v27, %v18890_v31  ;;  %v6132_v35 = vrot.slane %v6118_v25, %v18890_v31  ;;  %v6141_v37 = vrot.slane %v6133_v14, %v18890_v31  ;;  %v6148_v30 = vrot.slane %v6134_v41, %v18890_v31  ;;  %v18459_v41 = vld [vmem:[%s21978_s4 + $0x20] sm:$0xff]  }
 0xd10   :  { %v6185_v20 = vcombine.low %v6161_v49, %v6177_v11  ;;  %v6186_v40 = vcombine.high %v6161_v49, %v6177_v11  ;;  %v6201_v42 = vcombine.low %v6168_v5, %v6184_v38  ;;  %v6202_v29 = vcombine.high %v6168_v5, %v6184_v38  ;;  %18095 = vmatpush3.bf16.msra.mxu0 %v18459_v41  ;;  %v18460_v49 = vld [vmem:[%s21978_s4 + $0x28] sm:$0xff]  }
 0xd11   :  { %v6221_v44 = vcombine.low %v6125_v21, %v6132_v35  ;;  %v17429_v45 = vcombine.high %v6125_v21, %v6132_v35  ;;  %v6237_v34 = vcombine.low %v6141_v37, %v6148_v30  ;;  %v17430_v46 = vcombine.high %v6141_v37, %v6148_v30  ;;  %18096 = vmatprep.subr.bf16.mxu0 %v18756_v1  ;;  %v17434_v37 = vld [vmem:[%s21980_s6 + $0x2] ss:$0 sm:$0xff] }
 0xd12   :  { %v6193_v47 = vrot.slane %v6185_v20, %v18890_v31  ;;  %v6200_v57 = vrot.slane %v6186_v40, %v18890_v31  ;;  %v6209_v4 = vrot.slane %v6201_v42, %v18890_v31  ;;  %v6216_v8 = vrot.slane %v6202_v29, %v18890_v31  ;;  %v17436_v29 = vld [vmem:[%s21981_s7 + $0x2] ss:$0 sm:$0xff] }
 0xd13   :  { %v6228_v32 = vrot.slane %v6221_v44, %v18888_v24  ;;  %v6236_v17 = vrot.slane %v17429_v45, %v18888_v24  ;;  %v6244_v48 = vrot.slane %v6237_v34, %v18888_v24  ;;  %v6252_v36 = vrot.slane %v17430_v46, %v18888_v24 }
 0xd14   :  { %v6289_v33 = vcombine.low %v6193_v47, %v6200_v57  ;;  %v17431_v50 = vcombine.high %v6193_v47, %v6200_v57  ;;  %v6305_v6 = vcombine.low %v6209_v4, %v6216_v8  ;;  %v17432_v39 = vcombine.high %v6209_v4, %v6216_v8  ;;  %18097 = vmatpush3.bf16.msra.mxu0 %v18460_v49 }
 0xd15   :  { %v6253_v56 = vcombine.low %v6228_v32, %v6236_v17  ;;  %v6269_v60 = vcombine.low %v6244_v48, %v6252_v36  ;;  %v6254_v58 = vcombine.high %v6228_v32, %v6236_v17  ;;  %v6270_v53 = vcombine.high %v6244_v48, %v6252_v36  ;;  %18108 = vmatprep.subr.bf16.mxu0 %v18756_v1  ;;  %v18726_v48 = vld [vmem:[%s21976_s2] sm:$0x3]  ;;  %v17443_v36 = vld [vmem:[%s21979_s5 + $0x3] ss:$0 sm:$0xff] }
 0xd16   :  { %v6296_v63 = vrot.slane %v6289_v33, %v18888_v24  ;;  %v6304_v0 = vrot.slane %v17431_v50, %v18888_v24  ;;  %v6312_v61 = vrot.slane %v6305_v6, %v18888_v24  ;;  %v6320_v59 = vrot.slane %v17432_v39, %v18888_v24 }
 0xd17   :  { %v6261_v3 = vrot.slane %v6253_v56, %v18890_v31  ;;  %v6277_v62 = vrot.slane %v6269_v60, %v18890_v31  ;;  %v6268_v55 = vrot.slane %v6254_v58, %v18890_v31  ;;  %v6284_v2 = vrot.slane %v6270_v53, %v18890_v31 }
 0xd18   :  { %v6321_v12 = vcombine.low %v6296_v63, %v6304_v0  ;;  %v6337_v13 = vcombine.low %v6312_v61, %v6320_v59  ;;  %v6322_v15 = vcombine.high %v6296_v63, %v6304_v0  ;;  %v6338_v52 = vcombine.high %v6312_v61, %v6320_v59 }
 0xd19   :  { %v6286_v10 = vcombine.high %v6261_v3, %v6277_v62  ;;  %v6287_v54 = vcombine.low %v6268_v55, %v6284_v2  ;;  %v6288_v16 = vcombine.high %v6268_v55, %v6284_v2  ;;  %v6285_v43 = vcombine.low %v6261_v3, %v6277_v62 }
 0xd1a   :  { %v6329_v51 = vrot.slane %v6321_v12, %v18890_v31  ;;  %v6345_v22 = vrot.slane %v6337_v13, %v18890_v31  ;;  %v6336_v26 = vrot.slane %v6322_v15, %v18890_v31  ;;  %v6352_v28 = vrot.slane %v6338_v52, %v18890_v31 }
 0xd1b   :  { %6359 = vrot.lane.b32.xlu0 %v6286_v10, %s18774_s26 }
 0xd1c   :  { %v6354_v23 = vcombine.high %v6329_v51, %v6345_v22  ;;  %v6355_v27 = vcombine.low %v6336_v26, %v6352_v28  ;;  %v6356_v25 = vcombine.high %v6336_v26, %v6352_v28  ;;  %v6353_v14 = vcombine.low %v6329_v51, %v6345_v22 }
 0xd1e   :  { %6361 = vrot.lane.b32.xlu1 %v6354_v23, %s18774_s26 }
 0xd1f   :  { %6367 = vrot.lane.b32.xlu0 %v6287_v54, %s18773_s25 }
 0xd22   :  { %6369 = vrot.lane.b32.xlu1 %v6355_v27, %s18773_s25 }
 0xd23   :  { %6375 = vrot.lane.b32.xlu0 %v6288_v16, %s18772_s24 }
 0xd26   :  { %6377 = vrot.lane.b32.xlu1 %v6356_v25, %s18772_s24 }
 0xd8d   :  { %v6360_v5 = vpop.permute.xlu0 %6359 }
 0xd8e   :  { %v6381_v21 = vsel %vm1291_vm2, %v6285_v43, %v6360_v5 }
 0xd90   :  { %v6362_v11 = vpop.permute.xlu1 %6361 }
 0xd91   :  { %v6368_v38 = vpop.permute.xlu0 %6367  ;;  %v6382_v42 = vsel %vm1291_vm2, %v6353_v14, %v6362_v11 }
 0xd92   :  { %v6383_v30 = vsel %vm52_vm0, %v6381_v21, %v6368_v38 }
 0xd94   :  { %v6370_v35 = vpop.permute.xlu1 %6369 }
 0xd95   :  { %v6376_v20 = vpop.permute.xlu0 %6375  ;;  %v6384_v45 = vsel %vm52_vm0, %v6382_v42, %v6370_v35 }
 0xd96   :  { %v6385_v40 = vsel %vm2080_vm11, %v6383_v30, %v6376_v20 }
 0xd97   :  { %v6395_v44 = vmul.f32 %v17434_v37, %v6385_v40 }
 0xd98   :  { %v6378_v34 = vpop.permute.xlu1 %6377 }
 0xd99   :  { %v6386_v46 = vsel %vm2080_vm11, %v6384_v45, %v6378_v34  ;;  %v6405_v47 = vadd.f32 %v17436_v29, %v6395_v44 }
 0xd9a   :  { %v6396_v57 = vmul.f32 %v17434_v37, %v6386_v46 }
 0xd9b   :  { %v6407_v8 = vmax.f32 %v6405_v47, 0.0 }
 0xd9c   :  { %v6406_v4 = vadd.f32 %v17436_v29, %v6396_v57 }
 0xd9e   :  { %v6408_v32 = vmax.f32 %v6406_v4, 0.0 }
 0xda0   :  { %v18416_v17 = vpack.c.bf16 %v6408_v32, %v6407_v8 }
 0xda2   :  { %18417 = vmatpush3.bf16.msra.mxu1 %v18416_v17  ;;  %18099 = vmatmul.mubr.msk.bf16.vlgmr.msra.gmra.mrb[60].mxu0 %vm2203_vm12, %v18416_v17 }
 0xda3   :  { %18102 = vmatprep.subr.bf16.mxu1 %v18756_v1  ;;  %18110 = vmatprep.mubr.msk.bf16.mxu0 %vm18757_vm1, %v18756_v1 }
 0xda5   :  { %18092 = vmatmul.mubr.msk.f32.vlgmr.msra.gmra.mrb[52].mxu1 %vm52_vm0, %v18726_v48 }
 0xda6   :  { %18104 = vmatprep.mubr.msk.bf16.mxu1 %vm18757_vm1, %v18756_v1 }
 0xe75   :  { %v6555_v33 = vpop.f32.mrb[60].mxu0 }
 0xe76   :  { %v20031_v50 = vadd.f32 %v17443_v36, %v6555_v33  ;;  %v18100_v6 = vpop.f32.mrb[61].mxu0 }
 0xe77   :  { %v6558_v39 = vpop.f32.mrb[62].mxu0 }
 0xe78   :  { %v20033_v56 = vadd.f32 %v17443_v36, %v6558_v39  ;;  %6582 = vrot.lane.b32.xlu0 %v20031_v50, %s18759_s12  ;;  %v18101_v60 = vpop.f32.mrb[63].mxu0  ;;  %v20075_v58 = vpop.f32.mrb[52].mxu1 }
 0xe79   :  { %v18093_v53 = vpop.f32.mrb[53].mxu1 }
 0xe7a   :  { %6584 = vrot.lane.b32.xlu1 %v20033_v56, %s18759_s12 }
 0xe7c   :  { %6588 = vrot.lane.b32.xlu0 %v20031_v50, %s18758_s11 }
 0xe7e   :  { %6590 = vrot.lane.b32.xlu1 %v20033_v56, %s18758_s11 }
 0xe80   :  { %6594 = vrot.lane.b32.xlu0 %v20031_v50, %s18760_s13 }
 0xe82   :  { %6596 = vrot.lane.b32.xlu1 %v20033_v56, %s18760_s13 }
 0xe84   :  { %6600 = vrot.lane.b32.xlu0 %v20031_v50, %s18761_s14 }
 0xe86   :  { %6602 = vrot.lane.b32.xlu1 %v20033_v56, %s18761_s14 }
 0xe88   :  { %6564 = vrot.lane.b32.xlu0 %v20031_v50, %s18762_s15 }
 0xe8a   :  { %6566 = vrot.lane.b32.xlu1 %v20033_v56, %s18762_s15 }
 0xe8c   :  { %6570 = vrot.lane.b32.xlu0 %v20031_v50, %s18763_s16 }
 0xe8e   :  { %6572 = vrot.lane.b32.xlu1 %v20033_v56, %s18763_s16 }
 0xe90   :  { %6576 = vrot.lane.b32.xlu0 %v20031_v50, %s18764_s17 }
 0xe92   :  { %6578 = vrot.lane.b32.xlu1 %v20033_v56, %s18764_s17 }
 0xe94   :  { %6618 = vrot.lane.b32.xlu0 %v20031_v50, %s18766_s19 }
 0xe96   :  { %6606 = vrot.lane.b32.xlu1 %v20031_v50, %s18765_s18 }
 0xe98   :  { %6608 = vrot.lane.b32.xlu0 %v20033_v56, %s18765_s18 }
 0xe9a   :  { %6612 = vrot.lane.b32.xlu1 %v20031_v50, %s18767_s20 }
 0xe9e   :  { %6614 = vrot.lane.b32.xlu1 %v20033_v56, %s18767_s20 }
 0xea2   :  { %6620 = vrot.lane.b32.xlu1 %v20033_v56, %s18766_s19 }
 0xeea   :  { %v6583_v63 = vpop.permute.xlu0 %6582 }
 0xeec   :  { %v6585_v0 = vpop.permute.xlu1 %6584 }
 0xeee   :  { %v6589_v61 = vpop.permute.xlu0 %6588 }
 0xef0   :  { %v6591_v59 = vpop.permute.xlu1 %6590 }
 0xef2   :  { %v6595_v3 = vpop.permute.xlu0 %6594 }
 0xef3   :  { %v6686_v62 = vcombine.low %v6583_v63, %v6595_v3  ;;  %v6687_v55 = vcombine.high %v6583_v63, %v6595_v3 }
 0xef4   :  { %v6597_v2 = vpop.permute.xlu1 %6596 }
 0xef5   :  { %v6694_v52 = vrot.slane %v6686_v62, %v18888_v24  ;;  %v6701_v10 = vrot.slane %v6687_v55, %v18888_v24  ;;  %v6958_v54 = vcombine.low %v6585_v0, %v6597_v2  ;;  %v6959_v16 = vcombine.high %v6585_v0, %v6597_v2 }
 0xef6   :  { %v6601_v12 = vpop.permute.xlu0 %6600 }
 0xef7   :  { %v6702_v13 = vcombine.low %v6589_v61, %v6601_v12  ;;  %v6703_v15 = vcombine.high %v6589_v61, %v6601_v12  ;;  %v6966_v49 = vrot.slane %v6958_v54, %v18888_v24  ;;  %v6973_v21 = vrot.slane %v6959_v16, %v18888_v24 }
 0xef8   :  { %v6603_v43 = vpop.permute.xlu1 %6602 }
 0xef9   :  { %v6710_v51 = vrot.slane %v6702_v13, %v18888_v24  ;;  %v6717_v22 = vrot.slane %v6703_v15, %v18888_v24  ;;  %v6974_v26 = vcombine.low %v6591_v59, %v6603_v43  ;;  %v6975_v28 = vcombine.high %v6591_v59, %v6603_v43 }
 0xefa   :  { %v6565_v23 = vpop.permute.xlu0 %6564 }
 0xefb   :  { %v6750_v27 = vcombine.low %v6694_v52, %v6710_v51  ;;  %v6751_v25 = vcombine.high %v6694_v52, %v6710_v51  ;;  %v6766_v14 = vcombine.low %v6701_v10, %v6717_v22  ;;  %v6767_v41 = vcombine.high %v6701_v10, %v6717_v22 }
 0xefc   :  { %v6982_v5 = vrot.slane %v6974_v26, %v18888_v24  ;;  %v6989_v11 = vrot.slane %v6975_v28, %v18888_v24  ;;  %v6567_v38 = vpop.permute.xlu1 %6566 }
 0xefd   :  { %v6758_v35 = vrot.slane %v6750_v27, %v18890_v31  ;;  %v6765_v37 = vrot.slane %v6751_v25, %v18890_v31  ;;  %v6774_v42 = vrot.slane %v6766_v14, %v18890_v31  ;;  %v6781_v29 = vrot.slane %v6767_v41, %v18890_v31 }
 0xefe   :  { %v7022_v30 = vcombine.low %v6966_v49, %v6982_v5  ;;  %v7023_v20 = vcombine.high %v6966_v49, %v6982_v5  ;;  %v6571_v40 = vpop.permute.xlu0 %6570  ;;  %v7038_v44 = vcombine.low %v6973_v21, %v6989_v11  ;;  %v7039_v45 = vcombine.high %v6973_v21, %v6989_v11 }
 0xeff   :  { %v17448_v57 = vcombine.low %v6758_v35, %v6765_v37  ;;  %v17450_v4 = vcombine.high %v6758_v35, %v6765_v37  ;;  %v6654_v8 = vcombine.low %v20031_v50, %v6571_v40  ;;  %v6655_v32 = vcombine.high %v20031_v50, %v6571_v40 }
 0xf00   :  { %v6573_v34 = vpop.permute.xlu1 %6572  ;;  %v7030_v46 = vrot.slane %v7022_v30, %v18890_v31  ;;  %v7037_v47 = vrot.slane %v7023_v20, %v18890_v31  ;;  %v17452_v48 = vcombine.low %v6774_v42, %v6781_v29  ;;  %v17454_v36 = vcombine.high %v6774_v42, %v6781_v29 }
 0xf01   :  { %v6926_v33 = vcombine.low %v20033_v56, %v6573_v34  ;;  %v6927_v6 = vcombine.high %v20033_v56, %v6573_v34  ;;  %v7046_v39 = vrot.slane %v7038_v44, %v18890_v31  ;;  %v7053_v60 = vrot.slane %v7039_v45, %v18890_v31 }
 0xf02   :  { %v6577_v17 = vpop.permute.xlu0 %6576  ;;  %v17456_v61 = vcombine.low %v7030_v46, %v7037_v47  ;;  %v17458_v59 = vcombine.high %v7030_v46, %v7037_v47  ;;  %v6662_v55 = vrot.slane %v6654_v8, %v18888_v24  ;;  %v6669_v2 = vrot.slane %v6655_v32, %v18888_v24 }
 0xf03   :  { %v6670_v53 = vcombine.low %v6565_v23, %v6577_v17  ;;  %v6671_v63 = vcombine.high %v6565_v23, %v6577_v17  ;;  %v6934_v15 = vrot.slane %v6926_v33, %v18888_v24  ;;  %v6941_v52 = vrot.slane %v6927_v6, %v18888_v24 }
 0xf04   :  { %v6579_v0 = vpop.permute.xlu1 %6578  ;;  %v7213_v35 = vrot.slane %v17448_v57, %v18888_v24  ;;  %v7229_v37 = vrot.slane %v17450_v4, %v18888_v24  ;;  %v7245_v30 = vrot.slane %v17452_v48, %v18888_v24  ;;  %v7261_v20 = vrot.slane %v17454_v36, %v18888_v24 }
 0xf05   :  { %v6942_v3 = vcombine.low %v6567_v38, %v6579_v0  ;;  %v6943_v62 = vcombine.high %v6567_v38, %v6579_v0  ;;  %v6678_v12 = vrot.slane %v6670_v53, %v18888_v24  ;;  %v6685_v13 = vrot.slane %v6671_v63, %v18888_v24 }
 0xf06   :  { %v17460_v8 = vcombine.low %v7046_v39, %v7053_v60  ;;  %v17462_v32 = vcombine.high %v7046_v39, %v7053_v60  ;;  %v7349_v17 = vrot.slane %v17456_v61, %v18888_v24  ;;  %v7365_v57 = vrot.slane %v17458_v59, %v18888_v24 }
 0xf07   :  { %v6950_v10 = vrot.slane %v6942_v3, %v18888_v24  ;;  %v6957_v54 = vrot.slane %v6943_v62, %v18888_v24  ;;  %v6718_v16 = vcombine.low %v6662_v55, %v6678_v12  ;;  %v6719_v43 = vcombine.high %v6662_v55, %v6678_v12 }
 0xf08   :  { %v6734_v51 = vcombine.low %v6669_v2, %v6685_v13  ;;  %v6735_v22 = vcombine.high %v6669_v2, %v6685_v13  ;;  %v7278_v33 = vcombine.low %v7213_v35, %v7229_v37  ;;  %v7310_v4 = vcombine.low %v7245_v30, %v7261_v20 }
 0xf09   :  { %v6990_v26 = vcombine.low %v6934_v15, %v6950_v10  ;;  %v6991_v28 = vcombine.high %v6934_v15, %v6950_v10  ;;  %v7006_v23 = vcombine.low %v6941_v52, %v6957_v54  ;;  %v7007_v27 = vcombine.high %v6941_v52, %v6957_v54 }
 0xf0a   :  { %v6726_v25 = vrot.slane %v6718_v16, %v18890_v31  ;;  %v6733_v14 = vrot.slane %v6719_v43, %v18890_v31  ;;  %v6742_v41 = vrot.slane %v6734_v51, %v18890_v31  ;;  %v6749_v49 = vrot.slane %v6735_v22, %v18890_v31 }
 0xf0b   :  { %v6998_v5 = vrot.slane %v6990_v26, %v18890_v31  ;;  %v7005_v11 = vrot.slane %v6991_v28, %v18890_v31  ;;  %v7014_v38 = vrot.slane %v7006_v23, %v18890_v31  ;;  %v7021_v21 = vrot.slane %v7007_v27, %v18890_v31 }
 0xf0c   :  { %v17447_v45 = vcombine.low %v6726_v25, %v6733_v14  ;;  %v17449_v34 = vcombine.high %v6726_v25, %v6733_v14  ;;  %v17451_v46 = vcombine.low %v6742_v41, %v6749_v49  ;;  %v17453_v47 = vcombine.high %v6742_v41, %v6749_v49 }
 0xf0d   :  { %v17455_v40 = vcombine.low %v6998_v5, %v7005_v11  ;;  %v17457_v42 = vcombine.high %v6998_v5, %v7005_v11  ;;  %v17459_v29 = vcombine.low %v7014_v38, %v7021_v21  ;;  %v17461_v44 = vcombine.high %v7014_v38, %v7021_v21 }
 0xf0e   :  { %v20124_v63 = vrot.slane %v17447_v45, %v18888_v24  ;;  %v7222_v0 = vrot.slane %v17449_v34, %v18888_v24  ;;  %v7238_v39 = vrot.slane %v17451_v46, %v18888_v24  ;;  %v7254_v60 = vrot.slane %v17453_v47, %v18888_v24 }
 0xf0f   :  { %v7342_v48 = vrot.slane %v17455_v40, %v18888_v24  ;;  %v7358_v36 = vrot.slane %v17457_v42, %v18888_v24  ;;  %v7374_v6 = vrot.slane %v17459_v29, %v18888_v24  ;;  %v7390_v53 = vrot.slane %v17461_v44, %v18888_v24 }
 0xf10   :  { %v7381_v61 = vrot.slane %v17460_v8, %v18888_v24  ;;  %v7397_v59 = vrot.slane %v17462_v32, %v18888_v24  ;;  %v7414_v3 = vcombine.low %v7349_v17, %v7365_v57  ;;  %v7286_v62 = vrot.slane %v7278_v33, %v18890_v31 }
 0xf11   :  { %v7318_v55 = vrot.slane %v7310_v4, %v18890_v31  ;;  %v7398_v2 = vcombine.low %v7342_v48, %v7358_v36  ;;  %v7430_v12 = vcombine.low %v7374_v6, %v7390_v53  ;;  %v7262_v52 = vcombine.low %v20124_v63, %v7222_v0 }
 0xf12   :  { %v7422_v13 = vrot.slane %v7414_v3, %v18890_v31  ;;  %v7446_v15 = vcombine.low %v7381_v61, %v7397_v59  ;;  %v7294_v10 = vcombine.low %v7238_v39, %v7254_v60  ;;  %v7279_v16 = vcombine.high %v7213_v35, %v7229_v37 }
 0xf13   :  { %v7311_v43 = vcombine.high %v7245_v30, %v7261_v20  ;;  %v7330_v51 = vcombine.low %v7286_v62, %v7318_v55  ;;  %v7331_v22 = vcombine.high %v7286_v62, %v7318_v55  ;;  %v7406_v23 = vrot.slane %v7398_v2, %v18890_v31 }
 0xf14   :  { %v7454_v54 = vrot.slane %v7446_v15, %v18890_v31  ;;  %v7438_v27 = vrot.slane %v7430_v12, %v18890_v31  ;;  %v7270_v25 = vrot.slane %v7262_v52, %v18890_v31  ;;  %v7302_v14 = vrot.slane %v7294_v10, %v18890_v31 }
 0xf15   :  { %v7415_v41 = vcombine.high %v7349_v17, %v7365_v57  ;;  %v7447_v49 = vcombine.high %v7381_v61, %v7397_v59  ;;  %v7293_v38 = vrot.slane %v7279_v16, %v18890_v31  ;;  %v7325_v21 = vrot.slane %v7311_v43, %v18890_v31 }
 0xf16   :  { %v7466_v26 = vcombine.low %v7422_v13, %v7454_v54  ;;  %v7467_v28 = vcombine.high %v7422_v13, %v7454_v54  ;;  %v7399_v35 = vcombine.high %v7342_v48, %v7358_v36  ;;  %v7431_v37 = vcombine.high %v7374_v6, %v7390_v53 }
 0xf17   :  { %v7429_v30 = vrot.slane %v7415_v41, %v18890_v31  ;;  %v7461_v20 = vrot.slane %v7447_v49, %v18890_v31  ;;  %v7462_v29 = vcombine.low %v7406_v23, %v7438_v27  ;;  %v7463_v44 = vcombine.high %v7406_v23, %v7438_v27 }
 0xf18   :  { %v7746_v5 = vpack.c.bf16 %v7466_v26, %v7330_v51  ;;  %v7747_v11 = vpack.c.bf16 %v7467_v28, %v7331_v22  ;;  %v7326_v45 = vcombine.low %v7270_v25, %v7302_v14  ;;  %v7327_v47 = vcombine.high %v7270_v25, %v7302_v14 }
 0xf19   :  { %v7468_v34 = vcombine.low %v7429_v30, %v7461_v20  ;;  %v7469_v46 = vcombine.high %v7429_v30, %v7461_v20  ;;  %v7332_v8 = vcombine.low %v7293_v38, %v7325_v21  ;;  %v7333_v32 = vcombine.high %v7293_v38, %v7325_v21 }
 0xf1a   :  { %v7758_v40 = vsel %vm1291_vm2, %v7746_v5, 0  ;;  %v7805_v42 = vsel %vm1291_vm2, %v7747_v11, 0  ;;  %v7263_v17 = vcombine.high %v20124_v63, %v7222_v0  ;;  %v7295_v57 = vcombine.high %v7238_v39, %v7254_v60 }
 0xf1b   :  { %18103 = vmatpush3.bf16.xpose.msra.mxu1 %v7758_v40  ;;  %18109 = vmatpush3.bf16.xpose.msra.mxu0 %v7805_v42  ;;  %v7742_v33 = vpack.c.bf16 %v7462_v29, %v7326_v45  ;;  %v7743_v4 = vpack.c.bf16 %v7463_v44, %v7327_v47  ;;  %v7748_v48 = vpack.c.bf16 %v7468_v34, %v7332_v8  ;;  %v20208_v8 = vpop.permute.xlu0 %6618 }
 0xf1c   :  { %18114 = vmatprep.subr.bf16.mxu1 %v18756_v1  ;;  %18120 = vmatprep.subr.bf16.mxu0 %v18756_v1  ;;  %v7749_v36 = vpack.c.bf16 %v7469_v46, %v7333_v32  ;;  %v7413_v6 = vrot.slane %v7399_v35, %v18890_v31  ;;  %v7445_v53 = vrot.slane %v7431_v37, %v18890_v31  ;;  %v20204_v46 = vpop.permute.xlu1 %6606 }
 0xf1d   :  { %v7852_v61 = vsel %vm1291_vm2, %v7748_v48, 0  ;;  %v7277_v3 = vrot.slane %v7263_v17, %v18890_v31  ;;  %v7309_v63 = vrot.slane %v7295_v57, %v18890_v31 }
 0xf1e   :  { %v7899_v59 = vsel %vm1291_vm2, %v7749_v36, 0  ;;  %v7464_v0 = vcombine.low %v7413_v6, %v7445_v53  ;;  %v7465_v39 = vcombine.high %v7413_v6, %v7445_v53 }
 0xf1f   :  { %v7328_v60 = vcombine.low %v7277_v3, %v7309_v63  ;;  %v7329_v62 = vcombine.high %v7277_v3, %v7309_v63  ;;  %v6609_v17 = vpop.permute.xlu0 %6608 }
 0xf20   :  { %v20206_v47 = vpop.permute.xlu1 %6612 }
 0xf21   :  { %v7744_v55 = vpack.c.bf16 %v7464_v0, %v7328_v60  ;;  %v7745_v2 = vpack.c.bf16 %v7465_v39, %v7329_v62 }
 0xf22   :  { %18105 = vmatmul.mubr.msk.bf16.vlgmr.msra.gmra.mrb[56].mxu1 %vm1291_vm2, %v7742_v33  ;;  %18111 = vmatmul.mubr.msk.bf16.vlgmr.msra.gmra.mrb[64].mxu0 %vm1291_vm2, %v7743_v4 }
 0xf23   :  { %18115 = vmatpush3.bf16.xpose.msra.mxu1 %v7852_v61  ;;  %18121 = vmatpush3.bf16.xpose.msra.mxu0 %v7899_v59 }
 0xf24   :  { %18116 = vmatprep.mubr.msk.bf16.mxu1 %vm18757_vm1, %v18756_v1  ;;  %18122 = vmatprep.mubr.msk.bf16.mxu0 %vm18757_vm1, %v18756_v1  ;;  %v6615_v32 = vpop.permute.xlu1 %6614 }
 0xf25   :  { %18126 = vmatprep.subr.bf16.mxu1 %v18756_v1  ;;  %18132 = vmatprep.subr.bf16.mxu0 %v18756_v1 }
 0xf28   :  { %v6621_v57 = vpop.permute.xlu1 %6620 }
 0xf2a   :  { %18117 = vmatmul.mubr.msk.bf16.vlgmr.msra.gmra.mrb[60].mxu1 %vm1291_vm2, %v7744_v55  ;;  %18123 = vmatmul.mubr.msk.bf16.vlgmr.msra.gmra.mrb[68].mxu0 %vm1291_vm2, %v7745_v2 }
 0xf2b   :  { %18128 = vmatprep.mubr.msk.bf16.mxu1 %vm18757_vm1, %v18756_v1  ;;  %18134 = vmatprep.mubr.msk.bf16.mxu0 %vm18757_vm1, %v18756_v1 }
 0xff5   :  { %v7794_v12 = vpop.f32.mrb[56].mxu1  ;;  %v7841_v13 = vpop.f32.mrb[64].mxu0 }
 0xff6   :  { %v7795_v15 = vadd.f32 %v19011_v18, %v7794_v12  ;;  %v18106_v52 = vpop.f32.mrb[57].mxu1  ;;  %v18112_v10 = vpop.f32.mrb[65].mxu0  ;;  %v7842_v43 = vadd.f32 %v19011_v18, %v7841_v13 }
 0xff7   :  { %v7797_v54 = vpop.f32.mrb[58].mxu1  ;;  %v7844_v16 = vpop.f32.mrb[66].mxu0 }
 0xff8   :  { %v7798_v51 = vadd.f32 %v19013_v19, %v7797_v54  ;;  %v18107_v22 = vpop.f32.mrb[59].mxu1  ;;  %v18113_v26 = vpop.f32.mrb[67].mxu0  ;;  %v7942_v28 = vsel %vm52_vm0, %v7795_v15, -inf  ;;  %v7845_v27 = vadd.f32 %v19013_v19, %v7844_v16  ;;  %v7948_v25 = vsel %vm52_vm0, %v7842_v43, -inf }
 0xff9   :  { %7943 = vmax.xlane.f32.xlu0 %v7942_v28  ;;  %v7063_v26 = vcombine.high %v6609_v17, %v6621_v57 }
 0xffa   :  { %v7945_v23 = vsel %vm52_vm0, %v7798_v51, -inf  ;;  %v7951_v40 = vsel %vm52_vm0, %v7845_v27, -inf }
 0xffb   :  { %7946 = vmax.xlane.f32.xlu1 %v7945_v23  ;;  %v6790_v23 = vcombine.low %v20204_v46, %v20208_v8 }
 0xffd   :  { %v7935_v14 = vpop.f32.mrb[68].mxu0  ;;  %7949 = vmax.xlane.f32.xlu0 %v7948_v25  ;;  %v7888_v41 = vpop.f32.mrb[60].mxu1 }
 0xffe   :  { %v7889_v49 = vadd.f32 %v19011_v18, %v7888_v41  ;;  %v18118_v5 = vpop.f32.mrb[61].mxu1  ;;  %v18124_v11 = vpop.f32.mrb[69].mxu0  ;;  %v7936_v35 = vadd.f32 %v19011_v18, %v7935_v14 }
 0xfff   :  { %v7891_v38 = vpop.f32.mrb[62].mxu1  ;;  %v7938_v21 = vpop.f32.mrb[70].mxu0 }
0x1000   :  { %v7892_v37 = vadd.f32 %v19013_v19, %v7891_v38  ;;  %v18119_v30 = vpop.f32.mrb[63].mxu1  ;;  %v18125_v20 = vpop.f32.mrb[71].mxu0  ;;  %v7954_v42 = vsel %vm52_vm0, %v7889_v49, -inf  ;;  %v20182_v29 = vadd.f32 %v19013_v19, %v7938_v21  ;;  %v7960_v44 = vsel %vm52_vm0, %v7936_v35, -inf }
0x1001   :  { %7952 = vmax.xlane.f32.xlu0 %v7951_v40  ;;  %7955 = vmax.xlane.f32.xlu1 %v7954_v42  ;;  %v6791_v38 = vcombine.high %v20204_v46, %v20208_v8  ;;  %v7077_v20 = vrot.slane %v7063_v26, %v18888_v24 }
0x1002   :  { %v7957_v45 = vsel %vm52_vm0, %v7892_v37, -inf  ;;  %v7963_v34 = vsel %vm52_vm0, %v20182_v29, -inf }
0x1005   :  { %7961 = vmax.xlane.f32.xlu1 %v7960_v44  ;;  %7958 = vmax.xlane.f32.xlu0 %v7957_v45  ;;  %v6798_v44 = vrot.slane %v6790_v23, %v18888_v24 }
0x1009   :  { %7964 = vmax.xlane.f32.xlu0 %v7963_v34 }
0x1016   :  { %6626 = vrot.lane.b32.xlu1 %v20033_v56, %s18770_s1 }
0x101a   :  { %6630 = vrot.lane.b32.xlu1 %v20031_v50, %s18771_s23 }
0x101e   :  { %6636 = vrot.lane.b32.xlu1 %v20031_v50, %s18772_s24 }
0x101f   :  { %6624 = vrot.lane.b32.xlu0 %v20031_v50, %s18770_s1 }
0x1022   :  { %6638 = vrot.lane.b32.xlu1 %v20033_v56, %s18772_s24 }
0x1023   :  { %6632 = vrot.lane.b32.xlu0 %v20033_v56, %s18771_s23 }
0x1026   :  { %6644 = vrot.lane.b32.xlu1 %v20033_v56, %s18773_s25 }
0x1027   :  { %6642 = vrot.lane.b32.xlu0 %v20031_v50, %s18773_s25 }
0x1086   :  { %v7944_v33 = vpop.xlane.xlu0 %7943 }
0x1087   :  { %v7966_v4 = vmax.f32 %v7944_v33, 0.0 }
0x1088   :  { %v7947_v48 = vpop.xlane.xlu1 %7946 }
0x1089   :  { %v7974_v36 = vsub.f32 %v7795_v15, %v7966_v4  ;;  %v7967_v6 = vmax.f32 %v7947_v48, 0.0 }
0x108a   :  { %v7950_v53 = vpop.xlane.xlu0 %7949 }
0x108b   :  { %v7982_v61 = vmul.f32 1.442695, %v7974_v36  ;;  %v7975_v59 = vsub.f32 %v7798_v51, %v7967_v6  ;;  %v7968_v3 = vmax.f32 %v7950_v53, 0.0  ;;  %v7062_v51 = vcombine.low %v6609_v17, %v6621_v57 }
0x108d   :  { %18565 = vpow2.f32 %v7982_v61  ;;  %v7984_v63 = vmul.f32 1.442695, %v7975_v59  ;;  %v7976_v0 = vsub.f32 %v7842_v43, %v7968_v3  ;;  %v7070_v21 = vrot.slane %v7062_v51, %v18888_v24 }
0x108e   :  { %v7953_v39 = vpop.xlane.xlu0 %7952  ;;  %v7956_v60 = vpop.xlane.xlu1 %7955  ;;  %v6805_v3 = vrot.slane %v6791_v38, %v18888_v24 }
0x108f   :  { %18567 = vpow2.f32 %v7984_v63  ;;  %v7986_v62 = vmul.f32 1.442695, %v7976_v0  ;;  %v7969_v55 = vmax.f32 %v7953_v39, 0.0  ;;  %v7970_v2 = vmax.f32 %v7956_v60, 0.0 }
0x1091   :  { %18569 = vpow2.f32 %v7986_v62  ;;  %v7977_v12 = vsub.f32 %v7845_v27, %v7969_v55  ;;  %v7978_v13 = vsub.f32 %v7889_v49, %v7970_v2 }
0x1092   :  { %v7962_v52 = vpop.xlane.xlu1 %7961  ;;  %v7959_v10 = vpop.xlane.xlu0 %7958 }
0x1093   :  { %v7988_v15 = vmul.f32 1.442695, %v7977_v12  ;;  %v7990_v54 = vmul.f32 1.442695, %v7978_v13  ;;  %v7972_v16 = vmax.f32 %v7962_v52, 0.0  ;;  %v7971_v22 = vmax.f32 %v7959_v10, 0.0 }
0x1095   :  { %18571 = vpow2.f32 %v7988_v15  ;;  %v7980_v28 = vsub.f32 %v7936_v35, %v7972_v16  ;;  %v7979_v43 = vsub.f32 %v7892_v37, %v7971_v22 }
0x1096   :  { %18573 = vpow2.f32 %v7990_v54  ;;  %v6627_v25 = vpop.permute.xlu1 %6626  ;;  %v7965_v14 = vpop.xlane.xlu0 %7964 }
0x1097   :  { %v20212_v41 = vpop.eup %18565  ;;  %v7994_v27 = vmul.f32 1.442695, %v7980_v28  ;;  %v7992_v49 = vmul.f32 1.442695, %v7979_v43  ;;  %v7078_v5 = vcombine.low %v6615_v32, %v6627_v25  ;;  %v7079_v11 = vcombine.high %v6615_v32, %v6627_v25 }
0x1098   :  { %v7973_v30 = vmax.f32 %v7965_v14, 0.0  ;;  %v7998_v35 = vsel %vm52_vm0, %v20212_v41, 0.0 }
0x1099   :  { %v20219_v37 = vpop.eup %18567  ;;  %18575 = vpow2.f32 %v7994_v27  ;;  %v7086_v40 = vrot.slane %v7078_v5, %v18888_v24  ;;  %v7093_v42 = vrot.slane %v7079_v11, %v18888_v24  ;;  %7999 = vadd.xlane.f32.xlu0 %v7998_v35 }
0x109a   :  { %18577 = vpow2.f32 %v7992_v49  ;;  %v7981_v45 = vsub.f32 %v20182_v29, %v7973_v30  ;;  %v6625_v34 = vpop.permute.xlu0 %6624  ;;  %v8001_v46 = vsel %vm52_vm0, %v20219_v37, 0.0 }
0x109b   :  { %v20228_v8 = vpop.eup %18569  ;;  %v7126_v32 = vcombine.low %v7070_v21, %v7086_v40  ;;  %v7127_v17 = vcombine.high %v7070_v21, %v7086_v40  ;;  %v7142_v57 = vcombine.low %v7077_v20, %v7093_v42  ;;  %v7143_v33 = vcombine.high %v7077_v20, %v7093_v42  ;;  %8002 = vadd.xlane.f32.xlu1 %v8001_v46 }
0x109c   :  { %v7996_v4 = vmul.f32 1.442695, %v7981_v45  ;;  %v6806_v48 = vcombine.low %v20206_v47, %v6625_v34  ;;  %v6807_v36 = vcombine.high %v20206_v47, %v6625_v34  ;;  %v8004_v6 = vsel %vm52_vm0, %v20228_v8, 0.0 }
0x109d   :  { %v7134_v29 = vrot.slane %v7126_v32, %v18890_v31  ;;  %v7141_v53 = vrot.slane %v7127_v17, %v18890_v31  ;;  %v7150_v61 = vrot.slane %v7142_v57, %v18890_v31  ;;  %v7157_v59 = vrot.slane %v7143_v33, %v18890_v31  ;;  %8005 = vadd.xlane.f32.xlu0 %v8004_v6 }
0x109e   :  { %18579 = vpow2.f32 %v7996_v4  ;;  %v6814_v63 = vrot.slane %v6806_v48, %v18888_v24  ;;  %v6821_v0 = vrot.slane %v6807_v36, %v18888_v24 }
0x109f   :  { %v20241_v47 = vpop.eup %18571  ;;  %v17471_v39 = vcombine.low %v7134_v29, %v7141_v53  ;;  %v17473_v60 = vcombine.high %v7134_v29, %v7141_v53  ;;  %v17475_v62 = vcombine.low %v7150_v61, %v7157_v59  ;;  %v17477_v55 = vcombine.high %v7150_v61, %v7157_v59 }
0x10a0   :  { %v20243_v2 = vpop.eup %18573  ;;  %v6854_v12 = vcombine.low %v6798_v44, %v6814_v63  ;;  %v6855_v13 = vcombine.high %v6798_v44, %v6814_v63  ;;  %v6870_v52 = vcombine.low %v6805_v3, %v6821_v0  ;;  %v6871_v10 = vcombine.high %v6805_v3, %v6821_v0 }
0x10a1   :  { %v7614_v15 = vrot.slane %v17471_v39, %v18888_v24  ;;  %v7630_v54 = vrot.slane %v17473_v60, %v18888_v24  ;;  %v7646_v43 = vrot.slane %v17475_v62, %v18888_v24  ;;  %v7662_v23 = vrot.slane %v17477_v55, %v18888_v24 }
0x10a2   :  { %v6862_v16 = vrot.slane %v6854_v12, %v18890_v31  ;;  %v6869_v22 = vrot.slane %v6855_v13, %v18890_v31  ;;  %v6878_v51 = vrot.slane %v6870_v52, %v18890_v31  ;;  %v6885_v26 = vrot.slane %v6871_v10, %v18890_v31 }
0x10a3   :  { %v20251_v28 = vpop.eup %18575  ;;  %v8010_v25 = vsel %vm52_vm0, %v20243_v2, 0.0  ;;  %v8007_v14 = vsel %vm52_vm0, %v20241_v47, 0.0  ;;  %v7670_v44 = vcombine.low %v7614_v15, %v7630_v54  ;;  %v7702_v45 = vcombine.low %v7646_v43, %v7662_v23 }
0x10a4   :  { %v20259_v27 = vpop.eup %18577  ;;  %v17463_v49 = vcombine.low %v6862_v16, %v6869_v22  ;;  %v17465_v5 = vcombine.high %v6862_v16, %v6869_v22  ;;  %v17467_v11 = vcombine.low %v6878_v51, %v6885_v26  ;;  %v17469_v38 = vcombine.high %v6878_v51, %v6885_v26  ;;  %8011 = vadd.xlane.f32.xlu1 %v8010_v25 }
0x10a5   :  { %8008 = vadd.xlane.f32.xlu0 %v8007_v14  ;;  %v8016_v21 = vsel %vm52_vm0, %v20251_v28, 0.0  ;;  %v8013_v30 = vsel %vm52_vm0, %v20259_v27, 0.0  ;;  %v7678_v57 = vrot.slane %v7670_v44, %v18890_v31  ;;  %v7710_v36 = vrot.slane %v7702_v45, %v18890_v31 }
0x10a6   :  { %v7478_v35 = vrot.slane %v17463_v49, %v18888_v24  ;;  %v7494_v20 = vrot.slane %v17465_v5, %v18888_v24  ;;  %v7510_v40 = vrot.slane %v17467_v11, %v18888_v24  ;;  %v7526_v42 = vrot.slane %v17469_v38, %v18888_v24 }
0x10a7   :  { %v7671_v53 = vcombine.high %v7614_v15, %v7630_v54  ;;  %v7703_v61 = vcombine.high %v7646_v43, %v7662_v23  ;;  %v7734_v3 = vcombine.low %v7678_v57, %v7710_v36  ;;  %v7735_v0 = vcombine.high %v7678_v57, %v7710_v36 }
0x10a8   :  { %v18580_v34 = vpop.eup %18579  ;;  %8017 = vadd.xlane.f32.xlu1 %v8016_v21  ;;  %v7534_v46 = vcombine.low %v7478_v35, %v7494_v20  ;;  %v7566_v32 = vcombine.low %v7510_v40, %v7526_v42  ;;  %v7535_v17 = vcombine.high %v7478_v35, %v7494_v20  ;;  %v7567_v29 = vcombine.high %v7510_v40, %v7526_v42 }
0x10a9   :  { %8014 = vadd.xlane.f32.xlu0 %v8013_v30  ;;  %v8019_v33 = vsel %vm52_vm0, %v18580_v34, 0.0  ;;  %v7685_v60 = vrot.slane %v7671_v53, %v18890_v31  ;;  %v7717_v62 = vrot.slane %v7703_v61, %v18890_v31  ;;  %v8022_v54 = vpack.c.bf16 %v20219_v37, %v20212_v41 }
0x10aa   :  { %v7542_v4 = vrot.slane %v7534_v46, %v18890_v31  ;;  %v7574_v48 = vrot.slane %v7566_v32, %v18890_v31  ;;  %v7549_v6 = vrot.slane %v7535_v17, %v18890_v31  ;;  %v7581_v39 = vrot.slane %v7567_v29, %v18890_v31 }
0x10ab   :  { %v7736_v10 = vcombine.low %v7685_v60, %v7717_v62  ;;  %v7737_v15 = vcombine.high %v7685_v60, %v7717_v62  ;;  %v8023_v16 = vpack.c.bf16 %v20241_v47, %v20228_v8  ;;  %v8024_v41 = vpack.c.bf16 %v20259_v27, %v20243_v2  ;;  %v6633_v8 = vpop.permute.xlu0 %6632 }
0x10ac   :  { %v7598_v59 = vcombine.low %v7542_v4, %v7574_v48  ;;  %v7599_v63 = vcombine.high %v7542_v4, %v7574_v48  ;;  %v7600_v13 = vcombine.low %v7549_v6, %v7581_v39  ;;  %v7601_v52 = vcombine.high %v7549_v6, %v7581_v39 }
0x10ad   :  { %8020 = vadd.xlane.f32.xlu0 %v8019_v33  ;;  %v8025_v37 = vpack.c.bf16 %v18580_v34, %v20251_v28 }
0x10ae   :  { %v7750_v55 = vpack.c.bf16 %v7734_v3, %v7598_v59  ;;  %v7751_v12 = vpack.c.bf16 %v7735_v0, %v7599_v63  ;;  %v7752_v22 = vpack.c.bf16 %v7736_v10, %v7600_v13  ;;  %v7753_v51 = vpack.c.bf16 %v7737_v15, %v7601_v52 }
0x10af   :  { %v6643_v47 = vpop.permute.xlu0 %6642 }
0x10b0   :  { %18127 = vmatpush3.bf16.msra.mxu1 %v7750_v55  ;;  %18133 = vmatpush3.bf16.msra.mxu0 %v7751_v12 }
0x10b1   :  { %18138 = vmatprep.subr.bf16.mxu1 %v18756_v1  ;;  %18144 = vmatprep.subr.bf16.mxu0 %v18756_v1 }
0x10b3   :  { %18129 = vmatmul.mubr.msk.bf16.vlgmr.msra.gmra.mrb[64].mxu1 %vm52_vm0, %v8022_v54  ;;  %18135 = vmatmul.mubr.msk.bf16.vlgmr.msra.gmra.mrb[72].mxu0 %vm52_vm0, %v8023_v16 }
0x10b4   :  { %18139 = vmatpush3.bf16.msra.mxu1 %v7752_v22  ;;  %18145 = vmatpush3.bf16.msra.mxu0 %v7753_v51 }
0x10b5   :  { %18140 = vmatprep.mubr.msk.bf16.mxu1 %vm18757_vm1, %v18756_v1  ;;  %18146 = vmatprep.mubr.msk.bf16.mxu0 %vm18757_vm1, %v18756_v1 }
0x10b6   :  { %18157 = vmatprep.subr.bf16.mxu0 %v18756_v1  ;;  %18418 = vmatprep.subr.bf16.mxu1 %v18775_v9 }
0x10b9   :  { %6650 = vrot.lane.b32.xlu1 %v20033_v56, %s18774_s26  ;;  %v6631_v56 = vpop.permute.xlu1 %6630 }
0x10ba   :  { %v6823_v20 = vcombine.high %v6631_v56, %v6643_v47 }
0x10bb   :  { %18141 = vmatmul.mubr.msk.bf16.vlgmr.msra.gmra.mrb[68].mxu1 %vm52_vm0, %v8024_v41  ;;  %18147 = vmatmul.mubr.msk.bf16.vlgmr.msra.gmra.mrb[76].mxu0 %vm52_vm0, %v8025_v37 }
0x10bc   :  { %18161 = vmatprep.mubr.msk.bf16.mxu0 %vm18757_vm1, %v18756_v1  ;;  %18154 = vmatprep.mubr.msk.f32.mxu1 %vm18757_vm1, %v18756_v1  ;;  %v6837_v17 = vrot.slane %v6823_v20, %v18888_v24 }
0x10bd   :  { %v6637_v2 = vpop.permute.xlu1 %6636 }
0x10c1   :  { %v6639_v28 = vpop.permute.xlu1 %6638 }
0x10c3   :  { %6648 = vrot.lane.b32.xlu0 %v20031_v50, %s18774_s26  ;;  %v6822_v50 = vcombine.low %v6631_v56, %v6643_v47 }
0x10c5   :  { %v6645_v25 = vpop.permute.xlu1 %6644  ;;  %v6830_v32 = vrot.slane %v6822_v50, %v18888_v24 }
0x10c6   :  { %v7094_v34 = vcombine.low %v6633_v8, %v6645_v25  ;;  %v7095_v46 = vcombine.high %v6633_v8, %v6645_v25 }
0x10c8   :  { %v7102_v61 = vrot.slane %v7094_v34, %v18888_v24  ;;  %v7109_v59 = vrot.slane %v7095_v46, %v18888_v24 }
0x1126   :  { %v8000_v26 = vpop.xlane.xlu0 %7999 }
0x1127   :  { %vm8202_vm7 = vcmp.gt.f32.partialorder %v8000_v26, 0.0 }
0x1128   :  { %v8003_v14 = vpop.xlane.xlu1 %8002  ;;  %v8210_v57 = vsel %vm8202_vm7, %v8000_v26, 1.0 }
0x1129   :  { %vm8203_vm8 = vcmp.gt.f32.partialorder %v8003_v14, 0.0  ;;  %18581 = vrcp.f32 %v8210_v57 }
0x112a   :  { %v8006_v43 = vpop.xlane.xlu0 %8005  ;;  %v8211_v33 = vsel %vm8203_vm8, %v8003_v14, 1.0 }
0x112b   :  { %vm8204_vm9 = vcmp.gt.f32.partialorder %v8006_v43, 0.0  ;;  %18583 = vrcp.f32 %v8211_v33 }
0x112c   :  { %v8212_v3 = vsel %vm8204_vm9, %v8006_v43, 1.0 }
0x112d   :  { %18585 = vrcp.f32 %v8212_v3 }
0x1131   :  { %v8012_v49 = vpop.xlane.xlu1 %8011 }
0x1132   :  { %v8009_v23 = vpop.xlane.xlu0 %8008  ;;  %vm8206_vm10 = vcmp.gt.f32.partialorder %v8012_v49, 0.0 }
0x1133   :  { %vm8205_vm14 = vcmp.gt.f32.partialorder %v8009_v23, 0.0  ;;  %v8214_v52 = vsel %vm8206_vm10, %v8012_v49, 1.0  ;;  %v18582_v26 = vpop.eup %18581 }
0x1134   :  { %v8213_v10 = vsel %vm8205_vm14, %v8009_v23, 1.0  ;;  %18587 = vrcp.f32 %v8214_v52 }
0x1135   :  { %v8018_v11 = vpop.xlane.xlu1 %8017  ;;  %18589 = vrcp.f32 %v8213_v10  ;;  %v18584_v25 = vpop.eup %18583 }
0x1136   :  { %v8015_v27 = vpop.xlane.xlu0 %8014  ;;  %vm8208_vm15 = vcmp.gt.f32.partialorder %v8018_v11, 0.0 }
0x1137   :  { %vm8207_vm3 = vcmp.gt.f32.partialorder %v8015_v27, 0.0  ;;  %v8216_v56 = vsel %vm8208_vm15, %v8018_v11, 1.0 }
0x1138   :  { %v8215_v47 = vsel %vm8207_vm3, %v8015_v27, 1.0  ;;  %18591 = vrcp.f32 %v8216_v56  ;;  %v18586_v27 = vpop.eup %18585 }
0x1139   :  { %v6651_v21 = vpop.permute.xlu1 %6650  ;;  %18593 = vrcp.f32 %v8215_v47 }
0x113a   :  { %v20305_v5 = vpop.xlane.xlu0 %8020  ;;  %v7110_v40 = vcombine.low %v6639_v28, %v6651_v21  ;;  %v7111_v42 = vcombine.high %v6639_v28, %v6651_v21 }
0x113b   :  { %vm8209_vm4 = vcmp.gt.f32.partialorder %v20305_v5, 0.0 }
0x113c   :  { %v7118_v4 = vrot.slane %v7110_v40, %v18888_v24  ;;  %v7125_v48 = vrot.slane %v7111_v42, %v18888_v24  ;;  %v8217_v11 = vsel %vm8209_vm4, %v20305_v5, 1.0 }
0x113d   :  { %18595 = vrcp.f32 %v8217_v11 }
0x113e   :  { %v6649_v38 = vpop.permute.xlu0 %6648  ;;  %v7158_v63 = vcombine.low %v7102_v61, %v7118_v4  ;;  %v7159_v0 = vcombine.high %v7102_v61, %v7118_v4  ;;  %v7174_v39 = vcombine.low %v7109_v59, %v7125_v48  ;;  %v7175_v60 = vcombine.high %v7109_v59, %v7125_v48  ;;  %v18588_v33 = vpop.eup %18587 }
0x113f   :  { %v6838_v30 = vcombine.low %v6637_v2, %v6649_v38  ;;  %v6839_v35 = vcombine.high %v6637_v2, %v6649_v38 }
0x1140   :  { %v7166_v15 = vrot.slane %v7158_v63, %v18890_v31  ;;  %v7173_v54 = vrot.slane %v7159_v0, %v18890_v31  ;;  %v7182_v16 = vrot.slane %v7174_v39, %v18890_v31  ;;  %v7189_v22 = vrot.slane %v7175_v60, %v18890_v31 }
0x1141   :  { %v6846_v44 = vrot.slane %v6838_v30, %v18888_v24  ;;  %v6853_v45 = vrot.slane %v6839_v35, %v18888_v24 }
0x1142   :  { %v17472_v2 = vcombine.low %v7166_v15, %v7173_v54  ;;  %v17474_v43 = vcombine.high %v7166_v15, %v7173_v54  ;;  %v17476_v28 = vcombine.low %v7182_v16, %v7189_v22  ;;  %v17478_v23 = vcombine.high %v7182_v16, %v7189_v22 }
0x1143   :  { %v6886_v36 = vcombine.low %v6830_v32, %v6846_v44  ;;  %v6887_v6 = vcombine.high %v6830_v32, %v6846_v44  ;;  %v6902_v29 = vcombine.low %v6837_v17, %v6853_v45  ;;  %v6903_v53 = vcombine.high %v6837_v17, %v6853_v45 }
0x1144   :  { %v7621_v30 = vrot.slane %v17472_v2, %v18888_v24  ;;  %v7637_v35 = vrot.slane %v17474_v43, %v18888_v24  ;;  %v7653_v50 = vrot.slane %v17476_v28, %v18888_v24  ;;  %v7669_v20 = vrot.slane %v17478_v23, %v18888_v24 }
0x1145   :  { %v6894_v62 = vrot.slane %v6886_v36, %v18890_v31  ;;  %v6901_v55 = vrot.slane %v6887_v6, %v18890_v31  ;;  %v6910_v12 = vrot.slane %v6902_v29, %v18890_v31  ;;  %v6917_v13 = vrot.slane %v6903_v53, %v18890_v31  ;;  %v18590_v29 = vpop.eup %18589 }
0x1146   :  { %v7686_v4 = vcombine.low %v7621_v30, %v7637_v35  ;;  %v7718_v48 = vcombine.low %v7653_v50, %v7669_v20  ;;  %v7687_v59 = vcombine.high %v7621_v30, %v7637_v35  ;;  %v7719_v3 = vcombine.high %v7653_v50, %v7669_v20 }
0x1147   :  { %v17464_v51 = vcombine.low %v6894_v62, %v6901_v55  ;;  %v17466_v41 = vcombine.high %v6894_v62, %v6901_v55  ;;  %v17468_v37 = vcombine.low %v6910_v12, %v6917_v13  ;;  %v17470_v8 = vcombine.high %v6910_v12, %v6917_v13  ;;  %v18592_v62 = vpop.eup %18591 }
0x1148   :  { %v7694_v55 = vrot.slane %v7686_v4, %v18890_v31  ;;  %v7726_v12 = vrot.slane %v7718_v48, %v18890_v31  ;;  %v18594_v13 = vpop.eup %18593  ;;  %v7701_v16 = vrot.slane %v7687_v59, %v18890_v31  ;;  %v7733_v22 = vrot.slane %v7719_v3, %v18890_v31 }
0x1149   :  { %v7485_v14 = vrot.slane %v17464_v51, %v18888_v24  ;;  %v7501_v49 = vrot.slane %v17466_v41, %v18888_v24  ;;  %v7517_v38 = vrot.slane %v17468_v37, %v18888_v24  ;;  %v7533_v21 = vrot.slane %v17470_v8, %v18888_v24 }
0x114a   :  { %v7738_v50 = vcombine.low %v7694_v55, %v7726_v12  ;;  %v7739_v20 = vcombine.high %v7694_v55, %v7726_v12 }
0x114b   :  { %v7550_v40 = vcombine.low %v7485_v14, %v7501_v49  ;;  %v7582_v42 = vcombine.low %v7517_v38, %v7533_v21  ;;  %v7551_v32 = vcombine.high %v7485_v14, %v7501_v49  ;;  %v7583_v17 = vcombine.high %v7517_v38, %v7533_v21 }
0x114d   :  { %v7558_v53 = vrot.slane %v7550_v40, %v18890_v31  ;;  %v7590_v61 = vrot.slane %v7582_v42, %v18890_v31  ;;  %v7565_v63 = vrot.slane %v7551_v32, %v18890_v31  ;;  %v7597_v0 = vrot.slane %v7583_v17, %v18890_v31 }
0x114e   :  { %v7740_v40 = vcombine.low %v7701_v16, %v7733_v22  ;;  %v7741_v42 = vcombine.high %v7701_v16, %v7733_v22 }
0x114f   :  { %v7602_v52 = vcombine.low %v7558_v53, %v7590_v61  ;;  %v7603_v10 = vcombine.high %v7558_v53, %v7590_v61  ;;  %v7604_v51 = vcombine.low %v7565_v63, %v7597_v0  ;;  %v7605_v37 = vcombine.high %v7565_v63, %v7597_v0 }
0x1186   :  { %v8063_v44 = vpop.f32.mrb[64].mxu1  ;;  %v8107_v45 = vpop.f32.mrb[72].mxu0 }
0x1187   :  { %v18130_v34 = vpop.f32.mrb[65].mxu1  ;;  %v18136_v46 = vpop.f32.mrb[73].mxu0  ;;  %v8226_v39 = vmul.f32 %v18582_v26, %v8063_v44  ;;  %v8228_v60 = vmul.f32 %v18586_v27, %v8107_v45 }
0x1188   :  { %v8066_v5 = vpop.f32.mrb[66].mxu1  ;;  %v8110_v57 = vpop.f32.mrb[74].mxu0 }
0x1189   :  { %v18131_v36 = vpop.f32.mrb[67].mxu1  ;;  %v18137_v6 = vpop.f32.mrb[75].mxu0  ;;  %v8234_v2 = vadd.f32 %v8226_v39, %v7602_v52  ;;  %v8236_v43 = vadd.f32 %v8228_v60, %v7603_v10  ;;  %v8227_v28 = vmul.f32 %v18584_v25, %v8066_v5  ;;  %v8229_v23 = vmul.f32 %v18590_v29, %v8110_v57 }
0x118a   :  { %v18596_v26 = vpop.eup %18595 }
0x118b   :  { %v8235_v32 = vadd.f32 %v8227_v28, %v7738_v50  ;;  %v8237_v17 = vadd.f32 %v8229_v23, %v7739_v20 }
0x118e   :  { %v8151_v15 = vpop.f32.mrb[68].mxu1  ;;  %v8195_v54 = vpop.f32.mrb[76].mxu0 }
0x118f   :  { %v8230_v41 = vmul.f32 %v18588_v33, %v8151_v15  ;;  %v8232_v8 = vmul.f32 %v18592_v62, %v8195_v54  ;;  %v18142_v56 = vpop.f32.mrb[69].mxu1  ;;  %v18148_v47 = vpop.f32.mrb[77].mxu0 }
0x1190   :  { %v8154_v14 = vpop.f32.mrb[70].mxu1  ;;  %v8198_v49 = vpop.f32.mrb[78].mxu0 }
0x1191   :  { %v8238_v38 = vadd.f32 %v8230_v41, %v7604_v51  ;;  %v8240_v21 = vadd.f32 %v8232_v8, %v7605_v37  ;;  %v8231_v11 = vmul.f32 %v18594_v13, %v8154_v14  ;;  %v8233_v27 = vmul.f32 %v18596_v26, %v8198_v49  ;;  %v18143_v30 = vpop.f32.mrb[71].mxu1  ;;  %v18149_v35 = vpop.f32.mrb[79].mxu0 }
0x1193   :  { %v8242_v44 = vcombine.low %v8234_v2, %v8238_v38  ;;  %v8243_v45 = vcombine.high %v8234_v2, %v8238_v38  ;;  %v8258_v34 = vcombine.low %v8236_v43, %v8240_v21  ;;  %v8259_v46 = vcombine.high %v8236_v43, %v8240_v21 }
0x1194   :  { %v8239_v25 = vadd.f32 %v8231_v11, %v7740_v40  ;;  %v8241_v5 = vadd.f32 %v8233_v27, %v7741_v42 }
0x1195   :  { %v8250_v57 = vrot.slane %v8242_v44, %v18888_v24  ;;  %v8257_v33 = vrot.slane %v8243_v45, %v18888_v24  ;;  %v8266_v4 = vrot.slane %v8258_v34, %v18888_v24  ;;  %v8273_v48 = vrot.slane %v8259_v46, %v18888_v24 }
0x1196   :  { %v8310_v36 = vcombine.low %v8235_v32, %v8239_v25  ;;  %v8311_v6 = vcombine.high %v8235_v32, %v8239_v25  ;;  %v8326_v29 = vcombine.low %v8237_v17, %v8241_v5  ;;  %v8327_v53 = vcombine.high %v8237_v17, %v8241_v5 }
0x1197   :  { %v8274_v61 = vcombine.low %v8250_v57, %v8266_v4  ;;  %v8275_v59 = vcombine.high %v8250_v57, %v8266_v4  ;;  %v8290_v3 = vcombine.low %v8257_v33, %v8273_v48  ;;  %v8291_v63 = vcombine.high %v8257_v33, %v8273_v48 }
0x1198   :  { %v8318_v0 = vrot.slane %v8310_v36, %v18888_v24  ;;  %v8325_v39 = vrot.slane %v8311_v6, %v18888_v24  ;;  %v8334_v60 = vrot.slane %v8326_v29, %v18888_v24  ;;  %v8341_v62 = vrot.slane %v8327_v53, %v18888_v24 }
0x1199   :  { %v8282_v55 = vrot.slane %v8274_v61, %v18890_v31  ;;  %v8289_v12 = vrot.slane %v8275_v59, %v18890_v31  ;;  %v8298_v13 = vrot.slane %v8290_v3, %v18890_v31  ;;  %v8305_v52 = vrot.slane %v8291_v63, %v18890_v31 }
0x119a   :  { %v8342_v10 = vcombine.low %v8318_v0, %v8334_v60  ;;  %v8343_v15 = vcombine.high %v8318_v0, %v8334_v60  ;;  %v8358_v54 = vcombine.low %v8325_v39, %v8341_v62  ;;  %v8359_v16 = vcombine.high %v8325_v39, %v8341_v62  ;;  %v18461_v0 = vld [vmem:[%s21978_s4 + $0x30] sm:$0xff]   ;;  %v18462_v39 = vld [vmem:[%s21978_s4 + $0x38] sm:$0xff]  }
0x119b   :  { %v8378_v22 = vcombine.low %v8282_v55, %v8289_v12  ;;  %v17487_v51 = vcombine.high %v8282_v55, %v8289_v12  ;;  %v8394_v41 = vcombine.low %v8298_v13, %v8305_v52  ;;  %v17488_v37 = vcombine.high %v8298_v13, %v8305_v52  ;;  %18158 = vmatpush3.bf16.msra.mxu0 %v18461_v0  ;;  %v17492_v52 = vld [vmem:[%s21980_s6 + $0x3] ss:$0 sm:$0xff] }
0x119c   :  { %v8350_v8 = vrot.slane %v8342_v10, %v18890_v31  ;;  %v8357_v56 = vrot.slane %v8343_v15, %v18890_v31  ;;  %v8366_v47 = vrot.slane %v8358_v54, %v18890_v31  ;;  %v8373_v26 = vrot.slane %v8359_v16, %v18890_v31  ;;  %18159 = vmatprep.subr.bf16.mxu0 %v18756_v1 }
0x119d   :  { %v8385_v2 = vrot.slane %v8378_v22, %v18888_v24  ;;  %v8393_v43 = vrot.slane %v17487_v51, %v18888_v24  ;;  %v8401_v28 = vrot.slane %v8394_v41, %v18888_v24  ;;  %v8409_v23 = vrot.slane %v17488_v37, %v18888_v24  ;;  %v17494_v22 = vld [vmem:[%s21981_s7 + $0x3] ss:$0 sm:$0xff] }
0x119e   :  { %v8446_v14 = vcombine.low %v8350_v8, %v8357_v56  ;;  %v17489_v49 = vcombine.high %v8350_v8, %v8357_v56  ;;  %v8462_v38 = vcombine.low %v8366_v47, %v8373_v26  ;;  %v17490_v21 = vcombine.high %v8366_v47, %v8373_v26 }
0x119f   :  { %v8410_v11 = vcombine.low %v8385_v2, %v8393_v43  ;;  %v8426_v27 = vcombine.low %v8401_v28, %v8409_v23  ;;  %v8411_v30 = vcombine.high %v8385_v2, %v8393_v43  ;;  %v8427_v35 = vcombine.high %v8401_v28, %v8409_v23  ;;  %18160 = vmatpush3.bf16.msra.mxu0 %v18462_v39  ;;  %v18727_v23 = vld [vmem:[%s21976_s2] sm:$0x3] }
0x11a0   :  { %v8453_v50 = vrot.slane %v8446_v14, %v18888_v24  ;;  %v8461_v20 = vrot.slane %v17489_v49, %v18888_v24  ;;  %v8469_v40 = vrot.slane %v8462_v38, %v18888_v24  ;;  %v8477_v42 = vrot.slane %v17490_v21, %v18888_v24  ;;  %18171 = vmatprep.subr.bf16.mxu0 %v18756_v1  ;;  %v17501_v14 = vld [vmem:[%s21979_s5 + $0x4] ss:$0 sm:$0xff] }
0x11a1   :  { %v8418_v44 = vrot.slane %v8410_v11, %v18890_v31  ;;  %v8434_v45 = vrot.slane %v8426_v27, %v18890_v31  ;;  %v8425_v34 = vrot.slane %v8411_v30, %v18890_v31  ;;  %v8441_v46 = vrot.slane %v8427_v35, %v18890_v31 }
0x11a2   :  { %v8478_v32 = vcombine.low %v8453_v50, %v8461_v20  ;;  %v8494_v17 = vcombine.low %v8469_v40, %v8477_v42  ;;  %v8479_v25 = vcombine.high %v8453_v50, %v8461_v20  ;;  %v8495_v5 = vcombine.high %v8469_v40, %v8477_v42 }
0x11a3   :  { %v8443_v57 = vcombine.high %v8418_v44, %v8434_v45  ;;  %v8444_v33 = vcombine.low %v8425_v34, %v8441_v46  ;;  %v8445_v4 = vcombine.high %v8425_v34, %v8441_v46  ;;  %v8442_v48 = vcombine.low %v8418_v44, %v8434_v45 }
0x11a4   :  { %v8486_v36 = vrot.slane %v8478_v32, %v18890_v31  ;;  %v8502_v6 = vrot.slane %v8494_v17, %v18890_v31  ;;  %v8493_v29 = vrot.slane %v8479_v25, %v18890_v31  ;;  %v8509_v53 = vrot.slane %v8495_v5, %v18890_v31 }
0x11a5   :  { %8516 = vrot.lane.b32.xlu0 %v8443_v57, %s18774_s26 }
0x11a6   :  { %v8511_v61 = vcombine.high %v8486_v36, %v8502_v6  ;;  %v8512_v59 = vcombine.low %v8493_v29, %v8509_v53  ;;  %v8513_v3 = vcombine.high %v8493_v29, %v8509_v53  ;;  %v8510_v63 = vcombine.low %v8486_v36, %v8502_v6 }
0x11a8   :  { %8518 = vrot.lane.b32.xlu1 %v8511_v61, %s18774_s26 }
0x11a9   :  { %8524 = vrot.lane.b32.xlu0 %v8444_v33, %s18773_s25 }
0x11ac   :  { %8526 = vrot.lane.b32.xlu1 %v8512_v59, %s18773_s25 }
0x11ad   :  { %8532 = vrot.lane.b32.xlu0 %v8445_v4, %s18772_s24 }
0x11b0   :  { %8534 = vrot.lane.b32.xlu1 %v8513_v3, %s18772_s24 }
0x1217   :  { %v8517_v60 = vpop.permute.xlu0 %8516 }
0x1218   :  { %v8538_v12 = vsel %vm1291_vm2, %v8442_v48, %v8517_v60 }
0x121a   :  { %v8519_v62 = vpop.permute.xlu1 %8518 }
0x121b   :  { %v8525_v55 = vpop.permute.xlu0 %8524  ;;  %v8539_v16 = vsel %vm1291_vm2, %v8510_v63, %v8519_v62 }
0x121c   :  { %v8540_v10 = vsel %vm52_vm0, %v8538_v12, %v8525_v55 }
0x121e   :  { %v8527_v13 = vpop.permute.xlu1 %8526 }
0x121f   :  { %v8533_v15 = vpop.permute.xlu0 %8532  ;;  %v8541_v41 = vsel %vm52_vm0, %v8539_v16, %v8527_v13 }
0x1220   :  { %v8542_v54 = vsel %vm2080_vm11, %v8540_v10, %v8533_v15 }
0x1221   :  { %v8552_v51 = vmul.f32 %v17492_v52, %v8542_v54 }
0x1222   :  { %v8535_v37 = vpop.permute.xlu1 %8534 }
0x1223   :  { %v8543_v8 = vsel %vm2080_vm11, %v8541_v41, %v8535_v37  ;;  %v8562_v56 = vadd.f32 %v17494_v22, %v8552_v51 }
0x1224   :  { %v8553_v47 = vmul.f32 %v17492_v52, %v8543_v8 }
0x1225   :  { %v8564_v2 = vmax.f32 %v8562_v56, 0.0 }
0x1226   :  { %v8563_v26 = vadd.f32 %v17494_v22, %v8553_v47 }
0x1228   :  { %v8565_v43 = vmax.f32 %v8563_v26, 0.0 }
0x122a   :  { %v18419_v28 = vpack.c.bf16 %v8565_v43, %v8564_v2 }
0x122c   :  { %18420 = vmatpush3.bf16.msra.mxu1 %v18419_v28  ;;  %18162 = vmatmul.mubr.msk.bf16.vlgmr.msra.gmra.mrb[80].mxu0 %vm2203_vm12, %v18419_v28 }
0x122d   :  { %18165 = vmatprep.subr.bf16.mxu1 %v18756_v1  ;;  %18173 = vmatprep.mubr.msk.bf16.mxu0 %vm18757_vm1, %v18756_v1 }
0x122f   :  { %18155 = vmatmul.mubr.msk.f32.vlgmr.msra.gmra.mrb[54].mxu1 %vm52_vm0, %v18727_v23 }
0x1230   :  { %18167 = vmatprep.mubr.msk.bf16.mxu1 %vm18757_vm1, %v18756_v1 }
0x12ff   :  { %v8712_v49 = vpop.f32.mrb[80].mxu0 }
0x1300   :  { %v20412_v38 = vadd.f32 %v17501_v14, %v8712_v49  ;;  %v18163_v21 = vpop.f32.mrb[81].mxu0 }
0x1301   :  { %v8715_v11 = vpop.f32.mrb[82].mxu0 }
0x1302   :  { %v20414_v27 = vadd.f32 %v17501_v14, %v8715_v11  ;;  %8739 = vrot.lane.b32.xlu0 %v20412_v38, %s18759_s12  ;;  %v18164_v30 = vpop.f32.mrb[83].mxu0  ;;  %v20456_v35 = vpop.f32.mrb[54].mxu1 }
0x1303   :  { %v18156_v50 = vpop.f32.mrb[55].mxu1 }
0x1304   :  { %8741 = vrot.lane.b32.xlu1 %v20414_v27, %s18759_s12 }
0x1306   :  { %8745 = vrot.lane.b32.xlu0 %v20412_v38, %s18758_s11 }
0x1308   :  { %8747 = vrot.lane.b32.xlu1 %v20414_v27, %s18758_s11 }
0x130a   :  { %8751 = vrot.lane.b32.xlu0 %v20412_v38, %s18760_s13 }
0x130c   :  { %8753 = vrot.lane.b32.xlu1 %v20414_v27, %s18760_s13 }
0x130e   :  { %8757 = vrot.lane.b32.xlu0 %v20412_v38, %s18761_s14 }
0x1310   :  { %8759 = vrot.lane.b32.xlu1 %v20414_v27, %s18761_s14 }
0x1312   :  { %8721 = vrot.lane.b32.xlu0 %v20412_v38, %s18762_s15 }
0x1314   :  { %8723 = vrot.lane.b32.xlu1 %v20414_v27, %s18762_s15 }
0x1316   :  { %8727 = vrot.lane.b32.xlu0 %v20412_v38, %s18763_s16 }
0x1318   :  { %8729 = vrot.lane.b32.xlu1 %v20414_v27, %s18763_s16 }
0x131a   :  { %8733 = vrot.lane.b32.xlu0 %v20412_v38, %s18764_s17 }
0x131c   :  { %8735 = vrot.lane.b32.xlu1 %v20414_v27, %s18764_s17 }
0x131e   :  { %8775 = vrot.lane.b32.xlu0 %v20412_v38, %s18766_s19 }
0x1320   :  { %8763 = vrot.lane.b32.xlu1 %v20412_v38, %s18765_s18 }
0x1322   :  { %8765 = vrot.lane.b32.xlu0 %v20414_v27, %s18765_s18 }
0x1324   :  { %8769 = vrot.lane.b32.xlu1 %v20412_v38, %s18767_s20 }
0x1328   :  { %8771 = vrot.lane.b32.xlu1 %v20414_v27, %s18767_s20 }
0x132c   :  { %8777 = vrot.lane.b32.xlu1 %v20414_v27, %s18766_s19 }
0x1374   :  { %v8740_v20 = vpop.permute.xlu0 %8739 }
0x1376   :  { %v8742_v40 = vpop.permute.xlu1 %8741 }
0x1378   :  { %v8746_v42 = vpop.permute.xlu0 %8745 }
0x137a   :  { %v8748_v44 = vpop.permute.xlu1 %8747 }
0x137c   :  { %v8752_v45 = vpop.permute.xlu0 %8751 }
0x137d   :  { %v8843_v34 = vcombine.low %v8740_v20, %v8752_v45  ;;  %v8844_v46 = vcombine.high %v8740_v20, %v8752_v45 }
0x137e   :  { %v8754_v32 = vpop.permute.xlu1 %8753 }
0x137f   :  { %v8851_v57 = vrot.slane %v8843_v34, %v18888_v24  ;;  %v8858_v33 = vrot.slane %v8844_v46, %v18888_v24  ;;  %v9115_v4 = vcombine.low %v8742_v40, %v8754_v32  ;;  %v9116_v48 = vcombine.high %v8742_v40, %v8754_v32 }
0x1380   :  { %v8758_v17 = vpop.permute.xlu0 %8757 }
0x1381   :  { %v8859_v25 = vcombine.low %v8746_v42, %v8758_v17  ;;  %v8860_v5 = vcombine.high %v8746_v42, %v8758_v17  ;;  %v9123_v60 = vrot.slane %v9115_v4, %v18888_v24  ;;  %v9130_v13 = vrot.slane %v9116_v48, %v18888_v24 }
0x1382   :  { %v8760_v36 = vpop.permute.xlu1 %8759 }
0x1383   :  { %v8867_v6 = vrot.slane %v8859_v25, %v18888_v24  ;;  %v8874_v29 = vrot.slane %v8860_v5, %v18888_v24  ;;  %v9131_v53 = vcombine.low %v8748_v44, %v8760_v36  ;;  %v9132_v61 = vcombine.high %v8748_v44, %v8760_v36 }
0x1384   :  { %v8722_v59 = vpop.permute.xlu0 %8721 }
0x1385   :  { %v8907_v3 = vcombine.low %v8851_v57, %v8867_v6  ;;  %v8908_v63 = vcombine.high %v8851_v57, %v8867_v6  ;;  %v8923_v0 = vcombine.low %v8858_v33, %v8874_v29  ;;  %v8924_v39 = vcombine.high %v8858_v33, %v8874_v29 }
0x1386   :  { %v9139_v62 = vrot.slane %v9131_v53, %v18888_v24  ;;  %v9146_v55 = vrot.slane %v9132_v61, %v18888_v24  ;;  %v8724_v12 = vpop.permute.xlu1 %8723 }
0x1387   :  { %v8915_v52 = vrot.slane %v8907_v3, %v18890_v31  ;;  %v8922_v10 = vrot.slane %v8908_v63, %v18890_v31  ;;  %v8931_v22 = vrot.slane %v8923_v0, %v18890_v31  ;;  %v8938_v51 = vrot.slane %v8924_v39, %v18890_v31 }
0x1388   :  { %v9179_v15 = vcombine.low %v9123_v60, %v9139_v62  ;;  %v9180_v54 = vcombine.high %v9123_v60, %v9139_v62  ;;  %v8728_v16 = vpop.permute.xlu0 %8727  ;;  %v9195_v41 = vcombine.low %v9130_v13, %v9146_v55  ;;  %v9196_v37 = vcombine.high %v9130_v13, %v9146_v55 }
0x1389   :  { %v17506_v26 = vcombine.low %v8915_v52, %v8922_v10  ;;  %v17508_v2 = vcombine.high %v8915_v52, %v8922_v10  ;;  %v8811_v43 = vcombine.low %v20412_v38, %v8728_v16  ;;  %v8812_v28 = vcombine.high %v20412_v38, %v8728_v16 }
0x138a   :  { %v8730_v8 = vpop.permute.xlu1 %8729  ;;  %v9187_v56 = vrot.slane %v9179_v15, %v18890_v31  ;;  %v9194_v47 = vrot.slane %v9180_v54, %v18890_v31  ;;  %v17510_v14 = vcombine.low %v8931_v22, %v8938_v51  ;;  %v17512_v49 = vcombine.high %v8931_v22, %v8938_v51 }
0x138b   :  { %v9083_v21 = vcombine.low %v20414_v27, %v8730_v8  ;;  %v9084_v11 = vcombine.high %v20414_v27, %v8730_v8  ;;  %v9203_v30 = vrot.slane %v9195_v41, %v18890_v31  ;;  %v9210_v50 = vrot.slane %v9196_v37, %v18890_v31 }
0x138c   :  { %v8734_v23 = vpop.permute.xlu0 %8733  ;;  %v17514_v44 = vcombine.low %v9187_v56, %v9194_v47  ;;  %v17516_v45 = vcombine.high %v9187_v56, %v9194_v47  ;;  %v8819_v32 = vrot.slane %v8811_v43, %v18888_v24  ;;  %v8826_v17 = vrot.slane %v8812_v28, %v18888_v24 }
0x138d   :  { %v8827_v20 = vcombine.low %v8722_v59, %v8734_v23  ;;  %v8828_v40 = vcombine.high %v8722_v59, %v8734_v23  ;;  %v9091_v57 = vrot.slane %v9083_v21, %v18888_v24  ;;  %v9098_v33 = vrot.slane %v9084_v11, %v18888_v24 }
0x138e   :  { %v8736_v42 = vpop.permute.xlu1 %8735  ;;  %v9370_v10 = vrot.slane %v17506_v26, %v18888_v24  ;;  %v9386_v15 = vrot.slane %v17508_v2, %v18888_v24  ;;  %v9402_v54 = vrot.slane %v17510_v14, %v18888_v24  ;;  %v9418_v16 = vrot.slane %v17512_v49, %v18888_v24 }
0x138f   :  { %v9099_v34 = vcombine.low %v8724_v12, %v8736_v42  ;;  %v9100_v46 = vcombine.high %v8724_v12, %v8736_v42  ;;  %v8835_v25 = vrot.slane %v8827_v20, %v18888_v24  ;;  %v8842_v5 = vrot.slane %v8828_v40, %v18888_v24 }
0x1390   :  { %v17518_v28 = vcombine.low %v9203_v30, %v9210_v50  ;;  %v17520_v23 = vcombine.high %v9203_v30, %v9210_v50  ;;  %v9506_v21 = vrot.slane %v17514_v44, %v18888_v24  ;;  %v9522_v26 = vrot.slane %v17516_v45, %v18888_v24 }
0x1391   :  { %v9107_v4 = vrot.slane %v9099_v34, %v18888_v24  ;;  %v9114_v48 = vrot.slane %v9100_v46, %v18888_v24  ;;  %v8875_v36 = vcombine.low %v8819_v32, %v8835_v25  ;;  %v8876_v6 = vcombine.high %v8819_v32, %v8835_v25 }
0x1392   :  { %v8891_v29 = vcombine.low %v8826_v17, %v8842_v5  ;;  %v8892_v53 = vcombine.high %v8826_v17, %v8842_v5  ;;  %v9435_v11 = vcombine.low %v9370_v10, %v9386_v15  ;;  %v9467_v2 = vcombine.low %v9402_v54, %v9418_v16 }
0x1393   :  { %v9147_v61 = vcombine.low %v9091_v57, %v9107_v4  ;;  %v9148_v59 = vcombine.high %v9091_v57, %v9107_v4  ;;  %v9163_v3 = vcombine.low %v9098_v33, %v9114_v48  ;;  %v9164_v63 = vcombine.high %v9098_v33, %v9114_v48 }
0x1394   :  { %v8883_v0 = vrot.slane %v8875_v36, %v18890_v31  ;;  %v8890_v39 = vrot.slane %v8876_v6, %v18890_v31  ;;  %v8899_v60 = vrot.slane %v8891_v29, %v18890_v31  ;;  %v8906_v62 = vrot.slane %v8892_v53, %v18890_v31 }
0x1395   :  { %v9155_v55 = vrot.slane %v9147_v61, %v18890_v31  ;;  %v9162_v12 = vrot.slane %v9148_v59, %v18890_v31  ;;  %v9171_v13 = vrot.slane %v9163_v3, %v18890_v31  ;;  %v9178_v52 = vrot.slane %v9164_v63, %v18890_v31 }
0x1396   :  { %v17505_v8 = vcombine.low %v8883_v0, %v8890_v39  ;;  %v17507_v56 = vcombine.high %v8883_v0, %v8890_v39  ;;  %v17509_v47 = vcombine.low %v8899_v60, %v8906_v62  ;;  %v17511_v43 = vcombine.high %v8899_v60, %v8906_v62 }
0x1397   :  { %v17513_v22 = vcombine.low %v9155_v55, %v9162_v12  ;;  %v17515_v51 = vcombine.high %v9155_v55, %v9162_v12  ;;  %v17517_v41 = vcombine.low %v9171_v13, %v9178_v52  ;;  %v17519_v37 = vcombine.high %v9171_v13, %v9178_v52 }
0x1398   :  { %v20505_v42 = vrot.slane %v17505_v8, %v18888_v24  ;;  %v9379_v34 = vrot.slane %v17507_v56, %v18888_v24  ;;  %v9395_v30 = vrot.slane %v17509_v47, %v18888_v24  ;;  %v9411_v50 = vrot.slane %v17511_v43, %v18888_v24 }
0x1399   :  { %v9499_v14 = vrot.slane %v17513_v22, %v18888_v24  ;;  %v9515_v49 = vrot.slane %v17515_v51, %v18888_v24  ;;  %v9531_v20 = vrot.slane %v17517_v41, %v18888_v24  ;;  %v9547_v40 = vrot.slane %v17519_v37, %v18888_v24 }
0x139a   :  { %v9538_v44 = vrot.slane %v17518_v28, %v18888_v24  ;;  %v9554_v45 = vrot.slane %v17520_v23, %v18888_v24  ;;  %v9571_v46 = vcombine.low %v9506_v21, %v9522_v26  ;;  %v9443_v32 = vrot.slane %v9435_v11, %v18890_v31 }
0x139b   :  { %v9475_v17 = vrot.slane %v9467_v2, %v18890_v31  ;;  %v9555_v25 = vcombine.low %v9499_v14, %v9515_v49  ;;  %v9587_v5 = vcombine.low %v9531_v20, %v9547_v40  ;;  %v9419_v4 = vcombine.low %v20505_v42, %v9379_v34 }
0x139c   :  { %v9579_v57 = vrot.slane %v9571_v46, %v18890_v31  ;;  %v9603_v33 = vcombine.low %v9538_v44, %v9554_v45  ;;  %v9451_v48 = vcombine.low %v9395_v30, %v9411_v50  ;;  %v9436_v6 = vcombine.high %v9370_v10, %v9386_v15 }
0x139d   :  { %v9468_v29 = vcombine.high %v9402_v54, %v9418_v16  ;;  %v9487_v53 = vcombine.low %v9443_v32, %v9475_v17  ;;  %v9488_v61 = vcombine.high %v9443_v32, %v9475_v17  ;;  %v9563_v63 = vrot.slane %v9555_v25, %v18890_v31 }
0x139e   :  { %v9611_v36 = vrot.slane %v9603_v33, %v18890_v31  ;;  %v9595_v0 = vrot.slane %v9587_v5, %v18890_v31  ;;  %v9427_v39 = vrot.slane %v9419_v4, %v18890_v31  ;;  %v9459_v60 = vrot.slane %v9451_v48, %v18890_v31 }
0x139f   :  { %v9572_v62 = vcombine.high %v9506_v21, %v9522_v26  ;;  %v9604_v55 = vcombine.high %v9538_v44, %v9554_v45  ;;  %v9450_v52 = vrot.slane %v9436_v6, %v18890_v31  ;;  %v9482_v10 = vrot.slane %v9468_v29, %v18890_v31 }
0x13a0   :  { %v9623_v59 = vcombine.low %v9579_v57, %v9611_v36  ;;  %v9624_v3 = vcombine.high %v9579_v57, %v9611_v36  ;;  %v9556_v15 = vcombine.high %v9499_v14, %v9515_v49  ;;  %v9588_v54 = vcombine.high %v9531_v20, %v9547_v40 }
0x13a1   :  { %v9586_v16 = vrot.slane %v9572_v62, %v18890_v31  ;;  %v9618_v22 = vrot.slane %v9604_v55, %v18890_v31  ;;  %v9619_v37 = vcombine.low %v9563_v63, %v9595_v0  ;;  %v9620_v8 = vcombine.high %v9563_v63, %v9595_v0 }
0x13a2   :  { %v9903_v12 = vpack.c.bf16 %v9623_v59, %v9487_v53  ;;  %v9904_v13 = vpack.c.bf16 %v9624_v3, %v9488_v61  ;;  %v9483_v56 = vcombine.low %v9427_v39, %v9459_v60  ;;  %v9484_v28 = vcombine.high %v9427_v39, %v9459_v60 }
0x13a3   :  { %v9625_v47 = vcombine.low %v9586_v16, %v9618_v22  ;;  %v9626_v43 = vcombine.high %v9586_v16, %v9618_v22  ;;  %v9489_v23 = vcombine.low %v9450_v52, %v9482_v10  ;;  %v9490_v21 = vcombine.high %v9450_v52, %v9482_v10 }
0x13a4   :  { %v9915_v51 = vsel %vm1291_vm2, %v9903_v12, 0  ;;  %v9962_v41 = vsel %vm1291_vm2, %v9904_v13, 0  ;;  %v9420_v26 = vcombine.high %v20505_v42, %v9379_v34  ;;  %v9452_v11 = vcombine.high %v9395_v30, %v9411_v50 }
0x13a5   :  { %18166 = vmatpush3.bf16.xpose.msra.mxu1 %v9915_v51  ;;  %18172 = vmatpush3.bf16.xpose.msra.mxu0 %v9962_v41  ;;  %v9899_v2 = vpack.c.bf16 %v9619_v37, %v9483_v56  ;;  %v9900_v14 = vpack.c.bf16 %v9620_v8, %v9484_v28  ;;  %v9905_v49 = vpack.c.bf16 %v9625_v47, %v9489_v23  ;;  %v20585_v28 = vpop.permute.xlu1 %8763 }
0x13a6   :  { %18177 = vmatprep.subr.bf16.mxu1 %v18756_v1  ;;  %18183 = vmatprep.subr.bf16.mxu0 %v18756_v1  ;;  %v9906_v20 = vpack.c.bf16 %v9626_v43, %v9490_v21  ;;  %v9570_v40 = vrot.slane %v9556_v15, %v18890_v31  ;;  %v9602_v44 = vrot.slane %v9588_v54, %v18890_v31  ;;  %v20589_v21 = vpop.permute.xlu0 %8775 }
0x13a7   :  { %v10009_v45 = vsel %vm1291_vm2, %v9905_v49, 0  ;;  %v9434_v32 = vrot.slane %v9420_v26, %v18890_v31  ;;  %v9466_v42 = vrot.slane %v9452_v11, %v18890_v31 }
0x13a8   :  { %v10056_v46 = vsel %vm1291_vm2, %v9906_v20, 0  ;;  %v9621_v34 = vcombine.low %v9570_v40, %v9602_v44  ;;  %v9622_v30 = vcombine.high %v9570_v40, %v9602_v44 }
0x13a9   :  { %v9485_v50 = vcombine.low %v9434_v32, %v9466_v42  ;;  %v9486_v17 = vcombine.high %v9434_v32, %v9466_v42  ;;  %v20587_v23 = vpop.permute.xlu1 %8769 }
0x13aa   :  { %v8766_v11 = vpop.permute.xlu0 %8765 }
0x13ab   :  { %v9901_v25 = vpack.c.bf16 %v9621_v34, %v9485_v50  ;;  %v9902_v5 = vpack.c.bf16 %v9622_v30, %v9486_v17 }
0x13ac   :  { %18168 = vmatmul.mubr.msk.bf16.vlgmr.msra.gmra.mrb[72].mxu1 %vm1291_vm2, %v9899_v2  ;;  %18174 = vmatmul.mubr.msk.bf16.vlgmr.msra.gmra.mrb[84].mxu0 %vm1291_vm2, %v9900_v14 }
0x13ad   :  { %18178 = vmatpush3.bf16.xpose.msra.mxu1 %v10009_v45  ;;  %18184 = vmatpush3.bf16.xpose.msra.mxu0 %v10056_v46  ;;  %v8772_v26 = vpop.permute.xlu1 %8771 }
0x13ae   :  { %18179 = vmatprep.mubr.msk.bf16.mxu1 %vm18757_vm1, %v18756_v1  ;;  %18185 = vmatprep.mubr.msk.bf16.mxu0 %vm18757_vm1, %v18756_v1 }
0x13af   :  { %18189 = vmatprep.subr.bf16.mxu1 %v18756_v1  ;;  %18195 = vmatprep.subr.bf16.mxu0 %v18756_v1 }
0x13b1   :  { %v8778_v2 = vpop.permute.xlu1 %8777 }
0x13b4   :  { %18180 = vmatmul.mubr.msk.bf16.vlgmr.msra.gmra.mrb[76].mxu1 %vm1291_vm2, %v9901_v25  ;;  %18186 = vmatmul.mubr.msk.bf16.vlgmr.msra.gmra.mrb[88].mxu0 %vm1291_vm2, %v9902_v5 }
0x13b5   :  { %18191 = vmatprep.mubr.msk.bf16.mxu1 %vm18757_vm1, %v18756_v1  ;;  %18197 = vmatprep.mubr.msk.bf16.mxu0 %vm18757_vm1, %v18756_v1 }
0x147f   :  { %v9951_v57 = vpop.f32.mrb[72].mxu1  ;;  %v9998_v33 = vpop.f32.mrb[84].mxu0 }
0x1480   :  { %v9952_v4 = vadd.f32 %v19011_v18, %v9951_v57  ;;  %v18169_v48 = vpop.f32.mrb[73].mxu1  ;;  %v18175_v36 = vpop.f32.mrb[85].mxu0  ;;  %v9999_v53 = vadd.f32 %v19011_v18, %v9998_v33 }
0x1481   :  { %v9954_v6 = vpop.f32.mrb[74].mxu1  ;;  %v10001_v29 = vpop.f32.mrb[86].mxu0 }
0x1482   :  { %v9955_v61 = vadd.f32 %v19013_v19, %v9954_v6  ;;  %v18170_v59 = vpop.f32.mrb[75].mxu1  ;;  %v18176_v3 = vpop.f32.mrb[87].mxu0  ;;  %v10099_v63 = vsel %vm52_vm0, %v9952_v4, -inf  ;;  %v10002_v39 = vadd.f32 %v19013_v19, %v10001_v29  ;;  %v10105_v60 = vsel %vm52_vm0, %v9999_v53, -inf }
0x1483   :  { %10100 = vmax.xlane.f32.xlu0 %v10099_v63  ;;  %v9220_v63 = vcombine.high %v8766_v11, %v8778_v2 }
0x1484   :  { %v10102_v0 = vsel %vm52_vm0, %v9955_v61, -inf  ;;  %v10108_v41 = vsel %vm52_vm0, %v10002_v39, -inf }
0x1485   :  { %10103 = vmax.xlane.f32.xlu1 %v10102_v0 }
0x1487   :  { %v10092_v62 = vpop.f32.mrb[88].mxu0  ;;  %10106 = vmax.xlane.f32.xlu0 %v10105_v60  ;;  %v10045_v55 = vpop.f32.mrb[76].mxu1  ;;  %v8947_v60 = vcombine.low %v20585_v28, %v20589_v21 }
0x1488   :  { %v10046_v12 = vadd.f32 %v19011_v18, %v10045_v55  ;;  %v18181_v13 = vpop.f32.mrb[77].mxu1  ;;  %v18187_v52 = vpop.f32.mrb[89].mxu0  ;;  %v10093_v54 = vadd.f32 %v19011_v18, %v10092_v62 }
0x1489   :  { %v10048_v10 = vpop.f32.mrb[78].mxu1  ;;  %v10095_v15 = vpop.f32.mrb[90].mxu0 }
0x148a   :  { %v10049_v16 = vadd.f32 %v19013_v19, %v10048_v10  ;;  %v18182_v22 = vpop.f32.mrb[79].mxu1  ;;  %v18188_v51 = vpop.f32.mrb[91].mxu0  ;;  %v10111_v37 = vsel %vm52_vm0, %v10046_v12, -inf  ;;  %v20563_v8 = vadd.f32 %v19013_v19, %v10095_v15  ;;  %v10117_v56 = vsel %vm52_vm0, %v10093_v54, -inf }
0x148b   :  { %10109 = vmax.xlane.f32.xlu0 %v10108_v41  ;;  %10112 = vmax.xlane.f32.xlu1 %v10111_v37  ;;  %v8948_v15 = vcombine.high %v20585_v28, %v20589_v21  ;;  %v9234_v41 = vrot.slane %v9220_v63, %v18888_v24 }
0x148c   :  { %v10114_v47 = vsel %vm52_vm0, %v10049_v16, -inf  ;;  %v10120_v43 = vsel %vm52_vm0, %v20563_v8, -inf }
0x148f   :  { %10118 = vmax.xlane.f32.xlu1 %v10117_v56  ;;  %10115 = vmax.xlane.f32.xlu0 %v10114_v47  ;;  %v8955_v47 = vrot.slane %v8947_v60, %v18888_v24 }
0x1493   :  { %10121 = vmax.xlane.f32.xlu0 %v10120_v43 }
0x14a0   :  { %8783 = vrot.lane.b32.xlu1 %v20414_v27, %s18770_s1 }
0x14a4   :  { %8787 = vrot.lane.b32.xlu1 %v20412_v38, %s18771_s23 }
0x14a8   :  { %8793 = vrot.lane.b32.xlu1 %v20412_v38, %s18772_s24 }
0x14a9   :  { %8781 = vrot.lane.b32.xlu0 %v20412_v38, %s18770_s1 }
0x14ac   :  { %8795 = vrot.lane.b32.xlu1 %v20414_v27, %s18772_s24 }
0x14ad   :  { %8789 = vrot.lane.b32.xlu0 %v20414_v27, %s18771_s23 }
0x14b0   :  { %8801 = vrot.lane.b32.xlu1 %v20414_v27, %s18773_s25 }
0x14b1   :  { %8799 = vrot.lane.b32.xlu0 %v20412_v38, %s18773_s25 }
0x1510   :  { %v10101_v14 = vpop.xlane.xlu0 %10100 }
0x1511   :  { %v10123_v49 = vmax.f32 %v10101_v14, 0.0 }
0x1512   :  { %v10104_v20 = vpop.xlane.xlu1 %10103 }
0x1513   :  { %v10131_v40 = vsub.f32 %v9952_v4, %v10123_v49  ;;  %v10124_v44 = vmax.f32 %v10104_v20, 0.0 }
0x1514   :  { %v10107_v45 = vpop.xlane.xlu0 %10106 }
0x1515   :  { %v10139_v46 = vmul.f32 1.442695, %v10131_v40  ;;  %v10132_v32 = vsub.f32 %v9955_v61, %v10124_v44  ;;  %v10125_v42 = vmax.f32 %v10107_v45, 0.0  ;;  %v9219_v61 = vcombine.low %v8766_v11, %v8778_v2 }
0x1517   :  { %18597 = vpow2.f32 %v10139_v46  ;;  %v10141_v34 = vmul.f32 1.442695, %v10132_v32  ;;  %v10133_v30 = vsub.f32 %v9999_v53, %v10125_v42  ;;  %v9227_v22 = vrot.slane %v9219_v61, %v18888_v24 }
0x1518   :  { %v10110_v50 = vpop.xlane.xlu0 %10109  ;;  %v10113_v17 = vpop.xlane.xlu1 %10112 }
0x1519   :  { %18599 = vpow2.f32 %v10141_v34  ;;  %v10143_v25 = vmul.f32 1.442695, %v10133_v30  ;;  %v10126_v5 = vmax.f32 %v10110_v50, 0.0  ;;  %v10127_v57 = vmax.f32 %v10113_v17, 0.0 }
0x151a   :  { %v8962_v34 = vrot.slane %v8948_v15, %v18888_v24 }
0x151b   :  { %18601 = vpow2.f32 %v10143_v25  ;;  %v10134_v33 = vsub.f32 %v10002_v39, %v10126_v5  ;;  %v10135_v48 = vsub.f32 %v10046_v12, %v10127_v57 }
0x151c   :  { %v10119_v36 = vpop.xlane.xlu1 %10118  ;;  %v10116_v6 = vpop.xlane.xlu0 %10115 }
0x151d   :  { %v10145_v4 = vmul.f32 1.442695, %v10134_v33  ;;  %v10147_v29 = vmul.f32 1.442695, %v10135_v48  ;;  %v10129_v59 = vmax.f32 %v10119_v36, 0.0  ;;  %v10128_v3 = vmax.f32 %v10116_v6, 0.0 }
0x151f   :  { %18603 = vpow2.f32 %v10145_v4  ;;  %v10137_v0 = vsub.f32 %v10093_v54, %v10129_v59  ;;  %v10136_v53 = vsub.f32 %v10049_v16, %v10128_v3 }
0x1520   :  { %18605 = vpow2.f32 %v10147_v29  ;;  %v8784_v62 = vpop.permute.xlu1 %8783  ;;  %v10122_v55 = vpop.xlane.xlu0 %10121 }
0x1521   :  { %v20593_v13 = vpop.eup %18597  ;;  %v10151_v39 = vmul.f32 1.442695, %v10137_v0  ;;  %v10149_v12 = vmul.f32 1.442695, %v10136_v53  ;;  %v9235_v52 = vcombine.low %v8772_v26, %v8784_v62  ;;  %v9236_v10 = vcombine.high %v8772_v26, %v8784_v62 }
0x1522   :  { %v10130_v51 = vmax.f32 %v10122_v55, 0.0  ;;  %v10155_v54 = vsel %vm52_vm0, %v20593_v13, 0.0 }
0x1523   :  { %v20600_v16 = vpop.eup %18599  ;;  %18607 = vpow2.f32 %v10151_v39  ;;  %v9243_v37 = vrot.slane %v9235_v52, %v18888_v24  ;;  %v9250_v56 = vrot.slane %v9236_v10, %v18888_v24  ;;  %10156 = vadd.xlane.f32.xlu0 %v10155_v54 }
0x1524   :  { %18609 = vpow2.f32 %v10149_v12  ;;  %v10138_v43 = vsub.f32 %v20563_v8, %v10130_v51  ;;  %v8782_v28 = vpop.permute.xlu0 %8781  ;;  %v10158_v21 = vsel %vm52_vm0, %v20600_v16, 0.0 }
0x1525   :  { %v20609_v26 = vpop.eup %18601  ;;  %v9283_v11 = vcombine.low %v9227_v22, %v9243_v37  ;;  %v9284_v2 = vcombine.high %v9227_v22, %v9243_v37  ;;  %v9299_v14 = vcombine.low %v9234_v41, %v9250_v56  ;;  %v9300_v49 = vcombine.high %v9234_v41, %v9250_v56  ;;  %10159 = vadd.xlane.f32.xlu1 %v10158_v21 }
0x1526   :  { %v10153_v20 = vmul.f32 1.442695, %v10138_v43  ;;  %v8963_v40 = vcombine.low %v20587_v23, %v8782_v28  ;;  %v8964_v44 = vcombine.high %v20587_v23, %v8782_v28  ;;  %v10161_v45 = vsel %vm52_vm0, %v20609_v26, 0.0 }
0x1527   :  { %v9291_v8 = vrot.slane %v9283_v11, %v18890_v31  ;;  %v9298_v46 = vrot.slane %v9284_v2, %v18890_v31  ;;  %v9307_v32 = vrot.slane %v9299_v14, %v18890_v31  ;;  %v9314_v42 = vrot.slane %v9300_v49, %v18890_v31  ;;  %10162 = vadd.xlane.f32.xlu0 %v10161_v45 }
0x1528   :  { %18611 = vpow2.f32 %v10153_v20  ;;  %v8971_v30 = vrot.slane %v8963_v40, %v18888_v24  ;;  %v8978_v50 = vrot.slane %v8964_v44, %v18888_v24 }
0x1529   :  { %v20622_v23 = vpop.eup %18603  ;;  %v17529_v17 = vcombine.low %v9291_v8, %v9298_v46  ;;  %v17531_v25 = vcombine.high %v9291_v8, %v9298_v46  ;;  %v17533_v5 = vcombine.low %v9307_v32, %v9314_v42  ;;  %v17535_v57 = vcombine.high %v9307_v32, %v9314_v42 }
0x152a   :  { %v20624_v33 = vpop.eup %18605  ;;  %v9011_v48 = vcombine.low %v8955_v47, %v8971_v30  ;;  %v9012_v36 = vcombine.high %v8955_v47, %v8971_v30  ;;  %v9027_v6 = vcombine.low %v8962_v34, %v8978_v50  ;;  %v9028_v4 = vcombine.high %v8962_v34, %v8978_v50 }
0x152b   :  { %v9771_v29 = vrot.slane %v17529_v17, %v18888_v24  ;;  %v9787_v59 = vrot.slane %v17531_v25, %v18888_v24  ;;  %v9803_v60 = vrot.slane %v17533_v5, %v18888_v24  ;;  %v9819_v62 = vrot.slane %v17535_v57, %v18888_v24 }
0x152c   :  { %v9019_v3 = vrot.slane %v9011_v48, %v18890_v31  ;;  %v9026_v61 = vrot.slane %v9012_v36, %v18890_v31  ;;  %v9035_v63 = vrot.slane %v9027_v6, %v18890_v31  ;;  %v9042_v0 = vrot.slane %v9028_v4, %v18890_v31 }
0x152d   :  { %v20632_v53 = vpop.eup %18607  ;;  %v10167_v55 = vsel %vm52_vm0, %v20624_v33, 0.0  ;;  %v10164_v39 = vsel %vm52_vm0, %v20622_v23, 0.0  ;;  %v9827_v43 = vcombine.low %v9771_v29, %v9787_v59  ;;  %v9859_v28 = vcombine.low %v9803_v60, %v9819_v62 }
0x152e   :  { %v20640_v12 = vpop.eup %18609  ;;  %v17521_v52 = vcombine.low %v9019_v3, %v9026_v61  ;;  %v17523_v10 = vcombine.high %v9019_v3, %v9026_v61  ;;  %v17525_v15 = vcombine.low %v9035_v63, %v9042_v0  ;;  %v17527_v22 = vcombine.high %v9035_v63, %v9042_v0  ;;  %10168 = vadd.xlane.f32.xlu1 %v10167_v55 }
0x152f   :  { %10165 = vadd.xlane.f32.xlu0 %v10164_v39  ;;  %v10173_v51 = vsel %vm52_vm0, %v20632_v53, 0.0  ;;  %v10170_v54 = vsel %vm52_vm0, %v20640_v12, 0.0  ;;  %v9835_v49 = vrot.slane %v9827_v43, %v18890_v31  ;;  %v9867_v45 = vrot.slane %v9859_v28, %v18890_v31 }
0x1530   :  { %v9635_v41 = vrot.slane %v17521_v52, %v18888_v24  ;;  %v9651_v37 = vrot.slane %v17523_v10, %v18888_v24  ;;  %v9667_v56 = vrot.slane %v17525_v15, %v18888_v24  ;;  %v9683_v47 = vrot.slane %v17527_v22, %v18888_v24 }
0x1531   :  { %v9828_v32 = vcombine.high %v9771_v29, %v9787_v59  ;;  %v9860_v42 = vcombine.high %v9803_v60, %v9819_v62  ;;  %v9891_v30 = vcombine.low %v9835_v49, %v9867_v45  ;;  %v9892_v17 = vcombine.high %v9835_v49, %v9867_v45 }
0x1532   :  { %v18612_v21 = vpop.eup %18611  ;;  %10174 = vadd.xlane.f32.xlu1 %v10173_v51  ;;  %v9691_v11 = vcombine.low %v9635_v41, %v9651_v37  ;;  %v9723_v2 = vcombine.low %v9667_v56, %v9683_v47  ;;  %v9692_v14 = vcombine.high %v9635_v41, %v9651_v37  ;;  %v9724_v46 = vcombine.high %v9667_v56, %v9683_v47 }
0x1533   :  { %10171 = vadd.xlane.f32.xlu0 %v10170_v54  ;;  %v10176_v20 = vsel %vm52_vm0, %v18612_v21, 0.0  ;;  %v9842_v5 = vrot.slane %v9828_v32, %v18890_v31  ;;  %v9874_v57 = vrot.slane %v9860_v42, %v18890_v31  ;;  %v10179_v59 = vpack.c.bf16 %v20600_v16, %v20593_v13 }
0x1534   :  { %v9699_v40 = vrot.slane %v9691_v11, %v18890_v31  ;;  %v9731_v44 = vrot.slane %v9723_v2, %v18890_v31  ;;  %v9706_v8 = vrot.slane %v9692_v14, %v18890_v31  ;;  %v9738_v25 = vrot.slane %v9724_v46, %v18890_v31 }
0x1535   :  { %v9893_v3 = vcombine.low %v9842_v5, %v9874_v57  ;;  %v9894_v29 = vcombine.high %v9842_v5, %v9874_v57  ;;  %v10180_v61 = vpack.c.bf16 %v20622_v23, %v20609_v26  ;;  %v10181_v13 = vpack.c.bf16 %v20640_v12, %v20624_v33  ;;  %v8790_v26 = vpop.permute.xlu0 %8789 }
0x1536   :  { %v9755_v34 = vcombine.low %v9699_v40, %v9731_v44  ;;  %v9756_v50 = vcombine.high %v9699_v40, %v9731_v44  ;;  %v9757_v6 = vcombine.low %v9706_v8, %v9738_v25  ;;  %v9758_v4 = vcombine.high %v9706_v8, %v9738_v25 }
0x1537   :  { %10177 = vadd.xlane.f32.xlu0 %v10176_v20  ;;  %v10182_v16 = vpack.c.bf16 %v18612_v21, %v20632_v53 }
0x1538   :  { %v9907_v48 = vpack.c.bf16 %v9891_v30, %v9755_v34  ;;  %v9908_v36 = vpack.c.bf16 %v9892_v17, %v9756_v50  ;;  %v9909_v63 = vpack.c.bf16 %v9893_v3, %v9757_v6  ;;  %v9910_v0 = vpack.c.bf16 %v9894_v29, %v9758_v4 }
0x1539   :  { %v8800_v23 = vpop.permute.xlu0 %8799 }
0x153a   :  { %18190 = vmatpush3.bf16.msra.mxu1 %v9907_v48  ;;  %18196 = vmatpush3.bf16.msra.mxu0 %v9908_v36 }
0x153b   :  { %18201 = vmatprep.subr.bf16.mxu1 %v18756_v1  ;;  %18207 = vmatprep.subr.bf16.mxu0 %v18756_v1 }
0x153d   :  { %18192 = vmatmul.mubr.msk.bf16.vlgmr.msra.gmra.mrb[80].mxu1 %vm52_vm0, %v10179_v59  ;;  %18198 = vmatmul.mubr.msk.bf16.vlgmr.msra.gmra.mrb[92].mxu0 %vm52_vm0, %v10180_v61 }
0x153e   :  { %18202 = vmatpush3.bf16.msra.mxu1 %v9909_v63  ;;  %18208 = vmatpush3.bf16.msra.mxu0 %v9910_v0 }
0x153f   :  { %18203 = vmatprep.mubr.msk.bf16.mxu1 %vm18757_vm1, %v18756_v1  ;;  %18209 = vmatprep.mubr.msk.bf16.mxu0 %vm18757_vm1, %v18756_v1 }
0x1540   :  { %18220 = vmatprep.subr.bf16.mxu0 %v18756_v1  ;;  %18421 = vmatprep.subr.bf16.mxu1 %v18775_v9 }
0x1543   :  { %8807 = vrot.lane.b32.xlu1 %v20414_v27, %s18774_s26  ;;  %v8788_v27 = vpop.permute.xlu1 %8787 }
0x1544   :  { %v8980_v56 = vcombine.high %v8788_v27, %v8800_v23 }
0x1545   :  { %18204 = vmatmul.mubr.msk.bf16.vlgmr.msra.gmra.mrb[84].mxu1 %vm52_vm0, %v10181_v13  ;;  %18210 = vmatmul.mubr.msk.bf16.vlgmr.msra.gmra.mrb[96].mxu0 %vm52_vm0, %v10182_v16 }
0x1546   :  { %18224 = vmatprep.mubr.msk.bf16.mxu0 %vm18757_vm1, %v18756_v1  ;;  %18217 = vmatprep.mubr.msk.f32.mxu1 %vm18757_vm1, %v18756_v1  ;;  %v8994_v49 = vrot.slane %v8980_v56, %v18888_v24 }
0x1547   :  { %v8794_v33 = vpop.permute.xlu1 %8793 }
0x154b   :  { %v8796_v53 = vpop.permute.xlu1 %8795 }
0x154d   :  { %8805 = vrot.lane.b32.xlu0 %v20412_v38, %s18774_s26  ;;  %v8979_v38 = vcombine.low %v8788_v27, %v8800_v23 }
0x154f   :  { %v8802_v39 = vpop.permute.xlu1 %8801  ;;  %v8987_v14 = vrot.slane %v8979_v38, %v18888_v24 }
0x1550   :  { %v9251_v11 = vcombine.low %v8790_v26, %v8802_v39  ;;  %v9252_v2 = vcombine.high %v8790_v26, %v8802_v39 }
0x1552   :  { %v9259_v34 = vrot.slane %v9251_v11, %v18888_v24  ;;  %v9266_v30 = vrot.slane %v9252_v2, %v18888_v24 }
0x15b0   :  { %v10157_v60 = vpop.xlane.xlu0 %10156 }
0x15b1   :  { %vm10359_vm5 = vcmp.gt.f32.partialorder %v10157_v60, 0.0 }
0x15b2   :  { %v10160_v12 = vpop.xlane.xlu1 %10159  ;;  %v10367_v20 = vsel %vm10359_vm5, %v10157_v60, 1.0 }
0x15b3   :  { %vm10360_vm6 = vcmp.gt.f32.partialorder %v10160_v12, 0.0  ;;  %18613 = vrcp.f32 %v10367_v20 }
0x15b4   :  { %v10163_v62 = vpop.xlane.xlu0 %10162  ;;  %v10368_v40 = vsel %vm10360_vm6, %v10160_v12, 1.0 }
0x15b5   :  { %vm10361_vm7 = vcmp.gt.f32.partialorder %v10163_v62, 0.0  ;;  %18615 = vrcp.f32 %v10368_v40 }
0x15b6   :  { %v10369_v50 = vsel %vm10361_vm7, %v10163_v62, 1.0 }
0x15b7   :  { %18617 = vrcp.f32 %v10369_v50 }
0x15bb   :  { %v10169_v10 = vpop.xlane.xlu1 %10168 }
0x15bc   :  { %v10166_v55 = vpop.xlane.xlu0 %10165  ;;  %vm10363_vm8 = vcmp.gt.f32.partialorder %v10169_v10, 0.0 }
0x15bd   :  { %vm10362_vm9 = vcmp.gt.f32.partialorder %v10166_v55, 0.0  ;;  %v10371_v3 = vsel %vm10363_vm8, %v10169_v10, 1.0 }
0x15be   :  { %v10370_v29 = vsel %vm10362_vm9, %v10166_v55, 1.0  ;;  %18619 = vrcp.f32 %v10371_v3 }
0x15bf   :  { %v10175_v22 = vpop.xlane.xlu1 %10174  ;;  %18621 = vrcp.f32 %v10370_v29 }
0x15c0   :  { %v10172_v52 = vpop.xlane.xlu0 %10171  ;;  %vm10365_vm10 = vcmp.gt.f32.partialorder %v10175_v22, 0.0 }
0x15c1   :  { %vm10364_vm14 = vcmp.gt.f32.partialorder %v10172_v52, 0.0  ;;  %v10373_v23 = vsel %vm10365_vm10, %v10175_v22, 1.0 }
0x15c2   :  { %v10372_v60 = vsel %vm10364_vm14, %v10172_v52, 1.0  ;;  %18623 = vrcp.f32 %v10373_v23 }
0x15c3   :  { %v8808_v54 = vpop.permute.xlu1 %8807  ;;  %18625 = vrcp.f32 %v10372_v60 }
0x15c4   :  { %v20686_v15 = vpop.xlane.xlu0 %10177  ;;  %v9267_v47 = vcombine.low %v8796_v53, %v8808_v54  ;;  %v9268_v43 = vcombine.high %v8796_v53, %v8808_v54 }
0x15c5   :  { %vm10366_vm15 = vcmp.gt.f32.partialorder %v20686_v15, 0.0 }
0x15c6   :  { %v9275_v44 = vrot.slane %v9267_v47, %v18888_v24  ;;  %v9282_v45 = vrot.slane %v9268_v43, %v18888_v24  ;;  %v10374_v22 = vsel %vm10366_vm15, %v20686_v15, 1.0 }
0x15c7   :  { %18627 = vrcp.f32 %v10374_v22 }
0x15c8   :  { %v8806_v51 = vpop.permute.xlu0 %8805  ;;  %v9315_v17 = vcombine.low %v9259_v34, %v9275_v44  ;;  %v9316_v25 = vcombine.high %v9259_v34, %v9275_v44  ;;  %v9331_v5 = vcombine.low %v9266_v30, %v9282_v45  ;;  %v9332_v57 = vcombine.high %v9266_v30, %v9282_v45 }
0x15c9   :  { %v8995_v41 = vcombine.low %v8794_v33, %v8806_v51  ;;  %v8996_v37 = vcombine.high %v8794_v33, %v8806_v51  ;;  %v18614_v33 = vpop.eup %18613 }
0x15ca   :  { %v9323_v59 = vrot.slane %v9315_v17, %v18890_v31  ;;  %v9330_v61 = vrot.slane %v9316_v25, %v18890_v31  ;;  %v9339_v63 = vrot.slane %v9331_v5, %v18890_v31  ;;  %v9346_v0 = vrot.slane %v9332_v57, %v18890_v31  ;;  %v18616_v12 = vpop.eup %18615 }
0x15cb   :  { %v9003_v28 = vrot.slane %v8995_v41, %v18888_v24  ;;  %v9010_v21 = vrot.slane %v8996_v37, %v18888_v24  ;;  %v18618_v52 = vpop.eup %18617 }
0x15cc   :  { %v17530_v62 = vcombine.low %v9323_v59, %v9330_v61  ;;  %v17532_v53 = vcombine.high %v9323_v59, %v9330_v61  ;;  %v17534_v55 = vcombine.low %v9339_v63, %v9346_v0  ;;  %v17536_v39 = vcombine.high %v9339_v63, %v9346_v0  ;;  %v18620_v44 = vpop.eup %18619 }
0x15cd   :  { %v9043_v8 = vcombine.low %v8987_v14, %v9003_v28  ;;  %v9044_v46 = vcombine.high %v8987_v14, %v9003_v28  ;;  %v9059_v32 = vcombine.low %v8994_v49, %v9010_v21  ;;  %v9060_v42 = vcombine.high %v8994_v49, %v9010_v21 }
0x15ce   :  { %v9778_v37 = vrot.slane %v17530_v62, %v18888_v24  ;;  %v9794_v38 = vrot.slane %v17532_v53, %v18888_v24  ;;  %v9810_v56 = vrot.slane %v17534_v55, %v18888_v24  ;;  %v9826_v47 = vrot.slane %v17536_v39, %v18888_v24 }
0x15cf   :  { %v9051_v48 = vrot.slane %v9043_v8, %v18890_v31  ;;  %v9058_v36 = vrot.slane %v9044_v46, %v18890_v31  ;;  %v9067_v6 = vrot.slane %v9059_v32, %v18890_v31  ;;  %v9074_v4 = vrot.slane %v9060_v42, %v18890_v31  ;;  %v18622_v42 = vpop.eup %18621 }
0x15d0   :  { %v9843_v45 = vcombine.low %v9778_v37, %v9794_v38  ;;  %v9875_v8 = vcombine.low %v9810_v56, %v9826_v47  ;;  %v9844_v50 = vcombine.high %v9778_v37, %v9794_v38  ;;  %v9876_v17 = vcombine.high %v9810_v56, %v9826_v47 }
0x15d1   :  { %v17522_v13 = vcombine.low %v9051_v48, %v9058_v36  ;;  %v17524_v16 = vcombine.high %v9051_v48, %v9058_v36  ;;  %v17526_v26 = vcombine.low %v9067_v6, %v9074_v4  ;;  %v17528_v27 = vcombine.high %v9067_v6, %v9074_v4  ;;  %v18624_v36 = vpop.eup %18623 }
0x15d2   :  { %v9851_v6 = vrot.slane %v9843_v45, %v18890_v31  ;;  %v9883_v4 = vrot.slane %v9875_v8, %v18890_v31  ;;  %v18626_v3 = vpop.eup %18625  ;;  %v9858_v0 = vrot.slane %v9844_v50, %v18890_v31 }
0x15d3   :  { %v9642_v10 = vrot.slane %v17522_v13, %v18888_v24  ;;  %v9658_v51 = vrot.slane %v17524_v16, %v18888_v24  ;;  %v9674_v54 = vrot.slane %v17526_v26, %v18888_v24  ;;  %v9690_v41 = vrot.slane %v17528_v27, %v18888_v24  ;;  %v18628_v62 = vpop.eup %18627 }
0x15d4   :  { %v9890_v13 = vrot.slane %v9876_v17, %v18890_v31  ;;  %v9895_v47 = vcombine.low %v9851_v6, %v9883_v4 }
0x15d5   :  { %v9707_v43 = vcombine.low %v9642_v10, %v9658_v51  ;;  %v9739_v28 = vcombine.low %v9674_v54, %v9690_v41  ;;  %v9708_v49 = vcombine.high %v9642_v10, %v9658_v51  ;;  %v9740_v20 = vcombine.high %v9674_v54, %v9690_v41 }
0x15d7   :  { %v9715_v34 = vrot.slane %v9707_v43, %v18890_v31  ;;  %v9747_v30 = vrot.slane %v9739_v28, %v18890_v31  ;;  %v9722_v25 = vrot.slane %v9708_v49, %v18890_v31  ;;  %v9754_v5 = vrot.slane %v9740_v20, %v18890_v31 }
0x15d8   :  { %v9896_v43 = vcombine.high %v9851_v6, %v9883_v4  ;;  %v9897_v28 = vcombine.low %v9858_v0, %v9890_v13 }
0x15d9   :  { %v9759_v29 = vcombine.low %v9715_v34, %v9747_v30  ;;  %v9760_v59 = vcombine.high %v9715_v34, %v9747_v30  ;;  %v9761_v16 = vcombine.low %v9722_v25, %v9754_v5  ;;  %v9762_v27 = vcombine.high %v9722_v25, %v9754_v5 }
0x1610   :  { %v10220_v21 = vpop.f32.mrb[80].mxu1  ;;  %v10264_v11 = vpop.f32.mrb[92].mxu0 }
0x1611   :  { %v18193_v2 = vpop.f32.mrb[81].mxu1  ;;  %v18199_v14 = vpop.f32.mrb[93].mxu0  ;;  %v10383_v57 = vmul.f32 %v18614_v33, %v10220_v21  ;;  %v10385_v48 = vmul.f32 %v18618_v52, %v10264_v11  ;;  %v9898_v21 = vcombine.high %v9858_v0, %v9890_v13 }
0x1612   :  { %v10223_v15 = vpop.f32.mrb[82].mxu1  ;;  %v10267_v40 = vpop.f32.mrb[94].mxu0 }
0x1613   :  { %v18194_v46 = vpop.f32.mrb[83].mxu1  ;;  %v18200_v32 = vpop.f32.mrb[95].mxu0  ;;  %v10391_v53 = vadd.f32 %v10383_v57, %v9759_v29  ;;  %v10393_v55 = vadd.f32 %v10385_v48, %v9760_v59  ;;  %v10384_v39 = vmul.f32 %v18616_v12, %v10223_v15  ;;  %v10386_v10 = vmul.f32 %v18622_v42, %v10267_v40 }
0x1615   :  { %v10392_v20 = vadd.f32 %v10384_v39, %v9895_v47 }
0x1618   :  { %v10308_v61 = vpop.f32.mrb[84].mxu1  ;;  %v10352_v63 = vpop.f32.mrb[96].mxu0 }
0x1619   :  { %v10387_v26 = vmul.f32 %v18620_v44, %v10308_v61  ;;  %v10389_v23 = vmul.f32 %v18624_v36, %v10352_v63  ;;  %v18205_v60 = vpop.f32.mrb[85].mxu1  ;;  %v18211_v33 = vpop.f32.mrb[97].mxu0  ;;  %v10394_v44 = vadd.f32 %v10386_v10, %v9896_v43 }
0x161a   :  { %v10311_v51 = vpop.f32.mrb[86].mxu1  ;;  %v10355_v54 = vpop.f32.mrb[98].mxu0 }
0x161b   :  { %v10395_v41 = vadd.f32 %v10387_v26, %v9761_v16  ;;  %v10397_v22 = vadd.f32 %v10389_v23, %v9762_v27  ;;  %v10388_v52 = vmul.f32 %v18626_v3, %v10311_v51  ;;  %v10390_v37 = vmul.f32 %v18628_v62, %v10355_v54  ;;  %v18206_v38 = vpop.f32.mrb[87].mxu1  ;;  %v18212_v56 = vpop.f32.mrb[99].mxu0 }
0x161d   :  { %v10399_v11 = vcombine.low %v10391_v53, %v10395_v41  ;;  %v10400_v2 = vcombine.high %v10391_v53, %v10395_v41  ;;  %v10415_v14 = vcombine.low %v10393_v55, %v10397_v22  ;;  %v10416_v49 = vcombine.high %v10393_v55, %v10397_v22 }
0x161e   :  { %v10396_v12 = vadd.f32 %v10388_v52, %v9897_v28  ;;  %v10398_v15 = vadd.f32 %v10390_v37, %v9898_v21 }
0x161f   :  { %v10407_v40 = vrot.slane %v10399_v11, %v18888_v24  ;;  %v10414_v45 = vrot.slane %v10400_v2, %v18888_v24  ;;  %v10423_v8 = vrot.slane %v10415_v14, %v18888_v24  ;;  %v10430_v46 = vrot.slane %v10416_v49, %v18888_v24 }
0x1620   :  { %v10467_v32 = vcombine.low %v10392_v20, %v10396_v12  ;;  %v10468_v42 = vcombine.high %v10392_v20, %v10396_v12  ;;  %v10483_v34 = vcombine.low %v10394_v44, %v10398_v15  ;;  %v10484_v30 = vcombine.high %v10394_v44, %v10398_v15 }
0x1621   :  { %v10431_v50 = vcombine.low %v10407_v40, %v10423_v8  ;;  %v10432_v17 = vcombine.high %v10407_v40, %v10423_v8  ;;  %v10447_v25 = vcombine.low %v10414_v45, %v10430_v46  ;;  %v10448_v5 = vcombine.high %v10414_v45, %v10430_v46 }
0x1622   :  { %v10475_v57 = vrot.slane %v10467_v32, %v18888_v24  ;;  %v10482_v48 = vrot.slane %v10468_v42, %v18888_v24  ;;  %v10491_v36 = vrot.slane %v10483_v34, %v18888_v24  ;;  %v10498_v6 = vrot.slane %v10484_v30, %v18888_v24 }
0x1623   :  { %v10439_v4 = vrot.slane %v10431_v50, %v18890_v31  ;;  %v10446_v3 = vrot.slane %v10432_v17, %v18890_v31  ;;  %v10455_v29 = vrot.slane %v10447_v25, %v18890_v31  ;;  %v10462_v59 = vrot.slane %v10448_v5, %v18890_v31 }
0x1624   :  { %v10499_v61 = vcombine.low %v10475_v57, %v10491_v36  ;;  %v10500_v63 = vcombine.high %v10475_v57, %v10491_v36  ;;  %v10515_v0 = vcombine.low %v10482_v48, %v10498_v6  ;;  %v10516_v13 = vcombine.high %v10482_v48, %v10498_v6  ;;  %v18463_v48 = vld [vmem:[%s21978_s4 + $0x40] sm:$0xff]   ;;  %v18464_v36 = vld [vmem:[%s21978_s4 + $0x48] sm:$0xff]  }
0x1625   :  { %v10535_v16 = vcombine.low %v10439_v4, %v10446_v3  ;;  %v17545_v26 = vcombine.high %v10439_v4, %v10446_v3  ;;  %v10551_v27 = vcombine.low %v10455_v29, %v10462_v59  ;;  %v17546_v23 = vcombine.high %v10455_v29, %v10462_v59  ;;  %18221 = vmatpush3.bf16.msra.mxu0 %v18463_v48 }
0x1626   :  { %v10507_v60 = vrot.slane %v10499_v61, %v18890_v31  ;;  %v10514_v33 = vrot.slane %v10500_v63, %v18890_v31  ;;  %v10523_v62 = vrot.slane %v10515_v0, %v18890_v31  ;;  %v10530_v53 = vrot.slane %v10516_v13, %v18890_v31  ;;  %18222 = vmatprep.subr.bf16.mxu0 %v18756_v1  ;;  %v17550_v61 = vld [vmem:[%s21980_s6 + $0x4] ss:$0 sm:$0xff] }
0x1627   :  { %v10542_v55 = vrot.slane %v10535_v16, %v18888_v24  ;;  %v10550_v39 = vrot.slane %v17545_v26, %v18888_v24  ;;  %v10558_v10 = vrot.slane %v10551_v27, %v18888_v24  ;;  %v10566_v51 = vrot.slane %v17546_v23, %v18888_v24  ;;  %v17552_v26 = vld [vmem:[%s21981_s7 + $0x4] ss:$0 sm:$0xff] }
0x1628   :  { %v10603_v54 = vcombine.low %v10507_v60, %v10514_v33  ;;  %v17547_v41 = vcombine.high %v10507_v60, %v10514_v33  ;;  %v10619_v22 = vcombine.low %v10523_v62, %v10530_v53  ;;  %v17548_v52 = vcombine.high %v10523_v62, %v10530_v53 }
0x1629   :  { %v10567_v37 = vcombine.low %v10542_v55, %v10550_v39  ;;  %v10583_v38 = vcombine.low %v10558_v10, %v10566_v51  ;;  %v10568_v56 = vcombine.high %v10542_v55, %v10550_v39  ;;  %v10584_v47 = vcombine.high %v10558_v10, %v10566_v51  ;;  %18223 = vmatpush3.bf16.msra.mxu0 %v18464_v36 }
0x162a   :  { %v10610_v43 = vrot.slane %v10603_v54, %v18888_v24  ;;  %v10618_v28 = vrot.slane %v17547_v41, %v18888_v24  ;;  %v10626_v21 = vrot.slane %v10619_v22, %v18888_v24  ;;  %v10634_v11 = vrot.slane %v17548_v52, %v18888_v24  ;;  %18234 = vmatprep.subr.bf16.mxu0 %v18756_v1  ;;  %v18728_v54 = vld [vmem:[%s21976_s2] sm:$0x3]  ;;  %v17559_v41 = vld [vmem:[%s21979_s5 + $0x5] ss:$0 sm:$0xff] }
0x162b   :  { %v10575_v2 = vrot.slane %v10567_v37, %v18890_v31  ;;  %v10591_v14 = vrot.slane %v10583_v38, %v18890_v31  ;;  %v10582_v49 = vrot.slane %v10568_v56, %v18890_v31  ;;  %v10598_v20 = vrot.slane %v10584_v47, %v18890_v31 }
0x162c   :  { %v10635_v44 = vcombine.low %v10610_v43, %v10618_v28  ;;  %v10651_v12 = vcombine.low %v10626_v21, %v10634_v11  ;;  %v10636_v15 = vcombine.high %v10610_v43, %v10618_v28  ;;  %v10652_v40 = vcombine.high %v10626_v21, %v10634_v11 }
0x162d   :  { %v10600_v45 = vcombine.high %v10575_v2, %v10591_v14  ;;  %v10601_v8 = vcombine.low %v10582_v49, %v10598_v20  ;;  %v10602_v46 = vcombine.high %v10582_v49, %v10598_v20  ;;  %v10599_v32 = vcombine.low %v10575_v2, %v10591_v14 }
0x162e   :  { %v10643_v42 = vrot.slane %v10635_v44, %v18890_v31  ;;  %v10659_v34 = vrot.slane %v10651_v12, %v18890_v31  ;;  %v10650_v30 = vrot.slane %v10636_v15, %v18890_v31  ;;  %v10666_v50 = vrot.slane %v10652_v40, %v18890_v31 }
0x162f   :  { %10673 = vrot.lane.b32.xlu0 %v10600_v45, %s18774_s26 }
0x1630   :  { %v10668_v17 = vcombine.high %v10643_v42, %v10659_v34  ;;  %v10669_v25 = vcombine.low %v10650_v30, %v10666_v50  ;;  %v10670_v5 = vcombine.high %v10650_v30, %v10666_v50  ;;  %v10667_v57 = vcombine.low %v10643_v42, %v10659_v34 }
0x1632   :  { %10675 = vrot.lane.b32.xlu1 %v10668_v17, %s18774_s26 }
0x1633   :  { %10681 = vrot.lane.b32.xlu0 %v10601_v8, %s18773_s25 }
0x1636   :  { %10683 = vrot.lane.b32.xlu1 %v10669_v25, %s18773_s25 }
0x1637   :  { %10689 = vrot.lane.b32.xlu0 %v10602_v46, %s18772_s24 }
0x163a   :  { %10691 = vrot.lane.b32.xlu1 %v10670_v5, %s18772_s24 }
0x16a1   :  { %v10674_v6 = vpop.permute.xlu0 %10673 }
0x16a2   :  { %v10695_v29 = vsel %vm1291_vm2, %v10599_v32, %v10674_v6 }
0x16a4   :  { %v10676_v4 = vpop.permute.xlu1 %10675 }
0x16a5   :  { %v10682_v3 = vpop.permute.xlu0 %10681  ;;  %v10696_v16 = vsel %vm1291_vm2, %v10667_v57, %v10676_v4 }
0x16a6   :  { %v10697_v63 = vsel %vm52_vm0, %v10695_v29, %v10682_v3 }
0x16a8   :  { %v10684_v59 = vpop.permute.xlu1 %10683 }
0x16a9   :  { %v10690_v0 = vpop.permute.xlu0 %10689  ;;  %v10698_v23 = vsel %vm52_vm0, %v10696_v16, %v10684_v59 }
0x16aa   :  { %v10699_v13 = vsel %vm2080_vm11, %v10697_v63, %v10690_v0 }
0x16ab   :  { %v10709_v27 = vmul.f32 %v17550_v61, %v10699_v13 }
0x16ac   :  { %v10692_v60 = vpop.permute.xlu1 %10691 }
0x16ad   :  { %v10700_v33 = vsel %vm2080_vm11, %v10698_v23, %v10692_v60  ;;  %v10719_v62 = vadd.f32 %v17552_v26, %v10709_v27 }
0x16ae   :  { %v10710_v53 = vmul.f32 %v17550_v61, %v10700_v33 }
0x16af   :  { %v10721_v39 = vmax.f32 %v10719_v62, 0.0 }
0x16b0   :  { %v10720_v55 = vadd.f32 %v17552_v26, %v10710_v53 }
0x16b2   :  { %v10722_v10 = vmax.f32 %v10720_v55, 0.0 }
0x16b4   :  { %v18422_v51 = vpack.c.bf16 %v10722_v10, %v10721_v39 }
0x16b6   :  { %18423 = vmatpush3.bf16.msra.mxu1 %v18422_v51  ;;  %18225 = vmatmul.mubr.msk.bf16.vlgmr.msra.gmra.mrb[100].mxu0 %vm2203_vm12, %v18422_v51 }
0x16b7   :  { %18228 = vmatprep.subr.bf16.mxu1 %v18756_v1  ;;  %18236 = vmatprep.mubr.msk.bf16.mxu0 %vm18757_vm1, %v18756_v1 }
0x16b9   :  { %18218 = vmatmul.mubr.msk.f32.vlgmr.msra.gmra.mrb[88].mxu1 %vm52_vm0, %v18728_v54 }
0x16ba   :  { %18230 = vmatprep.mubr.msk.bf16.mxu1 %vm18757_vm1, %v18756_v1 }
0x1789   :  { %v10857_v22 = vpop.f32.mrb[100].mxu0 }
0x178a   :  { %v20793_v52 = vadd.f32 %v17559_v41, %v10857_v22  ;;  %v18226_v37 = vpop.f32.mrb[101].mxu0 }
0x178b   :  { %v10860_v38 = vpop.f32.mrb[102].mxu0 }
0x178c   :  { %v20795_v56 = vadd.f32 %v17559_v41, %v10860_v38  ;;  %10884 = vrot.lane.b32.xlu0 %v20793_v52, %s18759_s12  ;;  %v18227_v47 = vpop.f32.mrb[103].mxu0  ;;  %v10789_v43 = vpop.f32.mrb[88].mxu1 }
0x178d   :  { %10793 = vst.msk [vmem:[#allocation2 + $0x2] sm:$0x3] %vm2176_vm13, %v10789_v43  ;;  %v18219_v28 = vpop.f32.mrb[89].mxu1 }
0x178e   :  { %10886 = vrot.lane.b32.xlu1 %v20795_v56, %s18759_s12 }
0x1790   :  { %10890 = vrot.lane.b32.xlu0 %v20793_v52, %s18758_s11 }
0x1792   :  { %10892 = vrot.lane.b32.xlu1 %v20795_v56, %s18758_s11 }
0x1794   :  { %10896 = vrot.lane.b32.xlu0 %v20793_v52, %s18760_s13 }
0x1796   :  { %10898 = vrot.lane.b32.xlu1 %v20795_v56, %s18760_s13 }
0x1798   :  { %10902 = vrot.lane.b32.xlu0 %v20793_v52, %s18761_s14 }
0x179a   :  { %10904 = vrot.lane.b32.xlu1 %v20795_v56, %s18761_s14 }
0x179c   :  { %10866 = vrot.lane.b32.xlu0 %v20793_v52, %s18762_s15 }
0x179e   :  { %10868 = vrot.lane.b32.xlu1 %v20795_v56, %s18762_s15 }
0x17a0   :  { %10872 = vrot.lane.b32.xlu0 %v20793_v52, %s18763_s16 }
0x17a2   :  { %10874 = vrot.lane.b32.xlu1 %v20795_v56, %s18763_s16 }
0x17a4   :  { %10878 = vrot.lane.b32.xlu0 %v20793_v52, %s18764_s17 }
0x17a6   :  { %10880 = vrot.lane.b32.xlu1 %v20795_v56, %s18764_s17 }
0x17a8   :  { %10920 = vrot.lane.b32.xlu0 %v20793_v52, %s18766_s19 }
0x17aa   :  { %10908 = vrot.lane.b32.xlu1 %v20793_v52, %s18765_s18 }
0x17ac   :  { %10910 = vrot.lane.b32.xlu0 %v20795_v56, %s18765_s18 }
0x17ae   :  { %10914 = vrot.lane.b32.xlu1 %v20793_v52, %s18767_s20 }
0x17b2   :  { %10916 = vrot.lane.b32.xlu1 %v20795_v56, %s18767_s20 }
0x17b6   :  { %10922 = vrot.lane.b32.xlu1 %v20795_v56, %s18766_s19 }
0x17fe   :  { %v10885_v21 = vpop.permute.xlu0 %10884 }
0x1800   :  { %v10887_v11 = vpop.permute.xlu1 %10886 }
0x1802   :  { %v10891_v2 = vpop.permute.xlu0 %10890 }
0x1804   :  { %v10893_v14 = vpop.permute.xlu1 %10892 }
0x1806   :  { %v10897_v49 = vpop.permute.xlu0 %10896 }
0x1807   :  { %v10988_v20 = vcombine.low %v10885_v21, %v10897_v49  ;;  %v10989_v44 = vcombine.high %v10885_v21, %v10897_v49 }
0x1808   :  { %v10899_v12 = vpop.permute.xlu1 %10898 }
0x1809   :  { %v10996_v8 = vrot.slane %v10988_v20, %v18888_v24  ;;  %v11003_v46 = vrot.slane %v10989_v44, %v18888_v24  ;;  %v11260_v32 = vcombine.low %v10887_v11, %v10899_v12  ;;  %v11261_v42 = vcombine.high %v10887_v11, %v10899_v12 }
0x180a   :  { %v10903_v15 = vpop.permute.xlu0 %10902 }
0x180b   :  { %v11004_v40 = vcombine.low %v10891_v2, %v10903_v15  ;;  %v11005_v45 = vcombine.high %v10891_v2, %v10903_v15  ;;  %v11268_v4 = vrot.slane %v11260_v32, %v18888_v24  ;;  %v11275_v61 = vrot.slane %v11261_v42, %v18888_v24 }
0x180c   :  { %v10905_v34 = vpop.permute.xlu1 %10904 }
0x180d   :  { %v11012_v30 = vrot.slane %v11004_v40, %v18888_v24  ;;  %v11019_v50 = vrot.slane %v11005_v45, %v18888_v24  ;;  %v11276_v17 = vcombine.low %v10893_v14, %v10905_v34  ;;  %v11277_v25 = vcombine.high %v10893_v14, %v10905_v34 }
0x180e   :  { %v10867_v5 = vpop.permute.xlu0 %10866 }
0x180f   :  { %v11052_v57 = vcombine.low %v10996_v8, %v11012_v30  ;;  %v11053_v48 = vcombine.high %v10996_v8, %v11012_v30  ;;  %v11068_v36 = vcombine.low %v11003_v46, %v11019_v50  ;;  %v11069_v6 = vcombine.high %v11003_v46, %v11019_v50 }
0x1810   :  { %v11284_v3 = vrot.slane %v11276_v17, %v18888_v24  ;;  %v11291_v29 = vrot.slane %v11277_v25, %v18888_v24  ;;  %v10869_v59 = vpop.permute.xlu1 %10868 }
0x1811   :  { %v11060_v63 = vrot.slane %v11052_v57, %v18890_v31  ;;  %v11067_v0 = vrot.slane %v11053_v48, %v18890_v31  ;;  %v11076_v27 = vrot.slane %v11068_v36, %v18890_v31  ;;  %v11083_v23 = vrot.slane %v11069_v6, %v18890_v31 }
0x1812   :  { %v11324_v13 = vcombine.low %v11268_v4, %v11284_v3  ;;  %v11325_v16 = vcombine.high %v11268_v4, %v11284_v3  ;;  %v10873_v26 = vpop.permute.xlu0 %10872  ;;  %v11340_v60 = vcombine.low %v11275_v61, %v11291_v29  ;;  %v11341_v33 = vcombine.high %v11275_v61, %v11291_v29 }
0x1813   :  { %v17564_v39 = vcombine.low %v11060_v63, %v11067_v0  ;;  %v17566_v10 = vcombine.high %v11060_v63, %v11067_v0  ;;  %v10956_v51 = vcombine.low %v20793_v52, %v10873_v26  ;;  %v10957_v54 = vcombine.high %v20793_v52, %v10873_v26 }
0x1814   :  { %v10875_v62 = vpop.permute.xlu1 %10874  ;;  %v11332_v53 = vrot.slane %v11324_v13, %v18890_v31  ;;  %v11339_v55 = vrot.slane %v11325_v16, %v18890_v31  ;;  %v17568_v22 = vcombine.low %v11076_v27, %v11083_v23  ;;  %v17570_v37 = vcombine.high %v11076_v27, %v11083_v23 }
0x1815   :  { %v11228_v38 = vcombine.low %v20795_v56, %v10875_v62  ;;  %v11229_v47 = vcombine.high %v20795_v56, %v10875_v62  ;;  %v11348_v43 = vrot.slane %v11340_v60, %v18890_v31  ;;  %v11355_v28 = vrot.slane %v11341_v33, %v18890_v31 }
0x1816   :  { %v10879_v41 = vpop.permute.xlu0 %10878  ;;  %v17572_v14 = vcombine.low %v11332_v53, %v11339_v55  ;;  %v17574_v49 = vcombine.high %v11332_v53, %v11339_v55  ;;  %v10964_v12 = vrot.slane %v10956_v51, %v18888_v24  ;;  %v10971_v15 = vrot.slane %v10957_v54, %v18888_v24 }
0x1817   :  { %v10972_v21 = vcombine.low %v10867_v5, %v10879_v41  ;;  %v10973_v11 = vcombine.high %v10867_v5, %v10879_v41  ;;  %v11236_v8 = vrot.slane %v11228_v38, %v18888_v24  ;;  %v11243_v46 = vrot.slane %v11229_v47, %v18888_v24 }
0x1818   :  { %v10881_v2 = vpop.permute.xlu1 %10880  ;;  %v11515_v0 = vrot.slane %v17564_v39, %v18888_v24  ;;  %v11531_v13 = vrot.slane %v17566_v10, %v18888_v24  ;;  %v11547_v16 = vrot.slane %v17568_v22, %v18888_v24  ;;  %v11563_v26 = vrot.slane %v17570_v37, %v18888_v24 }
0x1819   :  { %v11244_v20 = vcombine.low %v10869_v59, %v10881_v2  ;;  %v11245_v44 = vcombine.high %v10869_v59, %v10881_v2  ;;  %v10980_v40 = vrot.slane %v10972_v21, %v18888_v24  ;;  %v10987_v45 = vrot.slane %v10973_v11, %v18888_v24 }
0x181a   :  { %v17576_v54 = vcombine.low %v11348_v43, %v11355_v28  ;;  %v17578_v41 = vcombine.high %v11348_v43, %v11355_v28  ;;  %v11651_v38 = vrot.slane %v17572_v14, %v18888_v24  ;;  %v11667_v39 = vrot.slane %v17574_v49, %v18888_v24 }
0x181b   :  { %v11252_v32 = vrot.slane %v11244_v20, %v18888_v24  ;;  %v11259_v42 = vrot.slane %v11245_v44, %v18888_v24  ;;  %v11020_v34 = vcombine.low %v10964_v12, %v10980_v40  ;;  %v11021_v30 = vcombine.high %v10964_v12, %v10980_v40 }
0x181c   :  { %v11036_v50 = vcombine.low %v10971_v15, %v10987_v45  ;;  %v11037_v17 = vcombine.high %v10971_v15, %v10987_v45  ;;  %v11580_v47 = vcombine.low %v11515_v0, %v11531_v13  ;;  %v11612_v10 = vcombine.low %v11547_v16, %v11563_v26 }
0x181d   :  { %v11292_v25 = vcombine.low %v11236_v8, %v11252_v32  ;;  %v11293_v5 = vcombine.high %v11236_v8, %v11252_v32  ;;  %v11308_v57 = vcombine.low %v11243_v46, %v11259_v42  ;;  %v11309_v48 = vcombine.high %v11243_v46, %v11259_v42 }
0x181e   :  { %v11028_v36 = vrot.slane %v11020_v34, %v18890_v31  ;;  %v11035_v6 = vrot.slane %v11021_v30, %v18890_v31  ;;  %v11044_v4 = vrot.slane %v11036_v50, %v18890_v31  ;;  %v11051_v3 = vrot.slane %v11037_v17, %v18890_v31 }
0x181f   :  { %v11300_v29 = vrot.slane %v11292_v25, %v18890_v31  ;;  %v11307_v59 = vrot.slane %v11293_v5, %v18890_v31  ;;  %v11316_v61 = vrot.slane %v11308_v57, %v18890_v31  ;;  %v11323_v63 = vrot.slane %v11309_v48, %v18890_v31 }
0x1820   :  { %v17563_v62 = vcombine.low %v11028_v36, %v11035_v6  ;;  %v17565_v53 = vcombine.high %v11028_v36, %v11035_v6  ;;  %v17567_v55 = vcombine.low %v11044_v4, %v11051_v3  ;;  %v17569_v51 = vcombine.high %v11044_v4, %v11051_v3 }
0x1821   :  { %v17571_v27 = vcombine.low %v11300_v29, %v11307_v59  ;;  %v17573_v23 = vcombine.high %v11300_v29, %v11307_v59  ;;  %v17575_v60 = vcombine.low %v11316_v61, %v11323_v63  ;;  %v17577_v33 = vcombine.high %v11316_v61, %v11323_v63 }
0x1822   :  { %v20885_v2 = vrot.slane %v17563_v62, %v18888_v24  ;;  %v11524_v20 = vrot.slane %v17565_v53, %v18888_v24  ;;  %v11540_v43 = vrot.slane %v17567_v55, %v18888_v24  ;;  %v11556_v28 = vrot.slane %v17569_v51, %v18888_v24 }
0x1823   :  { %v11644_v22 = vrot.slane %v17571_v27, %v18888_v24  ;;  %v11660_v37 = vrot.slane %v17573_v23, %v18888_v24  ;;  %v11676_v21 = vrot.slane %v17575_v60, %v18888_v24  ;;  %v11692_v11 = vrot.slane %v17577_v33, %v18888_v24 }
0x1824   :  { %v11683_v14 = vrot.slane %v17576_v54, %v18888_v24  ;;  %v11699_v49 = vrot.slane %v17578_v41, %v18888_v24  ;;  %v11716_v44 = vcombine.low %v11651_v38, %v11667_v39  ;;  %v11588_v12 = vrot.slane %v11580_v47, %v18890_v31 }
0x1825   :  { %v11620_v15 = vrot.slane %v11612_v10, %v18890_v31  ;;  %v11700_v40 = vcombine.low %v11644_v22, %v11660_v37  ;;  %v11732_v45 = vcombine.low %v11676_v21, %v11692_v11  ;;  %v11564_v32 = vcombine.low %v20885_v2, %v11524_v20 }
0x1826   :  { %v11724_v8 = vrot.slane %v11716_v44, %v18890_v31  ;;  %v11748_v46 = vcombine.low %v11683_v14, %v11699_v49  ;;  %v11596_v42 = vcombine.low %v11540_v43, %v11556_v28  ;;  %v11581_v30 = vcombine.high %v11515_v0, %v11531_v13 }
0x1827   :  { %v11613_v50 = vcombine.high %v11547_v16, %v11563_v26  ;;  %v11632_v17 = vcombine.low %v11588_v12, %v11620_v15  ;;  %v11633_v25 = vcombine.high %v11588_v12, %v11620_v15  ;;  %v11708_v48 = vrot.slane %v11700_v40, %v18890_v31 }
0x1828   :  { %v11756_v34 = vrot.slane %v11748_v46, %v18890_v31  ;;  %v11740_v36 = vrot.slane %v11732_v45, %v18890_v31  ;;  %v11572_v6 = vrot.slane %v11564_v32, %v18890_v31  ;;  %v11604_v4 = vrot.slane %v11596_v42, %v18890_v31 }
0x1829   :  { %v11717_v3 = vcombine.high %v11651_v38, %v11667_v39  ;;  %v11749_v29 = vcombine.high %v11683_v14, %v11699_v49  ;;  %v11595_v63 = vrot.slane %v11581_v30, %v18890_v31  ;;  %v11627_v0 = vrot.slane %v11613_v50, %v18890_v31 }
0x182a   :  { %v11768_v5 = vcombine.low %v11724_v8, %v11756_v34  ;;  %v11769_v57 = vcombine.high %v11724_v8, %v11756_v34  ;;  %v11701_v13 = vcombine.high %v11644_v22, %v11660_v37  ;;  %v11733_v16 = vcombine.high %v11676_v21, %v11692_v11 }
0x182b   :  { %v11731_v26 = vrot.slane %v11717_v3, %v18890_v31  ;;  %v11763_v27 = vrot.slane %v11749_v29, %v18890_v31  ;;  %v11764_v33 = vcombine.low %v11708_v48, %v11740_v36  ;;  %v11765_v62 = vcombine.high %v11708_v48, %v11740_v36 }
0x182c   :  { %v12048_v59 = vpack.c.bf16 %v11768_v5, %v11632_v17  ;;  %v12049_v61 = vpack.c.bf16 %v11769_v57, %v11633_v25  ;;  %v11628_v53 = vcombine.low %v11572_v6, %v11604_v4  ;;  %v11629_v54 = vcombine.high %v11572_v6, %v11604_v4 }
0x182d   :  { %v11770_v55 = vcombine.low %v11731_v26, %v11763_v27  ;;  %v11771_v51 = vcombine.high %v11731_v26, %v11763_v27  ;;  %v11634_v41 = vcombine.low %v11595_v63, %v11627_v0  ;;  %v11635_v38 = vcombine.high %v11595_v63, %v11627_v0 }
0x182e   :  { %v12060_v23 = vsel %vm1291_vm2, %v12048_v59, 0  ;;  %v12107_v60 = vsel %vm1291_vm2, %v12049_v61, 0  ;;  %v11565_v39 = vcombine.high %v20885_v2, %v11524_v20  ;;  %v11597_v47 = vcombine.high %v11540_v43, %v11556_v28 }
0x182f   :  { %18229 = vmatpush3.bf16.xpose.msra.mxu1 %v12060_v23  ;;  %18235 = vmatpush3.bf16.xpose.msra.mxu0 %v12107_v60  ;;  %v12044_v10 = vpack.c.bf16 %v11764_v33, %v11628_v53  ;;  %v12045_v22 = vpack.c.bf16 %v11765_v62, %v11629_v54  ;;  %v12050_v37 = vpack.c.bf16 %v11770_v55, %v11634_v41  ;;  %v20965_v54 = vpop.permute.xlu1 %10908 }
0x1830   :  { %18240 = vmatprep.subr.bf16.mxu1 %v18756_v1  ;;  %18246 = vmatprep.subr.bf16.mxu0 %v18756_v1  ;;  %v12051_v21 = vpack.c.bf16 %v11771_v51, %v11635_v38  ;;  %v11715_v11 = vrot.slane %v11701_v13, %v18890_v31  ;;  %v11747_v14 = vrot.slane %v11733_v16, %v18890_v31  ;;  %v20969_v38 = vpop.permute.xlu0 %10920 }
0x1831   :  { %v12154_v49 = vsel %vm1291_vm2, %v12050_v37, 0  ;;  %v11579_v12 = vrot.slane %v11565_v39, %v18890_v31  ;;  %v11611_v2 = vrot.slane %v11597_v47, %v18890_v31 }
0x1832   :  { %v12201_v44 = vsel %vm1291_vm2, %v12051_v21, 0  ;;  %v11766_v20 = vcombine.low %v11715_v11, %v11747_v14  ;;  %v11767_v43 = vcombine.high %v11715_v11, %v11747_v14 }
0x1833   :  { %v11630_v28 = vcombine.low %v11579_v12, %v11611_v2  ;;  %v11631_v15 = vcombine.high %v11579_v12, %v11611_v2  ;;  %v20967_v41 = vpop.permute.xlu1 %10914 }
0x1834   :  { %v10911_v47 = vpop.permute.xlu0 %10910 }
0x1835   :  { %v12046_v40 = vpack.c.bf16 %v11766_v20, %v11630_v28  ;;  %v12047_v45 = vpack.c.bf16 %v11767_v43, %v11631_v15 }
0x1836   :  { %18231 = vmatmul.mubr.msk.bf16.vlgmr.msra.gmra.mrb[92].mxu1 %vm1291_vm2, %v12044_v10  ;;  %18237 = vmatmul.mubr.msk.bf16.vlgmr.msra.gmra.mrb[104].mxu0 %vm1291_vm2, %v12045_v22 }
0x1837   :  { %18241 = vmatpush3.bf16.xpose.msra.mxu1 %v12154_v49  ;;  %18247 = vmatpush3.bf16.xpose.msra.mxu0 %v12201_v44  ;;  %v10917_v39 = vpop.permute.xlu1 %10916 }
0x1838   :  { %18242 = vmatprep.mubr.msk.bf16.mxu1 %vm18757_vm1, %v18756_v1  ;;  %18248 = vmatprep.mubr.msk.bf16.mxu0 %vm18757_vm1, %v18756_v1 }
0x1839   :  { %18252 = vmatprep.subr.bf16.mxu1 %v18756_v1  ;;  %18258 = vmatprep.subr.bf16.mxu0 %v18756_v1 }
0x183b   :  { %v10923_v10 = vpop.permute.xlu1 %10922 }
0x183e   :  { %18243 = vmatmul.mubr.msk.bf16.vlgmr.msra.gmra.mrb[96].mxu1 %vm1291_vm2, %v12046_v40  ;;  %18249 = vmatmul.mubr.msk.bf16.vlgmr.msra.gmra.mrb[108].mxu0 %vm1291_vm2, %v12047_v45 }
0x183f   :  { %18254 = vmatprep.mubr.msk.bf16.mxu1 %vm18757_vm1, %v18756_v1  ;;  %18260 = vmatprep.mubr.msk.bf16.mxu0 %vm18757_vm1, %v18756_v1 }
0x1909   :  { %v12096_v8 = vpop.f32.mrb[92].mxu1  ;;  %v12143_v46 = vpop.f32.mrb[104].mxu0 }
0x190a   :  { %v12097_v32 = vadd.f32 %v19011_v18, %v12096_v8  ;;  %v18232_v42 = vpop.f32.mrb[93].mxu1  ;;  %v18238_v34 = vpop.f32.mrb[105].mxu0  ;;  %v12144_v17 = vadd.f32 %v19011_v18, %v12143_v46 }
0x190b   :  { %v12099_v30 = vpop.f32.mrb[94].mxu1  ;;  %v12146_v50 = vpop.f32.mrb[106].mxu0 }
0x190c   :  { %v12100_v25 = vadd.f32 %v19013_v19, %v12099_v30  ;;  %v18233_v5 = vpop.f32.mrb[95].mxu1  ;;  %v18239_v57 = vpop.f32.mrb[107].mxu0  ;;  %v12244_v48 = vsel %vm52_vm0, %v12097_v32, -inf  ;;  %v12147_v6 = vadd.f32 %v19013_v19, %v12146_v50  ;;  %v12250_v4 = vsel %vm52_vm0, %v12144_v17, -inf }
0x190d   :  { %12245 = vmax.xlane.f32.xlu0 %v12244_v48  ;;  %v11365_v48 = vcombine.high %v10911_v47, %v10923_v10 }
0x190e   :  { %v12247_v36 = vsel %vm52_vm0, %v12100_v25, -inf  ;;  %v12253_v60 = vsel %vm52_vm0, %v12147_v6, -inf }
0x190f   :  { %12248 = vmax.xlane.f32.xlu1 %v12247_v36 }
0x1911   :  { %v12237_v3 = vpop.f32.mrb[108].mxu0  ;;  %12251 = vmax.xlane.f32.xlu0 %v12250_v4  ;;  %v12190_v29 = vpop.f32.mrb[96].mxu1  ;;  %v11092_v4 = vcombine.low %v20965_v54, %v20969_v38 }
0x1912   :  { %v12191_v59 = vadd.f32 %v19011_v18, %v12190_v29  ;;  %v18244_v61 = vpop.f32.mrb[97].mxu1  ;;  %v18250_v63 = vpop.f32.mrb[109].mxu0  ;;  %v12238_v16 = vadd.f32 %v19011_v18, %v12237_v3 }
0x1913   :  { %v12193_v0 = vpop.f32.mrb[98].mxu1  ;;  %v12240_v13 = vpop.f32.mrb[110].mxu0 }
0x1914   :  { %v12194_v26 = vadd.f32 %v19013_v19, %v12193_v0  ;;  %v18245_v27 = vpop.f32.mrb[99].mxu1  ;;  %v18251_v23 = vpop.f32.mrb[111].mxu0  ;;  %v12256_v33 = vsel %vm52_vm0, %v12191_v59, -inf  ;;  %v20943_v62 = vadd.f32 %v19013_v19, %v12240_v13  ;;  %v12262_v53 = vsel %vm52_vm0, %v12238_v16, -inf }
0x1915   :  { %12254 = vmax.xlane.f32.xlu0 %v12253_v60  ;;  %12257 = vmax.xlane.f32.xlu1 %v12256_v33  ;;  %v11093_v13 = vcombine.high %v20965_v54, %v20969_v38  ;;  %v11379_v60 = vrot.slane %v11365_v48, %v18888_v24 }
0x1916   :  { %v12259_v55 = vsel %vm52_vm0, %v12194_v26, -inf  ;;  %v12265_v51 = vsel %vm52_vm0, %v20943_v62, -inf }
0x1919   :  { %12263 = vmax.xlane.f32.xlu1 %v12262_v53  ;;  %12260 = vmax.xlane.f32.xlu0 %v12259_v55  ;;  %v11100_v55 = vrot.slane %v11092_v4, %v18888_v24 }
0x191d   :  { %12266 = vmax.xlane.f32.xlu0 %v12265_v51 }
0x192a   :  { %10928 = vrot.lane.b32.xlu1 %v20795_v56, %s18770_s1 }
0x192e   :  { %10932 = vrot.lane.b32.xlu1 %v20793_v52, %s18771_s23 }
0x1932   :  { %10938 = vrot.lane.b32.xlu1 %v20793_v52, %s18772_s24 }
0x1933   :  { %10926 = vrot.lane.b32.xlu0 %v20793_v52, %s18770_s1 }
0x1936   :  { %10940 = vrot.lane.b32.xlu1 %v20795_v56, %s18772_s24 }
0x1937   :  { %10934 = vrot.lane.b32.xlu0 %v20795_v56, %s18771_s23 }
0x193a   :  { %10946 = vrot.lane.b32.xlu1 %v20795_v56, %s18773_s25 }
0x193b   :  { %10944 = vrot.lane.b32.xlu0 %v20793_v52, %s18773_s25 }
0x199a   :  { %v12246_v22 = vpop.xlane.xlu0 %12245 }
0x199b   :  { %v12268_v37 = vmax.f32 %v12246_v22, 0.0 }
0x199c   :  { %v12249_v21 = vpop.xlane.xlu1 %12248 }
0x199d   :  { %v12276_v11 = vsub.f32 %v12097_v32, %v12268_v37  ;;  %v12269_v14 = vmax.f32 %v12249_v21, 0.0 }
0x199e   :  { %v12252_v49 = vpop.xlane.xlu0 %12251 }
0x199f   :  { %v12284_v44 = vmul.f32 1.442695, %v12276_v11  ;;  %v12277_v12 = vsub.f32 %v12100_v25, %v12269_v14  ;;  %v12270_v2 = vmax.f32 %v12252_v49, 0.0  ;;  %v11364_v25 = vcombine.low %v10911_v47, %v10923_v10 }
0x19a1   :  { %18629 = vpow2.f32 %v12284_v44  ;;  %v12286_v20 = vmul.f32 1.442695, %v12277_v12  ;;  %v12278_v43 = vsub.f32 %v12144_v17, %v12270_v2  ;;  %v11372_v27 = vrot.slane %v11364_v25, %v18888_v24 }
0x19a2   :  { %v12255_v28 = vpop.xlane.xlu0 %12254  ;;  %v12258_v15 = vpop.xlane.xlu1 %12257 }
0x19a3   :  { %18631 = vpow2.f32 %v12286_v20  ;;  %v12288_v40 = vmul.f32 1.442695, %v12278_v43  ;;  %v12271_v45 = vmax.f32 %v12255_v28, 0.0  ;;  %v12272_v8 = vmax.f32 %v12258_v15, 0.0 }
0x19a4   :  { %v11107_v20 = vrot.slane %v11093_v13, %v18888_v24 }
0x19a5   :  { %18633 = vpow2.f32 %v12288_v40  ;;  %v12279_v46 = vsub.f32 %v12147_v6, %v12271_v45  ;;  %v12280_v42 = vsub.f32 %v12191_v59, %v12272_v8 }
0x19a6   :  { %v12264_v34 = vpop.xlane.xlu1 %12263  ;;  %v12261_v30 = vpop.xlane.xlu0 %12260 }
0x19a7   :  { %v12290_v32 = vmul.f32 1.442695, %v12279_v46  ;;  %v12292_v50 = vmul.f32 1.442695, %v12280_v42  ;;  %v12274_v5 = vmax.f32 %v12264_v34, 0.0  ;;  %v12273_v57 = vmax.f32 %v12261_v30, 0.0 }
0x19a9   :  { %18635 = vpow2.f32 %v12290_v32  ;;  %v12282_v36 = vsub.f32 %v12238_v16, %v12274_v5  ;;  %v12281_v17 = vsub.f32 %v12194_v26, %v12273_v57 }
0x19aa   :  { %18637 = vpow2.f32 %v12292_v50  ;;  %v10929_v3 = vpop.permute.xlu1 %10928  ;;  %v12267_v29 = vpop.xlane.xlu0 %12266 }
0x19ab   :  { %v20973_v61 = vpop.eup %18629  ;;  %v12296_v6 = vmul.f32 1.442695, %v12282_v36  ;;  %v12294_v59 = vmul.f32 1.442695, %v12281_v17  ;;  %v11380_v63 = vcombine.low %v10917_v39, %v10929_v3  ;;  %v11381_v0 = vcombine.high %v10917_v39, %v10929_v3 }
0x19ac   :  { %v12275_v23 = vmax.f32 %v12267_v29, 0.0  ;;  %v12300_v16 = vsel %vm52_vm0, %v20973_v61, 0.0 }
0x19ad   :  { %v20980_v26 = vpop.eup %18631  ;;  %18639 = vpow2.f32 %v12296_v6  ;;  %v11388_v33 = vrot.slane %v11380_v63, %v18888_v24  ;;  %v11395_v53 = vrot.slane %v11381_v0, %v18888_v24  ;;  %12301 = vadd.xlane.f32.xlu0 %v12300_v16 }
0x19ae   :  { %18641 = vpow2.f32 %v12294_v59  ;;  %v12283_v51 = vsub.f32 %v20943_v62, %v12275_v23  ;;  %v10927_v54 = vpop.permute.xlu0 %10926  ;;  %v12303_v38 = vsel %vm52_vm0, %v20980_v26, 0.0 }
0x19af   :  { %v20989_v39 = vpop.eup %18633  ;;  %v11428_v47 = vcombine.low %v11372_v27, %v11388_v33  ;;  %v11429_v10 = vcombine.high %v11372_v27, %v11388_v33  ;;  %v11444_v22 = vcombine.low %v11379_v60, %v11395_v53  ;;  %v11445_v37 = vcombine.high %v11379_v60, %v11395_v53  ;;  %12304 = vadd.xlane.f32.xlu1 %v12303_v38 }
0x19b0   :  { %v12298_v21 = vmul.f32 1.442695, %v12283_v51  ;;  %v11108_v11 = vcombine.low %v20967_v41, %v10927_v54  ;;  %v11109_v14 = vcombine.high %v20967_v41, %v10927_v54  ;;  %v12306_v49 = vsel %vm52_vm0, %v20989_v39, 0.0 }
0x19b1   :  { %v11436_v62 = vrot.slane %v11428_v47, %v18890_v31  ;;  %v11443_v44 = vrot.slane %v11429_v10, %v18890_v31  ;;  %v11452_v12 = vrot.slane %v11444_v22, %v18890_v31  ;;  %v11459_v2 = vrot.slane %v11445_v37, %v18890_v31  ;;  %12307 = vadd.xlane.f32.xlu0 %v12306_v49 }
0x19b2   :  { %18643 = vpow2.f32 %v12298_v21  ;;  %v11116_v43 = vrot.slane %v11108_v11, %v18888_v24  ;;  %v11123_v28 = vrot.slane %v11109_v14, %v18888_v24 }
0x19b3   :  { %v21002_v41 = vpop.eup %18635  ;;  %v17587_v15 = vcombine.low %v11436_v62, %v11443_v44  ;;  %v17589_v40 = vcombine.high %v11436_v62, %v11443_v44  ;;  %v17591_v45 = vcombine.low %v11452_v12, %v11459_v2  ;;  %v17593_v8 = vcombine.high %v11452_v12, %v11459_v2 }
0x19b4   :  { %v21004_v46 = vpop.eup %18637  ;;  %v11156_v42 = vcombine.low %v11100_v55, %v11116_v43  ;;  %v11157_v34 = vcombine.high %v11100_v55, %v11116_v43  ;;  %v11172_v30 = vcombine.low %v11107_v20, %v11123_v28  ;;  %v11173_v32 = vcombine.high %v11107_v20, %v11123_v28 }
0x19b5   :  { %v11916_v50 = vrot.slane %v17587_v15, %v18888_v24  ;;  %v11932_v5 = vrot.slane %v17589_v40, %v18888_v24  ;;  %v11948_v4 = vrot.slane %v17591_v45, %v18888_v24  ;;  %v11964_v3 = vrot.slane %v17593_v8, %v18888_v24 }
0x19b6   :  { %v11164_v57 = vrot.slane %v11156_v42, %v18890_v31  ;;  %v11171_v25 = vrot.slane %v11157_v34, %v18890_v31  ;;  %v11180_v48 = vrot.slane %v11172_v30, %v18890_v31  ;;  %v11187_v36 = vrot.slane %v11173_v32, %v18890_v31 }
0x19b7   :  { %v21012_v17 = vpop.eup %18639  ;;  %v12312_v29 = vsel %vm52_vm0, %v21004_v46, 0.0  ;;  %v12309_v6 = vsel %vm52_vm0, %v21002_v41, 0.0  ;;  %v11972_v51 = vcombine.low %v11916_v50, %v11932_v5  ;;  %v12004_v54 = vcombine.low %v11948_v4, %v11964_v3 }
0x19b8   :  { %v21020_v59 = vpop.eup %18641  ;;  %v17579_v63 = vcombine.low %v11164_v57, %v11171_v25  ;;  %v17581_v0 = vcombine.high %v11164_v57, %v11171_v25  ;;  %v17583_v13 = vcombine.low %v11180_v48, %v11187_v36  ;;  %v17585_v27 = vcombine.high %v11180_v48, %v11187_v36  ;;  %12313 = vadd.xlane.f32.xlu1 %v12312_v29 }
0x19b9   :  { %12310 = vadd.xlane.f32.xlu0 %v12309_v6  ;;  %v12318_v23 = vsel %vm52_vm0, %v21012_v17, 0.0  ;;  %v12315_v16 = vsel %vm52_vm0, %v21020_v59, 0.0  ;;  %v11980_v37 = vrot.slane %v11972_v51, %v18890_v31  ;;  %v12012_v49 = vrot.slane %v12004_v54, %v18890_v31 }
0x19ba   :  { %v11780_v60 = vrot.slane %v17579_v63, %v18888_v24  ;;  %v11796_v33 = vrot.slane %v17581_v0, %v18888_v24  ;;  %v11812_v53 = vrot.slane %v17583_v13, %v18888_v24  ;;  %v11828_v55 = vrot.slane %v17585_v27, %v18888_v24 }
0x19bb   :  { %v11973_v12 = vcombine.high %v11916_v50, %v11932_v5  ;;  %v12005_v2 = vcombine.high %v11948_v4, %v11964_v3  ;;  %v12036_v43 = vcombine.low %v11980_v37, %v12012_v49  ;;  %v12037_v15 = vcombine.high %v11980_v37, %v12012_v49 }
0x19bc   :  { %v18644_v38 = vpop.eup %18643  ;;  %12319 = vadd.xlane.f32.xlu1 %v12318_v23  ;;  %v11836_v47 = vcombine.low %v11780_v60, %v11796_v33  ;;  %v11868_v10 = vcombine.low %v11812_v53, %v11828_v55  ;;  %v11837_v22 = vcombine.high %v11780_v60, %v11796_v33  ;;  %v11869_v44 = vcombine.high %v11812_v53, %v11828_v55 }
0x19bd   :  { %12316 = vadd.xlane.f32.xlu0 %v12315_v16  ;;  %v12321_v21 = vsel %vm52_vm0, %v18644_v38, 0.0  ;;  %v11987_v45 = vrot.slane %v11973_v12, %v18890_v31  ;;  %v12019_v8 = vrot.slane %v12005_v2, %v18890_v31  ;;  %v12324_v5 = vpack.c.bf16 %v20980_v26, %v20973_v61 }
0x19be   :  { %v11844_v11 = vrot.slane %v11836_v47, %v18890_v31  ;;  %v11876_v14 = vrot.slane %v11868_v10, %v18890_v31  ;;  %v11851_v62 = vrot.slane %v11837_v22, %v18890_v31  ;;  %v11883_v40 = vrot.slane %v11869_v44, %v18890_v31 }
0x19bf   :  { %v12038_v57 = vcombine.low %v11987_v45, %v12019_v8  ;;  %v12039_v50 = vcombine.high %v11987_v45, %v12019_v8  ;;  %v12325_v25 = vpack.c.bf16 %v21002_v41, %v20989_v39  ;;  %v12326_v61 = vpack.c.bf16 %v21020_v59, %v21004_v46  ;;  %v10935_v39 = vpop.permute.xlu0 %10934 }
0x19c0   :  { %v11900_v20 = vcombine.low %v11844_v11, %v11876_v14  ;;  %v11901_v28 = vcombine.high %v11844_v11, %v11876_v14  ;;  %v11902_v30 = vcombine.low %v11851_v62, %v11883_v40  ;;  %v11903_v32 = vcombine.high %v11851_v62, %v11883_v40 }
0x19c1   :  { %12322 = vadd.xlane.f32.xlu0 %v12321_v21  ;;  %v12327_v26 = vpack.c.bf16 %v18644_v38, %v21012_v17 }
0x19c2   :  { %v12052_v42 = vpack.c.bf16 %v12036_v43, %v11900_v20  ;;  %v12053_v34 = vpack.c.bf16 %v12037_v15, %v11901_v28  ;;  %v12054_v48 = vpack.c.bf16 %v12038_v57, %v11902_v30  ;;  %v12055_v36 = vpack.c.bf16 %v12039_v50, %v11903_v32 }
0x19c3   :  { %v10945_v41 = vpop.permute.xlu0 %10944 }
0x19c4   :  { %18253 = vmatpush3.bf16.msra.mxu1 %v12052_v42  ;;  %18259 = vmatpush3.bf16.msra.mxu0 %v12053_v34 }
0x19c5   :  { %18264 = vmatprep.subr.bf16.mxu1 %v18756_v1  ;;  %18270 = vmatprep.subr.bf16.mxu0 %v18756_v1 }
0x19c7   :  { %18255 = vmatmul.mubr.msk.bf16.vlgmr.msra.gmra.mrb[100].mxu1 %vm52_vm0, %v12324_v5  ;;  %18261 = vmatmul.mubr.msk.bf16.vlgmr.msra.gmra.mrb[112].mxu0 %vm52_vm0, %v12325_v25 }
0x19c8   :  { %18265 = vmatpush3.bf16.msra.mxu1 %v12054_v48  ;;  %18271 = vmatpush3.bf16.msra.mxu0 %v12055_v36 }
0x19c9   :  { %18266 = vmatprep.mubr.msk.bf16.mxu1 %vm18757_vm1, %v18756_v1  ;;  %18272 = vmatprep.mubr.msk.bf16.mxu0 %vm18757_vm1, %v18756_v1 }
0x19ca   :  { %18283 = vmatprep.subr.bf16.mxu0 %v18756_v1  ;;  %18424 = vmatprep.subr.bf16.mxu1 %v18775_v9 }
0x19cd   :  { %10952 = vrot.lane.b32.xlu1 %v20795_v56, %s18774_s26  ;;  %v10933_v56 = vpop.permute.xlu1 %10932 }
0x19ce   :  { %v11125_v53 = vcombine.high %v10933_v56, %v10945_v41 }
0x19cf   :  { %18267 = vmatmul.mubr.msk.bf16.vlgmr.msra.gmra.mrb[104].mxu1 %vm52_vm0, %v12326_v61  ;;  %18273 = vmatmul.mubr.msk.bf16.vlgmr.msra.gmra.mrb[116].mxu0 %vm52_vm0, %v12327_v26 }
0x19d0   :  { %18287 = vmatprep.mubr.msk.bf16.mxu0 %vm18757_vm1, %v18756_v1  ;;  %18280 = vmatprep.mubr.msk.f32.mxu1 %vm18757_vm1, %v18756_v1  ;;  %v11139_v37 = vrot.slane %v11125_v53, %v18888_v24 }
0x19d1   :  { %v10939_v46 = vpop.permute.xlu1 %10938 }
0x19d5   :  { %v10941_v17 = vpop.permute.xlu1 %10940 }
0x19d7   :  { %10950 = vrot.lane.b32.xlu0 %v20793_v52, %s18774_s26  ;;  %v11124_v52 = vcombine.low %v10933_v56, %v10945_v41 }
0x19d9   :  { %v10947_v6 = vpop.permute.xlu1 %10946  ;;  %v11132_v22 = vrot.slane %v11124_v52, %v18888_v24 }
0x19da   :  { %v11396_v47 = vcombine.low %v10935_v39, %v10947_v6  ;;  %v11397_v10 = vcombine.high %v10935_v39, %v10947_v6 }
0x19dc   :  { %v11404_v20 = vrot.slane %v11396_v47, %v18888_v24  ;;  %v11411_v43 = vrot.slane %v11397_v10, %v18888_v24 }
0x1a3a   :  { %v12302_v4 = vpop.xlane.xlu0 %12301 }
0x1a3b   :  { %vm12504_vm13 = vcmp.gt.f32.partialorder %v12302_v4, 0.0 }
0x1a3c   :  { %v12305_v59 = vpop.xlane.xlu1 %12304  ;;  %v12512_v21 = vsel %vm12504_vm13, %v12302_v4, 1.0 }
0x1a3d   :  { %vm12505_vm3 = vcmp.gt.f32.partialorder %v12305_v59, 0.0  ;;  %18645 = vrcp.f32 %v12512_v21 }
0x1a3e   :  { %v12308_v3 = vpop.xlane.xlu0 %12307  ;;  %v12513_v11 = vsel %vm12505_vm3, %v12305_v59, 1.0 }
0x1a3f   :  { %vm12506_vm4 = vcmp.gt.f32.partialorder %v12308_v3, 0.0  ;;  %18647 = vrcp.f32 %v12513_v11 }
0x1a40   :  { %v12514_v28 = vsel %vm12506_vm4, %v12308_v3, 1.0 }
0x1a41   :  { %18649 = vrcp.f32 %v12514_v28 }
0x1a45   :  { %v12314_v0 = vpop.xlane.xlu1 %12313 }
0x1a46   :  { %v12311_v29 = vpop.xlane.xlu0 %12310  ;;  %vm12508_vm5 = vcmp.gt.f32.partialorder %v12314_v0, 0.0 }
0x1a47   :  { %vm12507_vm6 = vcmp.gt.f32.partialorder %v12311_v29, 0.0  ;;  %v12516_v57 = vsel %vm12508_vm5, %v12314_v0, 1.0 }
0x1a48   :  { %v12515_v50 = vsel %vm12507_vm6, %v12311_v29, 1.0  ;;  %18651 = vrcp.f32 %v12516_v57 }
0x1a49   :  { %v12320_v27 = vpop.xlane.xlu1 %12319  ;;  %18653 = vrcp.f32 %v12515_v50 }
0x1a4a   :  { %v12317_v63 = vpop.xlane.xlu0 %12316  ;;  %vm12510_vm7 = vcmp.gt.f32.partialorder %v12320_v27, 0.0 }
0x1a4b   :  { %vm12509_vm8 = vcmp.gt.f32.partialorder %v12317_v63, 0.0  ;;  %v12518_v41 = vsel %vm12510_vm7, %v12320_v27, 1.0 }
0x1a4c   :  { %v12517_v4 = vsel %vm12509_vm8, %v12317_v63, 1.0  ;;  %18655 = vrcp.f32 %v12518_v41 }
0x1a4d   :  { %v10953_v16 = vpop.permute.xlu1 %10952  ;;  %18657 = vrcp.f32 %v12517_v4 }
0x1a4e   :  { %v21066_v13 = vpop.xlane.xlu0 %12322  ;;  %v11412_v55 = vcombine.low %v10941_v17, %v10953_v16  ;;  %v11413_v51 = vcombine.high %v10941_v17, %v10953_v16 }
0x1a4f   :  { %vm12511_vm9 = vcmp.gt.f32.partialorder %v21066_v13, 0.0 }
0x1a50   :  { %v11420_v14 = vrot.slane %v11412_v55, %v18888_v24  ;;  %v11427_v49 = vrot.slane %v11413_v51, %v18888_v24  ;;  %v12519_v27 = vsel %vm12511_vm9, %v21066_v13, 1.0 }
0x1a51   :  { %18659 = vrcp.f32 %v12519_v27 }
0x1a52   :  { %v10951_v23 = vpop.permute.xlu0 %10950  ;;  %v11460_v15 = vcombine.low %v11404_v20, %v11420_v14  ;;  %v11461_v40 = vcombine.high %v11404_v20, %v11420_v14  ;;  %v11476_v45 = vcombine.low %v11411_v43, %v11427_v49  ;;  %v11477_v8 = vcombine.high %v11411_v43, %v11427_v49 }
0x1a53   :  { %v11140_v60 = vcombine.low %v10939_v46, %v10951_v23  ;;  %v11141_v33 = vcombine.high %v10939_v46, %v10951_v23  ;;  %v18646_v46 = vpop.eup %18645 }
0x1a54   :  { %v11468_v5 = vrot.slane %v11460_v15, %v18890_v31  ;;  %v11475_v25 = vrot.slane %v11461_v40, %v18890_v31  ;;  %v11484_v48 = vrot.slane %v11476_v45, %v18890_v31  ;;  %v11491_v36 = vrot.slane %v11477_v8, %v18890_v31  ;;  %v18648_v59 = vpop.eup %18647 }
0x1a55   :  { %v11148_v54 = vrot.slane %v11140_v60, %v18888_v24  ;;  %v11155_v38 = vrot.slane %v11141_v33, %v18888_v24  ;;  %v18650_v63 = vpop.eup %18649 }
0x1a56   :  { %v17588_v3 = vcombine.low %v11468_v5, %v11475_v25  ;;  %v17590_v17 = vcombine.high %v11468_v5, %v11475_v25  ;;  %v17592_v29 = vcombine.low %v11484_v48, %v11491_v36  ;;  %v17594_v6 = vcombine.high %v11484_v48, %v11491_v36  ;;  %v18652_v14 = vpop.eup %18651 }
0x1a57   :  { %v11188_v62 = vcombine.low %v11132_v22, %v11148_v54  ;;  %v11189_v44 = vcombine.high %v11132_v22, %v11148_v54  ;;  %v11204_v12 = vcombine.low %v11139_v37, %v11155_v38  ;;  %v11205_v2 = vcombine.high %v11139_v37, %v11155_v38 }
0x1a58   :  { %v11923_v33 = vrot.slane %v17588_v3, %v18888_v24  ;;  %v11939_v52 = vrot.slane %v17590_v17, %v18888_v24  ;;  %v11955_v53 = vrot.slane %v17592_v29, %v18888_v24  ;;  %v11971_v55 = vrot.slane %v17594_v6, %v18888_v24 }
0x1a59   :  { %v11196_v42 = vrot.slane %v11188_v62, %v18890_v31  ;;  %v11203_v34 = vrot.slane %v11189_v44, %v18890_v31  ;;  %v11212_v30 = vrot.slane %v11204_v12, %v18890_v31  ;;  %v11219_v32 = vrot.slane %v11205_v2, %v18890_v31  ;;  %v18654_v2 = vpop.eup %18653 }
0x1a5a   :  { %v11988_v49 = vcombine.low %v11923_v33, %v11939_v52  ;;  %v12020_v62 = vcombine.low %v11955_v53, %v11971_v55  ;;  %v11989_v28 = vcombine.high %v11923_v33, %v11939_v52  ;;  %v12021_v15 = vcombine.high %v11955_v53, %v11971_v55 }
0x1a5b   :  { %v17580_v61 = vcombine.low %v11196_v42, %v11203_v34  ;;  %v17582_v26 = vcombine.high %v11196_v42, %v11203_v34  ;;  %v17584_v39 = vcombine.low %v11212_v30, %v11219_v32  ;;  %v17586_v56 = vcombine.high %v11212_v30, %v11219_v32  ;;  %v18656_v34 = vpop.eup %18655 }
0x1a5c   :  { %v11996_v30 = vrot.slane %v11988_v49, %v18890_v31  ;;  %v12028_v32 = vrot.slane %v12020_v62, %v18890_v31  ;;  %v18658_v57 = vpop.eup %18657  ;;  %v12003_v36 = vrot.slane %v11989_v28, %v18890_v31 }
0x1a5d   :  { %v11787_v0 = vrot.slane %v17580_v61, %v18888_v24  ;;  %v11803_v23 = vrot.slane %v17582_v26, %v18888_v24  ;;  %v11819_v16 = vrot.slane %v17584_v39, %v18888_v24  ;;  %v11835_v60 = vrot.slane %v17586_v56, %v18888_v24  ;;  %v18660_v3 = vpop.eup %18659 }
0x1a5e   :  { %v12035_v61 = vrot.slane %v12021_v15, %v18890_v31  ;;  %v12040_v55 = vcombine.low %v11996_v30, %v12028_v32 }
0x1a5f   :  { %v11852_v51 = vcombine.low %v11787_v0, %v11803_v23  ;;  %v11884_v54 = vcombine.low %v11819_v16, %v11835_v60  ;;  %v11853_v37 = vcombine.high %v11787_v0, %v11803_v23  ;;  %v11885_v21 = vcombine.high %v11819_v16, %v11835_v60 }
0x1a61   :  { %v11860_v20 = vrot.slane %v11852_v51, %v18890_v31  ;;  %v11892_v43 = vrot.slane %v11884_v54, %v18890_v31  ;;  %v11867_v40 = vrot.slane %v11853_v37, %v18890_v31  ;;  %v11899_v45 = vrot.slane %v11885_v21, %v18890_v31 }
0x1a62   :  { %v12041_v51 = vcombine.high %v11996_v30, %v12028_v32  ;;  %v12042_v54 = vcombine.low %v12003_v36, %v12035_v61 }
0x1a63   :  { %v11904_v50 = vcombine.low %v11860_v20, %v11892_v43  ;;  %v11905_v5 = vcombine.high %v11860_v20, %v11892_v43  ;;  %v11906_v26 = vcombine.low %v11867_v40, %v11899_v45  ;;  %v11907_v56 = vcombine.high %v11867_v40, %v11899_v45 }
0x1a9a   :  { %v12365_v38 = vpop.f32.mrb[100].mxu1  ;;  %v12409_v47 = vpop.f32.mrb[112].mxu0 }
0x1a9b   :  { %v18256_v10 = vpop.f32.mrb[101].mxu1  ;;  %v18262_v22 = vpop.f32.mrb[113].mxu0  ;;  %v12528_v8 = vmul.f32 %v18646_v46, %v12365_v38  ;;  %v12530_v42 = vmul.f32 %v18650_v63, %v12409_v47  ;;  %v12043_v38 = vcombine.high %v12003_v36, %v12035_v61 }
0x1a9c   :  { %v12368_v13 = vpop.f32.mrb[102].mxu1  ;;  %v12412_v11 = vpop.f32.mrb[114].mxu0 }
0x1a9d   :  { %v18257_v44 = vpop.f32.mrb[103].mxu1  ;;  %v18263_v12 = vpop.f32.mrb[115].mxu0  ;;  %v12536_v17 = vadd.f32 %v12528_v8, %v11904_v50  ;;  %v12538_v29 = vadd.f32 %v12530_v42, %v11905_v5  ;;  %v12529_v6 = vmul.f32 %v18648_v59, %v12368_v13  ;;  %v12531_v0 = vmul.f32 %v18654_v2, %v12412_v11 }
0x1a9f   :  { %v12537_v21 = vadd.f32 %v12529_v6, %v12040_v55 }
0x1aa2   :  { %v12453_v25 = vpop.f32.mrb[104].mxu1  ;;  %v12497_v48 = vpop.f32.mrb[116].mxu0 }
0x1aa3   :  { %v12532_v39 = vmul.f32 %v18652_v14, %v12453_v25  ;;  %v12534_v41 = vmul.f32 %v18656_v34, %v12497_v48  ;;  %v18268_v4 = vpop.f32.mrb[105].mxu1  ;;  %v18274_v46 = vpop.f32.mrb[117].mxu0  ;;  %v12539_v14 = vadd.f32 %v12531_v0, %v12041_v51 }
0x1aa4   :  { %v12456_v23 = vpop.f32.mrb[106].mxu1  ;;  %v12500_v16 = vpop.f32.mrb[118].mxu0 }
0x1aa5   :  { %v12540_v60 = vadd.f32 %v12532_v39, %v11906_v26  ;;  %v12542_v27 = vadd.f32 %v12534_v41, %v11907_v56  ;;  %v12533_v63 = vmul.f32 %v18658_v57, %v12456_v23  ;;  %v12535_v33 = vmul.f32 %v18660_v3, %v12500_v16  ;;  %v18269_v52 = vpop.f32.mrb[107].mxu1  ;;  %v18275_v53 = vpop.f32.mrb[119].mxu0 }
0x1aa7   :  { %v12544_v47 = vcombine.low %v12536_v17, %v12540_v60  ;;  %v12545_v10 = vcombine.high %v12536_v17, %v12540_v60  ;;  %v12560_v22 = vcombine.low %v12538_v29, %v12542_v27  ;;  %v12561_v37 = vcombine.high %v12538_v29, %v12542_v27 }
0x1aa8   :  { %v12541_v59 = vadd.f32 %v12533_v63, %v12042_v54  ;;  %v12543_v13 = vadd.f32 %v12535_v33, %v12043_v38 }
0x1aa9   :  { %v12552_v11 = vrot.slane %v12544_v47, %v18888_v24  ;;  %v12559_v49 = vrot.slane %v12545_v10, %v18888_v24  ;;  %v12568_v62 = vrot.slane %v12560_v22, %v18888_v24  ;;  %v12575_v44 = vrot.slane %v12561_v37, %v18888_v24 }
0x1aaa   :  { %v12612_v12 = vcombine.low %v12537_v21, %v12541_v59  ;;  %v12613_v2 = vcombine.high %v12537_v21, %v12541_v59  ;;  %v12628_v20 = vcombine.low %v12539_v14, %v12543_v13  ;;  %v12629_v43 = vcombine.high %v12539_v14, %v12543_v13 }
0x1aab   :  { %v12576_v28 = vcombine.low %v12552_v11, %v12568_v62  ;;  %v12577_v15 = vcombine.high %v12552_v11, %v12568_v62  ;;  %v12592_v40 = vcombine.low %v12559_v49, %v12575_v44  ;;  %v12593_v45 = vcombine.high %v12559_v49, %v12575_v44 }
0x1aac   :  { %v12620_v8 = vrot.slane %v12612_v12, %v18888_v24  ;;  %v12627_v42 = vrot.slane %v12613_v2, %v18888_v24  ;;  %v12636_v34 = vrot.slane %v12628_v20, %v18888_v24  ;;  %v12643_v30 = vrot.slane %v12629_v43, %v18888_v24 }
0x1aad   :  { %v12584_v32 = vrot.slane %v12576_v28, %v18890_v31  ;;  %v12591_v57 = vrot.slane %v12577_v15, %v18890_v31  ;;  %v12600_v50 = vrot.slane %v12592_v40, %v18890_v31  ;;  %v12607_v5 = vrot.slane %v12593_v45, %v18890_v31 }
0x1aae   :  { %v12644_v25 = vcombine.low %v12620_v8, %v12636_v34  ;;  %v12645_v48 = vcombine.high %v12620_v8, %v12636_v34  ;;  %v12660_v36 = vcombine.low %v12627_v42, %v12643_v30  ;;  %v12661_v61 = vcombine.high %v12627_v42, %v12643_v30  ;;  %v18465_v42 = vld [vmem:[%s21978_s4 + $0x50] sm:$0xff]   ;;  %v18466_v34 = vld [vmem:[%s21978_s4 + $0x58] sm:$0xff]  }
0x1aaf   :  { %v12680_v26 = vcombine.low %v12584_v32, %v12591_v57  ;;  %v17603_v39 = vcombine.high %v12584_v32, %v12591_v57  ;;  %v12696_v56 = vcombine.low %v12600_v50, %v12607_v5  ;;  %v17604_v41 = vcombine.high %v12600_v50, %v12607_v5  ;;  %18284 = vmatpush3.bf16.msra.mxu0 %v18465_v42 }
0x1ab0   :  { %v12652_v4 = vrot.slane %v12644_v25, %v18890_v31  ;;  %v12659_v46 = vrot.slane %v12645_v48, %v18890_v31  ;;  %v12668_v3 = vrot.slane %v12660_v36, %v18890_v31  ;;  %v12675_v17 = vrot.slane %v12661_v61, %v18890_v31  ;;  %18285 = vmatprep.subr.bf16.mxu0 %v18756_v1  ;;  %v17608_v25 = vld [vmem:[%s21980_s6 + $0x5] ss:$0 sm:$0xff] }
0x1ab1   :  { %v12687_v29 = vrot.slane %v12680_v26, %v18888_v24  ;;  %v12695_v6 = vrot.slane %v17603_v39, %v18888_v24  ;;  %v12703_v0 = vrot.slane %v12696_v56, %v18888_v24  ;;  %v12711_v23 = vrot.slane %v17604_v41, %v18888_v24  ;;  %v17610_v39 = vld [vmem:[%s21981_s7 + $0x5] ss:$0 sm:$0xff] }
0x1ab2   :  { %v12748_v16 = vcombine.low %v12652_v4, %v12659_v46  ;;  %v17605_v60 = vcombine.high %v12652_v4, %v12659_v46  ;;  %v12764_v27 = vcombine.low %v12668_v3, %v12675_v17  ;;  %v17606_v63 = vcombine.high %v12668_v3, %v12675_v17 }
0x1ab3   :  { %v12712_v33 = vcombine.low %v12687_v29, %v12695_v6  ;;  %v12728_v52 = vcombine.low %v12703_v0, %v12711_v23  ;;  %v12713_v53 = vcombine.high %v12687_v29, %v12695_v6  ;;  %v12729_v55 = vcombine.high %v12703_v0, %v12711_v23  ;;  %18286 = vmatpush3.bf16.msra.mxu0 %v18466_v34 }
0x1ab4   :  { %v12755_v51 = vrot.slane %v12748_v16, %v18888_v24  ;;  %v12763_v54 = vrot.slane %v17605_v60, %v18888_v24  ;;  %v12771_v38 = vrot.slane %v12764_v27, %v18888_v24  ;;  %v12779_v47 = vrot.slane %v17606_v63, %v18888_v24  ;;  %18297 = vmatprep.subr.bf16.mxu0 %v18756_v1  ;;  %v18729_v16 = vld [vmem:[%s21976_s2] sm:$0x3]  ;;  %v17617_v60 = vld [vmem:[%s21979_s5 + $0x6] ss:$0 sm:$0xff] }
0x1ab5   :  { %v12720_v10 = vrot.slane %v12712_v33, %v18890_v31  ;;  %v12736_v22 = vrot.slane %v12728_v52, %v18890_v31  ;;  %v12727_v37 = vrot.slane %v12713_v53, %v18890_v31  ;;  %v12743_v21 = vrot.slane %v12729_v55, %v18890_v31 }
0x1ab6   :  { %v12780_v14 = vcombine.low %v12755_v51, %v12763_v54  ;;  %v12796_v59 = vcombine.low %v12771_v38, %v12779_v47  ;;  %v12781_v13 = vcombine.high %v12755_v51, %v12763_v54  ;;  %v12797_v11 = vcombine.high %v12771_v38, %v12779_v47 }
0x1ab7   :  { %v12745_v49 = vcombine.high %v12720_v10, %v12736_v22  ;;  %v12746_v62 = vcombine.low %v12727_v37, %v12743_v21  ;;  %v12747_v44 = vcombine.high %v12727_v37, %v12743_v21  ;;  %v12744_v12 = vcombine.low %v12720_v10, %v12736_v22 }
0x1ab8   :  { %v12788_v2 = vrot.slane %v12780_v14, %v18890_v31  ;;  %v12804_v20 = vrot.slane %v12796_v59, %v18890_v31  ;;  %v12795_v43 = vrot.slane %v12781_v13, %v18890_v31  ;;  %v12811_v28 = vrot.slane %v12797_v11, %v18890_v31 }
0x1ab9   :  { %12818 = vrot.lane.b32.xlu0 %v12745_v49, %s18774_s26 }
0x1aba   :  { %v12813_v15 = vcombine.high %v12788_v2, %v12804_v20  ;;  %v12814_v40 = vcombine.low %v12795_v43, %v12811_v28  ;;  %v12815_v45 = vcombine.high %v12795_v43, %v12811_v28  ;;  %v12812_v8 = vcombine.low %v12788_v2, %v12804_v20 }
0x1abc   :  { %12820 = vrot.lane.b32.xlu1 %v12813_v15, %s18774_s26 }
0x1abd   :  { %12826 = vrot.lane.b32.xlu0 %v12746_v62, %s18773_s25 }
0x1ac0   :  { %12828 = vrot.lane.b32.xlu1 %v12814_v40, %s18773_s25 }
0x1ac1   :  { %12834 = vrot.lane.b32.xlu0 %v12747_v44, %s18772_s24 }
0x1ac4   :  { %12836 = vrot.lane.b32.xlu1 %v12815_v45, %s18772_s24 }
0x1b2b   :  { %v12819_v30 = vpop.permute.xlu0 %12818 }
0x1b2c   :  { %v12840_v50 = vsel %vm1291_vm2, %v12744_v12, %v12819_v30 }
0x1b2e   :  { %v12821_v32 = vpop.permute.xlu1 %12820 }
0x1b2f   :  { %v12827_v57 = vpop.permute.xlu0 %12826  ;;  %v12841_v26 = vsel %vm1291_vm2, %v12812_v8, %v12821_v32 }
0x1b30   :  { %v12842_v48 = vsel %vm52_vm0, %v12840_v50, %v12827_v57 }
0x1b32   :  { %v12829_v5 = vpop.permute.xlu1 %12828 }
0x1b33   :  { %v12835_v36 = vpop.permute.xlu0 %12834  ;;  %v12843_v41 = vsel %vm52_vm0, %v12841_v26, %v12829_v5 }
0x1b34   :  { %v12844_v61 = vsel %vm2080_vm11, %v12842_v48, %v12835_v36 }
0x1b35   :  { %v12854_v56 = vmul.f32 %v17608_v25, %v12844_v61 }
0x1b36   :  { %v12837_v4 = vpop.permute.xlu1 %12836 }
0x1b37   :  { %v12845_v46 = vsel %vm2080_vm11, %v12843_v41, %v12837_v4  ;;  %v12864_v3 = vadd.f32 %v17610_v39, %v12854_v56 }
0x1b38   :  { %v12855_v17 = vmul.f32 %v17608_v25, %v12845_v46 }
0x1b39   :  { %v12866_v6 = vmax.f32 %v12864_v3, 0.0 }
0x1b3a   :  { %v12865_v29 = vadd.f32 %v17610_v39, %v12855_v17 }
0x1b3c   :  { %v12867_v0 = vmax.f32 %v12865_v29, 0.0 }
0x1b3e   :  { %v18425_v23 = vpack.c.bf16 %v12867_v0, %v12866_v6 }
0x1b40   :  { %18426 = vmatpush3.bf16.msra.mxu1 %v18425_v23  ;;  %18288 = vmatmul.mubr.msk.bf16.vlgmr.msra.gmra.mrb[120].mxu0 %vm2203_vm12, %v18425_v23 }
0x1b41   :  { %18291 = vmatprep.subr.bf16.mxu1 %v18756_v1  ;;  %18299 = vmatprep.mubr.msk.bf16.mxu0 %vm18757_vm1, %v18756_v1 }
0x1b43   :  { %18281 = vmatmul.mubr.msk.f32.vlgmr.msra.gmra.mrb[90].mxu1 %vm52_vm0, %v18729_v16 }
0x1b44   :  { %18293 = vmatprep.mubr.msk.bf16.mxu1 %vm18757_vm1, %v18756_v1 }
0x1c13   :  { %v13013_v27 = vpop.f32.mrb[120].mxu0 }
0x1c14   :  { %v21173_v63 = vadd.f32 %v17617_v60, %v13013_v27  ;;  %v18289_v33 = vpop.f32.mrb[121].mxu0 }
0x1c15   :  { %v13016_v52 = vpop.f32.mrb[122].mxu0 }
0x1c16   :  { %v21175_v53 = vadd.f32 %v17617_v60, %v13016_v52  ;;  %13040 = vrot.lane.b32.xlu0 %v21173_v63, %s18759_s12  ;;  %v18290_v55 = vpop.f32.mrb[123].mxu0  ;;  %v21217_v51 = vpop.f32.mrb[90].mxu1 }
0x1c17   :  { %v18282_v54 = vpop.f32.mrb[91].mxu1 }
0x1c18   :  { %13042 = vrot.lane.b32.xlu1 %v21175_v53, %s18759_s12 }
0x1c1a   :  { %13046 = vrot.lane.b32.xlu0 %v21173_v63, %s18758_s11 }
0x1c1c   :  { %13048 = vrot.lane.b32.xlu1 %v21175_v53, %s18758_s11 }
0x1c1e   :  { %13052 = vrot.lane.b32.xlu0 %v21173_v63, %s18760_s13 }
0x1c20   :  { %13054 = vrot.lane.b32.xlu1 %v21175_v53, %s18760_s13 }
0x1c22   :  { %13058 = vrot.lane.b32.xlu0 %v21173_v63, %s18761_s14 }
0x1c24   :  { %13060 = vrot.lane.b32.xlu1 %v21175_v53, %s18761_s14 }
0x1c26   :  { %13022 = vrot.lane.b32.xlu0 %v21173_v63, %s18762_s15 }
0x1c28   :  { %13024 = vrot.lane.b32.xlu1 %v21175_v53, %s18762_s15 }
0x1c2a   :  { %13028 = vrot.lane.b32.xlu0 %v21173_v63, %s18763_s16 }
0x1c2c   :  { %13030 = vrot.lane.b32.xlu1 %v21175_v53, %s18763_s16 }
0x1c2e   :  { %13034 = vrot.lane.b32.xlu0 %v21173_v63, %s18764_s17 }
0x1c30   :  { %13036 = vrot.lane.b32.xlu1 %v21175_v53, %s18764_s17 }
0x1c32   :  { %13076 = vrot.lane.b32.xlu0 %v21173_v63, %s18766_s19 }
0x1c34   :  { %13064 = vrot.lane.b32.xlu1 %v21173_v63, %s18765_s18 }
0x1c36   :  { %13066 = vrot.lane.b32.xlu0 %v21175_v53, %s18765_s18 }
0x1c38   :  { %13070 = vrot.lane.b32.xlu1 %v21173_v63, %s18767_s20 }
0x1c3c   :  { %13072 = vrot.lane.b32.xlu1 %v21175_v53, %s18767_s20 }
0x1c40   :  { %13078 = vrot.lane.b32.xlu1 %v21175_v53, %s18766_s19 }
0x1c88   :  { %v13041_v38 = vpop.permute.xlu0 %13040 }
0x1c8a   :  { %v13043_v47 = vpop.permute.xlu1 %13042 }
0x1c8c   :  { %v13047_v10 = vpop.permute.xlu0 %13046 }
0x1c8e   :  { %v13049_v22 = vpop.permute.xlu1 %13048 }
0x1c90   :  { %v13053_v37 = vpop.permute.xlu0 %13052 }
0x1c91   :  { %v13144_v11 = vcombine.low %v13041_v38, %v13053_v37  ;;  %v13145_v62 = vcombine.high %v13041_v38, %v13053_v37 }
0x1c92   :  { %v13055_v21 = vpop.permute.xlu1 %13054 }
0x1c93   :  { %v13416_v20 = vcombine.low %v13043_v47, %v13055_v21  ;;  %v13152_v28 = vrot.slane %v13144_v11, %v18888_v24  ;;  %v13159_v45 = vrot.slane %v13145_v62, %v18888_v24  ;;  %v13417_v8 = vcombine.high %v13043_v47, %v13055_v21 }
0x1c94   :  { %v13059_v14 = vpop.permute.xlu0 %13058 }
0x1c95   :  { %v13160_v59 = vcombine.low %v13047_v10, %v13059_v14  ;;  %v13161_v13 = vcombine.high %v13047_v10, %v13059_v14  ;;  %v13424_v57 = vrot.slane %v13416_v20, %v18888_v24  ;;  %v13431_v36 = vrot.slane %v13417_v8, %v18888_v24 }
0x1c96   :  { %v13061_v49 = vpop.permute.xlu1 %13060 }
0x1c97   :  { %v13432_v44 = vcombine.low %v13049_v22, %v13061_v49  ;;  %v13168_v12 = vrot.slane %v13160_v59, %v18888_v24  ;;  %v13175_v43 = vrot.slane %v13161_v13, %v18888_v24  ;;  %v13433_v15 = vcombine.high %v13049_v22, %v13061_v49 }
0x1c98   :  { %v13023_v2 = vpop.permute.xlu0 %13022 }
0x1c99   :  { %v13440_v42 = vrot.slane %v13432_v44, %v18888_v24  ;;  %v13208_v34 = vcombine.low %v13152_v28, %v13168_v12  ;;  %v13209_v30 = vcombine.high %v13152_v28, %v13168_v12  ;;  %v13224_v50 = vcombine.low %v13159_v45, %v13175_v43 }
0x1c9a   :  { %v13025_v40 = vpop.permute.xlu1 %13024  ;;  %v13225_v5 = vcombine.high %v13159_v45, %v13175_v43  ;;  %v13447_v25 = vrot.slane %v13433_v15, %v18888_v24 }
0x1c9b   :  { %v13480_v61 = vcombine.low %v13424_v57, %v13440_v42  ;;  %v13481_v26 = vcombine.high %v13424_v57, %v13440_v42  ;;  %v13216_v39 = vrot.slane %v13208_v34, %v18890_v31  ;;  %v13223_v56 = vrot.slane %v13209_v30, %v18890_v31 }
0x1c9c   :  { %v13029_v32 = vpop.permute.xlu0 %13028  ;;  %v13232_v3 = vrot.slane %v13224_v50, %v18890_v31  ;;  %v13239_v17 = vrot.slane %v13225_v5, %v18890_v31  ;;  %v13496_v0 = vcombine.low %v13431_v36, %v13447_v25  ;;  %v13497_v23 = vcombine.high %v13431_v36, %v13447_v25 }
0x1c9d   :  { %v13112_v41 = vcombine.low %v21173_v63, %v13029_v32  ;;  %v13113_v4 = vcombine.high %v21173_v63, %v13029_v32  ;;  %v13488_v33 = vrot.slane %v13480_v61, %v18890_v31  ;;  %v13495_v52 = vrot.slane %v13481_v26, %v18890_v31 }
0x1c9e   :  { %v13031_v48 = vpop.permute.xlu1 %13030  ;;  %v17622_v43 = vcombine.low %v13216_v39, %v13223_v56  ;;  %v17624_v28 = vcombine.high %v13216_v39, %v13223_v56  ;;  %v17626_v15 = vcombine.low %v13232_v3, %v13239_v17  ;;  %v13504_v5 = vrot.slane %v13496_v0, %v18890_v31 }
0x1c9f   :  { %v13384_v29 = vcombine.low %v21175_v53, %v13031_v48  ;;  %v13385_v6 = vcombine.high %v21175_v53, %v13031_v48  ;;  %v13120_v38 = vrot.slane %v13112_v41, %v18888_v24  ;;  %v13127_v47 = vrot.slane %v13113_v4, %v18888_v24 }
0x1ca0   :  { %v13035_v46 = vpop.permute.xlu0 %13034  ;;  %v13511_v25 = vrot.slane %v13497_v23, %v18890_v31  ;;  %v17630_v48 = vcombine.low %v13488_v33, %v13495_v52  ;;  %v17632_v36 = vcombine.high %v13488_v33, %v13495_v52  ;;  %v13671_v41 = vrot.slane %v17622_v43, %v18888_v24 }
0x1ca1   :  { %v13128_v16 = vcombine.low %v13023_v2, %v13035_v46  ;;  %v13129_v60 = vcombine.high %v13023_v2, %v13035_v46  ;;  %v13392_v37 = vrot.slane %v13384_v29, %v18888_v24  ;;  %v13399_v21 = vrot.slane %v13385_v6, %v18888_v24 }
0x1ca2   :  { %v13037_v27 = vpop.permute.xlu1 %13036  ;;  %v13687_v4 = vrot.slane %v17624_v28, %v18888_v24  ;;  %v13703_v46 = vrot.slane %v17626_v15, %v18888_v24  ;;  %v17636_v23 = vcombine.high %v13504_v5, %v13511_v25 }
0x1ca3   :  { %v13400_v55 = vcombine.low %v13025_v40, %v13037_v27  ;;  %v13401_v54 = vcombine.high %v13025_v40, %v13037_v27  ;;  %v13136_v10 = vrot.slane %v13128_v16, %v18888_v24  ;;  %v13143_v22 = vrot.slane %v13129_v60, %v18888_v24 }
0x1ca4   :  { %v17628_v40 = vcombine.high %v13232_v3, %v13239_v17  ;;  %v17634_v16 = vcombine.low %v13504_v5, %v13511_v25  ;;  %v13807_v60 = vrot.slane %v17630_v48, %v18888_v24  ;;  %v13823_v27 = vrot.slane %v17632_v36, %v18888_v24 }
0x1ca5   :  { %v13408_v14 = vrot.slane %v13400_v55, %v18888_v24  ;;  %v13415_v59 = vrot.slane %v13401_v54, %v18888_v24  ;;  %v13176_v13 = vcombine.low %v13120_v38, %v13136_v10  ;;  %v13177_v11 = vcombine.high %v13120_v38, %v13136_v10 }
0x1ca6   :  { %v13192_v49 = vcombine.low %v13127_v47, %v13143_v22  ;;  %v13193_v62 = vcombine.high %v13127_v47, %v13143_v22  ;;  %v13719_v3 = vrot.slane %v17628_v40, %v18888_v24  ;;  %v13736_v38 = vcombine.low %v13671_v41, %v13687_v4 }
0x1ca7   :  { %v13448_v44 = vcombine.low %v13392_v37, %v13408_v14  ;;  %v13449_v12 = vcombine.high %v13392_v37, %v13408_v14  ;;  %v13464_v2 = vcombine.low %v13399_v21, %v13415_v59  ;;  %v13465_v20 = vcombine.high %v13399_v21, %v13415_v59 }
0x1ca8   :  { %v13184_v30 = vrot.slane %v13176_v13, %v18890_v31  ;;  %v13191_v32 = vrot.slane %v13177_v11, %v18890_v31  ;;  %v13200_v57 = vrot.slane %v13192_v49, %v18890_v31  ;;  %v13207_v50 = vrot.slane %v13193_v62, %v18890_v31 }
0x1ca9   :  { %v13456_v45 = vrot.slane %v13448_v44, %v18890_v31  ;;  %v13463_v8 = vrot.slane %v13449_v12, %v18890_v31  ;;  %v13472_v42 = vrot.slane %v13464_v2, %v18890_v31  ;;  %v13479_v34 = vrot.slane %v13465_v20, %v18890_v31 }
0x1caa   :  { %v17621_v17 = vcombine.low %v13184_v30, %v13191_v32  ;;  %v17623_v29 = vcombine.high %v13184_v30, %v13191_v32  ;;  %v17625_v6 = vcombine.low %v13200_v57, %v13207_v50  ;;  %v17627_v0 = vcombine.high %v13200_v57, %v13207_v50 }
0x1cab   :  { %v17629_v61 = vcombine.low %v13456_v45, %v13463_v8  ;;  %v17631_v26 = vcombine.high %v13456_v45, %v13463_v8  ;;  %v17633_v39 = vcombine.low %v13472_v42, %v13479_v34  ;;  %v17635_v56 = vcombine.high %v13472_v42, %v13479_v34 }
0x1cac   :  { %v13768_v47 = vcombine.low %v13703_v46, %v13719_v3  ;;  %v13664_v10 = vrot.slane %v17621_v17, %v18888_v24  ;;  %v13680_v22 = vrot.slane %v17623_v29, %v18888_v24  ;;  %v13696_v37 = vrot.slane %v17625_v6, %v18888_v24 }
0x1cad   :  { %v21262_v33 = vrot.slane %v17629_v61, %v18888_v24  ;;  %v13816_v52 = vrot.slane %v17631_v26, %v18888_v24  ;;  %v13832_v55 = vrot.slane %v17633_v39, %v18888_v24  ;;  %v13848_v54 = vrot.slane %v17635_v56, %v18888_v24 }
0x1cae   :  { %v13712_v21 = vrot.slane %v17627_v0, %v18888_v24  ;;  %v13839_v14 = vrot.slane %v17634_v16, %v18888_v24  ;;  %v13855_v59 = vrot.slane %v17636_v23, %v18888_v24  ;;  %v13872_v13 = vcombine.low %v13807_v60, %v13823_v27 }
0x1caf   :  { %v13856_v11 = vcombine.low %v21262_v33, %v13816_v52  ;;  %v13888_v49 = vcombine.low %v13832_v55, %v13848_v54  ;;  %v13744_v62 = vrot.slane %v13736_v38, %v18890_v31  ;;  %v13776_v44 = vrot.slane %v13768_v47, %v18890_v31 }
0x1cb0   :  { %v13880_v12 = vrot.slane %v13872_v13, %v18890_v31  ;;  %v13904_v2 = vcombine.low %v13839_v14, %v13855_v59  ;;  %v13720_v20 = vcombine.low %v13664_v10, %v13680_v22  ;;  %v13752_v43 = vcombine.low %v13696_v37, %v13712_v21 }
0x1cb1   :  { %v13737_v15 = vcombine.high %v13671_v41, %v13687_v4  ;;  %v13769_v40 = vcombine.high %v13703_v46, %v13719_v3  ;;  %v13864_v45 = vrot.slane %v13856_v11, %v18890_v31  ;;  %v13896_v8 = vrot.slane %v13888_v49, %v18890_v31 }
0x1cb2   :  { %v13912_v28 = vrot.slane %v13904_v2, %v18890_v31  ;;  %v13873_v42 = vcombine.high %v13807_v60, %v13823_v27  ;;  %v13905_v34 = vcombine.high %v13839_v14, %v13855_v59  ;;  %v13788_v30 = vcombine.low %v13744_v62, %v13776_v44 }
0x1cb3   :  { %v13789_v57 = vcombine.high %v13744_v62, %v13776_v44  ;;  %v13728_v5 = vrot.slane %v13720_v20, %v18890_v31  ;;  %v13760_v25 = vrot.slane %v13752_v43, %v18890_v31  ;;  %v13751_v39 = vrot.slane %v13737_v15, %v18890_v31 }
0x1cb4   :  { %v13924_v32 = vcombine.low %v13880_v12, %v13912_v28  ;;  %v13925_v50 = vcombine.high %v13880_v12, %v13912_v28  ;;  %v13887_v48 = vrot.slane %v13873_v42, %v18890_v31  ;;  %v13919_v36 = vrot.slane %v13905_v34, %v18890_v31 }
0x1cb5   :  { %v13783_v56 = vrot.slane %v13769_v40, %v18890_v31  ;;  %v13920_v41 = vcombine.low %v13864_v45, %v13896_v8  ;;  %v13921_v4 = vcombine.high %v13864_v45, %v13896_v8  ;;  %v13857_v6 = vcombine.high %v21262_v33, %v13816_v52 }
0x1cb6   :  { %v14204_v61 = vpack.c.bf16 %v13924_v32, %v13788_v30  ;;  %v14205_v26 = vpack.c.bf16 %v13925_v50, %v13789_v57  ;;  %v13926_v17 = vcombine.low %v13887_v48, %v13919_v36  ;;  %v13927_v29 = vcombine.high %v13887_v48, %v13919_v36 }
0x1cb7   :  { %v13889_v0 = vcombine.high %v13832_v55, %v13848_v54  ;;  %v13784_v16 = vcombine.low %v13728_v5, %v13760_v25  ;;  %v13785_v23 = vcombine.high %v13728_v5, %v13760_v25  ;;  %v13790_v60 = vcombine.low %v13751_v39, %v13783_v56 }
0x1cb8   :  { %v14216_v46 = vsel %vm1291_vm2, %v14204_v61, 0  ;;  %v14263_v3 = vsel %vm1291_vm2, %v14205_v26, 0  ;;  %v13791_v27 = vcombine.high %v13751_v39, %v13783_v56  ;;  %v13721_v38 = vcombine.high %v13664_v10, %v13680_v22 }
0x1cb9   :  { %18292 = vmatpush3.bf16.xpose.msra.mxu1 %v14216_v46  ;;  %18298 = vmatpush3.bf16.xpose.msra.mxu0 %v14263_v3  ;;  %v13753_v47 = vcombine.high %v13696_v37, %v13712_v21  ;;  %v14200_v14 = vpack.c.bf16 %v13920_v41, %v13784_v16  ;;  %v14201_v59 = vpack.c.bf16 %v13921_v4, %v13785_v23 }
0x1cba   :  { %18303 = vmatprep.subr.bf16.mxu1 %v18756_v1  ;;  %18309 = vmatprep.subr.bf16.mxu0 %v18756_v1  ;;  %v14206_v13 = vpack.c.bf16 %v13926_v17, %v13790_v60  ;;  %v14207_v11 = vpack.c.bf16 %v13927_v29, %v13791_v27  ;;  %v13871_v49 = vrot.slane %v13857_v6, %v18890_v31  ;;  %v21346_v60 = vpop.permute.xlu1 %13064 }
0x1cbb   :  { %v13903_v33 = vrot.slane %v13889_v0, %v18890_v31  ;;  %v13735_v52 = vrot.slane %v13721_v38, %v18890_v31  ;;  %v13767_v55 = vrot.slane %v13753_v47, %v18890_v31  ;;  %v21350_v38 = vpop.permute.xlu0 %13076 }
0x1cbc   :  { %v14310_v54 = vsel %vm1291_vm2, %v14206_v13, 0  ;;  %v14357_v10 = vsel %vm1291_vm2, %v14207_v11, 0 }
0x1cbd   :  { %v13922_v22 = vcombine.low %v13871_v49, %v13903_v33  ;;  %v13923_v37 = vcombine.high %v13871_v49, %v13903_v33  ;;  %v13786_v21 = vcombine.low %v13735_v52, %v13767_v55  ;;  %v13787_v62 = vcombine.high %v13735_v52, %v13767_v55 }
0x1cbe   :  { %v21348_v27 = vpop.permute.xlu1 %13070 }
0x1cbf   :  { %v14202_v44 = vpack.c.bf16 %v13922_v22, %v13786_v21  ;;  %v14203_v12 = vpack.c.bf16 %v13923_v37, %v13787_v62 }
0x1cc0   :  { %18294 = vmatmul.mubr.msk.bf16.vlgmr.msra.gmra.mrb[108].mxu1 %vm1291_vm2, %v14200_v14  ;;  %18300 = vmatmul.mubr.msk.bf16.vlgmr.msra.gmra.mrb[124].mxu0 %vm1291_vm2, %v14201_v59  ;;  %v13067_v14 = vpop.permute.xlu0 %13066 }
0x1cc1   :  { %18304 = vmatpush3.bf16.xpose.msra.mxu1 %v14310_v54  ;;  %18310 = vmatpush3.bf16.xpose.msra.mxu0 %v14357_v10 }
0x1cc2   :  { %18305 = vmatprep.mubr.msk.bf16.mxu1 %vm18757_vm1, %v18756_v1  ;;  %18311 = vmatprep.mubr.msk.bf16.mxu0 %vm18757_vm1, %v18756_v1  ;;  %v13073_v47 = vpop.permute.xlu1 %13072 }
0x1cc3   :  { %18315 = vmatprep.subr.bf16.mxu1 %v18756_v1  ;;  %18321 = vmatprep.subr.bf16.mxu0 %v18756_v1 }
0x1cc6   :  { %v13079_v59 = vpop.permute.xlu1 %13078 }
0x1cc8   :  { %18306 = vmatmul.mubr.msk.bf16.vlgmr.msra.gmra.mrb[112].mxu1 %vm1291_vm2, %v14202_v44  ;;  %18312 = vmatmul.mubr.msk.bf16.vlgmr.msra.gmra.mrb[128].mxu0 %vm1291_vm2, %v14203_v12 }
0x1cc9   :  { %18317 = vmatprep.mubr.msk.bf16.mxu1 %vm18757_vm1, %v18756_v1  ;;  %18323 = vmatprep.mubr.msk.bf16.mxu0 %vm18757_vm1, %v18756_v1 }
0x1d93   :  { %v14252_v2 = vpop.f32.mrb[108].mxu1  ;;  %v14299_v20 = vpop.f32.mrb[124].mxu0 }
0x1d94   :  { %v14253_v43 = vadd.f32 %v19011_v18, %v14252_v2  ;;  %v18295_v28 = vpop.f32.mrb[109].mxu1  ;;  %v18301_v15 = vpop.f32.mrb[125].mxu0  ;;  %v14300_v8 = vadd.f32 %v19011_v18, %v14299_v20 }
0x1d95   :  { %v14255_v40 = vpop.f32.mrb[110].mxu1  ;;  %v14302_v45 = vpop.f32.mrb[126].mxu0 }
0x1d96   :  { %v14256_v42 = vadd.f32 %v19013_v19, %v14255_v40  ;;  %v18296_v34 = vpop.f32.mrb[111].mxu1  ;;  %v18302_v30 = vpop.f32.mrb[127].mxu0  ;;  %v14400_v32 = vsel %vm52_vm0, %v14253_v43, -inf  ;;  %v14303_v50 = vadd.f32 %v19013_v19, %v14302_v45  ;;  %v14406_v5 = vsel %vm52_vm0, %v14300_v8, -inf }
0x1d97   :  { %14401 = vmax.xlane.f32.xlu0 %v14400_v32 }
0x1d98   :  { %v14403_v57 = vsel %vm52_vm0, %v14256_v42, -inf  ;;  %v14409_v17 = vsel %vm52_vm0, %v14303_v50, -inf }
0x1d99   :  { %14404 = vmax.xlane.f32.xlu1 %v14403_v57  ;;  %v13521_v57 = vcombine.high %v13067_v14, %v13079_v59 }
0x1d9b   :  { %v14393_v25 = vpop.f32.mrb[128].mxu0  ;;  %14407 = vmax.xlane.f32.xlu0 %v14406_v5  ;;  %v14346_v48 = vpop.f32.mrb[112].mxu1 }
0x1d9c   :  { %v14347_v36 = vadd.f32 %v19011_v18, %v14346_v48  ;;  %v18307_v61 = vpop.f32.mrb[113].mxu1  ;;  %v18313_v26 = vpop.f32.mrb[129].mxu0  ;;  %v14394_v41 = vadd.f32 %v19011_v18, %v14393_v25  ;;  %v13248_v25 = vcombine.low %v21346_v60, %v21350_v38 }
0x1d9d   :  { %v14349_v39 = vpop.f32.mrb[114].mxu1  ;;  %v14396_v56 = vpop.f32.mrb[130].mxu0 }
0x1d9e   :  { %v14350_v4 = vadd.f32 %v19013_v19, %v14349_v39  ;;  %v18308_v46 = vpop.f32.mrb[115].mxu1  ;;  %v18314_v3 = vpop.f32.mrb[131].mxu0  ;;  %v14412_v29 = vsel %vm52_vm0, %v14347_v36, -inf  ;;  %v21324_v6 = vadd.f32 %v19013_v19, %v14396_v56  ;;  %v14418_v0 = vsel %vm52_vm0, %v14394_v41, -inf }
0x1d9f   :  { %14410 = vmax.xlane.f32.xlu0 %v14409_v17  ;;  %14413 = vmax.xlane.f32.xlu1 %v14412_v29  ;;  %v13249_v46 = vcombine.high %v21346_v60, %v21350_v38  ;;  %v13535_v29 = vrot.slane %v13521_v57, %v18888_v24 }
0x1da0   :  { %v14415_v16 = vsel %vm52_vm0, %v14350_v4, -inf  ;;  %v14421_v23 = vsel %vm52_vm0, %v21324_v6, -inf }
0x1da3   :  { %14419 = vmax.xlane.f32.xlu1 %v14418_v0  ;;  %14416 = vmax.xlane.f32.xlu0 %v14415_v16 }
0x1da7   :  { %14422 = vmax.xlane.f32.xlu0 %v14421_v23  ;;  %v13256_v23 = vrot.slane %v13248_v25, %v18888_v24 }
0x1db4   :  { %13084 = vrot.lane.b32.xlu1 %v21175_v53, %s18770_s1 }
0x1db8   :  { %13088 = vrot.lane.b32.xlu1 %v21173_v63, %s18771_s23 }
0x1dbc   :  { %13094 = vrot.lane.b32.xlu1 %v21173_v63, %s18772_s24 }
0x1dbd   :  { %13082 = vrot.lane.b32.xlu0 %v21173_v63, %s18770_s1 }
0x1dc0   :  { %13096 = vrot.lane.b32.xlu1 %v21175_v53, %s18772_s24 }
0x1dc1   :  { %13090 = vrot.lane.b32.xlu0 %v21175_v53, %s18771_s23 }
0x1dc4   :  { %13102 = vrot.lane.b32.xlu1 %v21175_v53, %s18773_s25 }
0x1dc5   :  { %13100 = vrot.lane.b32.xlu0 %v21173_v63, %s18773_s25 }
0x1e24   :  { %v14402_v13 = vpop.xlane.xlu0 %14401 }
0x1e25   :  { %v14424_v11 = vmax.f32 %v14402_v13, 0.0 }
0x1e26   :  { %v14405_v49 = vpop.xlane.xlu1 %14404 }
0x1e27   :  { %v14432_v33 = vsub.f32 %v14253_v43, %v14424_v11  ;;  %v14425_v52 = vmax.f32 %v14405_v49, 0.0 }
0x1e28   :  { %v14408_v55 = vpop.xlane.xlu0 %14407 }
0x1e29   :  { %v14440_v54 = vmul.f32 1.442695, %v14432_v33  ;;  %v14433_v10 = vsub.f32 %v14256_v42, %v14425_v52  ;;  %v14426_v22 = vmax.f32 %v14408_v55, 0.0  ;;  %v13520_v42 = vcombine.low %v13067_v14, %v13079_v59 }
0x1e2b   :  { %18661 = vpow2.f32 %v14440_v54  ;;  %v14442_v37 = vmul.f32 1.442695, %v14433_v10  ;;  %v14434_v21 = vsub.f32 %v14300_v8, %v14426_v22  ;;  %v13528_v3 = vrot.slane %v13520_v42, %v18888_v24 }
0x1e2c   :  { %v14411_v62 = vpop.xlane.xlu0 %14410  ;;  %v14414_v44 = vpop.xlane.xlu1 %14413 }
0x1e2d   :  { %18663 = vpow2.f32 %v14442_v37  ;;  %v14444_v12 = vmul.f32 1.442695, %v14434_v21  ;;  %v14427_v2 = vmax.f32 %v14411_v62, 0.0  ;;  %v14428_v20 = vmax.f32 %v14414_v44, 0.0 }
0x1e2e   :  { %v13263_v21 = vrot.slane %v13249_v46, %v18888_v24 }
0x1e2f   :  { %18665 = vpow2.f32 %v14444_v12  ;;  %v14435_v28 = vsub.f32 %v14303_v50, %v14427_v2  ;;  %v14436_v15 = vsub.f32 %v14347_v36, %v14428_v20 }
0x1e30   :  { %v14420_v40 = vpop.xlane.xlu1 %14419  ;;  %v14417_v45 = vpop.xlane.xlu0 %14416 }
0x1e31   :  { %v14446_v43 = vmul.f32 1.442695, %v14435_v28  ;;  %v14448_v34 = vmul.f32 1.442695, %v14436_v15  ;;  %v14430_v30 = vmax.f32 %v14420_v40, 0.0  ;;  %v14429_v32 = vmax.f32 %v14417_v45, 0.0 }
0x1e33   :  { %18667 = vpow2.f32 %v14446_v43  ;;  %v14438_v5 = vsub.f32 %v14394_v41, %v14430_v30  ;;  %v14437_v8 = vsub.f32 %v14350_v4, %v14429_v32 }
0x1e34   :  { %18669 = vpow2.f32 %v14448_v34  ;;  %v13085_v48 = vpop.permute.xlu1 %13084  ;;  %v14423_v61 = vpop.xlane.xlu0 %14422 }
0x1e35   :  { %v21354_v26 = vpop.eup %18661  ;;  %v14452_v50 = vmul.f32 1.442695, %v14438_v5  ;;  %v14450_v36 = vmul.f32 1.442695, %v14437_v8  ;;  %v13536_v39 = vcombine.low %v13073_v47, %v13085_v48  ;;  %v13537_v56 = vcombine.high %v13073_v47, %v13085_v48 }
0x1e36   :  { %v14431_v17 = vmax.f32 %v14423_v61, 0.0  ;;  %v14456_v41 = vsel %vm52_vm0, %v21354_v26, 0.0 }
0x1e37   :  { %v21361_v4 = vpop.eup %18663  ;;  %18671 = vpow2.f32 %v14452_v50  ;;  %v13544_v0 = vrot.slane %v13536_v39, %v18888_v24  ;;  %v13551_v16 = vrot.slane %v13537_v56, %v18888_v24  ;;  %14457 = vadd.xlane.f32.xlu0 %v14456_v41 }
0x1e38   :  { %18673 = vpow2.f32 %v14450_v36  ;;  %v14439_v60 = vsub.f32 %v21324_v6, %v14431_v17  ;;  %v13083_v38 = vpop.permute.xlu0 %13082  ;;  %v14459_v47 = vsel %vm52_vm0, %v21361_v4, 0.0 }
0x1e39   :  { %v21370_v14 = vpop.eup %18665  ;;  %v13584_v59 = vcombine.low %v13528_v3, %v13544_v0  ;;  %v13585_v13 = vcombine.high %v13528_v3, %v13544_v0  ;;  %v13600_v11 = vcombine.low %v13535_v29, %v13551_v16  ;;  %v13601_v49 = vcombine.high %v13535_v29, %v13551_v16  ;;  %14460 = vadd.xlane.f32.xlu1 %v14459_v47 }
0x1e3a   :  { %v14454_v33 = vmul.f32 1.442695, %v14439_v60  ;;  %v13264_v52 = vcombine.low %v21348_v27, %v13083_v38  ;;  %v13265_v55 = vcombine.high %v21348_v27, %v13083_v38  ;;  %v14462_v54 = vsel %vm52_vm0, %v21370_v14, 0.0 }
0x1e3b   :  { %v13592_v6 = vrot.slane %v13584_v59, %v18890_v31  ;;  %v13599_v10 = vrot.slane %v13585_v13, %v18890_v31  ;;  %v13608_v22 = vrot.slane %v13600_v11, %v18890_v31  ;;  %v13615_v37 = vrot.slane %v13601_v49, %v18890_v31  ;;  %14463 = vadd.xlane.f32.xlu0 %v14462_v54 }
0x1e3c   :  { %18675 = vpow2.f32 %v14454_v33  ;;  %v13272_v62 = vrot.slane %v13264_v52, %v18888_v24  ;;  %v13279_v44 = vrot.slane %v13265_v55, %v18888_v24 }
0x1e3d   :  { %v21383_v27 = vpop.eup %18667  ;;  %v17645_v12 = vcombine.low %v13592_v6, %v13599_v10  ;;  %v17647_v2 = vcombine.high %v13592_v6, %v13599_v10  ;;  %v17649_v20 = vcombine.low %v13608_v22, %v13615_v37  ;;  %v17651_v28 = vcombine.high %v13608_v22, %v13615_v37 }
0x1e3e   :  { %v21385_v15 = vpop.eup %18669  ;;  %v13312_v40 = vcombine.low %v13256_v23, %v13272_v62  ;;  %v13313_v45 = vcombine.high %v13256_v23, %v13272_v62  ;;  %v13328_v43 = vcombine.low %v13263_v21, %v13279_v44  ;;  %v13329_v34 = vcombine.high %v13263_v21, %v13279_v44 }
0x1e3f   :  { %v14072_v30 = vrot.slane %v17645_v12, %v18888_v24  ;;  %v14088_v32 = vrot.slane %v17647_v2, %v18888_v24  ;;  %v14104_v48 = vrot.slane %v17649_v20, %v18888_v24  ;;  %v14120_v61 = vrot.slane %v17651_v28, %v18888_v24 }
0x1e40   :  { %v13320_v42 = vrot.slane %v13312_v40, %v18890_v31  ;;  %v13327_v57 = vrot.slane %v13313_v45, %v18890_v31  ;;  %v13336_v5 = vrot.slane %v13328_v43, %v18890_v31  ;;  %v13343_v8 = vrot.slane %v13329_v34, %v18890_v31 }
0x1e41   :  { %v21393_v25 = vpop.eup %18671  ;;  %v14468_v50 = vsel %vm52_vm0, %v21385_v15, 0.0  ;;  %v14465_v36 = vsel %vm52_vm0, %v21383_v27, 0.0  ;;  %v14128_v38 = vcombine.low %v14072_v30, %v14088_v32  ;;  %v14160_v47 = vcombine.low %v14104_v48, %v14120_v61 }
0x1e42   :  { %v21401_v39 = vpop.eup %18673  ;;  %v17637_v56 = vcombine.low %v13320_v42, %v13327_v57  ;;  %v17639_v46 = vcombine.high %v13320_v42, %v13327_v57  ;;  %v17641_v3 = vcombine.low %v13336_v5, %v13343_v8  ;;  %v17643_v17 = vcombine.high %v13336_v5, %v13343_v8  ;;  %14469 = vadd.xlane.f32.xlu1 %v14468_v50 }
0x1e43   :  { %14466 = vadd.xlane.f32.xlu0 %v14465_v36  ;;  %v14474_v41 = vsel %vm52_vm0, %v21393_v25, 0.0  ;;  %v14471_v29 = vsel %vm52_vm0, %v21401_v39, 0.0  ;;  %v14136_v33 = vrot.slane %v14128_v38, %v18890_v31  ;;  %v14168_v6 = vrot.slane %v14160_v47, %v18890_v31 }
0x1e44   :  { %v13936_v0 = vrot.slane %v17637_v56, %v18888_v24  ;;  %v13952_v16 = vrot.slane %v17639_v46, %v18888_v24  ;;  %v13968_v23 = vrot.slane %v17641_v3, %v18888_v24  ;;  %v13984_v60 = vrot.slane %v17643_v17, %v18888_v24 }
0x1e45   :  { %v14129_v37 = vcombine.high %v14072_v30, %v14088_v32  ;;  %v14161_v21 = vcombine.high %v14104_v48, %v14120_v61  ;;  %v14192_v44 = vcombine.low %v14136_v33, %v14168_v6  ;;  %v14193_v2 = vcombine.high %v14136_v33, %v14168_v6 }
0x1e46   :  { %v18676_v59 = vpop.eup %18675  ;;  %14475 = vadd.xlane.f32.xlu1 %v14474_v41  ;;  %v13992_v13 = vcombine.low %v13936_v0, %v13952_v16  ;;  %v14024_v11 = vcombine.low %v13968_v23, %v13984_v60  ;;  %v13993_v49 = vcombine.high %v13936_v0, %v13952_v16  ;;  %v14025_v22 = vcombine.high %v13968_v23, %v13984_v60 }
0x1e47   :  { %14472 = vadd.xlane.f32.xlu0 %v14471_v29  ;;  %v14477_v52 = vsel %vm52_vm0, %v18676_v59, 0.0  ;;  %v14143_v28 = vrot.slane %v14129_v37, %v18890_v31  ;;  %v14175_v40 = vrot.slane %v14161_v21, %v18890_v31  ;;  %v14480_v32 = vpack.c.bf16 %v21361_v4, %v21354_v26 }
0x1e48   :  { %v14000_v55 = vrot.slane %v13992_v13, %v18890_v31  ;;  %v14032_v54 = vrot.slane %v14024_v11, %v18890_v31  ;;  %v14007_v10 = vrot.slane %v13993_v49, %v18890_v31  ;;  %v14039_v20 = vrot.slane %v14025_v22, %v18890_v31 }
0x1e49   :  { %v14194_v57 = vcombine.low %v14143_v28, %v14175_v40  ;;  %v14195_v30 = vcombine.high %v14143_v28, %v14175_v40  ;;  %v14481_v5 = vpack.c.bf16 %v21383_v27, %v21370_v14  ;;  %v14482_v26 = vpack.c.bf16 %v21401_v39, %v21385_v15  ;;  %v13091_v14 = vpop.permute.xlu0 %13090 }
0x1e4a   :  { %v14056_v62 = vcombine.low %v14000_v55, %v14032_v54  ;;  %v14057_v12 = vcombine.high %v14000_v55, %v14032_v54  ;;  %v14058_v34 = vcombine.low %v14007_v10, %v14039_v20  ;;  %v14059_v42 = vcombine.high %v14007_v10, %v14039_v20 }
0x1e4b   :  { %14478 = vadd.xlane.f32.xlu0 %v14477_v52  ;;  %v14483_v4 = vpack.c.bf16 %v18676_v59, %v21393_v25 }
0x1e4c   :  { %v14208_v45 = vpack.c.bf16 %v14192_v44, %v14056_v62  ;;  %v14209_v43 = vpack.c.bf16 %v14193_v2, %v14057_v12  ;;  %v14210_v8 = vpack.c.bf16 %v14194_v57, %v14058_v34  ;;  %v14211_v48 = vpack.c.bf16 %v14195_v30, %v14059_v42 }
0x1e4d   :  { %v13101_v27 = vpop.permute.xlu0 %13100 }
0x1e4e   :  { %18316 = vmatpush3.bf16.msra.mxu1 %v14208_v45  ;;  %18322 = vmatpush3.bf16.msra.mxu0 %v14209_v43 }
0x1e4f   :  { %18327 = vmatprep.subr.bf16.mxu1 %v18756_v1  ;;  %18333 = vmatprep.subr.bf16.mxu0 %v18756_v1 }
0x1e51   :  { %18318 = vmatmul.mubr.msk.bf16.vlgmr.msra.gmra.mrb[116].mxu1 %vm52_vm0, %v14480_v32  ;;  %18324 = vmatmul.mubr.msk.bf16.vlgmr.msra.gmra.mrb[132].mxu0 %vm52_vm0, %v14481_v5 }
0x1e52   :  { %18328 = vmatpush3.bf16.msra.mxu1 %v14210_v8  ;;  %18334 = vmatpush3.bf16.msra.mxu0 %v14211_v48 }
0x1e53   :  { %18329 = vmatprep.mubr.msk.bf16.mxu1 %vm18757_vm1, %v18756_v1  ;;  %18335 = vmatprep.mubr.msk.bf16.mxu0 %vm18757_vm1, %v18756_v1 }
0x1e54   :  { %18346 = vmatprep.subr.bf16.mxu0 %v18756_v1  ;;  %18427 = vmatprep.subr.bf16.mxu1 %v18775_v9 }
0x1e57   :  { %13108 = vrot.lane.b32.xlu1 %v21175_v53, %s18774_s26  ;;  %v13089_v53 = vpop.permute.xlu1 %13088 }
0x1e58   :  { %v13281_v60 = vcombine.high %v13089_v53, %v13101_v27 }
0x1e59   :  { %18330 = vmatmul.mubr.msk.bf16.vlgmr.msra.gmra.mrb[120].mxu1 %vm52_vm0, %v14482_v26  ;;  %18336 = vmatmul.mubr.msk.bf16.vlgmr.msra.gmra.mrb[136].mxu0 %vm52_vm0, %v14483_v4 }
0x1e5a   :  { %18350 = vmatprep.mubr.msk.bf16.mxu0 %vm18757_vm1, %v18756_v1  ;;  %18343 = vmatprep.mubr.msk.f32.mxu1 %vm18757_vm1, %v18756_v1  ;;  %v13295_v52 = vrot.slane %v13281_v60, %v18888_v24 }
0x1e5b   :  { %v13095_v15 = vpop.permute.xlu1 %13094 }
0x1e5f   :  { %v13097_v25 = vpop.permute.xlu1 %13096 }
0x1e61   :  { %13106 = vrot.lane.b32.xlu0 %v21173_v63, %s18774_s26  ;;  %v13280_v63 = vcombine.low %v13089_v53, %v13101_v27 }
0x1e63   :  { %v13103_v39 = vpop.permute.xlu1 %13102  ;;  %v13288_v33 = vrot.slane %v13280_v63, %v18888_v24 }
0x1e64   :  { %v13552_v11 = vcombine.low %v13091_v14, %v13103_v39  ;;  %v13553_v49 = vcombine.high %v13091_v14, %v13103_v39 }
0x1e66   :  { %v13560_v44 = vrot.slane %v13552_v11, %v18888_v24  ;;  %v13567_v12 = vrot.slane %v13553_v49, %v18888_v24 }
0x1ec4   :  { %v14458_v61 = vpop.xlane.xlu0 %14457 }
0x1ec5   :  { %vm14660_vm10 = vcmp.gt.f32.partialorder %v14458_v61, 0.0 }
0x1ec6   :  { %v14461_v56 = vpop.xlane.xlu1 %14460  ;;  %v14668_v55 = vsel %vm14660_vm10, %v14458_v61, 1.0 }
0x1ec7   :  { %vm14661_vm14 = vcmp.gt.f32.partialorder %v14461_v56, 0.0  ;;  %18677 = vrcp.f32 %v14668_v55 }
0x1ec8   :  { %v14464_v50 = vpop.xlane.xlu0 %14463  ;;  %v14669_v54 = vsel %vm14661_vm14, %v14461_v56, 1.0 }
0x1ec9   :  { %vm14662_vm15 = vcmp.gt.f32.partialorder %v14464_v50, 0.0  ;;  %18679 = vrcp.f32 %v14669_v54 }
0x1eca   :  { %v14670_v2 = vsel %vm14662_vm15, %v14464_v50, 1.0 }
0x1ecb   :  { %18681 = vrcp.f32 %v14670_v2 }
0x1ecf   :  { %v14470_v3 = vpop.xlane.xlu1 %14469 }
0x1ed0   :  { %v14467_v36 = vpop.xlane.xlu0 %14466  ;;  %vm14664_vm13 = vcmp.gt.f32.partialorder %v14470_v3, 0.0 }
0x1ed1   :  { %vm14663_vm3 = vcmp.gt.f32.partialorder %v14467_v36, 0.0  ;;  %v14672_v30 = vsel %vm14664_vm13, %v14470_v3, 1.0  ;;  %v18678_v50 = vpop.eup %18677  ;;  %vm4333_vm13 = vcmask 517376  }
0x1ed2   :  { %v14671_v32 = vsel %vm14663_vm3, %v14467_v36, 1.0  ;;  %18683 = vrcp.f32 %v14672_v30  ;;  %vm6490_vm3 = vcmask 779776  }
0x1ed3   :  { %v14476_v41 = vpop.xlane.xlu1 %14475  ;;  %18685 = vrcp.f32 %v14671_v32  ;;  %v18680_v3 = vpop.eup %18679 }
0x1ed4   :  { %v14473_v46 = vpop.xlane.xlu0 %14472  ;;  %vm14666_vm4 = vcmp.gt.f32.partialorder %v14476_v41, 0.0 }
0x1ed5   :  { %vm14665_vm5 = vcmp.gt.f32.partialorder %v14473_v46, 0.0  ;;  %v14674_v61 = vsel %vm14666_vm4, %v14476_v41, 1.0 }
0x1ed6   :  { %18687 = vrcp.f32 %v14674_v61 }
0x1ed7   :  { %v13109_v0 = vpop.permute.xlu1 %13108 }
0x1ed8   :  { %v21447_v17 = vpop.xlane.xlu0 %14478  ;;  %v13568_v38 = vcombine.low %v13097_v25, %v13109_v0  ;;  %v13569_v47 = vcombine.high %v13097_v25, %v13109_v0 }
0x1ed9   :  { %vm14667_vm6 = vcmp.gt.f32.partialorder %v21447_v17, 0.0 }
0x1eda   :  { %v13576_v6 = vrot.slane %v13568_v38, %v18888_v24  ;;  %v13583_v10 = vrot.slane %v13569_v47, %v18888_v24  ;;  %v14675_v41 = vsel %vm14667_vm6, %v21447_v17, 1.0 }
0x1edc   :  { %v13107_v29 = vpop.permute.xlu0 %13106  ;;  %v13616_v20 = vcombine.low %v13560_v44, %v13576_v6  ;;  %v13617_v28 = vcombine.high %v13560_v44, %v13576_v6  ;;  %v13632_v40 = vcombine.low %v13567_v12, %v13583_v10  ;;  %v13633_v45 = vcombine.high %v13567_v12, %v13583_v10 }
0x1edd   :  { %v13296_v16 = vcombine.low %v13095_v15, %v13107_v29  ;;  %v13297_v23 = vcombine.high %v13095_v15, %v13107_v29  ;;  %v14673_v15 = vsel %vm14665_vm5, %v14473_v46, 1.0  ;;  %v18682_v46 = vpop.eup %18681 }
0x1ede   :  { %v13624_v5 = vrot.slane %v13616_v20, %v18890_v31  ;;  %v13631_v8 = vrot.slane %v13617_v28, %v18890_v31  ;;  %v13640_v48 = vrot.slane %v13632_v40, %v18890_v31  ;;  %v13647_v26 = vrot.slane %v13633_v45, %v18890_v31  ;;  %v18684_v10 = vpop.eup %18683 }
0x1edf   :  { %v13304_v59 = vrot.slane %v13296_v16, %v18888_v24  ;;  %v13311_v13 = vrot.slane %v13297_v23, %v18888_v24  ;;  %18689 = vrcp.f32 %v14673_v15  ;;  %v18686_v44 = vpop.eup %18685 }
0x1ee0   :  { %v17646_v25 = vcombine.low %v13624_v5, %v13631_v8  ;;  %v17648_v36 = vcombine.high %v13624_v5, %v13631_v8  ;;  %v17650_v39 = vcombine.low %v13640_v48, %v13647_v26  ;;  %v17652_v56 = vcombine.high %v13640_v48, %v13647_v26 }
0x1ee1   :  { %v13344_v22 = vcombine.low %v13288_v33, %v13304_v59  ;;  %v13345_v37 = vcombine.high %v13288_v33, %v13304_v59  ;;  %v13360_v21 = vcombine.low %v13295_v52, %v13311_v13  ;;  %v13361_v62 = vcombine.high %v13295_v52, %v13311_v13 }
0x1ee2   :  { %v14079_v63 = vrot.slane %v17646_v25, %v18888_v24  ;;  %v14095_v60 = vrot.slane %v17648_v36, %v18888_v24  ;;  %v14111_v38 = vrot.slane %v17650_v39, %v18888_v24  ;;  %v14127_v47 = vrot.slane %v17652_v56, %v18888_v24 }
0x1ee3   :  { %v13352_v43 = vrot.slane %v13344_v22, %v18890_v31  ;;  %v13359_v34 = vrot.slane %v13345_v37, %v18890_v31  ;;  %v13368_v42 = vrot.slane %v13360_v21, %v18890_v31  ;;  %v13375_v57 = vrot.slane %v13361_v62, %v18890_v31 }
0x1ee4   :  { %18691 = vrcp.f32 %v14675_v41  ;;  %v14144_v22 = vcombine.low %v14079_v63, %v14095_v60  ;;  %v14176_v37 = vcombine.low %v14111_v38, %v14127_v47  ;;  %v14145_v20 = vcombine.high %v14079_v63, %v14095_v60 }
0x1ee5   :  { %v17638_v4 = vcombine.low %v13352_v43, %v13359_v34  ;;  %v17640_v14 = vcombine.high %v13352_v43, %v13359_v34  ;;  %v17642_v53 = vcombine.low %v13368_v42, %v13375_v57  ;;  %v17644_v27 = vcombine.high %v13368_v42, %v13375_v57  ;;  %v18688_v42 = vpop.eup %18687 }
0x1ee6   :  { %v14177_v28 = vcombine.high %v14111_v38, %v14127_v47  ;;  %v14152_v57 = vrot.slane %v14144_v22, %v18890_v31  ;;  %v14184_v30 = vrot.slane %v14176_v37, %v18890_v31 }
0x1ee7   :  { %v13943_v29 = vrot.slane %v17638_v4, %v18888_v24  ;;  %v13959_v0 = vrot.slane %v17640_v14, %v18888_v24  ;;  %v13975_v16 = vrot.slane %v17642_v53, %v18888_v24  ;;  %v13991_v23 = vrot.slane %v17644_v27, %v18888_v24 }
0x1ee8   :  { %v14159_v4 = vrot.slane %v14145_v20, %v18890_v31  ;;  %v14191_v14 = vrot.slane %v14177_v28, %v18890_v31 }
0x1ee9   :  { %v14008_v59 = vcombine.low %v13943_v29, %v13959_v0  ;;  %v14040_v13 = vcombine.low %v13975_v16, %v13991_v23  ;;  %v14009_v55 = vcombine.high %v13943_v29, %v13959_v0  ;;  %v14041_v54 = vcombine.high %v13975_v16, %v13991_v23  ;;  %v18690_v32 = vpop.eup %18689 }
0x1eeb   :  { %v14016_v12 = vrot.slane %v14008_v59, %v18890_v31  ;;  %v14048_v2 = vrot.slane %v14040_v13, %v18890_v31  ;;  %v14023_v40 = vrot.slane %v14009_v55, %v18890_v31  ;;  %v14055_v45 = vrot.slane %v14041_v54, %v18890_v31 }
0x1eec   :  { %v14196_v59 = vcombine.low %v14152_v57, %v14184_v30  ;;  %v14197_v13 = vcombine.high %v14152_v57, %v14184_v30 }
0x1eed   :  { %v14060_v5 = vcombine.low %v14016_v12, %v14048_v2  ;;  %v14061_v8 = vcombine.high %v14016_v12, %v14048_v2  ;;  %v14062_v53 = vcombine.low %v14023_v40, %v14055_v45  ;;  %v14063_v61 = vcombine.high %v14023_v40, %v14055_v45 }
0x1eee   :  { %v18692_v36 = vpop.eup %18691 }
0x1f24   :  { %v14521_v11 = vpop.f32.mrb[116].mxu1  ;;  %v14565_v49 = vpop.f32.mrb[132].mxu0 }
0x1f25   :  { %v18319_v33 = vpop.f32.mrb[117].mxu1  ;;  %v18325_v52 = vpop.f32.mrb[133].mxu0  ;;  %v14684_v43 = vmul.f32 %v18678_v50, %v14521_v11  ;;  %v14686_v34 = vmul.f32 %v18682_v46, %v14565_v49  ;;  %v14198_v11 = vcombine.low %v14159_v4, %v14191_v14  ;;  %v14199_v49 = vcombine.high %v14159_v4, %v14191_v14 }
0x1f26   :  { %v14524_v17 = vpop.f32.mrb[118].mxu1  ;;  %v14568_v6 = vpop.f32.mrb[134].mxu0 }
0x1f27   :  { %v18320_v21 = vpop.f32.mrb[119].mxu1  ;;  %v18326_v62 = vpop.f32.mrb[135].mxu0  ;;  %v14692_v39 = vadd.f32 %v14684_v43, %v14060_v5  ;;  %v14694_v56 = vadd.f32 %v14686_v34, %v14061_v8  ;;  %v14685_v29 = vmul.f32 %v18680_v3, %v14524_v17  ;;  %v14687_v0 = vmul.f32 %v18686_v44, %v14568_v6 }
0x1f29   :  { %v14695_v22 = vadd.f32 %v14687_v0, %v14197_v13 }
0x1f2c   :  { %v14609_v48 = vpop.f32.mrb[120].mxu1  ;;  %v14653_v26 = vpop.f32.mrb[136].mxu0 }
0x1f2d   :  { %v14688_v27 = vmul.f32 %v18684_v10, %v14609_v48  ;;  %v14690_v15 = vmul.f32 %v18688_v42, %v14653_v26  ;;  %v18331_v50 = vpop.f32.mrb[121].mxu1  ;;  %v18337_v25 = vpop.f32.mrb[137].mxu0  ;;  %v14693_v10 = vadd.f32 %v14685_v29, %v14196_v59 }
0x1f2e   :  { %v14612_v16 = vpop.f32.mrb[122].mxu1  ;;  %v14656_v23 = vpop.f32.mrb[138].mxu0 }
0x1f2f   :  { %v14696_v41 = vadd.f32 %v14688_v27, %v14062_v53  ;;  %v14698_v46 = vadd.f32 %v14690_v15, %v14063_v61  ;;  %v14689_v63 = vmul.f32 %v18690_v32, %v14612_v16  ;;  %v14691_v60 = vmul.f32 %v18692_v36, %v14656_v23  ;;  %v18332_v38 = vpop.f32.mrb[123].mxu1  ;;  %v18338_v47 = vpop.f32.mrb[139].mxu0 }
0x1f31   :  { %v14700_v33 = vcombine.low %v14692_v39, %v14696_v41  ;;  %v14701_v52 = vcombine.high %v14692_v39, %v14696_v41  ;;  %v14716_v55 = vcombine.low %v14694_v56, %v14698_v46  ;;  %v14717_v54 = vcombine.high %v14694_v56, %v14698_v46 }
0x1f32   :  { %v14697_v3 = vadd.f32 %v14689_v63, %v14198_v11  ;;  %v14699_v17 = vadd.f32 %v14691_v60, %v14199_v49 }
0x1f33   :  { %v14708_v6 = vrot.slane %v14700_v33, %v18888_v24  ;;  %v14715_v37 = vrot.slane %v14701_v52, %v18888_v24  ;;  %v14724_v21 = vrot.slane %v14716_v55, %v18888_v24  ;;  %v14731_v62 = vrot.slane %v14717_v54, %v18888_v24 }
0x1f34   :  { %v14768_v44 = vcombine.low %v14693_v10, %v14697_v3  ;;  %v14769_v12 = vcombine.high %v14693_v10, %v14697_v3  ;;  %v14784_v2 = vcombine.low %v14695_v22, %v14699_v17  ;;  %v14785_v20 = vcombine.high %v14695_v22, %v14699_v17 }
0x1f35   :  { %v14732_v28 = vcombine.low %v14708_v6, %v14724_v21  ;;  %v14733_v40 = vcombine.high %v14708_v6, %v14724_v21  ;;  %v14748_v45 = vcombine.low %v14715_v37, %v14731_v62  ;;  %v14749_v43 = vcombine.high %v14715_v37, %v14731_v62 }
0x1f36   :  { %v14776_v34 = vrot.slane %v14768_v44, %v18888_v24  ;;  %v14783_v42 = vrot.slane %v14769_v12, %v18888_v24  ;;  %v14792_v57 = vrot.slane %v14784_v2, %v18888_v24  ;;  %v14799_v30 = vrot.slane %v14785_v20, %v18888_v24 }
0x1f37   :  { %v14740_v32 = vrot.slane %v14732_v28, %v18890_v31  ;;  %v14747_v5 = vrot.slane %v14733_v40, %v18890_v31  ;;  %v14756_v8 = vrot.slane %v14748_v45, %v18890_v31  ;;  %v14763_v48 = vrot.slane %v14749_v43, %v18890_v31 }
0x1f38   :  { %v14800_v26 = vcombine.low %v14776_v34, %v14792_v57  ;;  %v14801_v4 = vcombine.high %v14776_v34, %v14792_v57  ;;  %v14816_v14 = vcombine.low %v14783_v42, %v14799_v30  ;;  %v14817_v53 = vcombine.high %v14783_v42, %v14799_v30  ;;  %v18467_v57 = vld [vmem:[%s21978_s4 + $0x60] sm:$0xff]   ;;  %v18468_v30 = vld [vmem:[%s21978_s4 + $0x68] sm:$0xff]  }
0x1f39   :  { %v14836_v27 = vcombine.low %v14740_v32, %v14747_v5  ;;  %v17661_v61 = vcombine.high %v14740_v32, %v14747_v5  ;;  %v14852_v15 = vcombine.low %v14756_v8, %v14763_v48  ;;  %v17662_v50 = vcombine.high %v14756_v8, %v14763_v48  ;;  %18347 = vmatpush3.bf16.msra.mxu0 %v18467_v57 }
0x1f3a   :  { %v14808_v25 = vrot.slane %v14800_v26, %v18890_v31  ;;  %v14815_v36 = vrot.slane %v14801_v4, %v18890_v31  ;;  %v14824_v39 = vrot.slane %v14816_v14, %v18890_v31  ;;  %v14831_v56 = vrot.slane %v14817_v53, %v18890_v31  ;;  %18348 = vmatprep.subr.bf16.mxu0 %v18756_v1  ;;  %v17666_v4 = vld [vmem:[%s21980_s6 + $0x6] ss:$0 sm:$0xff] }
0x1f3b   :  { %v14843_v29 = vrot.slane %v14836_v27, %v18888_v24  ;;  %v14851_v0 = vrot.slane %v17661_v61, %v18888_v24  ;;  %v14859_v16 = vrot.slane %v14852_v15, %v18888_v24  ;;  %v14867_v23 = vrot.slane %v17662_v50, %v18888_v24  ;;  %v17668_v15 = vld [vmem:[%s21981_s7 + $0x6] ss:$0 sm:$0xff] }
0x1f3c   :  { %v14904_v41 = vcombine.low %v14808_v25, %v14815_v36  ;;  %v17663_v46 = vcombine.high %v14808_v25, %v14815_v36  ;;  %v14920_v63 = vcombine.low %v14824_v39, %v14831_v56  ;;  %v17664_v60 = vcombine.high %v14824_v39, %v14831_v56 }
0x1f3d   :  { %v14868_v38 = vcombine.low %v14843_v29, %v14851_v0  ;;  %v14884_v47 = vcombine.low %v14859_v16, %v14867_v23  ;;  %v14869_v59 = vcombine.high %v14843_v29, %v14851_v0  ;;  %v14885_v13 = vcombine.high %v14859_v16, %v14867_v23  ;;  %18349 = vmatpush3.bf16.msra.mxu0 %v18468_v30 }
0x1f3e   :  { %v14911_v11 = vrot.slane %v14904_v41, %v18888_v24  ;;  %v14919_v49 = vrot.slane %v17663_v46, %v18888_v24  ;;  %v14927_v33 = vrot.slane %v14920_v63, %v18888_v24  ;;  %v14935_v52 = vrot.slane %v17664_v60, %v18888_v24  ;;  %18360 = vmatprep.subr.bf16.mxu0 %v18756_v1  ;;  %v18730_v46 = vld [vmem:[%s21976_s2] sm:$0x3]  ;;  %v17675_v63 = vld [vmem:[%s21979_s5 + $0x7] ss:$0 sm:$0xff] }
0x1f3f   :  { %v14876_v55 = vrot.slane %v14868_v38, %v18890_v31  ;;  %v14892_v54 = vrot.slane %v14884_v47, %v18890_v31  ;;  %v14883_v10 = vrot.slane %v14869_v59, %v18890_v31  ;;  %v14899_v22 = vrot.slane %v14885_v13, %v18890_v31 }
0x1f40   :  { %v14936_v3 = vcombine.low %v14911_v11, %v14919_v49  ;;  %v14952_v17 = vcombine.low %v14927_v33, %v14935_v52  ;;  %v14937_v6 = vcombine.high %v14911_v11, %v14919_v49  ;;  %v14953_v37 = vcombine.high %v14927_v33, %v14935_v52 }
0x1f41   :  { %v14901_v21 = vcombine.high %v14876_v55, %v14892_v54  ;;  %v14902_v62 = vcombine.low %v14883_v10, %v14899_v22  ;;  %v14903_v44 = vcombine.high %v14883_v10, %v14899_v22  ;;  %v14900_v12 = vcombine.low %v14876_v55, %v14892_v54 }
0x1f42   :  { %v14944_v2 = vrot.slane %v14936_v3, %v18890_v31  ;;  %v14960_v20 = vrot.slane %v14952_v17, %v18890_v31  ;;  %v14951_v28 = vrot.slane %v14937_v6, %v18890_v31  ;;  %v14967_v40 = vrot.slane %v14953_v37, %v18890_v31 }
0x1f43   :  { %14974 = vrot.lane.b32.xlu0 %v14901_v21, %s18774_s26 }
0x1f44   :  { %v14969_v45 = vcombine.high %v14944_v2, %v14960_v20  ;;  %v14970_v43 = vcombine.low %v14951_v28, %v14967_v40  ;;  %v14971_v34 = vcombine.high %v14951_v28, %v14967_v40  ;;  %v14968_v42 = vcombine.low %v14944_v2, %v14960_v20 }
0x1f46   :  { %14976 = vrot.lane.b32.xlu1 %v14969_v45, %s18774_s26 }
0x1f47   :  { %14982 = vrot.lane.b32.xlu0 %v14902_v62, %s18773_s25 }
0x1f4a   :  { %14984 = vrot.lane.b32.xlu1 %v14970_v43, %s18773_s25 }
0x1f4b   :  { %14990 = vrot.lane.b32.xlu0 %v14903_v44, %s18772_s24 }
0x1f4e   :  { %14992 = vrot.lane.b32.xlu1 %v14971_v34, %s18772_s24 }
0x1fb5   :  { %v14975_v32 = vpop.permute.xlu0 %14974 }
0x1fb6   :  { %v14996_v48 = vsel %vm1291_vm2, %v14900_v12, %v14975_v32 }
0x1fb8   :  { %v14977_v5 = vpop.permute.xlu1 %14976 }
0x1fb9   :  { %v14983_v8 = vpop.permute.xlu0 %14982  ;;  %v14997_v61 = vsel %vm1291_vm2, %v14968_v42, %v14977_v5 }
0x1fba   :  { %v14998_v14 = vsel %vm52_vm0, %v14996_v48, %v14983_v8 }
0x1fbc   :  { %v14985_v26 = vpop.permute.xlu1 %14984 }
0x1fbd   :  { %v14991_v53 = vpop.permute.xlu0 %14990  ;;  %v14999_v25 = vsel %vm52_vm0, %v14997_v61, %v14985_v26 }
0x1fbe   :  { %v15000_v27 = vsel %vm2080_vm11, %v14998_v14, %v14991_v53 }
0x1fbf   :  { %v15010_v50 = vmul.f32 %v17666_v4, %v15000_v27 }
0x1fc0   :  { %v14993_v36 = vpop.permute.xlu1 %14992 }
0x1fc1   :  { %v15001_v39 = vsel %vm2080_vm11, %v14999_v25, %v14993_v36  ;;  %v15020_v56 = vadd.f32 %v17668_v15, %v15010_v50 }
0x1fc2   :  { %v15011_v29 = vmul.f32 %v17666_v4, %v15001_v39 }
0x1fc3   :  { %v15022_v16 = vmax.f32 %v15020_v56, 0.0 }
0x1fc4   :  { %v15021_v0 = vadd.f32 %v17668_v15, %v15011_v29 }
0x1fc6   :  { %v15023_v23 = vmax.f32 %v15021_v0, 0.0 }
0x1fc8   :  { %v18428_v41 = vpack.c.bf16 %v15023_v23, %v15022_v16 }
0x1fca   :  { %18429 = vmatpush3.bf16.msra.mxu1 %v18428_v41  ;;  %18351 = vmatmul.mubr.msk.bf16.vlgmr.msra.gmra.mrb[140].mxu0 %vm2203_vm12, %v18428_v41 }
0x1fcb   :  { %18354 = vmatprep.subr.bf16.mxu1 %v18756_v1  ;;  %18362 = vmatprep.mubr.msk.bf16.mxu0 %vm18757_vm1, %v18756_v1 }
0x1fcd   :  { %18344 = vmatmul.mubr.msk.f32.vlgmr.msra.gmra.mrb[124].mxu1 %vm52_vm0, %v18730_v46 }
0x1fce   :  { %18356 = vmatprep.mubr.msk.bf16.mxu1 %vm18757_vm1, %v18756_v1 }
0x209d   :  { %v15169_v60 = vpop.f32.mrb[140].mxu0 }
0x209e   :  { %v21554_v38 = vadd.f32 %v17675_v63, %v15169_v60  ;;  %v18352_v47 = vpop.f32.mrb[141].mxu0 }
0x209f   :  { %v15172_v59 = vpop.f32.mrb[142].mxu0 }
0x20a0   :  { %v21556_v13 = vadd.f32 %v17675_v63, %v15172_v59  ;;  %15196 = vrot.lane.b32.xlu0 %v21554_v38, %s18759_s12  ;;  %v18353_v11 = vpop.f32.mrb[143].mxu0  ;;  %v21598_v49 = vpop.f32.mrb[124].mxu1 }
0x20a1   :  { %v18345_v33 = vpop.f32.mrb[125].mxu1 }
0x20a2   :  { %15198 = vrot.lane.b32.xlu1 %v21556_v13, %s18759_s12 }
0x20a4   :  { %15202 = vrot.lane.b32.xlu0 %v21554_v38, %s18758_s11 }
0x20a6   :  { %15204 = vrot.lane.b32.xlu1 %v21556_v13, %s18758_s11 }
0x20a8   :  { %15208 = vrot.lane.b32.xlu0 %v21554_v38, %s18760_s13 }
0x20aa   :  { %15210 = vrot.lane.b32.xlu1 %v21556_v13, %s18760_s13 }
0x20ac   :  { %15214 = vrot.lane.b32.xlu0 %v21554_v38, %s18761_s14 }
0x20ae   :  { %15216 = vrot.lane.b32.xlu1 %v21556_v13, %s18761_s14 }
0x20b0   :  { %15178 = vrot.lane.b32.xlu0 %v21554_v38, %s18762_s15 }
0x20b2   :  { %15180 = vrot.lane.b32.xlu1 %v21556_v13, %s18762_s15  ;;  %s18776_s15 = smov [#allocation2]  }
0x20b4   :  { %15184 = vrot.lane.b32.xlu0 %v21554_v38, %s18763_s16 }
0x20b6   :  { %15186 = vrot.lane.b32.xlu1 %v21556_v13, %s18763_s16  ;;  %s17268_s16 = sshll.u32 %s18776_s15, 4  ;;  %s17269_s16 = int_to_ptr.vmem [resolvable:$true] %s17268_s16 }
0x20b7   :  { %p18737_p1 = scmp.lt.s32.totalorder %s17269_s16, %s17269_s16 }
0x20b8   :  { %15190 = vrot.lane.b32.xlu0 %v21554_v38, %s18764_s17 }
0x20ba   :  { %15192 = vrot.lane.b32.xlu1 %v21556_v13, %s18764_s17  ;;  %s18732_s17 = scalar_lea.vmem %s17269_s16, 64 }
0x20bb   :  { %p18733_p0 = scmp.ne.s32.totalorder %s17269_s16, %s18732_s17  ;;  %p18738_p2 = scmp.lt.s32.totalorder %s18732_s17, %s18732_s17 }
0x20bc   :  { %15232 = vrot.lane.b32.xlu0 %v21554_v38, %s18766_s19 }
0x20bd   :  { %p18739_p3 = por %p18738_p2, %p18737_p1 }
0x20be   :  { %15220 = vrot.lane.b32.xlu1 %v21554_v38, %s18765_s18 }
0x20bf   :  { %p18740_p4 = pnand %p18739_p3, %p18733_p0 }
0x20c0   :  { %15222 = vrot.lane.b32.xlu0 %v21556_v13, %s18765_s18 }
0x20c2   :  { %15226 = vrot.lane.b32.xlu1 %v21554_v38, %s18767_s20 }
0x20c6   :  { %15228 = vrot.lane.b32.xlu1 %v21556_v13, %s18767_s20 }
0x20ca   :  { %15234 = vrot.lane.b32.xlu1 %v21556_v13, %s18766_s19 }
0x2112   :  { %v15197_v52 = vpop.permute.xlu0 %15196 }
0x2114   :  { %v15199_v55 = vpop.permute.xlu1 %15198 }
0x2116   :  { %v15203_v54 = vpop.permute.xlu0 %15202 }
0x2118   :  { %v15205_v10 = vpop.permute.xlu1 %15204 }
0x211a   :  { %v15209_v22 = vpop.permute.xlu0 %15208 }
0x211b   :  { %v15300_v3 = vcombine.low %v15197_v52, %v15209_v22  ;;  %v15301_v17 = vcombine.high %v15197_v52, %v15209_v22 }
0x211c   :  { %v15211_v6 = vpop.permute.xlu1 %15210 }
0x211d   :  { %v15308_v44 = vrot.slane %v15300_v3, %v18888_v24  ;;  %v15315_v12 = vrot.slane %v15301_v17, %v18888_v24  ;;  %v15572_v2 = vcombine.low %v15199_v55, %v15211_v6  ;;  %v15573_v20 = vcombine.high %v15199_v55, %v15211_v6 }
0x211e   :  { %v15215_v37 = vpop.permute.xlu0 %15214 }
0x211f   :  { %v15316_v21 = vcombine.low %v15203_v54, %v15215_v37  ;;  %v15317_v62 = vcombine.high %v15203_v54, %v15215_v37  ;;  %v15580_v8 = vrot.slane %v15572_v2, %v18888_v24  ;;  %v15587_v48 = vrot.slane %v15573_v20, %v18888_v24 }
0x2120   :  { %v15217_v28 = vpop.permute.xlu1 %15216 }
0x2121   :  { %v15324_v40 = vrot.slane %v15316_v21, %v18888_v24  ;;  %v15331_v45 = vrot.slane %v15317_v62, %v18888_v24  ;;  %v15588_v43 = vcombine.low %v15205_v10, %v15217_v28  ;;  %v15589_v34 = vcombine.high %v15205_v10, %v15217_v28 }
0x2122   :  { %v15179_v42 = vpop.permute.xlu0 %15178 }
0x2123   :  { %v15364_v57 = vcombine.low %v15308_v44, %v15324_v40  ;;  %v15365_v30 = vcombine.high %v15308_v44, %v15324_v40  ;;  %v15380_v32 = vcombine.low %v15315_v12, %v15331_v45  ;;  %v15381_v5 = vcombine.high %v15315_v12, %v15331_v45 }
0x2124   :  { %v15596_v26 = vrot.slane %v15588_v43, %v18888_v24  ;;  %v15603_v4 = vrot.slane %v15589_v34, %v18888_v24  ;;  %v15181_v14 = vpop.permute.xlu1 %15180 }
0x2125   :  { %v15372_v53 = vrot.slane %v15364_v57, %v18890_v31  ;;  %v15379_v27 = vrot.slane %v15365_v30, %v18890_v31  ;;  %v15388_v61 = vrot.slane %v15380_v32, %v18890_v31  ;;  %v15395_v15 = vrot.slane %v15381_v5, %v18890_v31 }
0x2126   :  { %v15636_v50 = vcombine.low %v15580_v8, %v15596_v26  ;;  %v15637_v25 = vcombine.high %v15580_v8, %v15596_v26  ;;  %v15652_v36 = vcombine.low %v15587_v48, %v15603_v4  ;;  %v15653_v39 = vcombine.high %v15587_v48, %v15603_v4  ;;  %v15185_v56 = vpop.permute.xlu0 %15184 }
0x2127   :  { %v17680_v29 = vcombine.low %v15372_v53, %v15379_v27  ;;  %v17682_v0 = vcombine.high %v15372_v53, %v15379_v27  ;;  %v17684_v16 = vcombine.low %v15388_v61, %v15395_v15  ;;  %v17686_v23 = vcombine.high %v15388_v61, %v15395_v15 }
0x2128   :  { %v15644_v41 = vrot.slane %v15636_v50, %v18890_v31  ;;  %v15651_v46 = vrot.slane %v15637_v25, %v18890_v31  ;;  %v15187_v63 = vpop.permute.xlu1 %15186  ;;  %v15660_v60 = vrot.slane %v15652_v36, %v18890_v31  ;;  %v15667_v47 = vrot.slane %v15653_v39, %v18890_v31 }
0x2129   :  { %v15268_v33 = vcombine.low %v21554_v38, %v15185_v56  ;;  %v15269_v52 = vcombine.high %v21554_v38, %v15185_v56  ;;  %v21619_v54 = vrot.slane %v17680_v29, %v18888_v24  ;;  %v21622_v10 = vrot.slane %v17682_v0, %v18888_v24 }
0x212a   :  { %v17688_v59 = vcombine.low %v15644_v41, %v15651_v46  ;;  %v17690_v11 = vcombine.high %v15644_v41, %v15651_v46  ;;  %v15191_v55 = vpop.permute.xlu0 %15190  ;;  %v21625_v22 = vrot.slane %v17684_v16, %v18888_v24  ;;  %v21628_v3 = vrot.slane %v17686_v23, %v18888_v24 }
0x212b   :  { %v17692_v6 = vcombine.low %v15660_v60, %v15667_v47  ;;  %v17694_v37 = vcombine.high %v15660_v60, %v15667_v47  ;;  %v15540_v21 = vcombine.low %v21556_v13, %v15187_v63  ;;  %v15541_v62 = vcombine.high %v21556_v13, %v15187_v63 }
0x212c   :  { %v15193_v17 = vpop.permute.xlu1 %15192  ;;  %v15284_v44 = vcombine.low %v15179_v42, %v15191_v55  ;;  %v15285_v12 = vcombine.high %v15179_v42, %v15191_v55  ;;  %v21633_v28 = vrot.slane %v17688_v59, %v18888_v24  ;;  %v21636_v40 = vrot.slane %v17690_v11, %v18888_v24 }
0x212d   :  { %v15556_v2 = vcombine.low %v15181_v14, %v15193_v17  ;;  %v15557_v20 = vcombine.high %v15181_v14, %v15193_v17  ;;  %v15276_v45 = vrot.slane %v15268_v33, %v18888_v24  ;;  %v15283_v43 = vrot.slane %v15269_v52, %v18888_v24 }
0x212e   :  { %v15292_v34 = vrot.slane %v15284_v44, %v18888_v24  ;;  %v15299_v57 = vrot.slane %v15285_v12, %v18888_v24  ;;  %v21645_v32 = vrot.slane %v17692_v6, %v18888_v24  ;;  %v21648_v5 = vrot.slane %v17694_v37, %v18888_v24 }
0x212f   :  { %v15564_v30 = vrot.slane %v15556_v2, %v18888_v24  ;;  %v15571_v42 = vrot.slane %v15557_v20, %v18888_v24  ;;  %v15548_v8 = vrot.slane %v15540_v21, %v18888_v24  ;;  %v15555_v48 = vrot.slane %v15541_v62, %v18888_v24 }
0x2130   :  { %v15332_v26 = vcombine.low %v15276_v45, %v15292_v34  ;;  %v15333_v4 = vcombine.high %v15276_v45, %v15292_v34  ;;  %v15348_v14 = vcombine.low %v15283_v43, %v15299_v57  ;;  %v15349_v53 = vcombine.high %v15283_v43, %v15299_v57 }
0x2131   :  { %v15604_v27 = vcombine.low %v15548_v8, %v15564_v30  ;;  %v15605_v61 = vcombine.high %v15548_v8, %v15564_v30  ;;  %v15620_v15 = vcombine.low %v15555_v48, %v15571_v42  ;;  %v15621_v50 = vcombine.high %v15555_v48, %v15571_v42 }
0x2132   :  { %v15340_v25 = vrot.slane %v15332_v26, %v18890_v31  ;;  %v15347_v36 = vrot.slane %v15333_v4, %v18890_v31  ;;  %v15356_v39 = vrot.slane %v15348_v14, %v18890_v31  ;;  %v15363_v56 = vrot.slane %v15349_v53, %v18890_v31 }
0x2133   :  { %v15612_v29 = vrot.slane %v15604_v27, %v18890_v31  ;;  %v15619_v0 = vrot.slane %v15605_v61, %v18890_v31  ;;  %v15628_v16 = vrot.slane %v15620_v15, %v18890_v31  ;;  %v15635_v23 = vrot.slane %v15621_v50, %v18890_v31 }
0x2134   :  { %v17679_v41 = vcombine.low %v15340_v25, %v15347_v36  ;;  %v17681_v46 = vcombine.high %v15340_v25, %v15347_v36  ;;  %v17683_v63 = vcombine.low %v15356_v39, %v15363_v56  ;;  %v17685_v60 = vcombine.high %v15356_v39, %v15363_v56 }
0x2135   :  { %v17687_v47 = vcombine.low %v15612_v29, %v15619_v0  ;;  %v17689_v59 = vcombine.high %v15612_v29, %v15619_v0  ;;  %v17691_v11 = vcombine.low %v15628_v16, %v15635_v23  ;;  %v17693_v33 = vcombine.high %v15628_v16, %v15635_v23 }
0x2136   :  { %v15892_v52 = vcombine.low %v21619_v54, %v21622_v10  ;;  %v15924_v55 = vcombine.low %v21625_v22, %v21628_v3  ;;  %v16028_v17 = vcombine.low %v21633_v28, %v21636_v40  ;;  %v15820_v44 = vrot.slane %v17679_v41, %v18888_v24 }
0x2137   :  { %v15956_v6 = vrot.slane %v17687_v47, %v18888_v24  ;;  %v15972_v37 = vrot.slane %v17689_v59, %v18888_v24  ;;  %v15988_v21 = vrot.slane %v17691_v11, %v18888_v24  ;;  %v16004_v62 = vrot.slane %v17693_v33, %v18888_v24 }
0x2138   :  { %v15836_v12 = vrot.slane %v17681_v46, %v18888_v24  ;;  %v15852_v2 = vrot.slane %v17683_v63, %v18888_v24  ;;  %v15868_v20 = vrot.slane %v17685_v60, %v18888_v24  ;;  %v16060_v45 = vcombine.low %v21645_v32, %v21648_v5 }
0x2139   :  { %v16012_v43 = vcombine.low %v15956_v6, %v15972_v37  ;;  %v16044_v34 = vcombine.low %v15988_v21, %v16004_v62  ;;  %v15900_v57 = vrot.slane %v15892_v52, %v18890_v31  ;;  %v15932_v30 = vrot.slane %v15924_v55, %v18890_v31 }
0x213a   :  { %v15876_v42 = vcombine.low %v15820_v44, %v15836_v12  ;;  %v15908_v8 = vcombine.low %v15852_v2, %v15868_v20  ;;  %v16036_v48 = vrot.slane %v16028_v17, %v18890_v31  ;;  %v16068_v26 = vrot.slane %v16060_v45, %v18890_v31 }
0x213b   :  { %v16013_v4 = vcombine.high %v15956_v6, %v15972_v37  ;;  %v16020_v14 = vrot.slane %v16012_v43, %v18890_v31  ;;  %v16045_v53 = vcombine.high %v15988_v21, %v16004_v62  ;;  %v16052_v27 = vrot.slane %v16044_v34, %v18890_v31 }
0x213c   :  { %v15944_v61 = vcombine.low %v15900_v57, %v15932_v30  ;;  %v16080_v15 = vcombine.low %v16036_v48, %v16068_v26  ;;  %v15945_v50 = vcombine.high %v15900_v57, %v15932_v30  ;;  %v16081_v25 = vcombine.high %v16036_v48, %v16068_v26 }
0x213d   :  { %v15884_v36 = vrot.slane %v15876_v42, %v18890_v31  ;;  %v15916_v39 = vrot.slane %v15908_v8, %v18890_v31  ;;  %v15893_v56 = vcombine.high %v21619_v54, %v21622_v10  ;;  %v15925_v29 = vcombine.high %v21625_v22, %v21628_v3 }
0x213e   :  { %v16360_v0 = vpack.c.bf16 %v16080_v15, %v15944_v61  ;;  %v16361_v16 = vpack.c.bf16 %v16081_v25, %v15945_v50  ;;  %v16029_v23 = vcombine.high %v21633_v28, %v21636_v40  ;;  %v16061_v41 = vcombine.high %v21645_v32, %v21648_v5 }
0x213f   :  { %v16076_v46 = vcombine.low %v16020_v14, %v16052_v27  ;;  %v16077_v63 = vcombine.high %v16020_v14, %v16052_v27  ;;  %v15907_v60 = vrot.slane %v15893_v56, %v18890_v31  ;;  %v15939_v47 = vrot.slane %v15925_v29, %v18890_v31 }
0x2140   :  { %v16372_v59 = vsel %vm1291_vm2, %v16360_v0, 0  ;;  %v16419_v54 = vsel %vm1291_vm2, %v16361_v16, 0  ;;  %v16043_v10 = vrot.slane %v16029_v23, %v18890_v31  ;;  %v16075_v22 = vrot.slane %v16061_v41, %v18890_v31 }
0x2141   :  { %18355 = vmatpush3.bf16.xpose.msra.mxu1 %v16372_v59  ;;  %18361 = vmatpush3.bf16.xpose.msra.mxu0 %v16419_v54  ;;  %v15940_v3 = vcombine.low %v15884_v36, %v15916_v39  ;;  %v15941_v28 = vcombine.high %v15884_v36, %v15916_v39  ;;  %v15946_v40 = vcombine.low %v15907_v60, %v15939_v47 }
0x2142   :  { %18366 = vmatprep.subr.bf16.mxu1 %v18756_v1  ;;  %18372 = vmatprep.subr.bf16.mxu0 %v18756_v1  ;;  %v16082_v32 = vcombine.low %v16043_v10, %v16075_v22  ;;  %v15947_v5 = vcombine.high %v15907_v60, %v15939_v47  ;;  %v16083_v11 = vcombine.high %v16043_v10, %v16075_v22 }
0x2143   :  { %v15877_v33 = vcombine.high %v15820_v44, %v15836_v12  ;;  %v15909_v52 = vcombine.high %v15852_v2, %v15868_v20  ;;  %v16356_v55 = vpack.c.bf16 %v16076_v46, %v15940_v3  ;;  %v16357_v17 = vpack.c.bf16 %v16077_v63, %v15941_v28 }
0x2144   :  { %v16362_v6 = vpack.c.bf16 %v16082_v32, %v15946_v40  ;;  %v16363_v37 = vpack.c.bf16 %v16083_v11, %v15947_v5  ;;  %v16027_v21 = vrot.slane %v16013_v4, %v18890_v31  ;;  %v16059_v62 = vrot.slane %v16045_v53, %v18890_v31  ;;  %v21759_v11 = vpop.permute.xlu0 %15232 }
0x2145   :  { %v15891_v45 = vrot.slane %v15877_v33, %v18890_v31  ;;  %v15923_v43 = vrot.slane %v15909_v52, %v18890_v31 }
0x2146   :  { %v16466_v34 = vsel %vm1291_vm2, %v16362_v6, 0  ;;  %v16513_v44 = vsel %vm1291_vm2, %v16363_v37, 0  ;;  %v16078_v12 = vcombine.low %v16027_v21, %v16059_v62  ;;  %v16079_v2 = vcombine.high %v16027_v21, %v16059_v62 }
0x2147   :  { %v15942_v20 = vcombine.low %v15891_v45, %v15923_v43  ;;  %v15943_v57 = vcombine.high %v15891_v45, %v15923_v43 }
0x2148   :  { %18357 = vmatmul.mubr.msk.bf16.vlgmr.msra.gmra.mrb[128].mxu1 %vm1291_vm2, %v16356_v55  ;;  %18363 = vmatmul.mubr.msk.bf16.vlgmr.msra.gmra.mrb[144].mxu0 %vm1291_vm2, %v16357_v17  ;;  %v15223_v52 = vpop.permute.xlu0 %15222 }
0x2149   :  { %18367 = vmatpush3.bf16.xpose.msra.mxu1 %v16466_v34  ;;  %18373 = vmatpush3.bf16.xpose.msra.mxu0 %v16513_v44  ;;  %v16358_v30 = vpack.c.bf16 %v16078_v12, %v15942_v20  ;;  %v16359_v42 = vpack.c.bf16 %v16079_v2, %v15943_v57 }
0x214a   :  { %18368 = vmatprep.mubr.msk.bf16.mxu1 %vm18757_vm1, %v18756_v1  ;;  %18374 = vmatprep.mubr.msk.bf16.mxu0 %vm18757_vm1, %v18756_v1 }
0x214b   :  { %18378 = vmatprep.subr.bf16.mxu1 %v18756_v1  ;;  %18384 = vmatprep.subr.bf16.mxu0 %v18756_v1 }
0x2150   :  { %18369 = vmatmul.mubr.msk.bf16.vlgmr.msra.gmra.mrb[132].mxu1 %vm1291_vm2, %v16358_v30  ;;  %18375 = vmatmul.mubr.msk.bf16.vlgmr.msra.gmra.mrb[148].mxu0 %vm1291_vm2, %v16359_v42 }
0x2151   :  { %18380 = vmatprep.mubr.msk.bf16.mxu1 %vm18757_vm1, %v18756_v1  ;;  %18386 = vmatprep.mubr.msk.bf16.mxu0 %vm18757_vm1, %v18756_v1 }
0x221b   :  { %v16408_v8 = vpop.f32.mrb[128].mxu1  ;;  %v16455_v48 = vpop.f32.mrb[144].mxu0 }
0x221c   :  { %v16409_v26 = vadd.f32 %v19011_v18, %v16408_v8  ;;  %v18358_v4 = vpop.f32.mrb[129].mxu1  ;;  %v18364_v14 = vpop.f32.mrb[145].mxu0  ;;  %v16456_v61 = vadd.f32 %v19011_v18, %v16455_v48 }
0x221d   :  { %v16411_v53 = vpop.f32.mrb[130].mxu1  ;;  %v16458_v27 = vpop.f32.mrb[146].mxu0 }
0x221e   :  { %v16412_v15 = vadd.f32 %v19013_v19, %v16411_v53  ;;  %v18359_v50 = vpop.f32.mrb[131].mxu1  ;;  %v18365_v25 = vpop.f32.mrb[147].mxu0  ;;  %v16556_v36 = vsel %vm52_vm0, %v16409_v26, -inf  ;;  %v16459_v56 = vadd.f32 %v19013_v19, %v16458_v27  ;;  %v16562_v29 = vsel %vm52_vm0, %v16456_v61, -inf }
0x221f   :  { %16557 = vmax.xlane.f32.xlu0 %v16556_v36 }
0x2220   :  { %v16559_v39 = vsel %vm52_vm0, %v16412_v15, -inf  ;;  %v16565_v22 = vsel %vm52_vm0, %v16459_v56, -inf }
0x2221   :  { %16560 = vmax.xlane.f32.xlu1 %v16559_v39 }
0x2223   :  { %v16549_v0 = vpop.f32.mrb[148].mxu0  ;;  %16563 = vmax.xlane.f32.xlu0 %v16562_v29  ;;  %v16502_v16 = vpop.f32.mrb[132].mxu1 }
0x2224   :  { %v16503_v23 = vadd.f32 %v19011_v18, %v16502_v16  ;;  %v18370_v41 = vpop.f32.mrb[133].mxu1  ;;  %v18376_v46 = vpop.f32.mrb[149].mxu0  ;;  %v16550_v47 = vadd.f32 %v19011_v18, %v16549_v0 }
0x2225   :  { %v16505_v63 = vpop.f32.mrb[134].mxu1  ;;  %v16552_v60 = vpop.f32.mrb[150].mxu0 }
0x2226   :  { %v16506_v59 = vadd.f32 %v19013_v19, %v16505_v63  ;;  %v18371_v54 = vpop.f32.mrb[135].mxu1  ;;  %v18377_v10 = vpop.f32.mrb[151].mxu0  ;;  %v16568_v3 = vsel %vm52_vm0, %v16503_v23, -inf  ;;  %v21733_v28 = vadd.f32 %v19013_v19, %v16552_v60  ;;  %v16574_v40 = vsel %vm52_vm0, %v16550_v47, -inf }
0x2227   :  { %16566 = vmax.xlane.f32.xlu0 %v16565_v22  ;;  %16569 = vmax.xlane.f32.xlu1 %v16568_v3  ;;  %v21755_v19 = vpop.permute.xlu1 %15220 }
0x2228   :  { %v16571_v32 = vsel %vm52_vm0, %v16506_v59, -inf  ;;  %v16577_v18 = vsel %vm52_vm0, %v21733_v28, -inf  ;;  %v15404_v29 = vcombine.low %v21755_v19, %v21759_v11  ;;  %v15405_v60 = vcombine.high %v21755_v19, %v21759_v11 }
0x222b   :  { %16575 = vmax.xlane.f32.xlu1 %v16574_v40  ;;  %16572 = vmax.xlane.f32.xlu0 %v16571_v32  ;;  %v21757_v5 = vpop.permute.xlu1 %15226  ;;  %v15412_v32 = vrot.slane %v15404_v29, %v18888_v24 }
0x222f   :  { %16578 = vmax.xlane.f32.xlu0 %v16577_v18  ;;  %v15229_v33 = vpop.permute.xlu1 %15228 }
0x2233   :  { %v15235_v55 = vpop.permute.xlu1 %15234 }
0x2234   :  { %v15677_v36 = vcombine.high %v15223_v52, %v15235_v55 }
0x2236   :  { %v15691_v22 = vrot.slane %v15677_v36, %v18888_v24 }
0x223c   :  { %15240 = vrot.lane.b32.xlu1 %v21556_v13, %s18770_s1 }
0x2240   :  { %15244 = vrot.lane.b32.xlu1 %v21554_v38, %s18771_s23 }
0x2244   :  { %15250 = vrot.lane.b32.xlu1 %v21554_v38, %s18772_s24 }
0x2245   :  { %15238 = vrot.lane.b32.xlu0 %v21554_v38, %s18770_s1 }
0x2248   :  { %15252 = vrot.lane.b32.xlu1 %v21556_v13, %s18772_s24 }
0x2249   :  { %15246 = vrot.lane.b32.xlu0 %v21556_v13, %s18771_s23 }
0x224c   :  { %15258 = vrot.lane.b32.xlu1 %v21556_v13, %s18773_s25 }
0x224d   :  { %15256 = vrot.lane.b32.xlu0 %v21554_v38, %s18773_s25 }
0x22ac   :  { %v16558_v17 = vpop.xlane.xlu0 %16557 }
0x22ad   :  { %v16580_v6 = vmax.f32 %v16558_v17, 0.0 }
0x22ae   :  { %v16561_v37 = vpop.xlane.xlu1 %16560 }
0x22af   :  { %v16588_v21 = vsub.f32 %v16409_v26, %v16580_v6  ;;  %v16581_v62 = vmax.f32 %v16561_v37, 0.0 }
0x22b0   :  { %v16564_v45 = vpop.xlane.xlu0 %16563 }
0x22b1   :  { %v16596_v43 = vmul.f32 1.442695, %v16588_v21  ;;  %v16589_v34 = vsub.f32 %v16412_v15, %v16581_v62  ;;  %v16582_v44 = vmax.f32 %v16564_v45, 0.0  ;;  %v15676_v15 = vcombine.low %v15223_v52, %v15235_v55 }
0x22b3   :  { %18693 = vpow2.f32 %v16596_v43  ;;  %v16598_v12 = vmul.f32 1.442695, %v16589_v34  ;;  %v16590_v2 = vsub.f32 %v16456_v61, %v16582_v44  ;;  %v15684_v54 = vrot.slane %v15676_v15, %v18888_v24 }
0x22b4   :  { %v16567_v20 = vpop.xlane.xlu0 %16566  ;;  %v16570_v57 = vpop.xlane.xlu1 %16569 }
0x22b5   :  { %18695 = vpow2.f32 %v16598_v12  ;;  %v16600_v30 = vmul.f32 1.442695, %v16590_v2  ;;  %v16583_v42 = vmax.f32 %v16567_v20, 0.0  ;;  %v16584_v8 = vmax.f32 %v16570_v57, 0.0 }
0x22b6   :  { %v15419_v12 = vrot.slane %v15405_v60, %v18888_v24 }
0x22b7   :  { %18697 = vpow2.f32 %v16600_v30  ;;  %v16591_v48 = vsub.f32 %v16459_v56, %v16583_v42  ;;  %v16592_v4 = vsub.f32 %v16503_v23, %v16584_v8 }
0x22b8   :  { %v16576_v14 = vpop.xlane.xlu1 %16575  ;;  %v16573_v53 = vpop.xlane.xlu0 %16572 }
0x22b9   :  { %v16602_v26 = vmul.f32 1.442695, %v16591_v48  ;;  %v16604_v27 = vmul.f32 1.442695, %v16592_v4  ;;  %v16586_v50 = vmax.f32 %v16576_v14, 0.0  ;;  %v16585_v25 = vmax.f32 %v16573_v53, 0.0 }
0x22bb   :  { %18699 = vpow2.f32 %v16602_v26  ;;  %v16594_v39 = vsub.f32 %v16550_v47, %v16586_v50  ;;  %v16593_v61 = vsub.f32 %v16506_v59, %v16585_v25 }
0x22bc   :  { %18701 = vpow2.f32 %v16604_v27  ;;  %v15241_v0 = vpop.permute.xlu1 %15240  ;;  %v16579_v16 = vpop.xlane.xlu0 %16578 }
0x22bd   :  { %v21763_v41 = vpop.eup %18693  ;;  %v16608_v56 = vmul.f32 1.442695, %v16594_v39  ;;  %v16606_v23 = vmul.f32 1.442695, %v16593_v61  ;;  %v15692_v46 = vcombine.low %v15229_v33, %v15241_v0  ;;  %v15693_v63 = vcombine.high %v15229_v33, %v15241_v0 }
0x22be   :  { %v16587_v10 = vmax.f32 %v16579_v16, 0.0  ;;  %v16612_v47 = vsel %vm52_vm0, %v21763_v41, 0.0 }
0x22bf   :  { %v21770_v59 = vpop.eup %18695  ;;  %18703 = vpow2.f32 %v16608_v56  ;;  %v15700_v3 = vrot.slane %v15692_v46, %v18888_v24  ;;  %v15707_v40 = vrot.slane %v15693_v63, %v18888_v24  ;;  %16613 = vadd.xlane.f32.xlu0 %v16612_v47 }
0x22c0   :  { %18705 = vpow2.f32 %v16606_v23  ;;  %v16595_v18 = vsub.f32 %v21733_v28, %v16587_v10  ;;  %v15239_v19 = vpop.permute.xlu0 %15238  ;;  %v16615_v11 = vsel %vm52_vm0, %v21770_v59, 0.0 }
0x22c1   :  { %v21779_v33 = vpop.eup %18697  ;;  %v15740_v52 = vcombine.low %v15684_v54, %v15700_v3  ;;  %v15741_v55 = vcombine.high %v15684_v54, %v15700_v3  ;;  %v15756_v17 = vcombine.low %v15691_v22, %v15707_v40  ;;  %v15757_v6 = vcombine.high %v15691_v22, %v15707_v40  ;;  %16616 = vadd.xlane.f32.xlu1 %v16615_v11 }
0x22c2   :  { %v16610_v37 = vmul.f32 1.442695, %v16595_v18  ;;  %v15420_v21 = vcombine.low %v21757_v5, %v15239_v19  ;;  %v15421_v62 = vcombine.high %v21757_v5, %v15239_v19  ;;  %v16618_v45 = vsel %vm52_vm0, %v21779_v33, 0.0 }
0x22c3   :  { %v15748_v28 = vrot.slane %v15740_v52, %v18890_v31  ;;  %v15755_v43 = vrot.slane %v15741_v55, %v18890_v31  ;;  %v15764_v34 = vrot.slane %v15756_v17, %v18890_v31  ;;  %v15771_v44 = vrot.slane %v15757_v6, %v18890_v31  ;;  %16619 = vadd.xlane.f32.xlu0 %v16618_v45 }
0x22c4   :  { %18707 = vpow2.f32 %v16610_v37  ;;  %v15428_v2 = vrot.slane %v15420_v21, %v18888_v24  ;;  %v15435_v20 = vrot.slane %v15421_v62, %v18888_v24 }
0x22c5   :  { %v21792_v5 = vpop.eup %18699  ;;  %v17703_v57 = vcombine.low %v15748_v28, %v15755_v43  ;;  %v17705_v30 = vcombine.high %v15748_v28, %v15755_v43  ;;  %v17707_v42 = vcombine.low %v15764_v34, %v15771_v44  ;;  %v17709_v8 = vcombine.high %v15764_v34, %v15771_v44 }
0x22c6   :  { %v21794_v48 = vpop.eup %18701  ;;  %v15468_v4 = vcombine.low %v15412_v32, %v15428_v2  ;;  %v15469_v14 = vcombine.high %v15412_v32, %v15428_v2  ;;  %v15484_v53 = vcombine.low %v15419_v12, %v15435_v20  ;;  %v15485_v26 = vcombine.high %v15419_v12, %v15435_v20 }
0x22c7   :  { %v16228_v27 = vrot.slane %v17703_v57, %v18888_v24  ;;  %v16244_v50 = vrot.slane %v17705_v30, %v18888_v24  ;;  %v16260_v29 = vrot.slane %v17707_v42, %v18888_v24  ;;  %v16276_v0 = vrot.slane %v17709_v8, %v18888_v24 }
0x22c8   :  { %v15476_v25 = vrot.slane %v15468_v4, %v18890_v31  ;;  %v15483_v15 = vrot.slane %v15469_v14, %v18890_v31  ;;  %v15492_v36 = vrot.slane %v15484_v53, %v18890_v31  ;;  %v15499_v39 = vrot.slane %v15485_v26, %v18890_v31 }
0x22c9   :  { %v21802_v61 = vpop.eup %18703  ;;  %v16624_v16 = vsel %vm52_vm0, %v21794_v48, 0.0  ;;  %v16621_v56 = vsel %vm52_vm0, %v21792_v5, 0.0  ;;  %v16284_v18 = vcombine.low %v16228_v27, %v16244_v50  ;;  %v16316_v19 = vcombine.low %v16260_v29, %v16276_v0 }
0x22ca   :  { %v21810_v23 = vpop.eup %18705  ;;  %v17695_v46 = vcombine.low %v15476_v25, %v15483_v15  ;;  %v17697_v63 = vcombine.high %v15476_v25, %v15483_v15  ;;  %v17699_v60 = vcombine.low %v15492_v36, %v15499_v39  ;;  %v17701_v54 = vcombine.high %v15492_v36, %v15499_v39  ;;  %16625 = vadd.xlane.f32.xlu1 %v16624_v16 }
0x22cb   :  { %16622 = vadd.xlane.f32.xlu0 %v16621_v56  ;;  %v16630_v10 = vsel %vm52_vm0, %v21802_v61, 0.0  ;;  %v16627_v47 = vsel %vm52_vm0, %v21810_v23, 0.0  ;;  %v16292_v6 = vrot.slane %v16284_v18, %v18890_v31  ;;  %v16324_v45 = vrot.slane %v16316_v19, %v18890_v31 }
0x22cc   :  { %v16092_v22 = vrot.slane %v17695_v46, %v18888_v24  ;;  %v16108_v3 = vrot.slane %v17697_v63, %v18888_v24  ;;  %v16124_v40 = vrot.slane %v17699_v60, %v18888_v24  ;;  %v16140_v32 = vrot.slane %v17701_v54, %v18888_v24 }
0x22cd   :  { %v16285_v34 = vcombine.high %v16228_v27, %v16244_v50  ;;  %v16317_v44 = vcombine.high %v16260_v29, %v16276_v0  ;;  %v16348_v2 = vcombine.low %v16292_v6, %v16324_v45  ;;  %v16349_v57 = vcombine.high %v16292_v6, %v16324_v45 }
0x22ce   :  { %v18708_v11 = vpop.eup %18707  ;;  %16631 = vadd.xlane.f32.xlu1 %v16630_v10  ;;  %v16148_v52 = vcombine.low %v16092_v22, %v16108_v3  ;;  %v16180_v55 = vcombine.low %v16124_v40, %v16140_v32  ;;  %v16149_v17 = vcombine.high %v16092_v22, %v16108_v3  ;;  %v16181_v43 = vcombine.high %v16124_v40, %v16140_v32 }
0x22cf   :  { %16628 = vadd.xlane.f32.xlu0 %v16627_v47  ;;  %v16633_v37 = vsel %vm52_vm0, %v18708_v11, 0.0  ;;  %v16299_v42 = vrot.slane %v16285_v34, %v18890_v31  ;;  %v16331_v8 = vrot.slane %v16317_v44, %v18890_v31  ;;  %v16636_v50 = vpack.c.bf16 %v21770_v59, %v21763_v41 }
0x22d0   :  { %v16156_v21 = vrot.slane %v16148_v52, %v18890_v31  ;;  %v16188_v62 = vrot.slane %v16180_v55, %v18890_v31  ;;  %v16163_v28 = vrot.slane %v16149_v17, %v18890_v31  ;;  %v16195_v30 = vrot.slane %v16181_v43, %v18890_v31 }
0x22d1   :  { %v16350_v25 = vcombine.low %v16299_v42, %v16331_v8  ;;  %v16351_v27 = vcombine.high %v16299_v42, %v16331_v8  ;;  %v16637_v15 = vpack.c.bf16 %v21792_v5, %v21779_v33  ;;  %v16638_v41 = vpack.c.bf16 %v21810_v23, %v21794_v48  ;;  %v15247_v33 = vpop.permute.xlu0 %15246 }
0x22d2   :  { %v16212_v12 = vcombine.low %v16156_v21, %v16188_v62  ;;  %v16213_v20 = vcombine.high %v16156_v21, %v16188_v62  ;;  %v16214_v53 = vcombine.low %v16163_v28, %v16195_v30  ;;  %v16215_v26 = vcombine.high %v16163_v28, %v16195_v30 }
0x22d3   :  { %16634 = vadd.xlane.f32.xlu0 %v16633_v37  ;;  %v16639_v59 = vpack.c.bf16 %v18708_v11, %v21802_v61 }
0x22d4   :  { %v16364_v4 = vpack.c.bf16 %v16348_v2, %v16212_v12  ;;  %v16365_v14 = vpack.c.bf16 %v16349_v57, %v16213_v20  ;;  %v16366_v36 = vpack.c.bf16 %v16350_v25, %v16214_v53  ;;  %v16367_v39 = vpack.c.bf16 %v16351_v27, %v16215_v26 }
0x22d5   :  { %v15257_v5 = vpop.permute.xlu0 %15256 }
0x22d6   :  { %18379 = vmatpush3.bf16.msra.mxu1 %v16364_v4  ;;  %18385 = vmatpush3.bf16.msra.mxu0 %v16365_v14 }
0x22d7   :  { %18390 = vmatprep.subr.bf16.mxu1 %v18756_v1  ;;  %18396 = vmatprep.subr.bf16.mxu0 %v18756_v1 }
0x22d9   :  { %18381 = vmatmul.mubr.msk.bf16.vlgmr.msra.gmra.mrb[136].mxu1 %vm52_vm0, %v16636_v50  ;;  %18387 = vmatmul.mubr.msk.bf16.vlgmr.msra.gmra.mrb[152].mxu0 %vm52_vm0, %v16637_v15 }
0x22da   :  { %18391 = vmatpush3.bf16.msra.mxu1 %v16366_v36  ;;  %18397 = vmatpush3.bf16.msra.mxu0 %v16367_v39 }
0x22db   :  { %18392 = vmatprep.mubr.msk.bf16.mxu1 %vm18757_vm1, %v18756_v1  ;;  %18398 = vmatprep.mubr.msk.bf16.mxu0 %vm18757_vm1, %v18756_v1 }
0x22dc   :  { %18430 = vmatprep.subr.bf16.mxu1 %v18775_v9  ;;  %v15245_v9 = vpop.permute.xlu1 %15244 }
0x22dd   :  { %v15437_v22 = vcombine.high %v15245_v9, %v15257_v5 }
0x22df   :  { %15264 = vrot.lane.b32.xlu1 %v21556_v13, %s18774_s26  ;;  %v15451_v55 = vrot.slane %v15437_v22, %v18888_v24 }
0x22e0   :  { %v15251_v13 = vpop.permute.xlu1 %15250 }
0x22e1   :  { %18393 = vmatmul.mubr.msk.bf16.vlgmr.msra.gmra.mrb[140].mxu1 %vm52_vm0, %v16638_v41  ;;  %18399 = vmatmul.mubr.msk.bf16.vlgmr.msra.gmra.mrb[156].mxu0 %vm52_vm0, %v16639_v59 }
0x22e2   :  { %18406 = vmatprep.mubr.msk.f32.mxu1 %vm18757_vm1, %v18756_v1 }
0x22e4   :  { %v15253_v16 = vpop.permute.xlu1 %15252 }
0x22e8   :  { %v15259_v56 = vpop.permute.xlu1 %15258 }
0x22e9   :  { %15262 = vrot.lane.b32.xlu0 %v21554_v38, %s18774_s26  ;;  %v15436_v38 = vcombine.low %v15245_v9, %v15257_v5  ;;  %v15708_v19 = vcombine.low %v15247_v33, %v15259_v56  ;;  %v15709_v11 = vcombine.high %v15247_v33, %v15259_v56 }
0x22eb   :  { %v15444_v52 = vrot.slane %v15436_v38, %v18888_v24  ;;  %v15716_v34 = vrot.slane %v15708_v19, %v18888_v24  ;;  %v15723_v44 = vrot.slane %v15709_v11, %v18888_v24 }
0x234c   :  { %v16614_v29 = vpop.xlane.xlu0 %16613 }
0x234d   :  { %vm16816_vm1 = vcmp.gt.f32.partialorder %v16614_v29, 0.0 }
0x234e   :  { %v16617_v61 = vpop.xlane.xlu1 %16616  ;;  %v16824_v17 = vsel %vm16816_vm1, %v16614_v29, 1.0 }
0x234f   :  { %vm16817_vm12 = vcmp.gt.f32.partialorder %v16617_v61, 0.0  ;;  %18709 = vrcp.f32 %v16824_v17 }
0x2350   :  { %v16620_v0 = vpop.xlane.xlu0 %16619  ;;  %v16825_v6 = vsel %vm16817_vm12, %v16617_v61, 1.0 }
0x2351   :  { %vm16818_vm7 = vcmp.gt.f32.partialorder %v16620_v0, 0.0  ;;  %18711 = vrcp.f32 %v16825_v6 }
0x2352   :  { %v16826_v12 = vsel %vm16818_vm7, %v16620_v0, 1.0 }
0x2353   :  { %18713 = vrcp.f32 %v16826_v12 }
0x2357   :  { %v16626_v46 = vpop.xlane.xlu1 %16625 }
0x2358   :  { %v16623_v48 = vpop.xlane.xlu0 %16622  ;;  %vm16820_vm8 = vcmp.gt.f32.partialorder %v16626_v46, 0.0 }
0x2359   :  { %vm16819_vm9 = vcmp.gt.f32.partialorder %v16623_v48, 0.0  ;;  %v16828_v53 = vsel %vm16820_vm8, %v16626_v46, 1.0  ;;  %v18710_v5 = vpop.eup %18709 }
0x235a   :  { %v16827_v26 = vsel %vm16819_vm9, %v16623_v48, 1.0  ;;  %18715 = vrcp.f32 %v16828_v53 }
0x235b   :  { %v16632_v60 = vpop.xlane.xlu1 %16631  ;;  %18717 = vrcp.f32 %v16827_v26  ;;  %v18712_v48 = vpop.eup %18711 }
0x235c   :  { %v16629_v23 = vpop.xlane.xlu0 %16628  ;;  %vm16822_vm10 = vcmp.gt.f32.partialorder %v16632_v60, 0.0 }
0x235d   :  { %vm16821_vm14 = vcmp.gt.f32.partialorder %v16629_v23, 0.0  ;;  %v16830_v33 = vsel %vm16822_vm10, %v16632_v60, 1.0 }
0x235e   :  { %v16829_v9 = vsel %vm16821_vm14, %v16629_v23, 1.0  ;;  %18719 = vrcp.f32 %v16830_v33  ;;  %v18714_v23 = vpop.eup %18713 }
0x235f   :  { %v15265_v1 = vpop.permute.xlu1 %15264  ;;  %18721 = vrcp.f32 %v16829_v9 }
0x2360   :  { %v21853_v63 = vpop.xlane.xlu0 %16634  ;;  %v15724_v3 = vcombine.low %v15253_v16, %v15265_v1  ;;  %v15725_v40 = vcombine.high %v15253_v16, %v15265_v1 }
0x2361   :  { %vm16823_vm15 = vcmp.gt.f32.partialorder %v21853_v63, 0.0 }
0x2362   :  { %v15732_v37 = vrot.slane %v15724_v3, %v18888_v24  ;;  %v15739_v21 = vrot.slane %v15725_v40, %v18888_v24  ;;  %v16831_v60 = vsel %vm16823_vm15, %v21853_v63, 1.0 }
0x2363   :  { %18723 = vrcp.f32 %v16831_v60 }
0x2364   :  { %v15263_v54 = vpop.permute.xlu0 %15262  ;;  %v15772_v2 = vcombine.low %v15716_v34, %v15732_v37  ;;  %v15773_v20 = vcombine.high %v15716_v34, %v15732_v37  ;;  %v15788_v57 = vcombine.low %v15723_v44, %v15739_v21  ;;  %v15789_v30 = vcombine.high %v15723_v44, %v15739_v21  ;;  %v18716_v17 = vpop.eup %18715 }
0x2365   :  { %v15452_v10 = vcombine.low %v15251_v13, %v15263_v54  ;;  %v15453_v47 = vcombine.high %v15251_v13, %v15263_v54 }
0x2366   :  { %v15780_v25 = vrot.slane %v15772_v2, %v18890_v31  ;;  %v15787_v27 = vrot.slane %v15773_v20, %v18890_v31  ;;  %v15796_v50 = vrot.slane %v15788_v57, %v18890_v31  ;;  %v15803_v15 = vrot.slane %v15789_v30, %v18890_v31 }
0x2367   :  { %v15460_v32 = vrot.slane %v15452_v10, %v18888_v24  ;;  %v15467_v18 = vrot.slane %v15453_v47, %v18888_v24 }
0x2368   :  { %v17704_v29 = vcombine.low %v15780_v25, %v15787_v27  ;;  %v17706_v13 = vcombine.high %v15780_v25, %v15787_v27  ;;  %v17708_v0 = vcombine.low %v15796_v50, %v15803_v15  ;;  %v17710_v16 = vcombine.high %v15796_v50, %v15803_v15 }
0x2369   :  { %v15500_v62 = vcombine.low %v15444_v52, %v15460_v32  ;;  %v15501_v45 = vcombine.high %v15444_v52, %v15460_v32  ;;  %v15516_v28 = vcombine.low %v15451_v55, %v15467_v18  ;;  %v15517_v43 = vcombine.high %v15451_v55, %v15467_v18 }
0x236a   :  { %v16235_v1 = vrot.slane %v17704_v29, %v18888_v24  ;;  %v16251_v10 = vrot.slane %v17706_v13, %v18888_v24  ;;  %v16267_v47 = vrot.slane %v17708_v0, %v18888_v24  ;;  %v16283_v38 = vrot.slane %v17710_v16, %v18888_v24 }
0x236b   :  { %v15508_v42 = vrot.slane %v15500_v62, %v18890_v31  ;;  %v15515_v8 = vrot.slane %v15501_v45, %v18890_v31  ;;  %v15524_v4 = vrot.slane %v15516_v28, %v18890_v31  ;;  %v15531_v14 = vrot.slane %v15517_v43, %v18890_v31  ;;  %v18718_v45 = vpop.eup %18717 }
0x236c   :  { %v16300_v6 = vcombine.low %v16235_v1, %v16251_v10  ;;  %v16332_v37 = vcombine.low %v16267_v47, %v16283_v38  ;;  %v16301_v34 = vcombine.high %v16235_v1, %v16251_v10  ;;  %v16333_v44 = vcombine.high %v16267_v47, %v16283_v38  ;;  %v18720_v30 = vpop.eup %18719 }
0x236d   :  { %v17696_v36 = vcombine.low %v15508_v42, %v15515_v8  ;;  %v17698_v39 = vcombine.high %v15508_v42, %v15515_v8  ;;  %v17700_v41 = vcombine.low %v15524_v4, %v15531_v14  ;;  %v17702_v59 = vcombine.high %v15524_v4, %v15531_v14  ;;  %v18722_v4 = vpop.eup %18721 }
0x236e   :  { %v16308_v42 = vrot.slane %v16300_v6, %v18890_v31  ;;  %v16340_v8 = vrot.slane %v16332_v37, %v18890_v31  ;;  %v16315_v27 = vrot.slane %v16301_v34, %v18890_v31  ;;  %v16347_v50 = vrot.slane %v16333_v44, %v18890_v31  ;;  %v18724_v9 = vpop.eup %18723 }
0x236f   :  { %v16099_v56 = vrot.slane %v17696_v36, %v18888_v24  ;;  %v16115_v61 = vrot.slane %v17698_v39, %v18888_v24  ;;  %v16131_v46 = vrot.slane %v17700_v41, %v18888_v24  ;;  %v16147_v54 = vrot.slane %v17702_v59, %v18888_v24 }
0x2370   :  { %v16352_v10 = vcombine.low %v16308_v42, %v16340_v8  ;;  %v16353_v47 = vcombine.high %v16308_v42, %v16340_v8  ;;  %v16354_v38 = vcombine.low %v16315_v27, %v16347_v50 }
0x2371   :  { %v16164_v22 = vcombine.low %v16099_v56, %v16115_v61  ;;  %v16196_v3 = vcombine.low %v16131_v46, %v16147_v54  ;;  %v16165_v11 = vcombine.high %v16099_v56, %v16115_v61  ;;  %v16197_v52 = vcombine.high %v16131_v46, %v16147_v54 }
0x2373   :  { %v16172_v28 = vrot.slane %v16164_v22, %v18890_v31  ;;  %v16204_v43 = vrot.slane %v16196_v3, %v18890_v31  ;;  %v16179_v12 = vrot.slane %v16165_v11, %v18890_v31  ;;  %v16211_v2 = vrot.slane %v16197_v52, %v18890_v31 }
0x2374   :  { %v16355_v22 = vcombine.high %v16315_v27, %v16347_v50 }
0x2375   :  { %v16216_v14 = vcombine.low %v16172_v28, %v16204_v43  ;;  %v16217_v53 = vcombine.high %v16172_v28, %v16204_v43  ;;  %v16218_v15 = vcombine.low %v16179_v12, %v16211_v2  ;;  %v16219_v39 = vcombine.high %v16179_v12, %v16211_v2 }
0x23ac   :  { %v16677_v40 = vpop.f32.mrb[136].mxu1  ;;  %v16721_v32 = vpop.f32.mrb[152].mxu0 }
0x23ad   :  { %v18382_v18 = vpop.f32.mrb[137].mxu1  ;;  %v18388_v19 = vpop.f32.mrb[153].mxu0  ;;  %v16840_v20 = vmul.f32 %v18710_v5, %v16677_v40  ;;  %v16842_v57 = vmul.f32 %v18714_v23, %v16721_v32 }
0x23ae   :  { %v16680_v63 = vpop.f32.mrb[138].mxu1  ;;  %v16724_v55 = vpop.f32.mrb[154].mxu0 }
0x23af   :  { %v18383_v21 = vpop.f32.mrb[139].mxu1  ;;  %v18389_v62 = vpop.f32.mrb[155].mxu0  ;;  %v16848_v5 = vadd.f32 %v16840_v20, %v16216_v14  ;;  %v16850_v29 = vadd.f32 %v16842_v57, %v16217_v53  ;;  %v16841_v13 = vmul.f32 %v18712_v48, %v16680_v63  ;;  %v16843_v0 = vmul.f32 %v18718_v45, %v16724_v55 }
0x23b1   :  { %v16849_v19 = vadd.f32 %v16841_v13, %v16352_v10  ;;  %v16851_v11 = vadd.f32 %v16843_v0, %v16353_v47 }
0x23b4   :  { %v16765_v26 = vpop.f32.mrb[140].mxu1  ;;  %v16809_v25 = vpop.f32.mrb[156].mxu0 }
0x23b5   :  { %v16844_v36 = vmul.f32 %v18716_v17, %v16765_v26  ;;  %v16846_v41 = vmul.f32 %v18720_v30, %v16809_v25  ;;  %v18394_v59 = vpop.f32.mrb[141].mxu1  ;;  %v18400_v33 = vpop.f32.mrb[157].mxu0 }
0x23b6   :  { %v16768_v16 = vpop.f32.mrb[142].mxu1  ;;  %v16812_v56 = vpop.f32.mrb[158].mxu0 }
0x23b7   :  { %v16852_v61 = vadd.f32 %v16844_v36, %v16218_v15  ;;  %v16854_v46 = vadd.f32 %v16846_v41, %v16219_v39  ;;  %v16845_v54 = vmul.f32 %v18722_v4, %v16768_v16  ;;  %v16847_v60 = vmul.f32 %v18724_v9, %v16812_v56  ;;  %v18395_v23 = vpop.f32.mrb[143].mxu1  ;;  %v18401_v1 = vpop.f32.mrb[159].mxu0 }
0x23b9   :  { %v16856_v3 = vcombine.low %v16848_v5, %v16852_v61  ;;  %v16857_v40 = vcombine.high %v16848_v5, %v16852_v61  ;;  %v16872_v32 = vcombine.low %v16850_v29, %v16854_v46  ;;  %v16873_v18 = vcombine.high %v16850_v29, %v16854_v46 }
0x23ba   :  { %v16853_v48 = vadd.f32 %v16845_v54, %v16354_v38  ;;  %v16855_v52 = vadd.f32 %v16847_v60, %v16355_v22 }
0x23bb   :  { %v16864_v63 = vrot.slane %v16856_v3, %v18888_v24  ;;  %v16871_v55 = vrot.slane %v16857_v40, %v18888_v24  ;;  %v16880_v17 = vrot.slane %v16872_v32, %v18888_v24  ;;  %v16887_v6 = vrot.slane %v16873_v18, %v18888_v24 }
0x23bc   :  { %v16924_v37 = vcombine.low %v16849_v19, %v16853_v48  ;;  %v16925_v21 = vcombine.high %v16849_v19, %v16853_v48  ;;  %v16940_v62 = vcombine.low %v16851_v11, %v16855_v52  ;;  %v16941_v45 = vcombine.high %v16851_v11, %v16855_v52 }
0x23bd   :  { %v16888_v28 = vcombine.low %v16864_v63, %v16880_v17  ;;  %v16889_v43 = vcombine.high %v16864_v63, %v16880_v17  ;;  %v16904_v34 = vcombine.low %v16871_v55, %v16887_v6  ;;  %v16905_v44 = vcombine.high %v16871_v55, %v16887_v6 }
0x23be   :  { %v16932_v12 = vrot.slane %v16924_v37, %v18888_v24  ;;  %v16939_v2 = vrot.slane %v16925_v21, %v18888_v24  ;;  %v16948_v20 = vrot.slane %v16940_v62, %v18888_v24  ;;  %v16955_v57 = vrot.slane %v16941_v45, %v18888_v24 }
0x23bf   :  { %v16896_v30 = vrot.slane %v16888_v28, %v18890_v31  ;;  %v16903_v42 = vrot.slane %v16889_v43, %v18890_v31  ;;  %v16912_v8 = vrot.slane %v16904_v34, %v18890_v31  ;;  %v16919_v4 = vrot.slane %v16905_v44, %v18890_v31 }
0x23c0   :  { %v16956_v14 = vcombine.low %v16932_v12, %v16948_v20  ;;  %v16957_v53 = vcombine.high %v16932_v12, %v16948_v20  ;;  %v16972_v26 = vcombine.low %v16939_v2, %v16955_v57  ;;  %v16973_v25 = vcombine.high %v16939_v2, %v16955_v57 }
0x23c1   :  { %v16992_v27 = vcombine.low %v16896_v30, %v16903_v42  ;;  %v17719_v50 = vcombine.high %v16896_v30, %v16903_v42  ;;  %v17008_v15 = vcombine.low %v16912_v8, %v16919_v4  ;;  %v17720_v36 = vcombine.high %v16912_v8, %v16919_v4  ;;  %v17724_v42 = vld [vmem:[%s21980_s6 + $0x7] ss:$0 sm:$0xff] }
0x23c2   :  { %v16964_v39 = vrot.slane %v16956_v14, %v18890_v31  ;;  %v16971_v41 = vrot.slane %v16957_v53, %v18890_v31  ;;  %v16980_v59 = vrot.slane %v16972_v26, %v18890_v31  ;;  %v16987_v33 = vrot.slane %v16973_v25, %v18890_v31  ;;  %v17726_v14 = vld [vmem:[%s21981_s7 + $0x7] ss:$0 sm:$0xff] }
0x23c3   :  { %v16999_v9 = vrot.slane %v16992_v27, %v18888_v24  ;;  %v17007_v5 = vrot.slane %v17719_v50, %v18888_v24  ;;  %v17015_v29 = vrot.slane %v17008_v15, %v18888_v24  ;;  %v17023_v13 = vrot.slane %v17720_v36, %v18888_v24 }
0x23c4   :  { %v17060_v0 = vcombine.low %v16964_v39, %v16971_v41  ;;  %v17721_v16 = vcombine.high %v16964_v39, %v16971_v41  ;;  %v17076_v56 = vcombine.low %v16980_v59, %v16987_v33  ;;  %v17722_v61 = vcombine.high %v16980_v59, %v16987_v33 }
0x23c5   :  { %v17024_v46 = vcombine.low %v16999_v9, %v17007_v5  ;;  %v17040_v54 = vcombine.low %v17015_v29, %v17023_v13  ;;  %v17025_v60 = vcombine.high %v16999_v9, %v17007_v5  ;;  %v17041_v23 = vcombine.high %v17015_v29, %v17023_v13 }
0x23c6   :  { %v17067_v1 = vrot.slane %v17060_v0, %v18888_v24  ;;  %v17075_v10 = vrot.slane %v17721_v16, %v18888_v24  ;;  %v17083_v47 = vrot.slane %v17076_v56, %v18888_v24  ;;  %v17091_v38 = vrot.slane %v17722_v61, %v18888_v24  ;;  %v18731_v0 = vld [vmem:[%s21976_s2] sm:$0x3] }
0x23c7   :  { %v17032_v22 = vrot.slane %v17024_v46, %v18890_v31  ;;  %v17048_v3 = vrot.slane %v17040_v54, %v18890_v31  ;;  %v17039_v40 = vrot.slane %v17025_v60, %v18890_v31  ;;  %v17055_v32 = vrot.slane %v17041_v23, %v18890_v31 }
0x23c8   :  { %v17092_v18 = vcombine.low %v17067_v1, %v17075_v10  ;;  %v17108_v19 = vcombine.low %v17083_v47, %v17091_v38  ;;  %v17093_v11 = vcombine.high %v17067_v1, %v17075_v10  ;;  %v17109_v48 = vcombine.high %v17083_v47, %v17091_v38 }
0x23c9   :  { %v17057_v52 = vcombine.high %v17032_v22, %v17048_v3  ;;  %v17058_v63 = vcombine.low %v17039_v40, %v17055_v32  ;;  %v17059_v55 = vcombine.high %v17039_v40, %v17055_v32  ;;  %v17056_v17 = vcombine.low %v17032_v22, %v17048_v3 }
0x23ca   :  { %v17100_v6 = vrot.slane %v17092_v18, %v18890_v31  ;;  %v17116_v37 = vrot.slane %v17108_v19, %v18890_v31  ;;  %v17107_v21 = vrot.slane %v17093_v11, %v18890_v31  ;;  %v17123_v62 = vrot.slane %v17109_v48, %v18890_v31 }
0x23cb   :  { %17130 = vrot.lane.b32.xlu0 %v17057_v52, %s18774_s26  ;;  %v4329_v44 = vrot.slane %v19694_v7, %v18888_v24  ;;  %v12945_v31 = vrot.slane %v21217_v51, %v18888_v24  ;;  %v6486_v12 = vrot.slane %v20075_v58, %v18888_v24  ;;  %v15101_v2 = vrot.slane %v21598_v49, %v18888_v24 }
0x23cc   :  { %v17125_v45 = vcombine.high %v17100_v6, %v17116_v37  ;;  %v17126_v28 = vcombine.low %v17107_v21, %v17123_v62  ;;  %v17127_v43 = vcombine.high %v17107_v21, %v17123_v62  ;;  %v17124_v34 = vcombine.low %v17100_v6, %v17116_v37 }
0x23cd   :  { %v8643_v7 = vrot.slane %v20456_v35, %v18888_v24 }
0x23ce   :  { %17132 = vrot.lane.b32.xlu1 %v17125_v45, %s18774_s26 }
0x23cf   :  { %17138 = vrot.lane.b32.xlu0 %v17058_v63, %s18773_s25 }
0x23d2   :  { %17140 = vrot.lane.b32.xlu1 %v17126_v28, %s18773_s25 }
0x23d3   :  { %17146 = vrot.lane.b32.xlu0 %v17059_v55, %s18772_s24 }
0x23d6   :  { %17148 = vrot.lane.b32.xlu1 %v17127_v43, %s18772_s24 }
0x23d7   :  { %4330 = vrot.lane.b32.xlu0 %v4329_v44, %s18771_s23 }
0x23da   :  { %12946 = vrot.lane.b32.xlu1 %v12945_v31, %s18771_s23 }
0x23db   :  { %6487 = vrot.lane.b32.xlu0 %v6486_v12, %s18765_s18 }
0x23de   :  { %15102 = vrot.lane.b32.xlu1 %v15101_v2, %s18765_s18 }
0x23df   :  { %8644 = vrot.lane.b32.xlu0 %v8643_v7, %s18759_s12 }
0x243d   :  { %v17131_v20 = vpop.permute.xlu0 %17130 }
0x243e   :  { %v17152_v30 = vsel %vm1291_vm2, %v17056_v17, %v17131_v20 }
0x2440   :  { %v17133_v57 = vpop.permute.xlu1 %17132 }
0x2441   :  { %v17139_v51 = vpop.permute.xlu0 %17138  ;;  %v17153_v35 = vsel %vm1291_vm2, %v17124_v34, %v17133_v57  ;;  %vm8647_vm2 = vcmask 1042176  }
0x2442   :  { %v17154_v8 = vsel %vm52_vm0, %v17152_v30, %v17139_v51 }
0x2444   :  { %v17141_v58 = vpop.permute.xlu1 %17140 }
0x2445   :  { %v17147_v49 = vpop.permute.xlu0 %17146  ;;  %v17155_v26 = vsel %vm52_vm0, %v17153_v35, %v17141_v58 }
0x2446   :  { %v17156_v4 = vsel %vm2080_vm11, %v17154_v8, %v17147_v49 }
0x2447   :  { %v17166_v53 = vmul.f32 %v17724_v42, %v17156_v4 }
0x2448   :  { %v17149_v25 = vpop.permute.xlu1 %17148 }
0x2449   :  { %v17157_v27 = vsel %vm2080_vm11, %v17155_v26, %v17149_v25  ;;  %v4331_v50 = vpop.permute.xlu0 %4330  ;;  %v17176_v15 = vadd.f32 %v17726_v14, %v17166_v53 }
0x244a   :  { %v17167_v36 = vmul.f32 %v17724_v42, %v17157_v27  ;;  %4334 = vst.msk [vmem:[#allocation2] sm:$0x3] %vm4333_vm13, %v4331_v50 }
0x244b   :  { %v17178_v33 = vmax.f32 %v17176_v15, 0.0 }
0x244c   :  { %v17177_v39 = vadd.f32 %v17726_v14, %v17167_v36  ;;  %v12947_v41 = vpop.permute.xlu1 %12946 }
0x244d   :  { %12949 = vst.msk [vmem:[#allocation2 + $0x2] sm:$0x3] %vm4333_vm13, %v12947_v41  ;;  %v6488_v59 = vpop.permute.xlu0 %6487 }
0x244e   :  { %v17179_v9 = vmax.f32 %v17177_v39, 0.0  ;;  %6491 = vst.msk [vmem:[#allocation2] sm:$0x3] %vm6490_vm3, %v6488_v59 }
0x2450   :  { %v18431_v5 = vpack.c.bf16 %v17179_v9, %v17178_v33  ;;  %v15103_v29 = vpop.permute.xlu1 %15102 }
0x2451   :  { %15105 = vst.msk [vmem:[#allocation2 + $0x2] sm:$0x3] %vm6490_vm3, %v15103_v29  ;;  %v8645_v13 = vpop.permute.xlu0 %8644 }
0x2452   :  { %8648 = vst.msk [vmem:[#allocation2] sm:$0x3] %vm8647_vm2, %v8645_v13  ;;  %18432 = vmatpush3.bf16.msra.mxu1 %v18431_v5 }
0x2455   :  { %18407 = vmatmul.mubr.msk.f32.vlgmr.msra.gmra.mrb[126].mxu1 %vm52_vm0, %v18731_v0 }
0x2528   :  { %v17246_v16 = vpop.f32.mrb[126].mxu1 }
0x2529   :  { %v17257_v56 = vrot.slane %v17246_v16, %v18888_v24  ;;  %v18408_v61 = vpop.f32.mrb[127].mxu1 }
0x252b   :  { %17258 = vrot.lane.b32.xlu1 %v17257_v56, %s18759_s12 }
0x259d   :  { %v17259_v46 = vpop.permute.xlu1 %17258 }
0x259e   :  { %17261 = vst.msk [vmem:[#allocation2 + $0x2] sm:$0x3] %vm8647_vm2, %v17259_v46 }
0x259f   :  { %18743 = shalt.err (!%p18740_p4)
}
0x25a0   :  { %s18744_s19 = scalar_lea.hbm %s21982_s8, 64 }
0x25a1   :  { %p18745_p5 = scmp.ne.s32.totalorder %s21982_s8, %s18744_s19  ;;  %p18748_p6 = scmp.lt.u32.totalorder %s18744_s19, %s21982_s8 }
0x25a3   :  { %p18750_p7 = pnand %p18748_p6, %p18745_p5 }
0x25a5   :  { %18753 = shalt.err (!%p18750_p7)
}
0x25a6   :  { %17271 = dma.vmem_to_hbm [thread:$0]  %s17269_s16, 64, %s21982_s8, [#allocation3]  }
0x25a7   :  { %18754 = dma.done.wait [#allocation3], 64  }
0x25a8   :  { %18755 = vsyncadd [#allocation3], 4294967232 }
0x25a9   :  { %17275 = vsyncpa [#allocation3], 1 }

</bundles_post_ra>
